<compile_context>
chip_gen: v6e
topology: v6e:2x2x1
jax: 0.10.0
libtpu: 0.0.40
codegen_flags: <defaults>
</compile_context>

<pallas_src>
import functools

import jax
import jax.numpy as jnp
from jax import lax
from jax.experimental import pallas as pl
from jax.experimental.pallas import tpu as pltpu

VMEM_SPEC = pl.BlockSpec(memory_space=pltpu.MemorySpace.VMEM)


# -----------------------------------------------------------------------------
# Kernel 1: conv_prologue + QuartzNetBlock (2x TDC) + conv_epilogue (+ ReLUs)
#           + LSTM layer-0 input projection (gate-major).
# -----------------------------------------------------------------------------
def _conv_stack_kernel(x_ref,
                       w_pro_ref, b_pro_ref,
                       dw1_ref, pw1_ref, rpw1_ref, b1c_ref,
                       dw2_ref, pw2_ref, rpw2_ref, b2c_ref,
                       w_ep_ref, b_ep_ref,
                       wih0_ref, bg0_ref,
                       out_ref):
    f32 = jnp.float32
    bf16 = jnp.bfloat16

    W, NW, n_mels = x_ref.shape          # NW = CH * bs windows in this tile
    _, CH, bsz, H = out_ref.shape
    R = W * NW                           # flat rows: time-major blocks of NW

    # (W, NW, n_mels) -> (W*NW, n_mels): leading-dim merge, layout compatible.
    x = x_ref[...].reshape(R, n_mels).astype(bf16)

    def shiftb(a, m):
        # Shift value `a` by m time-blocks (each NW rows), zero fill.
        # shiftb(a, m)[t] == a[t - m]  (per time block).
        d = m * NW
        if d == 0:
            return a
        z = jnp.zeros((abs(d), a.shape[1]), a.dtype)
        if d > 0:
            return jnp.concatenate([z, a[:R - d]], axis=0)
        return jnp.concatenate([a[-d:], z], axis=0)

    # ---- conv_prologue: Conv1d(n_mels, 128, k=3, padding='same') + ReLU ----
    y0 = jnp.dot(x, w_pro_ref[0], preferred_element_type=f32)
    y1 = jnp.dot(x, w_pro_ref[1], preferred_element_type=f32)
    y2 = jnp.dot(x, w_pro_ref[2], preferred_element_type=f32)
    origin = jnp.maximum(y1 + shiftb(y0, 1) + shiftb(y2, -1) + b_pro_ref[...],
                         0.0)                                     # (R, 128) f32
    origin_b = origin.astype(bf16)

    def tdc(inp, dw_ref, pw_ref, rpw_ref, bc_ref):
        # depthwise conv (groups == channels, padding 'same'), pure VPU, f32
        K = dw_ref.shape[0]
        half = K // 2
        dw = dw_ref[...]                                          # (K, C)
        acc = inp * dw[half:half + 1, :]
        for k in range(K):
            if k == half:
                continue
            acc = acc + shiftb(inp, half - k) * dw[k:k + 1, :]
        # pointwise conv + (residual pointwise conv with BN folded) + bias
        y = (jnp.dot(acc.astype(bf16), pw_ref[...], preferred_element_type=f32)
             + jnp.dot(origin_b, rpw_ref[...], preferred_element_type=f32)
             + bc_ref[...])
        return jnp.maximum(y, 0.0)        # dropout == identity at inference

    h1 = tdc(origin, dw1_ref, pw1_ref, rpw1_ref, b1c_ref)         # (R, 64)
    h2 = tdc(h1, dw2_ref, pw2_ref, rpw2_ref, b2c_ref)             # (R, 64)

    # ---- conv_epilogue: Conv1d(64, H, k=W) 'valid' + ReLU -> (NW, H) ----
    h2b = h2.astype(bf16)
    acc = jnp.zeros((NW, H), f32)
    for t in range(W):
        acc = acc + jnp.dot(h2b[t * NW:(t + 1) * NW], w_ep_ref[t],
                            preferred_element_type=f32)
    feat = jnp.maximum(acc + b_ep_ref[...], 0.0).astype(bf16)     # (NW, H)

    # ---- LSTM layer-0 input projection, gate-major, bias (b_ih+b_hh) folded ----
    for g in range(4):
        pg = jnp.dot(feat, wih0_ref[g], preferred_element_type=f32) + bg0_ref[g]
        # rows of pg are ordered (seq_pos, batch); scatter into (CH, bs, H).
        for si in range(CH):
            out_ref[g, si] = pg[si * bsz:(si + 1) * bsz, :]


# -----------------------------------------------------------------------------
# Kernel 2: fused multi-layer LSTM + linear_eou/linear_vad heads
# -----------------------------------------------------------------------------
def _make_lstm_head_kernel(num_layers):
    def kernel(*refs):
        it = iter(refs)
        proj1_ref = next(it)                     # (4, T, bs, H) layer-0 x-proj
        whh_refs = [next(it)]                    # layer 0 recurrent weights
        wih_refs = [None]
        bg_refs = [None]
        for _ in range(1, num_layers):
            wih_refs.append(next(it))            # (4, H, H)
            whh_refs.append(next(it))            # (4, H, H)
            bg_refs.append(next(it))             # (4, 1, H)
        w_head_ref = next(it)                    # (H, 2)
        b_head_ref = next(it)                    # (1, 2)
        out_ref = next(it)                       # (T, bs, 2)
        seq_sc = next(it)                        # (T, bs, H) VMEM scratch
        xproj_sc = next(it)                      # (4, T, bs, H) VMEM scratch

        f32 = jnp.float32
        bf16 = jnp.bfloat16
        T, bsz, H = seq_sc.shape
        unroll = bool(T <= 32)

        def sigmoid(z):
            # exp + approx reciprocal both run on the EUP slot.
            return pl.reciprocal(1.0 + jnp.exp(-z), approx=True)

        def run_layer(l, xp_ref):
            whh_ref = whh_refs[l]
            last = (l == num_layers - 1)

            def step(t, carry):
                h, c = carry
                hb = h.astype(bf16)
                # gate order i, f, g, o; gate-major weights -> no lane slicing
                z = [xp_ref[g, t]
                     + jnp.dot(hb, whh_ref[g], preferred_element_type=f32)
                     for g in range(4)]
                i_g = sigmoid(z[0])
                f_g = sigmoid(z[1])
                g_g = jnp.tanh(z[2])
                o_g = sigmoid(z[3])
                c_new = f_g * c + i_g * g_g
                h_new = o_g * jnp.tanh(c_new)
                if last:
                    out_ref[t] = (jnp.dot(h_new.astype(bf16), w_head_ref[...],
                                          preferred_element_type=f32)
                                  + b_head_ref[...])
                else:
                    seq_sc[t] = h_new
                return h_new, c_new

            zero = jnp.zeros((bsz, H), f32)
            lax.fori_loop(0, T, step, (zero, zero), unroll=unroll)

        # layer 0: input projection was precomputed in the conv kernel
        run_layer(0, proj1_ref)

        # layers >= 1: batched-ish input-projection pass (off the serial path),
        # then the recurrence.
        for l in range(1, num_layers):
            wih_ref = wih_refs[l]
            bg_ref = bg_refs[l]

            def proj_step(t, _, wih_ref=wih_ref, bg_ref=bg_ref):
                xb = seq_sc[t].astype(bf16)
                for g in range(4):
                    xproj_sc[g, t] = (jnp.dot(xb, wih_ref[g],
                                              preferred_element_type=f32)
                                      + bg_ref[g])
                return 0

            lax.fori_loop(0, T, proj_step, 0, unroll=unroll)
            run_layer(l, xproj_sc)

    return kernel


# -----------------------------------------------------------------------------
# Helpers
# -----------------------------------------------------------------------------
def _pick_seq_chunk(seq, bs):
    # Largest divisor of seq with CH*bs rows (<=256, multiple of 8 if possible).
    best = None
    for ch in range(seq, 0, -1):
        if seq % ch:
            continue
        nw = ch * bs
        if nw % 8 == 0 and nw <= 256:
            return ch
        if best is None and (nw % 8 == 0 or ch == seq):
            best = ch
    return best if best is not None else seq


# -----------------------------------------------------------------------------
# Forward wrapper
# -----------------------------------------------------------------------------
@functools.partial(jax.jit, static_argnames=(
    "eou_window_size", "n_mels", "hidden_size", "num_layers"))
def eou_vad_forward(params, x, *, eou_window_size, n_mels, hidden_size,
                    num_layers):
    f32 = jnp.float32
    bf16 = jnp.bfloat16
    W = eou_window_size
    H = hidden_size
    bs, seq = x.shape[:2]

    # ---- fold parameters (tiny XLA ops): BN into resid pwc, all biases ----
    def fold_tdc(i):
        pw_w = params[f"pw{i}_w"]
        s = params[f"rbn{i}_s"]
        tt = params[f"rbn{i}_t"]
        rpw_f = (params[f"rpw{i}_w"] * s).astype(bf16)
        b_comb = (params[f"pw{i}_b"] + params[f"dw{i}_b"] @ pw_w
                  + params[f"rpw{i}_b"] * s + tt).astype(f32)
        return (params[f"dw{i}_w"].astype(f32), pw_w.astype(bf16), rpw_f, b_comb)

    dw1, pw1, rpw1, b1c = fold_tdc(1)
    dw2, pw2, rpw2, b2c = fold_tdc(2)
    w_pro = params["w_pro"].astype(bf16)
    b_pro = params["b_pro"].astype(f32)
    w_ep = params["w_ep"].astype(bf16)
    b_ep = params["b_ep"].astype(f32)
    l0 = params["lstm"][0]
    wih0 = l0["w_ih"].astype(bf16)
    whh0 = l0["w_hh"].astype(bf16)
    bg0 = l0["b"].astype(f32)
    # NOTE: fused (H, 2) head assumes column 0 = eou, column 1 = vad.
    w_head = params["w_head"].astype(bf16)
    b_head = params["b_head"].astype(f32)

    # ---- input layout: (bs, seq, W*n_mels) -> (W, seq*bs, n_mels) ----
    # rows along axis 1 ordered (seq_pos, batch) so the conv output is time-major
    xw = x.reshape(bs, seq, W, n_mels).astype(f32)
    x3 = xw.transpose(2, 1, 0, 3).reshape(W, seq * bs, n_mels)

    CH = _pick_seq_chunk(seq, bs)
    NW = CH * bs

    conv_weights = (w_pro, b_pro, dw1, pw1, rpw1, b1c,
                    dw2, pw2, rpw2, b2c, w_ep, b_ep, wih0, bg0)
    conv_in_specs = [pl.BlockSpec((W, NW, n_mels), lambda c: (0, c, 0))]
    for warr in conv_weights:
        conv_in_specs.append(
            pl.BlockSpec(warr.shape, lambda c, nd=warr.ndim: (0,) * nd))

    proj1 = pl.pallas_call(
        _conv_stack_kernel,
        out_shape=jax.ShapeDtypeStruct((4, seq, bs, H), f32),
        grid=(seq // CH,),
        in_specs=conv_in_specs,
        out_specs=pl.BlockSpec((4, CH, bs, H), lambda c: (0, c, 0, 0)),
        compiler_params=pltpu.CompilerParams(
            dimension_semantics=("parallel",)),
    )(x3, *conv_weights)

    # ---- fused LSTM (all layers, all timesteps) + heads ----
    lstm_args = [proj1, whh0]
    for l in range(1, num_layers):
        lp = params["lstm"][l]
        lstm_args += [lp["w_ih"].astype(bf16), lp["w_hh"].astype(bf16),
                      lp["b"].astype(f32)]
    lstm_args += [w_head, b_head]

    out_tm = pl.pallas_call(
        _make_lstm_head_kernel(num_layers),
        out_shape=jax.ShapeDtypeStruct((seq, bs, 2), f32),
        in_specs=[VMEM_SPEC] * len(lstm_args),
        out_specs=VMEM_SPEC,
        scratch_shapes=[pltpu.VMEM((seq, bs, H), f32),
                        pltpu.VMEM((4, seq, bs, H), f32)],
    )(*lstm_args)

    heads = out_tm.transpose(1, 0, 2)            # (bs, seq, 2)
    eou_predictions = heads[..., 0:1]
    vad_predictions = heads[..., 1:2]
    return eou_predictions, vad_predictions


# -----------------------------------------------------------------------------
# Deterministic parameter initialization (shapes follow the PyTorch __init__)
# -----------------------------------------------------------------------------
def init_params(key, n_mels, hidden_size, num_layers):
    keys = iter(jax.random.split(key, 64 + 8 * num_layers))

    def nrm(shape, scale):
        return (scale * jax.random.normal(next(keys), shape)).astype(jnp.float32)

    def bn_affine(c):
        gamma = 1.0 + 0.1 * jax.random.normal(next(keys), (1, c))
        beta = 0.1 * jax.random.normal(next(keys), (1, c))
        mean = 0.1 * jax.random.normal(next(keys), (1, c))
        var = 1.0 + 0.5 * jax.random.uniform(next(keys), (1, c))
        inv = gamma / jnp.sqrt(var + 1e-5)
        return inv.astype(jnp.float32), (beta - mean * inv).astype(jnp.float32)

    H = hidden_size
    p = {}
    # conv_prologue: Conv1d(n_mels, 128, 3, 'same'), stored as (k, c_in, c_out)
    p["w_pro"] = nrm((3, n_mels, 128), 0.08)
    p["b_pro"] = nrm((1, 128), 0.02)
    # TDC #1: depthwise(128, k=7) + pwc(128->64) + resid_pwc(128->64) + resid_bn
    p["dw1_w"] = nrm((7, 128), 0.10)
    p["dw1_b"] = nrm((1, 128), 0.02)
    p["pw1_w"] = nrm((128, 64), 0.06)
    p["pw1_b"] = nrm((1, 64), 0.02)
    p["rpw1_w"] = nrm((128, 64), 0.06)
    p["rpw1_b"] = nrm((1, 64), 0.02)
    p["rbn1_s"], p["rbn1_t"] = bn_affine(64)
    # TDC #2: depthwise(64, k=7) + pwc(64->64) + resid_pwc(128->64) + resid_bn
    p["dw2_w"] = nrm((7, 64), 0.10)
    p["dw2_b"] = nrm((1, 64), 0.02)
    p["pw2_w"] = nrm((64, 64), 0.08)
    p["pw2_b"] = nrm((1, 64), 0.02)
    p["rpw2_w"] = nrm((128, 64), 0.06)
    p["rpw2_b"] = nrm((1, 64), 0.02)
    p["rbn2_s"], p["rbn2_t"] = bn_affine(64)
    # conv_epilogue: Conv1d(64, H, 10), stored as (k, c_in, c_out)
    p["w_ep"] = nrm((10, 64, H), 0.05)
    p["b_ep"] = nrm((1, H), 0.02)
    # LSTM: gate-major (i, f, g, o) weights, b = b_ih + b_hh
    lstm = []
    for _ in range(num_layers):
        lstm.append({"w_ih": nrm((4, H, H), 0.10),
                     "w_hh": nrm((4, H, H), 0.10),
                     "b": nrm((4, 1, H), 0.02)})
    p["lstm"] = lstm
    # linear_eou / linear_vad (classes_no=1 each), fused into one (H, 2) matmul
    p["w_head"] = nrm((H, 2), 0.10)
    p["b_head"] = nrm((1, 2), 0.02)
    return p


if __name__ == "__main__":
    bs, seq = 2, 8
    eou_window_size, n_mels = 10, 16   # conv_epilogue k=10 requires window == 10
    hidden_size, num_layers = 32, 2
    assert eou_window_size == 10

    key = jax.random.PRNGKey(0)
    pkey, xkey = jax.random.split(key)
    params = init_params(pkey, n_mels, hidden_size, num_layers)
    x = jax.random.normal(
        xkey, (bs, seq, eou_window_size * n_mels), dtype=jnp.float32)

    eou, vad = eou_vad_forward(
        params, x, eou_window_size=eou_window_size, n_mels=n_mels,
        hidden_size=hidden_size, num_layers=num_layers)
    jax.block_until_ready((eou, vad))
    assert eou.shape == (bs, seq, 1) and vad.shape == (bs, seq, 1)
    assert bool(jnp.all(jnp.isfinite(eou))) and bool(jnp.all(jnp.isfinite(vad)))
    print("KERNEL_OK")
</pallas_src>

<mosaic_0001>
module attributes {stable_mosaic.version = 11 : i64} {
  func.func @_conv_stack_kernel(%arg0: i32, %arg1: memref<10x16x16xf32, #tpu.memory_space<vmem>>, %arg2: memref<3x16x128xbf16, #tpu.memory_space<vmem>>, %arg3: memref<1x128xf32, #tpu.memory_space<vmem>>, %arg4: memref<7x128xf32, #tpu.memory_space<vmem>>, %arg5: memref<128x64xbf16, #tpu.memory_space<vmem>>, %arg6: memref<128x64xbf16, #tpu.memory_space<vmem>>, %arg7: memref<1x64xf32, #tpu.memory_space<vmem>>, %arg8: memref<7x64xf32, #tpu.memory_space<vmem>>, %arg9: memref<64x64xbf16, #tpu.memory_space<vmem>>, %arg10: memref<128x64xbf16, #tpu.memory_space<vmem>>, %arg11: memref<1x64xf32, #tpu.memory_space<vmem>>, %arg12: memref<10x64x32xbf16, #tpu.memory_space<vmem>>, %arg13: memref<1x32xf32, #tpu.memory_space<vmem>>, %arg14: memref<4x32x32xbf16, #tpu.memory_space<vmem>>, %arg15: memref<4x1x32xf32, #tpu.memory_space<vmem>>, %arg16: memref<4x8x2x32xf32, #tpu.memory_space<vmem>>) attributes {dimension_semantics = [#tpu.dimension_semantics<parallel>], iteration_bounds = array<i64: 1>, scalar_prefetch = 0 : i64, scratch_operands = 0 : i64, tpu.core_type = #tpu.core_type<tc>, window_params = [{transform_indices = @transform_0, window_bounds = array<i64: 10, 16, 16>}, {pipeline_mode = #tpu.pipeline_mode<synchronous>, transform_indices = @transform_1, window_bounds = array<i64: 3, 16, 128>}, {pipeline_mode = #tpu.pipeline_mode<synchronous>, transform_indices = @transform_2, window_bounds = array<i64: 1, 128>}, {pipeline_mode = #tpu.pipeline_mode<synchronous>, transform_indices = @transform_3, window_bounds = array<i64: 7, 128>}, {pipeline_mode = #tpu.pipeline_mode<synchronous>, transform_indices = @transform_4, window_bounds = array<i64: 128, 64>}, {pipeline_mode = #tpu.pipeline_mode<synchronous>, transform_indices = @transform_5, window_bounds = array<i64: 128, 64>}, {pipeline_mode = #tpu.pipeline_mode<synchronous>, transform_indices = @transform_6, window_bounds = array<i64: 1, 64>}, {pipeline_mode = #tpu.pipeline_mode<synchronous>, transform_indices = @transform_7, window_bounds = array<i64: 7, 64>}, {pipeline_mode = #tpu.pipeline_mode<synchronous>, transform_indices = @transform_8, window_bounds = array<i64: 64, 64>}, {pipeline_mode = #tpu.pipeline_mode<synchronous>, transform_indices = @transform_9, window_bounds = array<i64: 128, 64>}, {pipeline_mode = #tpu.pipeline_mode<synchronous>, transform_indices = @transform_10, window_bounds = array<i64: 1, 64>}, {pipeline_mode = #tpu.pipeline_mode<synchronous>, transform_indices = @transform_11, window_bounds = array<i64: 10, 64, 32>}, {pipeline_mode = #tpu.pipeline_mode<synchronous>, transform_indices = @transform_12, window_bounds = array<i64: 1, 32>}, {pipeline_mode = #tpu.pipeline_mode<synchronous>, transform_indices = @transform_13, window_bounds = array<i64: 4, 32, 32>}, {pipeline_mode = #tpu.pipeline_mode<synchronous>, transform_indices = @transform_14, window_bounds = array<i64: 4, 1, 32>}, {transform_indices = @transform_15, window_bounds = array<i64: 4, 8, 2, 32>}]} {
    %c0 = arith.constant 0 : index
    %c0_0 = arith.constant 0 : index
    %c0_1 = arith.constant 0 : index
    %0 = vector.load %arg1[%c0, %c0_0, %c0_1] : memref<10x16x16xf32, #tpu.memory_space<vmem>>, vector<10x16x16xf32>
    %1 = vector.shape_cast %0 : vector<10x16x16xf32> to vector<160x16xf32>
    %2 = arith.truncf %1 : vector<160x16xf32> to vector<160x16xbf16>
    %c0_2 = arith.constant 0 : index
    %c0_3 = arith.constant 0 : index
    %c0_4 = arith.constant 0 : index
    %3 = vector.load %arg2[%c0_2, %c0_3, %c0_4] : memref<3x16x128xbf16, #tpu.memory_space<vmem>>, vector<1x16x128xbf16>
    %4 = vector.shape_cast %3 : vector<1x16x128xbf16> to vector<16x128xbf16>
    %cst = arith.constant dense<0.000000e+00> : vector<160x128xf32>
    %5 = tpu.matmul %2, %4, %cst {dimension_numbers = #tpu.dot_dimension_numbers<[1], [0], [0], [1], [0, 0, 1, 1], [], []>} : vector<160x16xbf16>, vector<16x128xbf16>, vector<160x128xf32> -> vector<160x128xf32>
    %c1 = arith.constant 1 : index
    %c0_5 = arith.constant 0 : index
    %c0_6 = arith.constant 0 : index
    %6 = vector.load %arg2[%c1, %c0_5, %c0_6] : memref<3x16x128xbf16, #tpu.memory_space<vmem>>, vector<1x16x128xbf16>
    %7 = vector.shape_cast %6 : vector<1x16x128xbf16> to vector<16x128xbf16>
    %cst_7 = arith.constant dense<0.000000e+00> : vector<160x128xf32>
    %8 = tpu.matmul %2, %7, %cst_7 {dimension_numbers = #tpu.dot_dimension_numbers<[1], [0], [0], [1], [0, 0, 1, 1], [], []>} : vector<160x16xbf16>, vector<16x128xbf16>, vector<160x128xf32> -> vector<160x128xf32>
    %c2 = arith.constant 2 : index
    %c0_8 = arith.constant 0 : index
    %c0_9 = arith.constant 0 : index
    %9 = vector.load %arg2[%c2, %c0_8, %c0_9] : memref<3x16x128xbf16, #tpu.memory_space<vmem>>, vector<1x16x128xbf16>
    %10 = vector.shape_cast %9 : vector<1x16x128xbf16> to vector<16x128xbf16>
    %cst_10 = arith.constant dense<0.000000e+00> : vector<160x128xf32>
    %11 = tpu.matmul %2, %10, %cst_10 {dimension_numbers = #tpu.dot_dimension_numbers<[1], [0], [0], [1], [0, 0, 1, 1], [], []>} : vector<160x16xbf16>, vector<16x128xbf16>, vector<160x128xf32> -> vector<160x128xf32>
    %cst_11 = arith.constant 0.000000e+00 : f32
    %12 = vector.broadcast %cst_11 : f32 to vector<16x128xf32>
    %13 = vector.extract_strided_slice %5 {offsets = [0, 0], sizes = [144, 128], strides = [1, 1]} : vector<160x128xf32> to vector<144x128xf32>
    %14 = tpu.concatenate %12, %13 in 0 : vector<16x128xf32>, vector<144x128xf32> -> vector<160x128xf32>
    %15 = arith.addf %8, %14 : vector<160x128xf32>
    %cst_12 = arith.constant 0.000000e+00 : f32
    %16 = vector.broadcast %cst_12 : f32 to vector<16x128xf32>
    %17 = vector.extract_strided_slice %11 {offsets = [16, 0], sizes = [144, 128], strides = [1, 1]} : vector<160x128xf32> to vector<144x128xf32>
    %18 = tpu.concatenate %17, %16 in 0 : vector<144x128xf32>, vector<16x128xf32> -> vector<160x128xf32>
    %19 = arith.addf %15, %18 : vector<160x128xf32>
    %c0_13 = arith.constant 0 : index
    %c0_14 = arith.constant 0 : index
    %20 = vector.load %arg3[%c0_13, %c0_14] : memref<1x128xf32, #tpu.memory_space<vmem>>, vector<1x128xf32>
    %21 = vector.broadcast %20 : vector<1x128xf32> to vector<160x128xf32>
    %22 = arith.addf %19, %21 : vector<160x128xf32>
    %cst_15 = arith.constant 0.000000e+00 : f32
    %23 = vector.broadcast %cst_15 : f32 to vector<160x128xf32>
    %24 = arith.maximumf %22, %23 : vector<160x128xf32>
    %25 = arith.truncf %24 : vector<160x128xf32> to vector<160x128xbf16>
    %c0_16 = arith.constant 0 : index
    %c0_17 = arith.constant 0 : index
    %26 = vector.load %arg4[%c0_16, %c0_17] : memref<7x128xf32, #tpu.memory_space<vmem>>, vector<7x128xf32>
    %27 = vector.extract_strided_slice %26 {offsets = [3, 0], sizes = [1, 128], strides = [1, 1]} : vector<7x128xf32> to vector<1x128xf32>
    %28 = vector.broadcast %27 : vector<1x128xf32> to vector<160x128xf32>
    %29 = arith.mulf %24, %28 : vector<160x128xf32>
    %cst_18 = arith.constant 0.000000e+00 : f32
    %30 = vector.broadcast %cst_18 : f32 to vector<48x128xf32>
    %31 = vector.extract_strided_slice %24 {offsets = [0, 0], sizes = [112, 128], strides = [1, 1]} : vector<160x128xf32> to vector<112x128xf32>
    %32 = tpu.concatenate %30, %31 in 0 : vector<48x128xf32>, vector<112x128xf32> -> vector<160x128xf32>
    %33 = vector.extract_strided_slice %26 {offsets = [0, 0], sizes = [1, 128], strides = [1, 1]} : vector<7x128xf32> to vector<1x128xf32>
    %34 = vector.broadcast %33 : vector<1x128xf32> to vector<160x128xf32>
    %35 = arith.mulf %32, %34 : vector<160x128xf32>
    %36 = arith.addf %29, %35 : vector<160x128xf32>
    %cst_19 = arith.constant 0.000000e+00 : f32
    %37 = vector.broadcast %cst_19 : f32 to vector<32x128xf32>
    %38 = vector.extract_strided_slice %24 {offsets = [0, 0], sizes = [128, 128], strides = [1, 1]} : vector<160x128xf32> to vector<128x128xf32>
    %39 = tpu.concatenate %37, %38 in 0 : vector<32x128xf32>, vector<128x128xf32> -> vector<160x128xf32>
    %40 = vector.extract_strided_slice %26 {offsets = [1, 0], sizes = [1, 128], strides = [1, 1]} : vector<7x128xf32> to vector<1x128xf32>
    %41 = vector.broadcast %40 : vector<1x128xf32> to vector<160x128xf32>
    %42 = arith.mulf %39, %41 : vector<160x128xf32>
    %43 = arith.addf %36, %42 : vector<160x128xf32>
    %cst_20 = arith.constant 0.000000e+00 : f32
    %44 = vector.broadcast %cst_20 : f32 to vector<16x128xf32>
    %45 = vector.extract_strided_slice %24 {offsets = [0, 0], sizes = [144, 128], strides = [1, 1]} : vector<160x128xf32> to vector<144x128xf32>
    %46 = tpu.concatenate %44, %45 in 0 : vector<16x128xf32>, vector<144x128xf32> -> vector<160x128xf32>
    %47 = vector.extract_strided_slice %26 {offsets = [2, 0], sizes = [1, 128], strides = [1, 1]} : vector<7x128xf32> to vector<1x128xf32>
    %48 = vector.broadcast %47 : vector<1x128xf32> to vector<160x128xf32>
    %49 = arith.mulf %46, %48 : vector<160x128xf32>
    %50 = arith.addf %43, %49 : vector<160x128xf32>
    %cst_21 = arith.constant 0.000000e+00 : f32
    %51 = vector.broadcast %cst_21 : f32 to vector<16x128xf32>
    %52 = vector.extract_strided_slice %24 {offsets = [16, 0], sizes = [144, 128], strides = [1, 1]} : vector<160x128xf32> to vector<144x128xf32>
    %53 = tpu.concatenate %52, %51 in 0 : vector<144x128xf32>, vector<16x128xf32> -> vector<160x128xf32>
    %54 = vector.extract_strided_slice %26 {offsets = [4, 0], sizes = [1, 128], strides = [1, 1]} : vector<7x128xf32> to vector<1x128xf32>
    %55 = vector.broadcast %54 : vector<1x128xf32> to vector<160x128xf32>
    %56 = arith.mulf %53, %55 : vector<160x128xf32>
    %57 = arith.addf %50, %56 : vector<160x128xf32>
    %cst_22 = arith.constant 0.000000e+00 : f32
    %58 = vector.broadcast %cst_22 : f32 to vector<32x128xf32>
    %59 = vector.extract_strided_slice %24 {offsets = [32, 0], sizes = [128, 128], strides = [1, 1]} : vector<160x128xf32> to vector<128x128xf32>
    %60 = tpu.concatenate %59, %58 in 0 : vector<128x128xf32>, vector<32x128xf32> -> vector<160x128xf32>
    %61 = vector.extract_strided_slice %26 {offsets = [5, 0], sizes = [1, 128], strides = [1, 1]} : vector<7x128xf32> to vector<1x128xf32>
    %62 = vector.broadcast %61 : vector<1x128xf32> to vector<160x128xf32>
    %63 = arith.mulf %60, %62 : vector<160x128xf32>
    %64 = arith.addf %57, %63 : vector<160x128xf32>
    %cst_23 = arith.constant 0.000000e+00 : f32
    %65 = vector.broadcast %cst_23 : f32 to vector<48x128xf32>
    %66 = vector.extract_strided_slice %24 {offsets = [48, 0], sizes = [112, 128], strides = [1, 1]} : vector<160x128xf32> to vector<112x128xf32>
    %67 = tpu.concatenate %66, %65 in 0 : vector<112x128xf32>, vector<48x128xf32> -> vector<160x128xf32>
    %68 = vector.extract_strided_slice %26 {offsets = [6, 0], sizes = [1, 128], strides = [1, 1]} : vector<7x128xf32> to vector<1x128xf32>
    %69 = vector.broadcast %68 : vector<1x128xf32> to vector<160x128xf32>
    %70 = arith.mulf %67, %69 : vector<160x128xf32>
    %71 = arith.addf %64, %70 : vector<160x128xf32>
    %72 = arith.truncf %71 : vector<160x128xf32> to vector<160x128xbf16>
    %c0_24 = arith.constant 0 : index
    %c0_25 = arith.constant 0 : index
    %73 = vector.load %arg5[%c0_24, %c0_25] : memref<128x64xbf16, #tpu.memory_space<vmem>>, vector<128x64xbf16>
    %cst_26 = arith.constant dense<0.000000e+00> : vector<160x64xf32>
    %74 = tpu.matmul %72, %73, %cst_26 {dimension_numbers = #tpu.dot_dimension_numbers<[1], [0], [0], [1], [0, 0, 1, 1], [], []>} : vector<160x128xbf16>, vector<128x64xbf16>, vector<160x64xf32> -> vector<160x64xf32>
    %c0_27 = arith.constant 0 : index
    %c0_28 = arith.constant 0 : index
    %75 = vector.load %arg6[%c0_27, %c0_28] : memref<128x64xbf16, #tpu.memory_space<vmem>>, vector<128x64xbf16>
    %cst_29 = arith.constant dense<0.000000e+00> : vector<160x64xf32>
    %76 = tpu.matmul %25, %75, %cst_29 {dimension_numbers = #tpu.dot_dimension_numbers<[1], [0], [0], [1], [0, 0, 1, 1], [], []>} : vector<160x128xbf16>, vector<128x64xbf16>, vector<160x64xf32> -> vector<160x64xf32>
    %77 = arith.addf %74, %76 : vector<160x64xf32>
    %c0_30 = arith.constant 0 : index
    %c0_31 = arith.constant 0 : index
    %78 = vector.load %arg7[%c0_30, %c0_31] : memref<1x64xf32, #tpu.memory_space<vmem>>, vector<1x64xf32>
    %79 = vector.broadcast %78 : vector<1x64xf32> to vector<160x64xf32>
    %80 = arith.addf %77, %79 : vector<160x64xf32>
    %cst_32 = arith.constant 0.000000e+00 : f32
    %81 = vector.broadcast %cst_32 : f32 to vector<160x64xf32>
    %82 = arith.maximumf %80, %81 : vector<160x64xf32>
    %c0_33 = arith.constant 0 : index
    %c0_34 = arith.constant 0 : index
    %83 = vector.load %arg8[%c0_33, %c0_34] : memref<7x64xf32, #tpu.memory_space<vmem>>, vector<7x64xf32>
    %84 = vector.extract_strided_slice %83 {offsets = [3, 0], sizes = [1, 64], strides = [1, 1]} : vector<7x64xf32> to vector<1x64xf32>
    %85 = vector.broadcast %84 : vector<1x64xf32> to vector<160x64xf32>
    %86 = arith.mulf %82, %85 : vector<160x64xf32>
    %cst_35 = arith.constant 0.000000e+00 : f32
    %87 = vector.broadcast %cst_35 : f32 to vector<48x64xf32>
    %88 = vector.extract_strided_slice %82 {offsets = [0, 0], sizes = [112, 64], strides = [1, 1]} : vector<160x64xf32> to vector<112x64xf32>
    %89 = tpu.concatenate %87, %88 in 0 : vector<48x64xf32>, vector<112x64xf32> -> vector<160x64xf32>
    %90 = vector.extract_strided_slice %83 {offsets = [0, 0], sizes = [1, 64], strides = [1, 1]} : vector<7x64xf32> to vector<1x64xf32>
    %91 = vector.broadcast %90 : vector<1x64xf32> to vector<160x64xf32>
    %92 = arith.mulf %89, %91 : vector<160x64xf32>
    %93 = arith.addf %86, %92 : vector<160x64xf32>
    %cst_36 = arith.constant 0.000000e+00 : f32
    %94 = vector.broadcast %cst_36 : f32 to vector<32x64xf32>
    %95 = vector.extract_strided_slice %82 {offsets = [0, 0], sizes = [128, 64], strides = [1, 1]} : vector<160x64xf32> to vector<128x64xf32>
    %96 = tpu.concatenate %94, %95 in 0 : vector<32x64xf32>, vector<128x64xf32> -> vector<160x64xf32>
    %97 = vector.extract_strided_slice %83 {offsets = [1, 0], sizes = [1, 64], strides = [1, 1]} : vector<7x64xf32> to vector<1x64xf32>
    %98 = vector.broadcast %97 : vector<1x64xf32> to vector<160x64xf32>
    %99 = arith.mulf %96, %98 : vector<160x64xf32>
    %100 = arith.addf %93, %99 : vector<160x64xf32>
    %cst_37 = arith.constant 0.000000e+00 : f32
    %101 = vector.broadcast %cst_37 : f32 to vector<16x64xf32>
    %102 = vector.extract_strided_slice %82 {offsets = [0, 0], sizes = [144, 64], strides = [1, 1]} : vector<160x64xf32> to vector<144x64xf32>
    %103 = tpu.concatenate %101, %102 in 0 : vector<16x64xf32>, vector<144x64xf32> -> vector<160x64xf32>
    %104 = vector.extract_strided_slice %83 {offsets = [2, 0], sizes = [1, 64], strides = [1, 1]} : vector<7x64xf32> to vector<1x64xf32>
    %105 = vector.broadcast %104 : vector<1x64xf32> to vector<160x64xf32>
    %106 = arith.mulf %103, %105 : vector<160x64xf32>
    %107 = arith.addf %100, %106 : vector<160x64xf32>
    %cst_38 = arith.constant 0.000000e+00 : f32
    %108 = vector.broadcast %cst_38 : f32 to vector<16x64xf32>
    %109 = vector.extract_strided_slice %82 {offsets = [16, 0], sizes = [144, 64], strides = [1, 1]} : vector<160x64xf32> to vector<144x64xf32>
    %110 = tpu.concatenate %109, %108 in 0 : vector<144x64xf32>, vector<16x64xf32> -> vector<160x64xf32>
    %111 = vector.extract_strided_slice %83 {offsets = [4, 0], sizes = [1, 64], strides = [1, 1]} : vector<7x64xf32> to vector<1x64xf32>
    %112 = vector.broadcast %111 : vector<1x64xf32> to vector<160x64xf32>
    %113 = arith.mulf %110, %112 : vector<160x64xf32>
    %114 = arith.addf %107, %113 : vector<160x64xf32>
    %cst_39 = arith.constant 0.000000e+00 : f32
    %115 = vector.broadcast %cst_39 : f32 to vector<32x64xf32>
    %116 = vector.extract_strided_slice %82 {offsets = [32, 0], sizes = [128, 64], strides = [1, 1]} : vector<160x64xf32> to vector<128x64xf32>
    %117 = tpu.concatenate %116, %115 in 0 : vector<128x64xf32>, vector<32x64xf32> -> vector<160x64xf32>
    %118 = vector.extract_strided_slice %83 {offsets = [5, 0], sizes = [1, 64], strides = [1, 1]} : vector<7x64xf32> to vector<1x64xf32>
    %119 = vector.broadcast %118 : vector<1x64xf32> to vector<160x64xf32>
    %120 = arith.mulf %117, %119 : vector<160x64xf32>
    %121 = arith.addf %114, %120 : vector<160x64xf32>
    %cst_40 = arith.constant 0.000000e+00 : f32
    %122 = vector.broadcast %cst_40 : f32 to vector<48x64xf32>
    %123 = vector.extract_strided_slice %82 {offsets = [48, 0], sizes = [112, 64], strides = [1, 1]} : vector<160x64xf32> to vector<112x64xf32>
    %124 = tpu.concatenate %123, %122 in 0 : vector<112x64xf32>, vector<48x64xf32> -> vector<160x64xf32>
    %125 = vector.extract_strided_slice %83 {offsets = [6, 0], sizes = [1, 64], strides = [1, 1]} : vector<7x64xf32> to vector<1x64xf32>
    %126 = vector.broadcast %125 : vector<1x64xf32> to vector<160x64xf32>
    %127 = arith.mulf %124, %126 : vector<160x64xf32>
    %128 = arith.addf %121, %127 : vector<160x64xf32>
    %129 = arith.truncf %128 : vector<160x64xf32> to vector<160x64xbf16>
    %c0_41 = arith.constant 0 : index
    %c0_42 = arith.constant 0 : index
    %130 = vector.load %arg9[%c0_41, %c0_42] : memref<64x64xbf16, #tpu.memory_space<vmem>>, vector<64x64xbf16>
    %cst_43 = arith.constant dense<0.000000e+00> : vector<160x64xf32>
    %131 = tpu.matmul %129, %130, %cst_43 {dimension_numbers = #tpu.dot_dimension_numbers<[1], [0], [0], [1], [0, 0, 1, 1], [], []>} : vector<160x64xbf16>, vector<64x64xbf16>, vector<160x64xf32> -> vector<160x64xf32>
    %c0_44 = arith.constant 0 : index
    %c0_45 = arith.constant 0 : index
    %132 = vector.load %arg10[%c0_44, %c0_45] : memref<128x64xbf16, #tpu.memory_space<vmem>>, vector<128x64xbf16>
    %cst_46 = arith.constant dense<0.000000e+00> : vector<160x64xf32>
    %133 = tpu.matmul %25, %132, %cst_46 {dimension_numbers = #tpu.dot_dimension_numbers<[1], [0], [0], [1], [0, 0, 1, 1], [], []>} : vector<160x128xbf16>, vector<128x64xbf16>, vector<160x64xf32> -> vector<160x64xf32>
    %134 = arith.addf %131, %133 : vector<160x64xf32>
    %c0_47 = arith.constant 0 : index
    %c0_48 = arith.constant 0 : index
    %135 = vector.load %arg11[%c0_47, %c0_48] : memref<1x64xf32, #tpu.memory_space<vmem>>, vector<1x64xf32>
    %136 = vector.broadcast %135 : vector<1x64xf32> to vector<160x64xf32>
    %137 = arith.addf %134, %136 : vector<160x64xf32>
    %cst_49 = arith.constant 0.000000e+00 : f32
    %138 = vector.broadcast %cst_49 : f32 to vector<160x64xf32>
    %139 = arith.maximumf %137, %138 : vector<160x64xf32>
    %140 = arith.truncf %139 : vector<160x64xf32> to vector<160x64xbf16>
    %cst_50 = arith.constant 0.000000e+00 : f32
    %141 = vector.broadcast %cst_50 : f32 to vector<16x32xf32>
    %142 = vector.extract_strided_slice %140 {offsets = [0, 0], sizes = [16, 64], strides = [1, 1]} : vector<160x64xbf16> to vector<16x64xbf16>
    %c0_51 = arith.constant 0 : index
    %c0_52 = arith.constant 0 : index
    %c0_53 = arith.constant 0 : index
    %143 = vector.load %arg12[%c0_51, %c0_52, %c0_53] : memref<10x64x32xbf16, #tpu.memory_space<vmem>>, vector<1x64x32xbf16>
    %144 = vector.shape_cast %143 : vector<1x64x32xbf16> to vector<64x32xbf16>
    %cst_54 = arith.constant dense<0.000000e+00> : vector<16x32xf32>
    %145 = tpu.matmul %142, %144, %cst_54 {dimension_numbers = #tpu.dot_dimension_numbers<[1], [0], [0], [1], [0, 0, 1, 1], [], []>} : vector<16x64xbf16>, vector<64x32xbf16>, vector<16x32xf32> -> vector<16x32xf32>
    %146 = arith.addf %141, %145 : vector<16x32xf32>
    %147 = vector.extract_strided_slice %140 {offsets = [16, 0], sizes = [16, 64], strides = [1, 1]} : vector<160x64xbf16> to vector<16x64xbf16>
    %c1_55 = arith.constant 1 : index
    %c0_56 = arith.constant 0 : index
    %c0_57 = arith.constant 0 : index
    %148 = vector.load %arg12[%c1_55, %c0_56, %c0_57] : memref<10x64x32xbf16, #tpu.memory_space<vmem>>, vector<1x64x32xbf16>
    %149 = vector.shape_cast %148 : vector<1x64x32xbf16> to vector<64x32xbf16>
    %cst_58 = arith.constant dense<0.000000e+00> : vector<16x32xf32>
    %150 = tpu.matmul %147, %149, %cst_58 {dimension_numbers = #tpu.dot_dimension_numbers<[1], [0], [0], [1], [0, 0, 1, 1], [], []>} : vector<16x64xbf16>, vector<64x32xbf16>, vector<16x32xf32> -> vector<16x32xf32>
    %151 = arith.addf %146, %150 : vector<16x32xf32>
    %152 = vector.extract_strided_slice %140 {offsets = [32, 0], sizes = [16, 64], strides = [1, 1]} : vector<160x64xbf16> to vector<16x64xbf16>
    %c2_59 = arith.constant 2 : index
    %c0_60 = arith.constant 0 : index
    %c0_61 = arith.constant 0 : index
    %153 = vector.load %arg12[%c2_59, %c0_60, %c0_61] : memref<10x64x32xbf16, #tpu.memory_space<vmem>>, vector<1x64x32xbf16>
    %154 = vector.shape_cast %153 : vector<1x64x32xbf16> to vector<64x32xbf16>
    %cst_62 = arith.constant dense<0.000000e+00> : vector<16x32xf32>
    %155 = tpu.matmul %152, %154, %cst_62 {dimension_numbers = #tpu.dot_dimension_numbers<[1], [0], [0], [1], [0, 0, 1, 1], [], []>} : vector<16x64xbf16>, vector<64x32xbf16>, vector<16x32xf32> -> vector<16x32xf32>
    %156 = arith.addf %151, %155 : vector<16x32xf32>
    %157 = vector.extract_strided_slice %140 {offsets = [48, 0], sizes = [16, 64], strides = [1, 1]} : vector<160x64xbf16> to vector<16x64xbf16>
    %c3 = arith.constant 3 : index
    %c0_63 = arith.constant 0 : index
    %c0_64 = arith.constant 0 : index
    %158 = vector.load %arg12[%c3, %c0_63, %c0_64] : memref<10x64x32xbf16, #tpu.memory_space<vmem>>, vector<1x64x32xbf16>
    %159 = vector.shape_cast %158 : vector<1x64x32xbf16> to vector<64x32xbf16>
    %cst_65 = arith.constant dense<0.000000e+00> : vector<16x32xf32>
    %160 = tpu.matmul %157, %159, %cst_65 {dimension_numbers = #tpu.dot_dimension_numbers<[1], [0], [0], [1], [0, 0, 1, 1], [], []>} : vector<16x64xbf16>, vector<64x32xbf16>, vector<16x32xf32> -> vector<16x32xf32>
    %161 = arith.addf %156, %160 : vector<16x32xf32>
    %162 = vector.extract_strided_slice %140 {offsets = [64, 0], sizes = [16, 64], strides = [1, 1]} : vector<160x64xbf16> to vector<16x64xbf16>
    %c4 = arith.constant 4 : index
    %c0_66 = arith.constant 0 : index
    %c0_67 = arith.constant 0 : index
    %163 = vector.load %arg12[%c4, %c0_66, %c0_67] : memref<10x64x32xbf16, #tpu.memory_space<vmem>>, vector<1x64x32xbf16>
    %164 = vector.shape_cast %163 : vector<1x64x32xbf16> to vector<64x32xbf16>
    %cst_68 = arith.constant dense<0.000000e+00> : vector<16x32xf32>
    %165 = tpu.matmul %162, %164, %cst_68 {dimension_numbers = #tpu.dot_dimension_numbers<[1], [0], [0], [1], [0, 0, 1, 1], [], []>} : vector<16x64xbf16>, vector<64x32xbf16>, vector<16x32xf32> -> vector<16x32xf32>
    %166 = arith.addf %161, %165 : vector<16x32xf32>
    %167 = vector.extract_strided_slice %140 {offsets = [80, 0], sizes = [16, 64], strides = [1, 1]} : vector<160x64xbf16> to vector<16x64xbf16>
    %c5 = arith.constant 5 : index
    %c0_69 = arith.constant 0 : index
    %c0_70 = arith.constant 0 : index
    %168 = vector.load %arg12[%c5, %c0_69, %c0_70] : memref<10x64x32xbf16, #tpu.memory_space<vmem>>, vector<1x64x32xbf16>
    %169 = vector.shape_cast %168 : vector<1x64x32xbf16> to vector<64x32xbf16>
    %cst_71 = arith.constant dense<0.000000e+00> : vector<16x32xf32>
    %170 = tpu.matmul %167, %169, %cst_71 {dimension_numbers = #tpu.dot_dimension_numbers<[1], [0], [0], [1], [0, 0, 1, 1], [], []>} : vector<16x64xbf16>, vector<64x32xbf16>, vector<16x32xf32> -> vector<16x32xf32>
    %171 = arith.addf %166, %170 : vector<16x32xf32>
    %172 = vector.extract_strided_slice %140 {offsets = [96, 0], sizes = [16, 64], strides = [1, 1]} : vector<160x64xbf16> to vector<16x64xbf16>
    %c6 = arith.constant 6 : index
    %c0_72 = arith.constant 0 : index
    %c0_73 = arith.constant 0 : index
    %173 = vector.load %arg12[%c6, %c0_72, %c0_73] : memref<10x64x32xbf16, #tpu.memory_space<vmem>>, vector<1x64x32xbf16>
    %174 = vector.shape_cast %173 : vector<1x64x32xbf16> to vector<64x32xbf16>
    %cst_74 = arith.constant dense<0.000000e+00> : vector<16x32xf32>
    %175 = tpu.matmul %172, %174, %cst_74 {dimension_numbers = #tpu.dot_dimension_numbers<[1], [0], [0], [1], [0, 0, 1, 1], [], []>} : vector<16x64xbf16>, vector<64x32xbf16>, vector<16x32xf32> -> vector<16x32xf32>
    %176 = arith.addf %171, %175 : vector<16x32xf32>
    %177 = vector.extract_strided_slice %140 {offsets = [112, 0], sizes = [16, 64], strides = [1, 1]} : vector<160x64xbf16> to vector<16x64xbf16>
    %c7 = arith.constant 7 : index
    %c0_75 = arith.constant 0 : index
    %c0_76 = arith.constant 0 : index
    %178 = vector.load %arg12[%c7, %c0_75, %c0_76] : memref<10x64x32xbf16, #tpu.memory_space<vmem>>, vector<1x64x32xbf16>
    %179 = vector.shape_cast %178 : vector<1x64x32xbf16> to vector<64x32xbf16>
    %cst_77 = arith.constant dense<0.000000e+00> : vector<16x32xf32>
    %180 = tpu.matmul %177, %179, %cst_77 {dimension_numbers = #tpu.dot_dimension_numbers<[1], [0], [0], [1], [0, 0, 1, 1], [], []>} : vector<16x64xbf16>, vector<64x32xbf16>, vector<16x32xf32> -> vector<16x32xf32>
    %181 = arith.addf %176, %180 : vector<16x32xf32>
    %182 = vector.extract_strided_slice %140 {offsets = [128, 0], sizes = [16, 64], strides = [1, 1]} : vector<160x64xbf16> to vector<16x64xbf16>
    %c8 = arith.constant 8 : index
    %c0_78 = arith.constant 0 : index
    %c0_79 = arith.constant 0 : index
    %183 = vector.load %arg12[%c8, %c0_78, %c0_79] : memref<10x64x32xbf16, #tpu.memory_space<vmem>>, vector<1x64x32xbf16>
    %184 = vector.shape_cast %183 : vector<1x64x32xbf16> to vector<64x32xbf16>
    %cst_80 = arith.constant dense<0.000000e+00> : vector<16x32xf32>
    %185 = tpu.matmul %182, %184, %cst_80 {dimension_numbers = #tpu.dot_dimension_numbers<[1], [0], [0], [1], [0, 0, 1, 1], [], []>} : vector<16x64xbf16>, vector<64x32xbf16>, vector<16x32xf32> -> vector<16x32xf32>
    %186 = arith.addf %181, %185 : vector<16x32xf32>
    %187 = vector.extract_strided_slice %140 {offsets = [144, 0], sizes = [16, 64], strides = [1, 1]} : vector<160x64xbf16> to vector<16x64xbf16>
    %c9 = arith.constant 9 : index
    %c0_81 = arith.constant 0 : index
    %c0_82 = arith.constant 0 : index
    %188 = vector.load %arg12[%c9, %c0_81, %c0_82] : memref<10x64x32xbf16, #tpu.memory_space<vmem>>, vector<1x64x32xbf16>
    %189 = vector.shape_cast %188 : vector<1x64x32xbf16> to vector<64x32xbf16>
    %cst_83 = arith.constant dense<0.000000e+00> : vector<16x32xf32>
    %190 = tpu.matmul %187, %189, %cst_83 {dimension_numbers = #tpu.dot_dimension_numbers<[1], [0], [0], [1], [0, 0, 1, 1], [], []>} : vector<16x64xbf16>, vector<64x32xbf16>, vector<16x32xf32> -> vector<16x32xf32>
    %191 = arith.addf %186, %190 : vector<16x32xf32>
    %c0_84 = arith.constant 0 : index
    %c0_85 = arith.constant 0 : index
    %192 = vector.load %arg13[%c0_84, %c0_85] : memref<1x32xf32, #tpu.memory_space<vmem>>, vector<1x32xf32>
    %193 = vector.broadcast %192 : vector<1x32xf32> to vector<16x32xf32>
    %194 = arith.addf %191, %193 : vector<16x32xf32>
    %cst_86 = arith.constant 0.000000e+00 : f32
    %195 = vector.broadcast %cst_86 : f32 to vector<16x32xf32>
    %196 = arith.maximumf %194, %195 : vector<16x32xf32>
    %197 = arith.truncf %196 : vector<16x32xf32> to vector<16x32xbf16>
    %c0_87 = arith.constant 0 : index
    %c0_88 = arith.constant 0 : index
    %c0_89 = arith.constant 0 : index
    %198 = vector.load %arg14[%c0_87, %c0_88, %c0_89] : memref<4x32x32xbf16, #tpu.memory_space<vmem>>, vector<1x32x32xbf16>
    %199 = vector.shape_cast %198 : vector<1x32x32xbf16> to vector<32x32xbf16>
    %cst_90 = arith.constant dense<0.000000e+00> : vector<16x32xf32>
    %200 = tpu.matmul %197, %199, %cst_90 {dimension_numbers = #tpu.dot_dimension_numbers<[1], [0], [0], [1], [0, 0, 1, 1], [], []>} : vector<16x32xbf16>, vector<32x32xbf16>, vector<16x32xf32> -> vector<16x32xf32>
    %c0_91 = arith.constant 0 : index
    %c0_92 = arith.constant 0 : index
    %c0_93 = arith.constant 0 : index
    %201 = vector.load %arg15[%c0_91, %c0_92, %c0_93] : memref<4x1x32xf32, #tpu.memory_space<vmem>>, vector<1x1x32xf32>
    %202 = vector.shape_cast %201 : vector<1x1x32xf32> to vector<1x32xf32>
    %203 = vector.broadcast %202 : vector<1x32xf32> to vector<16x32xf32>
    %204 = arith.addf %200, %203 : vector<16x32xf32>
    %205 = vector.extract_strided_slice %204 {offsets = [0, 0], sizes = [2, 32], strides = [1, 1]} : vector<16x32xf32> to vector<2x32xf32>
    %c0_94 = arith.constant 0 : index
    %c0_95 = arith.constant 0 : index
    %c0_96 = arith.constant 0 : index
    %c0_97 = arith.constant 0 : index
    %206 = vector.load %arg16[%c0_94, %c0_95, %c0_96, %c0_97] : memref<4x8x2x32xf32, #tpu.memory_space<vmem>>, vector<1x1x2x32xf32>
    %207 = vector.shape_cast %206 : vector<1x1x2x32xf32> to vector<2x32xf32>
    %208 = vector.shape_cast %205 : vector<2x32xf32> to vector<1x1x2x32xf32>
    tpu.vector_store %arg16[%c0_94, %c0_95, %c0_96, %c0_97], %208 {strides = array<i32>} : memref<4x8x2x32xf32, #tpu.memory_space<vmem>>, vector<1x1x2x32xf32>,
    %209 = vector.extract_strided_slice %204 {offsets = [2, 0], sizes = [2, 32], strides = [1, 1]} : vector<16x32xf32> to vector<2x32xf32>
    %c0_98 = arith.constant 0 : index
    %c1_99 = arith.constant 1 : index
    %c0_100 = arith.constant 0 : index
    %c0_101 = arith.constant 0 : index
    %210 = vector.load %arg16[%c0_98, %c1_99, %c0_100, %c0_101] : memref<4x8x2x32xf32, #tpu.memory_space<vmem>>, vector<1x1x2x32xf32>
    %211 = vector.shape_cast %210 : vector<1x1x2x32xf32> to vector<2x32xf32>
    %212 = vector.shape_cast %209 : vector<2x32xf32> to vector<1x1x2x32xf32>
    tpu.vector_store %arg16[%c0_98, %c1_99, %c0_100, %c0_101], %212 {strides = array<i32>} : memref<4x8x2x32xf32, #tpu.memory_space<vmem>>, vector<1x1x2x32xf32>,
    %213 = vector.extract_strided_slice %204 {offsets = [4, 0], sizes = [2, 32], strides = [1, 1]} : vector<16x32xf32> to vector<2x32xf32>
    %c0_102 = arith.constant 0 : index
    %c2_103 = arith.constant 2 : index
    %c0_104 = arith.constant 0 : index
    %c0_105 = arith.constant 0 : index
    %214 = vector.load %arg16[%c0_102, %c2_103, %c0_104, %c0_105] : memref<4x8x2x32xf32, #tpu.memory_space<vmem>>, vector<1x1x2x32xf32>
    %215 = vector.shape_cast %214 : vector<1x1x2x32xf32> to vector<2x32xf32>
    %216 = vector.shape_cast %213 : vector<2x32xf32> to vector<1x1x2x32xf32>
    tpu.vector_store %arg16[%c0_102, %c2_103, %c0_104, %c0_105], %216 {strides = array<i32>} : memref<4x8x2x32xf32, #tpu.memory_space<vmem>>, vector<1x1x2x32xf32>,
    %217 = vector.extract_strided_slice %204 {offsets = [6, 0], sizes = [2, 32], strides = [1, 1]} : vector<16x32xf32> to vector<2x32xf32>
    %c0_106 = arith.constant 0 : index
    %c3_107 = arith.constant 3 : index
    %c0_108 = arith.constant 0 : index
    %c0_109 = arith.constant 0 : index
    %218 = vector.load %arg16[%c0_106, %c3_107, %c0_108, %c0_109] : memref<4x8x2x32xf32, #tpu.memory_space<vmem>>, vector<1x1x2x32xf32>
    %219 = vector.shape_cast %218 : vector<1x1x2x32xf32> to vector<2x32xf32>
    %220 = vector.shape_cast %217 : vector<2x32xf32> to vector<1x1x2x32xf32>
    tpu.vector_store %arg16[%c0_106, %c3_107, %c0_108, %c0_109], %220 {strides = array<i32>} : memref<4x8x2x32xf32, #tpu.memory_space<vmem>>, vector<1x1x2x32xf32>,
    %221 = vector.extract_strided_slice %204 {offsets = [8, 0], sizes = [2, 32], strides = [1, 1]} : vector<16x32xf32> to vector<2x32xf32>
    %c0_110 = arith.constant 0 : index
    %c4_111 = arith.constant 4 : index
    %c0_112 = arith.constant 0 : index
    %c0_113 = arith.constant 0 : index
    %222 = vector.load %arg16[%c0_110, %c4_111, %c0_112, %c0_113] : memref<4x8x2x32xf32, #tpu.memory_space<vmem>>, vector<1x1x2x32xf32>
    %223 = vector.shape_cast %222 : vector<1x1x2x32xf32> to vector<2x32xf32>
    %224 = vector.shape_cast %221 : vector<2x32xf32> to vector<1x1x2x32xf32>
    tpu.vector_store %arg16[%c0_110, %c4_111, %c0_112, %c0_113], %224 {strides = array<i32>} : memref<4x8x2x32xf32, #tpu.memory_space<vmem>>, vector<1x1x2x32xf32>,
    %225 = vector.extract_strided_slice %204 {offsets = [10, 0], sizes = [2, 32], strides = [1, 1]} : vector<16x32xf32> to vector<2x32xf32>
    %c0_114 = arith.constant 0 : index
    %c5_115 = arith.constant 5 : index
    %c0_116 = arith.constant 0 : index
    %c0_117 = arith.constant 0 : index
    %226 = vector.load %arg16[%c0_114, %c5_115, %c0_116, %c0_117] : memref<4x8x2x32xf32, #tpu.memory_space<vmem>>, vector<1x1x2x32xf32>
    %227 = vector.shape_cast %226 : vector<1x1x2x32xf32> to vector<2x32xf32>
    %228 = vector.shape_cast %225 : vector<2x32xf32> to vector<1x1x2x32xf32>
    tpu.vector_store %arg16[%c0_114, %c5_115, %c0_116, %c0_117], %228 {strides = array<i32>} : memref<4x8x2x32xf32, #tpu.memory_space<vmem>>, vector<1x1x2x32xf32>,
    %229 = vector.extract_strided_slice %204 {offsets = [12, 0], sizes = [2, 32], strides = [1, 1]} : vector<16x32xf32> to vector<2x32xf32>
    %c0_118 = arith.constant 0 : index
    %c6_119 = arith.constant 6 : index
    %c0_120 = arith.constant 0 : index
    %c0_121 = arith.constant 0 : index
    %230 = vector.load %arg16[%c0_118, %c6_119, %c0_120, %c0_121] : memref<4x8x2x32xf32, #tpu.memory_space<vmem>>, vector<1x1x2x32xf32>
    %231 = vector.shape_cast %230 : vector<1x1x2x32xf32> to vector<2x32xf32>
    %232 = vector.shape_cast %229 : vector<2x32xf32> to vector<1x1x2x32xf32>
    tpu.vector_store %arg16[%c0_118, %c6_119, %c0_120, %c0_121], %232 {strides = array<i32>} : memref<4x8x2x32xf32, #tpu.memory_space<vmem>>, vector<1x1x2x32xf32>,
    %233 = vector.extract_strided_slice %204 {offsets = [14, 0], sizes = [2, 32], strides = [1, 1]} : vector<16x32xf32> to vector<2x32xf32>
    %c0_122 = arith.constant 0 : index
    %c7_123 = arith.constant 7 : index
    %c0_124 = arith.constant 0 : index
    %c0_125 = arith.constant 0 : index
    %234 = vector.load %arg16[%c0_122, %c7_123, %c0_124, %c0_125] : memref<4x8x2x32xf32, #tpu.memory_space<vmem>>, vector<1x1x2x32xf32>
    %235 = vector.shape_cast %234 : vector<1x1x2x32xf32> to vector<2x32xf32>
    %236 = vector.shape_cast %233 : vector<2x32xf32> to vector<1x1x2x32xf32>
    tpu.vector_store %arg16[%c0_122, %c7_123, %c0_124, %c0_125], %236 {strides = array<i32>} : memref<4x8x2x32xf32, #tpu.memory_space<vmem>>, vector<1x1x2x32xf32>,
    %c1_126 = arith.constant 1 : index
    %c0_127 = arith.constant 0 : index
    %c0_128 = arith.constant 0 : index
    %237 = vector.load %arg14[%c1_126, %c0_127, %c0_128] : memref<4x32x32xbf16, #tpu.memory_space<vmem>>, vector<1x32x32xbf16>
    %238 = vector.shape_cast %237 : vector<1x32x32xbf16> to vector<32x32xbf16>
    %cst_129 = arith.constant dense<0.000000e+00> : vector<16x32xf32>
    %239 = tpu.matmul %197, %238, %cst_129 {dimension_numbers = #tpu.dot_dimension_numbers<[1], [0], [0], [1], [0, 0, 1, 1], [], []>} : vector<16x32xbf16>, vector<32x32xbf16>, vector<16x32xf32> -> vector<16x32xf32>
    %c1_130 = arith.constant 1 : index
    %c0_131 = arith.constant 0 : index
    %c0_132 = arith.constant 0 : index
    %240 = vector.load %arg15[%c1_130, %c0_131, %c0_132] : memref<4x1x32xf32, #tpu.memory_space<vmem>>, vector<1x1x32xf32>
    %241 = vector.shape_cast %240 : vector<1x1x32xf32> to vector<1x32xf32>
    %242 = vector.broadcast %241 : vector<1x32xf32> to vector<16x32xf32>
    %243 = arith.addf %239, %242 : vector<16x32xf32>
    %244 = vector.extract_strided_slice %243 {offsets = [0, 0], sizes = [2, 32], strides = [1, 1]} : vector<16x32xf32> to vector<2x32xf32>
    %c1_133 = arith.constant 1 : index
    %c0_134 = arith.constant 0 : index
    %c0_135 = arith.constant 0 : index
    %c0_136 = arith.constant 0 : index
    %245 = vector.load %arg16[%c1_133, %c0_134, %c0_135, %c0_136] : memref<4x8x2x32xf32, #tpu.memory_space<vmem>>, vector<1x1x2x32xf32>
    %246 = vector.shape_cast %245 : vector<1x1x2x32xf32> to vector<2x32xf32>
    %247 = vector.shape_cast %244 : vector<2x32xf32> to vector<1x1x2x32xf32>
    tpu.vector_store %arg16[%c1_133, %c0_134, %c0_135, %c0_136], %247 {strides = array<i32>} : memref<4x8x2x32xf32, #tpu.memory_space<vmem>>, vector<1x1x2x32xf32>,
    %248 = vector.extract_strided_slice %243 {offsets = [2, 0], sizes = [2, 32], strides = [1, 1]} : vector<16x32xf32> to vector<2x32xf32>
    %c1_137 = arith.constant 1 : index
    %c1_138 = arith.constant 1 : index
    %c0_139 = arith.constant 0 : index
    %c0_140 = arith.constant 0 : index
    %249 = vector.load %arg16[%c1_137, %c1_138, %c0_139, %c0_140] : memref<4x8x2x32xf32, #tpu.memory_space<vmem>>, vector<1x1x2x32xf32>
    %250 = vector.shape_cast %249 : vector<1x1x2x32xf32> to vector<2x32xf32>
    %251 = vector.shape_cast %248 : vector<2x32xf32> to vector<1x1x2x32xf32>
    tpu.vector_store %arg16[%c1_137, %c1_138, %c0_139, %c0_140], %251 {strides = array<i32>} : memref<4x8x2x32xf32, #tpu.memory_space<vmem>>, vector<1x1x2x32xf32>,
    %252 = vector.extract_strided_slice %243 {offsets = [4, 0], sizes = [2, 32], strides = [1, 1]} : vector<16x32xf32> to vector<2x32xf32>
    %c1_141 = arith.constant 1 : index
    %c2_142 = arith.constant 2 : index
    %c0_143 = arith.constant 0 : index
    %c0_144 = arith.constant 0 : index
    %253 = vector.load %arg16[%c1_141, %c2_142, %c0_143, %c0_144] : memref<4x8x2x32xf32, #tpu.memory_space<vmem>>, vector<1x1x2x32xf32>
    %254 = vector.shape_cast %253 : vector<1x1x2x32xf32> to vector<2x32xf32>
    %255 = vector.shape_cast %252 : vector<2x32xf32> to vector<1x1x2x32xf32>
    tpu.vector_store %arg16[%c1_141, %c2_142, %c0_143, %c0_144], %255 {strides = array<i32>} : memref<4x8x2x32xf32, #tpu.memory_space<vmem>>, vector<1x1x2x32xf32>,
    %256 = vector.extract_strided_slice %243 {offsets = [6, 0], sizes = [2, 32], strides = [1, 1]} : vector<16x32xf32> to vector<2x32xf32>
    %c1_145 = arith.constant 1 : index
    %c3_146 = arith.constant 3 : index
    %c0_147 = arith.constant 0 : index
    %c0_148 = arith.constant 0 : index
    %257 = vector.load %arg16[%c1_145, %c3_146, %c0_147, %c0_148] : memref<4x8x2x32xf32, #tpu.memory_space<vmem>>, vector<1x1x2x32xf32>
    %258 = vector.shape_cast %257 : vector<1x1x2x32xf32> to vector<2x32xf32>
    %259 = vector.shape_cast %256 : vector<2x32xf32> to vector<1x1x2x32xf32>
    tpu.vector_store %arg16[%c1_145, %c3_146, %c0_147, %c0_148], %259 {strides = array<i32>} : memref<4x8x2x32xf32, #tpu.memory_space<vmem>>, vector<1x1x2x32xf32>,
    %260 = vector.extract_strided_slice %243 {offsets = [8, 0], sizes = [2, 32], strides = [1, 1]} : vector<16x32xf32> to vector<2x32xf32>
    %c1_149 = arith.constant 1 : index
    %c4_150 = arith.constant 4 : index
    %c0_151 = arith.constant 0 : index
    %c0_152 = arith.constant 0 : index
    %261 = vector.load %arg16[%c1_149, %c4_150, %c0_151, %c0_152] : memref<4x8x2x32xf32, #tpu.memory_space<vmem>>, vector<1x1x2x32xf32>
    %262 = vector.shape_cast %261 : vector<1x1x2x32xf32> to vector<2x32xf32>
    %263 = vector.shape_cast %260 : vector<2x32xf32> to vector<1x1x2x32xf32>
    tpu.vector_store %arg16[%c1_149, %c4_150, %c0_151, %c0_152], %263 {strides = array<i32>} : memref<4x8x2x32xf32, #tpu.memory_space<vmem>>, vector<1x1x2x32xf32>,
    %264 = vector.extract_strided_slice %243 {offsets = [10, 0], sizes = [2, 32], strides = [1, 1]} : vector<16x32xf32> to vector<2x32xf32>
    %c1_153 = arith.constant 1 : index
    %c5_154 = arith.constant 5 : index
    %c0_155 = arith.constant 0 : index
    %c0_156 = arith.constant 0 : index
    %265 = vector.load %arg16[%c1_153, %c5_154, %c0_155, %c0_156] : memref<4x8x2x32xf32, #tpu.memory_space<vmem>>, vector<1x1x2x32xf32>
    %266 = vector.shape_cast %265 : vector<1x1x2x32xf32> to vector<2x32xf32>
    %267 = vector.shape_cast %264 : vector<2x32xf32> to vector<1x1x2x32xf32>
    tpu.vector_store %arg16[%c1_153, %c5_154, %c0_155, %c0_156], %267 {strides = array<i32>} : memref<4x8x2x32xf32, #tpu.memory_space<vmem>>, vector<1x1x2x32xf32>,
    %268 = vector.extract_strided_slice %243 {offsets = [12, 0], sizes = [2, 32], strides = [1, 1]} : vector<16x32xf32> to vector<2x32xf32>
    %c1_157 = arith.constant 1 : index
    %c6_158 = arith.constant 6 : index
    %c0_159 = arith.constant 0 : index
    %c0_160 = arith.constant 0 : index
    %269 = vector.load %arg16[%c1_157, %c6_158, %c0_159, %c0_160] : memref<4x8x2x32xf32, #tpu.memory_space<vmem>>, vector<1x1x2x32xf32>
    %270 = vector.shape_cast %269 : vector<1x1x2x32xf32> to vector<2x32xf32>
    %271 = vector.shape_cast %268 : vector<2x32xf32> to vector<1x1x2x32xf32>
    tpu.vector_store %arg16[%c1_157, %c6_158, %c0_159, %c0_160], %271 {strides = array<i32>} : memref<4x8x2x32xf32, #tpu.memory_space<vmem>>, vector<1x1x2x32xf32>,
    %272 = vector.extract_strided_slice %243 {offsets = [14, 0], sizes = [2, 32], strides = [1, 1]} : vector<16x32xf32> to vector<2x32xf32>
    %c1_161 = arith.constant 1 : index
    %c7_162 = arith.constant 7 : index
    %c0_163 = arith.constant 0 : index
    %c0_164 = arith.constant 0 : index
    %273 = vector.load %arg16[%c1_161, %c7_162, %c0_163, %c0_164] : memref<4x8x2x32xf32, #tpu.memory_space<vmem>>, vector<1x1x2x32xf32>
    %274 = vector.shape_cast %273 : vector<1x1x2x32xf32> to vector<2x32xf32>
    %275 = vector.shape_cast %272 : vector<2x32xf32> to vector<1x1x2x32xf32>
    tpu.vector_store %arg16[%c1_161, %c7_162, %c0_163, %c0_164], %275 {strides = array<i32>} : memref<4x8x2x32xf32, #tpu.memory_space<vmem>>, vector<1x1x2x32xf32>,
    %c2_165 = arith.constant 2 : index
    %c0_166 = arith.constant 0 : index
    %c0_167 = arith.constant 0 : index
    %276 = vector.load %arg14[%c2_165, %c0_166, %c0_167] : memref<4x32x32xbf16, #tpu.memory_space<vmem>>, vector<1x32x32xbf16>
    %277 = vector.shape_cast %276 : vector<1x32x32xbf16> to vector<32x32xbf16>
    %cst_168 = arith.constant dense<0.000000e+00> : vector<16x32xf32>
    %278 = tpu.matmul %197, %277, %cst_168 {dimension_numbers = #tpu.dot_dimension_numbers<[1], [0], [0], [1], [0, 0, 1, 1], [], []>} : vector<16x32xbf16>, vector<32x32xbf16>, vector<16x32xf32> -> vector<16x32xf32>
    %c2_169 = arith.constant 2 : index
    %c0_170 = arith.constant 0 : index
    %c0_171 = arith.constant 0 : index
    %279 = vector.load %arg15[%c2_169, %c0_170, %c0_171] : memref<4x1x32xf32, #tpu.memory_space<vmem>>, vector<1x1x32xf32>
    %280 = vector.shape_cast %279 : vector<1x1x32xf32> to vector<1x32xf32>
    %281 = vector.broadcast %280 : vector<1x32xf32> to vector<16x32xf32>
    %282 = arith.addf %278, %281 : vector<16x32xf32>
    %283 = vector.extract_strided_slice %282 {offsets = [0, 0], sizes = [2, 32], strides = [1, 1]} : vector<16x32xf32> to vector<2x32xf32>
    %c2_172 = arith.constant 2 : index
    %c0_173 = arith.constant 0 : index
    %c0_174 = arith.constant 0 : index
    %c0_175 = arith.constant 0 : index
    %284 = vector.load %arg16[%c2_172, %c0_173, %c0_174, %c0_175] : memref<4x8x2x32xf32, #tpu.memory_space<vmem>>, vector<1x1x2x32xf32>
    %285 = vector.shape_cast %284 : vector<1x1x2x32xf32> to vector<2x32xf32>
    %286 = vector.shape_cast %283 : vector<2x32xf32> to vector<1x1x2x32xf32>
    tpu.vector_store %arg16[%c2_172, %c0_173, %c0_174, %c0_175], %286 {strides = array<i32>} : memref<4x8x2x32xf32, #tpu.memory_space<vmem>>, vector<1x1x2x32xf32>,
    %287 = vector.extract_strided_slice %282 {offsets = [2, 0], sizes = [2, 32], strides = [1, 1]} : vector<16x32xf32> to vector<2x32xf32>
    %c2_176 = arith.constant 2 : index
    %c1_177 = arith.constant 1 : index
    %c0_178 = arith.constant 0 : index
    %c0_179 = arith.constant 0 : index
    %288 = vector.load %arg16[%c2_176, %c1_177, %c0_178, %c0_179] : memref<4x8x2x32xf32, #tpu.memory_space<vmem>>, vector<1x1x2x32xf32>
    %289 = vector.shape_cast %288 : vector<1x1x2x32xf32> to vector<2x32xf32>
    %290 = vector.shape_cast %287 : vector<2x32xf32> to vector<1x1x2x32xf32>
    tpu.vector_store %arg16[%c2_176, %c1_177, %c0_178, %c0_179], %290 {strides = array<i32>} : memref<4x8x2x32xf32, #tpu.memory_space<vmem>>, vector<1x1x2x32xf32>,
    %291 = vector.extract_strided_slice %282 {offsets = [4, 0], sizes = [2, 32], strides = [1, 1]} : vector<16x32xf32> to vector<2x32xf32>
    %c2_180 = arith.constant 2 : index
    %c2_181 = arith.constant 2 : index
    %c0_182 = arith.constant 0 : index
    %c0_183 = arith.constant 0 : index
    %292 = vector.load %arg16[%c2_180, %c2_181, %c0_182, %c0_183] : memref<4x8x2x32xf32, #tpu.memory_space<vmem>>, vector<1x1x2x32xf32>
    %293 = vector.shape_cast %292 : vector<1x1x2x32xf32> to vector<2x32xf32>
    %294 = vector.shape_cast %291 : vector<2x32xf32> to vector<1x1x2x32xf32>
    tpu.vector_store %arg16[%c2_180, %c2_181, %c0_182, %c0_183], %294 {strides = array<i32>} : memref<4x8x2x32xf32, #tpu.memory_space<vmem>>, vector<1x1x2x32xf32>,
    %295 = vector.extract_strided_slice %282 {offsets = [6, 0], sizes = [2, 32], strides = [1, 1]} : vector<16x32xf32> to vector<2x32xf32>
    %c2_184 = arith.constant 2 : index
    %c3_185 = arith.constant 3 : index
    %c0_186 = arith.constant 0 : index
    %c0_187 = arith.constant 0 : index
    %296 = vector.load %arg16[%c2_184, %c3_185, %c0_186, %c0_187] : memref<4x8x2x32xf32, #tpu.memory_space<vmem>>, vector<1x1x2x32xf32>
    %297 = vector.shape_cast %296 : vector<1x1x2x32xf32> to vector<2x32xf32>
    %298 = vector.shape_cast %295 : vector<2x32xf32> to vector<1x1x2x32xf32>
    tpu.vector_store %arg16[%c2_184, %c3_185, %c0_186, %c0_187], %298 {strides = array<i32>} : memref<4x8x2x32xf32, #tpu.memory_space<vmem>>, vector<1x1x2x32xf32>,
    %299 = vector.extract_strided_slice %282 {offsets = [8, 0], sizes = [2, 32], strides = [1, 1]} : vector<16x32xf32> to vector<2x32xf32>
    %c2_188 = arith.constant 2 : index
    %c4_189 = arith.constant 4 : index
    %c0_190 = arith.constant 0 : index
    %c0_191 = arith.constant 0 : index
    %300 = vector.load %arg16[%c2_188, %c4_189, %c0_190, %c0_191] : memref<4x8x2x32xf32, #tpu.memory_space<vmem>>, vector<1x1x2x32xf32>
    %301 = vector.shape_cast %300 : vector<1x1x2x32xf32> to vector<2x32xf32>
    %302 = vector.shape_cast %299 : vector<2x32xf32> to vector<1x1x2x32xf32>
    tpu.vector_store %arg16[%c2_188, %c4_189, %c0_190, %c0_191], %302 {strides = array<i32>} : memref<4x8x2x32xf32, #tpu.memory_space<vmem>>, vector<1x1x2x32xf32>,
    %303 = vector.extract_strided_slice %282 {offsets = [10, 0], sizes = [2, 32], strides = [1, 1]} : vector<16x32xf32> to vector<2x32xf32>
    %c2_192 = arith.constant 2 : index
    %c5_193 = arith.constant 5 : index
    %c0_194 = arith.constant 0 : index
    %c0_195 = arith.constant 0 : index
    %304 = vector.load %arg16[%c2_192, %c5_193, %c0_194, %c0_195] : memref<4x8x2x32xf32, #tpu.memory_space<vmem>>, vector<1x1x2x32xf32>
    %305 = vector.shape_cast %304 : vector<1x1x2x32xf32> to vector<2x32xf32>
    %306 = vector.shape_cast %303 : vector<2x32xf32> to vector<1x1x2x32xf32>
    tpu.vector_store %arg16[%c2_192, %c5_193, %c0_194, %c0_195], %306 {strides = array<i32>} : memref<4x8x2x32xf32, #tpu.memory_space<vmem>>, vector<1x1x2x32xf32>,
    %307 = vector.extract_strided_slice %282 {offsets = [12, 0], sizes = [2, 32], strides = [1, 1]} : vector<16x32xf32> to vector<2x32xf32>
    %c2_196 = arith.constant 2 : index
    %c6_197 = arith.constant 6 : index
    %c0_198 = arith.constant 0 : index
    %c0_199 = arith.constant 0 : index
    %308 = vector.load %arg16[%c2_196, %c6_197, %c0_198, %c0_199] : memref<4x8x2x32xf32, #tpu.memory_space<vmem>>, vector<1x1x2x32xf32>
    %309 = vector.shape_cast %308 : vector<1x1x2x32xf32> to vector<2x32xf32>
    %310 = vector.shape_cast %307 : vector<2x32xf32> to vector<1x1x2x32xf32>
    tpu.vector_store %arg16[%c2_196, %c6_197, %c0_198, %c0_199], %310 {strides = array<i32>} : memref<4x8x2x32xf32, #tpu.memory_space<vmem>>, vector<1x1x2x32xf32>,
    %311 = vector.extract_strided_slice %282 {offsets = [14, 0], sizes = [2, 32], strides = [1, 1]} : vector<16x32xf32> to vector<2x32xf32>
    %c2_200 = arith.constant 2 : index
    %c7_201 = arith.constant 7 : index
    %c0_202 = arith.constant 0 : index
    %c0_203 = arith.constant 0 : index
    %312 = vector.load %arg16[%c2_200, %c7_201, %c0_202, %c0_203] : memref<4x8x2x32xf32, #tpu.memory_space<vmem>>, vector<1x1x2x32xf32>
    %313 = vector.shape_cast %312 : vector<1x1x2x32xf32> to vector<2x32xf32>
    %314 = vector.shape_cast %311 : vector<2x32xf32> to vector<1x1x2x32xf32>
    tpu.vector_store %arg16[%c2_200, %c7_201, %c0_202, %c0_203], %314 {strides = array<i32>} : memref<4x8x2x32xf32, #tpu.memory_space<vmem>>, vector<1x1x2x32xf32>,
    %c3_204 = arith.constant 3 : index
    %c0_205 = arith.constant 0 : index
    %c0_206 = arith.constant 0 : index
    %315 = vector.load %arg14[%c3_204, %c0_205, %c0_206] : memref<4x32x32xbf16, #tpu.memory_space<vmem>>, vector<1x32x32xbf16>
    %316 = vector.shape_cast %315 : vector<1x32x32xbf16> to vector<32x32xbf16>
    %cst_207 = arith.constant dense<0.000000e+00> : vector<16x32xf32>
    %317 = tpu.matmul %197, %316, %cst_207 {dimension_numbers = #tpu.dot_dimension_numbers<[1], [0], [0], [1], [0, 0, 1, 1], [], []>} : vector<16x32xbf16>, vector<32x32xbf16>, vector<16x32xf32> -> vector<16x32xf32>
    %c3_208 = arith.constant 3 : index
    %c0_209 = arith.constant 0 : index
    %c0_210 = arith.constant 0 : index
    %318 = vector.load %arg15[%c3_208, %c0_209, %c0_210] : memref<4x1x32xf32, #tpu.memory_space<vmem>>, vector<1x1x32xf32>
    %319 = vector.shape_cast %318 : vector<1x1x32xf32> to vector<1x32xf32>
    %320 = vector.broadcast %319 : vector<1x32xf32> to vector<16x32xf32>
    %321 = arith.addf %317, %320 : vector<16x32xf32>
    %322 = vector.extract_strided_slice %321 {offsets = [0, 0], sizes = [2, 32], strides = [1, 1]} : vector<16x32xf32> to vector<2x32xf32>
    %c3_211 = arith.constant 3 : index
    %c0_212 = arith.constant 0 : index
    %c0_213 = arith.constant 0 : index
    %c0_214 = arith.constant 0 : index
    %323 = vector.load %arg16[%c3_211, %c0_212, %c0_213, %c0_214] : memref<4x8x2x32xf32, #tpu.memory_space<vmem>>, vector<1x1x2x32xf32>
    %324 = vector.shape_cast %323 : vector<1x1x2x32xf32> to vector<2x32xf32>
    %325 = vector.shape_cast %322 : vector<2x32xf32> to vector<1x1x2x32xf32>
    tpu.vector_store %arg16[%c3_211, %c0_212, %c0_213, %c0_214], %325 {strides = array<i32>} : memref<4x8x2x32xf32, #tpu.memory_space<vmem>>, vector<1x1x2x32xf32>,
    %326 = vector.extract_strided_slice %321 {offsets = [2, 0], sizes = [2, 32], strides = [1, 1]} : vector<16x32xf32> to vector<2x32xf32>
    %c3_215 = arith.constant 3 : index
    %c1_216 = arith.constant 1 : index
    %c0_217 = arith.constant 0 : index
    %c0_218 = arith.constant 0 : index
    %327 = vector.load %arg16[%c3_215, %c1_216, %c0_217, %c0_218] : memref<4x8x2x32xf32, #tpu.memory_space<vmem>>, vector<1x1x2x32xf32>
    %328 = vector.shape_cast %327 : vector<1x1x2x32xf32> to vector<2x32xf32>
    %329 = vector.shape_cast %326 : vector<2x32xf32> to vector<1x1x2x32xf32>
    tpu.vector_store %arg16[%c3_215, %c1_216, %c0_217, %c0_218], %329 {strides = array<i32>} : memref<4x8x2x32xf32, #tpu.memory_space<vmem>>, vector<1x1x2x32xf32>,
    %330 = vector.extract_strided_slice %321 {offsets = [4, 0], sizes = [2, 32], strides = [1, 1]} : vector<16x32xf32> to vector<2x32xf32>
    %c3_219 = arith.constant 3 : index
    %c2_220 = arith.constant 2 : index
    %c0_221 = arith.constant 0 : index
    %c0_222 = arith.constant 0 : index
    %331 = vector.load %arg16[%c3_219, %c2_220, %c0_221, %c0_222] : memref<4x8x2x32xf32, #tpu.memory_space<vmem>>, vector<1x1x2x32xf32>
    %332 = vector.shape_cast %331 : vector<1x1x2x32xf32> to vector<2x32xf32>
    %333 = vector.shape_cast %330 : vector<2x32xf32> to vector<1x1x2x32xf32>
    tpu.vector_store %arg16[%c3_219, %c2_220, %c0_221, %c0_222], %333 {strides = array<i32>} : memref<4x8x2x32xf32, #tpu.memory_space<vmem>>, vector<1x1x2x32xf32>,
    %334 = vector.extract_strided_slice %321 {offsets = [6, 0], sizes = [2, 32], strides = [1, 1]} : vector<16x32xf32> to vector<2x32xf32>
    %c3_223 = arith.constant 3 : index
    %c3_224 = arith.constant 3 : index
    %c0_225 = arith.constant 0 : index
    %c0_226 = arith.constant 0 : index
    %335 = vector.load %arg16[%c3_223, %c3_224, %c0_225, %c0_226] : memref<4x8x2x32xf32, #tpu.memory_space<vmem>>, vector<1x1x2x32xf32>
    %336 = vector.shape_cast %335 : vector<1x1x2x32xf32> to vector<2x32xf32>
    %337 = vector.shape_cast %334 : vector<2x32xf32> to vector<1x1x2x32xf32>
    tpu.vector_store %arg16[%c3_223, %c3_224, %c0_225, %c0_226], %337 {strides = array<i32>} : memref<4x8x2x32xf32, #tpu.memory_space<vmem>>, vector<1x1x2x32xf32>,
    %338 = vector.extract_strided_slice %321 {offsets = [8, 0], sizes = [2, 32], strides = [1, 1]} : vector<16x32xf32> to vector<2x32xf32>
    %c3_227 = arith.constant 3 : index
    %c4_228 = arith.constant 4 : index
    %c0_229 = arith.constant 0 : index
    %c0_230 = arith.constant 0 : index
    %339 = vector.load %arg16[%c3_227, %c4_228, %c0_229, %c0_230] : memref<4x8x2x32xf32, #tpu.memory_space<vmem>>, vector<1x1x2x32xf32>
    %340 = vector.shape_cast %339 : vector<1x1x2x32xf32> to vector<2x32xf32>
    %341 = vector.shape_cast %338 : vector<2x32xf32> to vector<1x1x2x32xf32>
    tpu.vector_store %arg16[%c3_227, %c4_228, %c0_229, %c0_230], %341 {strides = array<i32>} : memref<4x8x2x32xf32, #tpu.memory_space<vmem>>, vector<1x1x2x32xf32>,
    %342 = vector.extract_strided_slice %321 {offsets = [10, 0], sizes = [2, 32], strides = [1, 1]} : vector<16x32xf32> to vector<2x32xf32>
    %c3_231 = arith.constant 3 : index
    %c5_232 = arith.constant 5 : index
    %c0_233 = arith.constant 0 : index
    %c0_234 = arith.constant 0 : index
    %343 = vector.load %arg16[%c3_231, %c5_232, %c0_233, %c0_234] : memref<4x8x2x32xf32, #tpu.memory_space<vmem>>, vector<1x1x2x32xf32>
    %344 = vector.shape_cast %343 : vector<1x1x2x32xf32> to vector<2x32xf32>
    %345 = vector.shape_cast %342 : vector<2x32xf32> to vector<1x1x2x32xf32>
    tpu.vector_store %arg16[%c3_231, %c5_232, %c0_233, %c0_234], %345 {strides = array<i32>} : memref<4x8x2x32xf32, #tpu.memory_space<vmem>>, vector<1x1x2x32xf32>,
    %346 = vector.extract_strided_slice %321 {offsets = [12, 0], sizes = [2, 32], strides = [1, 1]} : vector<16x32xf32> to vector<2x32xf32>
    %c3_235 = arith.constant 3 : index
    %c6_236 = arith.constant 6 : index
    %c0_237 = arith.constant 0 : index
    %c0_238 = arith.constant 0 : index
    %347 = vector.load %arg16[%c3_235, %c6_236, %c0_237, %c0_238] : memref<4x8x2x32xf32, #tpu.memory_space<vmem>>, vector<1x1x2x32xf32>
    %348 = vector.shape_cast %347 : vector<1x1x2x32xf32> to vector<2x32xf32>
    %349 = vector.shape_cast %346 : vector<2x32xf32> to vector<1x1x2x32xf32>
    tpu.vector_store %arg16[%c3_235, %c6_236, %c0_237, %c0_238], %349 {strides = array<i32>} : memref<4x8x2x32xf32, #tpu.memory_space<vmem>>, vector<1x1x2x32xf32>,
    %350 = vector.extract_strided_slice %321 {offsets = [14, 0], sizes = [2, 32], strides = [1, 1]} : vector<16x32xf32> to vector<2x32xf32>
    %c3_239 = arith.constant 3 : index
    %c7_240 = arith.constant 7 : index
    %c0_241 = arith.constant 0 : index
    %c0_242 = arith.constant 0 : index
    %351 = vector.load %arg16[%c3_239, %c7_240, %c0_241, %c0_242] : memref<4x8x2x32xf32, #tpu.memory_space<vmem>>, vector<1x1x2x32xf32>
    %352 = vector.shape_cast %351 : vector<1x1x2x32xf32> to vector<2x32xf32>
    %353 = vector.shape_cast %350 : vector<2x32xf32> to vector<1x1x2x32xf32>
    tpu.vector_store %arg16[%c3_239, %c7_240, %c0_241, %c0_242], %353 {strides = array<i32>} : memref<4x8x2x32xf32, #tpu.memory_space<vmem>>, vector<1x1x2x32xf32>,
    return
  }
  func.func @transform_0(%arg0: i32) -> (i32, i32, i32) {
    %c0_i32 = arith.constant 0 : i32
    %c0_i32_0 = arith.constant 0 : i32
    %c0_i32_1 = arith.constant 0 : i32
    return %c0_i32, %arg0, %c0_i32_0 : i32, i32, i32
  }
  func.func @transform_1(%arg0: i32) -> (i32, i32, i32) {
    %c0_i32 = arith.constant 0 : i32
    %c0_i32_0 = arith.constant 0 : i32
    %c0_i32_1 = arith.constant 0 : i32
    %c0_i32_2 = arith.constant 0 : i32
    return %c0_i32, %c0_i32_0, %c0_i32_1 : i32, i32, i32
  }
  func.func @transform_2(%arg0: i32) -> (i32, i32) {
    %c0_i32 = arith.constant 0 : i32
    %c0_i32_0 = arith.constant 0 : i32
    %c0_i32_1 = arith.constant 0 : i32
    return %c0_i32, %c0_i32_0 : i32, i32
  }
  func.func @transform_3(%arg0: i32) -> (i32, i32) {
    %c0_i32 = arith.constant 0 : i32
    %c0_i32_0 = arith.constant 0 : i32
    %c0_i32_1 = arith.constant 0 : i32
    return %c0_i32, %c0_i32_0 : i32, i32
  }
  func.func @transform_4(%arg0: i32) -> (i32, i32) {
    %c0_i32 = arith.constant 0 : i32
    %c0_i32_0 = arith.constant 0 : i32
    %c0_i32_1 = arith.constant 0 : i32
    return %c0_i32, %c0_i32_0 : i32, i32
  }
  func.func @transform_5(%arg0: i32) -> (i32, i32) {
    %c0_i32 = arith.constant 0 : i32
    %c0_i32_0 = arith.constant 0 : i32
    %c0_i32_1 = arith.constant 0 : i32
    return %c0_i32, %c0_i32_0 : i32, i32
  }
  func.func @transform_6(%arg0: i32) -> (i32, i32) {
    %c0_i32 = arith.constant 0 : i32
    %c0_i32_0 = arith.constant 0 : i32
    %c0_i32_1 = arith.constant 0 : i32
    return %c0_i32, %c0_i32_0 : i32, i32
  }
  func.func @transform_7(%arg0: i32) -> (i32, i32) {
    %c0_i32 = arith.constant 0 : i32
    %c0_i32_0 = arith.constant 0 : i32
    %c0_i32_1 = arith.constant 0 : i32
    return %c0_i32, %c0_i32_0 : i32, i32
  }
  func.func @transform_8(%arg0: i32) -> (i32, i32) {
    %c0_i32 = arith.constant 0 : i32
    %c0_i32_0 = arith.constant 0 : i32
    %c0_i32_1 = arith.constant 0 : i32
    return %c0_i32, %c0_i32_0 : i32, i32
  }
  func.func @transform_9(%arg0: i32) -> (i32, i32) {
    %c0_i32 = arith.constant 0 : i32
    %c0_i32_0 = arith.constant 0 : i32
    %c0_i32_1 = arith.constant 0 : i32
    return %c0_i32, %c0_i32_0 : i32, i32
  }
  func.func @transform_10(%arg0: i32) -> (i32, i32) {
    %c0_i32 = arith.constant 0 : i32
    %c0_i32_0 = arith.constant 0 : i32
    %c0_i32_1 = arith.constant 0 : i32
    return %c0_i32, %c0_i32_0 : i32, i32
  }
  func.func @transform_11(%arg0: i32) -> (i32, i32, i32) {
    %c0_i32 = arith.constant 0 : i32
    %c0_i32_0 = arith.constant 0 : i32
    %c0_i32_1 = arith.constant 0 : i32
    %c0_i32_2 = arith.constant 0 : i32
    return %c0_i32, %c0_i32_0, %c0_i32_1 : i32, i32, i32
  }
  func.func @transform_12(%arg0: i32) -> (i32, i32) {
    %c0_i32 = arith.constant 0 : i32
    %c0_i32_0 = arith.constant 0 : i32
    %c0_i32_1 = arith.constant 0 : i32
    return %c0_i32, %c0_i32_0 : i32, i32
  }
  func.func @transform_13(%arg0: i32) -> (i32, i32, i32) {
    %c0_i32 = arith.constant 0 : i32
    %c0_i32_0 = arith.constant 0 : i32
    %c0_i32_1 = arith.constant 0 : i32
    %c0_i32_2 = arith.constant 0 : i32
    return %c0_i32, %c0_i32_0, %c0_i32_1 : i32, i32, i32
  }
  func.func @transform_14(%arg0: i32) -> (i32, i32, i32) {
    %c0_i32 = arith.constant 0 : i32
    %c0_i32_0 = arith.constant 0 : i32
    %c0_i32_1 = arith.constant 0 : i32
    %c0_i32_2 = arith.constant 0 : i32
    return %c0_i32, %c0_i32_0, %c0_i32_1 : i32, i32, i32
  }
  func.func @transform_15(%arg0: i32) -> (i32, i32, i32, i32) {
    %c0_i32 = arith.constant 0 : i32
    %c0_i32_0 = arith.constant 0 : i32
    %c0_i32_1 = arith.constant 0 : i32
    %c0_i32_2 = arith.constant 0 : i32
    return %c0_i32, %arg0, %c0_i32_0, %c0_i32_1 : i32, i32, i32, i32
  }
}

module attributes {stable_mosaic.version = 11 : i64} {
  func.func @kernel(%arg0: memref<4x8x2x32xf32, #tpu.memory_space<vmem>>, %arg1: memref<4x32x32xbf16, #tpu.memory_space<vmem>>, %arg2: memref<4x32x32xbf16, #tpu.memory_space<vmem>>, %arg3: memref<4x32x32xbf16, #tpu.memory_space<vmem>>, %arg4: memref<4x1x32xf32, #tpu.memory_space<vmem>>, %arg5: memref<32x2xbf16, #tpu.memory_space<vmem>>, %arg6: memref<1x2xf32, #tpu.memory_space<vmem>>, %arg7: memref<8x2x2xf32, #tpu.memory_space<vmem>>, %arg8: memref<8x2x32xf32, #tpu.memory_space<vmem>>, %arg9: memref<4x8x2x32xf32, #tpu.memory_space<vmem>>) attributes {dimension_semantics = [], scalar_prefetch = 0 : i64, scratch_operands = 2 : i64, tpu.core_type = #tpu.core_type<tc>} {
    %cst = arith.constant 0.000000e+00 : f32
    %0 = vector.broadcast %cst : f32 to vector<2x32xf32>
    %c0_i32 = arith.constant 0 : i32
    %1 = arith.truncf %0 : vector<2x32xf32> to vector<2x32xbf16>
    %c0 = arith.constant 0 : index
    %2 = arith.index_cast %c0_i32 : i32 to index
    %c0_0 = arith.constant 0 : index
    %c0_1 = arith.constant 0 : index
    %3 = vector.load %arg0[%c0, %2, %c0_0, %c0_1] : memref<4x8x2x32xf32, #tpu.memory_space<vmem>>, vector<1x1x2x32xf32>
    %4 = vector.shape_cast %3 : vector<1x1x2x32xf32> to vector<2x32xf32>
    %c0_2 = arith.constant 0 : index
    %c0_3 = arith.constant 0 : index
    %c0_4 = arith.constant 0 : index
    %5 = vector.load %arg1[%c0_2, %c0_3, %c0_4] : memref<4x32x32xbf16, #tpu.memory_space<vmem>>, vector<1x32x32xbf16>
    %6 = vector.shape_cast %5 : vector<1x32x32xbf16> to vector<32x32xbf16>
    %cst_5 = arith.constant dense<0.000000e+00> : vector<2x32xf32>
    %7 = tpu.matmul %1, %6, %cst_5 {dimension_numbers = #tpu.dot_dimension_numbers<[1], [0], [0], [1], [0, 0, 1, 1], [], []>} : vector<2x32xbf16>, vector<32x32xbf16>, vector<2x32xf32> -> vector<2x32xf32>
    %8 = arith.addf %4, %7 : vector<2x32xf32>
    %c1 = arith.constant 1 : index
    %9 = arith.index_cast %c0_i32 : i32 to index
    %c0_6 = arith.constant 0 : index
    %c0_7 = arith.constant 0 : index
    %10 = vector.load %arg0[%c1, %9, %c0_6, %c0_7] : memref<4x8x2x32xf32, #tpu.memory_space<vmem>>, vector<1x1x2x32xf32>
    %11 = vector.shape_cast %10 : vector<1x1x2x32xf32> to vector<2x32xf32>
    %c1_8 = arith.constant 1 : index
    %c0_9 = arith.constant 0 : index
    %c0_10 = arith.constant 0 : index
    %12 = vector.load %arg1[%c1_8, %c0_9, %c0_10] : memref<4x32x32xbf16, #tpu.memory_space<vmem>>, vector<1x32x32xbf16>
    %13 = vector.shape_cast %12 : vector<1x32x32xbf16> to vector<32x32xbf16>
    %cst_11 = arith.constant dense<0.000000e+00> : vector<2x32xf32>
    %14 = tpu.matmul %1, %13, %cst_11 {dimension_numbers = #tpu.dot_dimension_numbers<[1], [0], [0], [1], [0, 0, 1, 1], [], []>} : vector<2x32xbf16>, vector<32x32xbf16>, vector<2x32xf32> -> vector<2x32xf32>
    %15 = arith.addf %11, %14 : vector<2x32xf32>
    %c2 = arith.constant 2 : index
    %16 = arith.index_cast %c0_i32 : i32 to index
    %c0_12 = arith.constant 0 : index
    %c0_13 = arith.constant 0 : index
    %17 = vector.load %arg0[%c2, %16, %c0_12, %c0_13] : memref<4x8x2x32xf32, #tpu.memory_space<vmem>>, vector<1x1x2x32xf32>
    %18 = vector.shape_cast %17 : vector<1x1x2x32xf32> to vector<2x32xf32>
    %c2_14 = arith.constant 2 : index
    %c0_15 = arith.constant 0 : index
    %c0_16 = arith.constant 0 : index
    %19 = vector.load %arg1[%c2_14, %c0_15, %c0_16] : memref<4x32x32xbf16, #tpu.memory_space<vmem>>, vector<1x32x32xbf16>
    %20 = vector.shape_cast %19 : vector<1x32x32xbf16> to vector<32x32xbf16>
    %cst_17 = arith.constant dense<0.000000e+00> : vector<2x32xf32>
    %21 = tpu.matmul %1, %20, %cst_17 {dimension_numbers = #tpu.dot_dimension_numbers<[1], [0], [0], [1], [0, 0, 1, 1], [], []>} : vector<2x32xbf16>, vector<32x32xbf16>, vector<2x32xf32> -> vector<2x32xf32>
    %22 = arith.addf %18, %21 : vector<2x32xf32>
    %c3 = arith.constant 3 : index
    %23 = arith.index_cast %c0_i32 : i32 to index
    %c0_18 = arith.constant 0 : index
    %c0_19 = arith.constant 0 : index
    %24 = vector.load %arg0[%c3, %23, %c0_18, %c0_19] : memref<4x8x2x32xf32, #tpu.memory_space<vmem>>, vector<1x1x2x32xf32>
    %25 = vector.shape_cast %24 : vector<1x1x2x32xf32> to vector<2x32xf32>
    %c3_20 = arith.constant 3 : index
    %c0_21 = arith.constant 0 : index
    %c0_22 = arith.constant 0 : index
    %26 = vector.load %arg1[%c3_20, %c0_21, %c0_22] : memref<4x32x32xbf16, #tpu.memory_space<vmem>>, vector<1x32x32xbf16>
    %27 = vector.shape_cast %26 : vector<1x32x32xbf16> to vector<32x32xbf16>
    %cst_23 = arith.constant dense<0.000000e+00> : vector<2x32xf32>
    %28 = tpu.matmul %1, %27, %cst_23 {dimension_numbers = #tpu.dot_dimension_numbers<[1], [0], [0], [1], [0, 0, 1, 1], [], []>} : vector<2x32xbf16>, vector<32x32xbf16>, vector<2x32xf32> -> vector<2x32xf32>
    %29 = arith.addf %25, %28 : vector<2x32xf32>
    %cst_24 = arith.constant 0.000000e+00 : f32
    %30 = vector.broadcast %cst_24 : f32 to vector<2x32xf32>
    %31 = arith.subf %30, %8 : vector<2x32xf32>
    %32 = math.exp %31 : vector<2x32xf32>
    %cst_25 = arith.constant 1.000000e+00 : f32
    %33 = vector.broadcast %cst_25 : f32 to vector<2x32xf32>
    %34 = arith.addf %33, %32 : vector<2x32xf32>
    %35 = tpu.reciprocal %34 {approx = true} : vector<2x32xf32> -> vector<2x32xf32>
    %cst_26 = arith.constant 0.000000e+00 : f32
    %36 = vector.broadcast %cst_26 : f32 to vector<2x32xf32>
    %37 = arith.subf %36, %15 : vector<2x32xf32>
    %38 = math.exp %37 : vector<2x32xf32>
    %cst_27 = arith.constant 1.000000e+00 : f32
    %39 = vector.broadcast %cst_27 : f32 to vector<2x32xf32>
    %40 = arith.addf %39, %38 : vector<2x32xf32>
    %41 = tpu.reciprocal %40 {approx = true} : vector<2x32xf32> -> vector<2x32xf32>
    %42 = math.tanh %22 : vector<2x32xf32>
    %cst_28 = arith.constant 0.000000e+00 : f32
    %43 = vector.broadcast %cst_28 : f32 to vector<2x32xf32>
    %44 = arith.subf %43, %29 : vector<2x32xf32>
    %45 = math.exp %44 : vector<2x32xf32>
    %cst_29 = arith.constant 1.000000e+00 : f32
    %46 = vector.broadcast %cst_29 : f32 to vector<2x32xf32>
    %47 = arith.addf %46, %45 : vector<2x32xf32>
    %48 = tpu.reciprocal %47 {approx = true} : vector<2x32xf32> -> vector<2x32xf32>
    %49 = arith.mulf %41, %0 : vector<2x32xf32>
    %50 = arith.mulf %35, %42 : vector<2x32xf32>
    %51 = arith.addf %49, %50 : vector<2x32xf32>
    %52 = math.tanh %51 : vector<2x32xf32>
    %53 = arith.mulf %48, %52 : vector<2x32xf32>
    %54 = arith.index_cast %c0_i32 : i32 to index
    %c0_30 = arith.constant 0 : index
    %c0_31 = arith.constant 0 : index
    %55 = vector.load %arg8[%54, %c0_30, %c0_31] : memref<8x2x32xf32, #tpu.memory_space<vmem>>, vector<1x2x32xf32>
    %56 = vector.shape_cast %55 : vector<1x2x32xf32> to vector<2x32xf32>
    %57 = vector.shape_cast %53 : vector<2x32xf32> to vector<1x2x32xf32>
    tpu.vector_store %arg8[%54, %c0_30, %c0_31], %57 {strides = array<i32>} : memref<8x2x32xf32, #tpu.memory_space<vmem>>, vector<1x2x32xf32>,
    %c1_i32 = arith.constant 1 : i32
    %58 = arith.truncf %53 : vector<2x32xf32> to vector<2x32xbf16>
    %c0_32 = arith.constant 0 : index
    %59 = arith.index_cast %c1_i32 : i32 to index
    %c0_33 = arith.constant 0 : index
    %c0_34 = arith.constant 0 : index
    %60 = vector.load %arg0[%c0_32, %59, %c0_33, %c0_34] : memref<4x8x2x32xf32, #tpu.memory_space<vmem>>, vector<1x1x2x32xf32>
    %61 = vector.shape_cast %60 : vector<1x1x2x32xf32> to vector<2x32xf32>
    %c0_35 = arith.constant 0 : index
    %c0_36 = arith.constant 0 : index
    %c0_37 = arith.constant 0 : index
    %62 = vector.load %arg1[%c0_35, %c0_36, %c0_37] : memref<4x32x32xbf16, #tpu.memory_space<vmem>>, vector<1x32x32xbf16>
    %63 = vector.shape_cast %62 : vector<1x32x32xbf16> to vector<32x32xbf16>
    %cst_38 = arith.constant dense<0.000000e+00> : vector<2x32xf32>
    %64 = tpu.matmul %58, %63, %cst_38 {dimension_numbers = #tpu.dot_dimension_numbers<[1], [0], [0], [1], [0, 0, 1, 1], [], []>} : vector<2x32xbf16>, vector<32x32xbf16>, vector<2x32xf32> -> vector<2x32xf32>
    %65 = arith.addf %61, %64 : vector<2x32xf32>
    %c1_39 = arith.constant 1 : index
    %66 = arith.index_cast %c1_i32 : i32 to index
    %c0_40 = arith.constant 0 : index
    %c0_41 = arith.constant 0 : index
    %67 = vector.load %arg0[%c1_39, %66, %c0_40, %c0_41] : memref<4x8x2x32xf32, #tpu.memory_space<vmem>>, vector<1x1x2x32xf32>
    %68 = vector.shape_cast %67 : vector<1x1x2x32xf32> to vector<2x32xf32>
    %c1_42 = arith.constant 1 : index
    %c0_43 = arith.constant 0 : index
    %c0_44 = arith.constant 0 : index
    %69 = vector.load %arg1[%c1_42, %c0_43, %c0_44] : memref<4x32x32xbf16, #tpu.memory_space<vmem>>, vector<1x32x32xbf16>
    %70 = vector.shape_cast %69 : vector<1x32x32xbf16> to vector<32x32xbf16>
    %cst_45 = arith.constant dense<0.000000e+00> : vector<2x32xf32>
    %71 = tpu.matmul %58, %70, %cst_45 {dimension_numbers = #tpu.dot_dimension_numbers<[1], [0], [0], [1], [0, 0, 1, 1], [], []>} : vector<2x32xbf16>, vector<32x32xbf16>, vector<2x32xf32> -> vector<2x32xf32>
    %72 = arith.addf %68, %71 : vector<2x32xf32>
    %c2_46 = arith.constant 2 : index
    %73 = arith.index_cast %c1_i32 : i32 to index
    %c0_47 = arith.constant 0 : index
    %c0_48 = arith.constant 0 : index
    %74 = vector.load %arg0[%c2_46, %73, %c0_47, %c0_48] : memref<4x8x2x32xf32, #tpu.memory_space<vmem>>, vector<1x1x2x32xf32>
    %75 = vector.shape_cast %74 : vector<1x1x2x32xf32> to vector<2x32xf32>
    %c2_49 = arith.constant 2 : index
    %c0_50 = arith.constant 0 : index
    %c0_51 = arith.constant 0 : index
    %76 = vector.load %arg1[%c2_49, %c0_50, %c0_51] : memref<4x32x32xbf16, #tpu.memory_space<vmem>>, vector<1x32x32xbf16>
    %77 = vector.shape_cast %76 : vector<1x32x32xbf16> to vector<32x32xbf16>
    %cst_52 = arith.constant dense<0.000000e+00> : vector<2x32xf32>
    %78 = tpu.matmul %58, %77, %cst_52 {dimension_numbers = #tpu.dot_dimension_numbers<[1], [0], [0], [1], [0, 0, 1, 1], [], []>} : vector<2x32xbf16>, vector<32x32xbf16>, vector<2x32xf32> -> vector<2x32xf32>
    %79 = arith.addf %75, %78 : vector<2x32xf32>
    %c3_53 = arith.constant 3 : index
    %80 = arith.index_cast %c1_i32 : i32 to index
    %c0_54 = arith.constant 0 : index
    %c0_55 = arith.constant 0 : index
    %81 = vector.load %arg0[%c3_53, %80, %c0_54, %c0_55] : memref<4x8x2x32xf32, #tpu.memory_space<vmem>>, vector<1x1x2x32xf32>
    %82 = vector.shape_cast %81 : vector<1x1x2x32xf32> to vector<2x32xf32>
    %c3_56 = arith.constant 3 : index
    %c0_57 = arith.constant 0 : index
    %c0_58 = arith.constant 0 : index
    %83 = vector.load %arg1[%c3_56, %c0_57, %c0_58] : memref<4x32x32xbf16, #tpu.memory_space<vmem>>, vector<1x32x32xbf16>
    %84 = vector.shape_cast %83 : vector<1x32x32xbf16> to vector<32x32xbf16>
    %cst_59 = arith.constant dense<0.000000e+00> : vector<2x32xf32>
    %85 = tpu.matmul %58, %84, %cst_59 {dimension_numbers = #tpu.dot_dimension_numbers<[1], [0], [0], [1], [0, 0, 1, 1], [], []>} : vector<2x32xbf16>, vector<32x32xbf16>, vector<2x32xf32> -> vector<2x32xf32>
    %86 = arith.addf %82, %85 : vector<2x32xf32>
    %cst_60 = arith.constant 0.000000e+00 : f32
    %87 = vector.broadcast %cst_60 : f32 to vector<2x32xf32>
    %88 = arith.subf %87, %65 : vector<2x32xf32>
    %89 = math.exp %88 : vector<2x32xf32>
    %cst_61 = arith.constant 1.000000e+00 : f32
    %90 = vector.broadcast %cst_61 : f32 to vector<2x32xf32>
    %91 = arith.addf %90, %89 : vector<2x32xf32>
    %92 = tpu.reciprocal %91 {approx = true} : vector<2x32xf32> -> vector<2x32xf32>
    %cst_62 = arith.constant 0.000000e+00 : f32
    %93 = vector.broadcast %cst_62 : f32 to vector<2x32xf32>
    %94 = arith.subf %93, %72 : vector<2x32xf32>
    %95 = math.exp %94 : vector<2x32xf32>
    %cst_63 = arith.constant 1.000000e+00 : f32
    %96 = vector.broadcast %cst_63 : f32 to vector<2x32xf32>
    %97 = arith.addf %96, %95 : vector<2x32xf32>
    %98 = tpu.reciprocal %97 {approx = true} : vector<2x32xf32> -> vector<2x32xf32>
    %99 = math.tanh %79 : vector<2x32xf32>
    %cst_64 = arith.constant 0.000000e+00 : f32
    %100 = vector.broadcast %cst_64 : f32 to vector<2x32xf32>
    %101 = arith.subf %100, %86 : vector<2x32xf32>
    %102 = math.exp %101 : vector<2x32xf32>
    %cst_65 = arith.constant 1.000000e+00 : f32
    %103 = vector.broadcast %cst_65 : f32 to vector<2x32xf32>
    %104 = arith.addf %103, %102 : vector<2x32xf32>
    %105 = tpu.reciprocal %104 {approx = true} : vector<2x32xf32> -> vector<2x32xf32>
    %106 = arith.mulf %98, %51 : vector<2x32xf32>
    %107 = arith.mulf %92, %99 : vector<2x32xf32>
    %108 = arith.addf %106, %107 : vector<2x32xf32>
    %109 = math.tanh %108 : vector<2x32xf32>
    %110 = arith.mulf %105, %109 : vector<2x32xf32>
    %111 = arith.index_cast %c1_i32 : i32 to index
    %c0_66 = arith.constant 0 : index
    %c0_67 = arith.constant 0 : index
    %112 = vector.load %arg8[%111, %c0_66, %c0_67] : memref<8x2x32xf32, #tpu.memory_space<vmem>>, vector<1x2x32xf32>
    %113 = vector.shape_cast %112 : vector<1x2x32xf32> to vector<2x32xf32>
    %114 = vector.shape_cast %110 : vector<2x32xf32> to vector<1x2x32xf32>
    tpu.vector_store %arg8[%111, %c0_66, %c0_67], %114 {strides = array<i32>} : memref<8x2x32xf32, #tpu.memory_space<vmem>>, vector<1x2x32xf32>,
    %c2_i32 = arith.constant 2 : i32
    %115 = arith.truncf %110 : vector<2x32xf32> to vector<2x32xbf16>
    %c0_68 = arith.constant 0 : index
    %116 = arith.index_cast %c2_i32 : i32 to index
    %c0_69 = arith.constant 0 : index
    %c0_70 = arith.constant 0 : index
    %117 = vector.load %arg0[%c0_68, %116, %c0_69, %c0_70] : memref<4x8x2x32xf32, #tpu.memory_space<vmem>>, vector<1x1x2x32xf32>
    %118 = vector.shape_cast %117 : vector<1x1x2x32xf32> to vector<2x32xf32>
    %c0_71 = arith.constant 0 : index
    %c0_72 = arith.constant 0 : index
    %c0_73 = arith.constant 0 : index
    %119 = vector.load %arg1[%c0_71, %c0_72, %c0_73] : memref<4x32x32xbf16, #tpu.memory_space<vmem>>, vector<1x32x32xbf16>
    %120 = vector.shape_cast %119 : vector<1x32x32xbf16> to vector<32x32xbf16>
    %cst_74 = arith.constant dense<0.000000e+00> : vector<2x32xf32>
    %121 = tpu.matmul %115, %120, %cst_74 {dimension_numbers = #tpu.dot_dimension_numbers<[1], [0], [0], [1], [0, 0, 1, 1], [], []>} : vector<2x32xbf16>, vector<32x32xbf16>, vector<2x32xf32> -> vector<2x32xf32>
    %122 = arith.addf %118, %121 : vector<2x32xf32>
    %c1_75 = arith.constant 1 : index
    %123 = arith.index_cast %c2_i32 : i32 to index
    %c0_76 = arith.constant 0 : index
    %c0_77 = arith.constant 0 : index
    %124 = vector.load %arg0[%c1_75, %123, %c0_76, %c0_77] : memref<4x8x2x32xf32, #tpu.memory_space<vmem>>, vector<1x1x2x32xf32>
    %125 = vector.shape_cast %124 : vector<1x1x2x32xf32> to vector<2x32xf32>
    %c1_78 = arith.constant 1 : index
    %c0_79 = arith.constant 0 : index
    %c0_80 = arith.constant 0 : index
    %126 = vector.load %arg1[%c1_78, %c0_79, %c0_80] : memref<4x32x32xbf16, #tpu.memory_space<vmem>>, vector<1x32x32xbf16>
    %127 = vector.shape_cast %126 : vector<1x32x32xbf16> to vector<32x32xbf16>
    %cst_81 = arith.constant dense<0.000000e+00> : vector<2x32xf32>
    %128 = tpu.matmul %115, %127, %cst_81 {dimension_numbers = #tpu.dot_dimension_numbers<[1], [0], [0], [1], [0, 0, 1, 1], [], []>} : vector<2x32xbf16>, vector<32x32xbf16>, vector<2x32xf32> -> vector<2x32xf32>
    %129 = arith.addf %125, %128 : vector<2x32xf32>
    %c2_82 = arith.constant 2 : index
    %130 = arith.index_cast %c2_i32 : i32 to index
    %c0_83 = arith.constant 0 : index
    %c0_84 = arith.constant 0 : index
    %131 = vector.load %arg0[%c2_82, %130, %c0_83, %c0_84] : memref<4x8x2x32xf32, #tpu.memory_space<vmem>>, vector<1x1x2x32xf32>
    %132 = vector.shape_cast %131 : vector<1x1x2x32xf32> to vector<2x32xf32>
    %c2_85 = arith.constant 2 : index
    %c0_86 = arith.constant 0 : index
    %c0_87 = arith.constant 0 : index
    %133 = vector.load %arg1[%c2_85, %c0_86, %c0_87] : memref<4x32x32xbf16, #tpu.memory_space<vmem>>, vector<1x32x32xbf16>
    %134 = vector.shape_cast %133 : vector<1x32x32xbf16> to vector<32x32xbf16>
    %cst_88 = arith.constant dense<0.000000e+00> : vector<2x32xf32>
    %135 = tpu.matmul %115, %134, %cst_88 {dimension_numbers = #tpu.dot_dimension_numbers<[1], [0], [0], [1], [0, 0, 1, 1], [], []>} : vector<2x32xbf16>, vector<32x32xbf16>, vector<2x32xf32> -> vector<2x32xf32>
    %136 = arith.addf %132, %135 : vector<2x32xf32>
    %c3_89 = arith.constant 3 : index
    %137 = arith.index_cast %c2_i32 : i32 to index
    %c0_90 = arith.constant 0 : index
    %c0_91 = arith.constant 0 : index
    %138 = vector.load %arg0[%c3_89, %137, %c0_90, %c0_91] : memref<4x8x2x32xf32, #tpu.memory_space<vmem>>, vector<1x1x2x32xf32>
    %139 = vector.shape_cast %138 : vector<1x1x2x32xf32> to vector<2x32xf32>
    %c3_92 = arith.constant 3 : index
    %c0_93 = arith.constant 0 : index
    %c0_94 = arith.constant 0 : index
    %140 = vector.load %arg1[%c3_92, %c0_93, %c0_94] : memref<4x32x32xbf16, #tpu.memory_space<vmem>>, vector<1x32x32xbf16>
    %141 = vector.shape_cast %140 : vector<1x32x32xbf16> to vector<32x32xbf16>
    %cst_95 = arith.constant dense<0.000000e+00> : vector<2x32xf32>
    %142 = tpu.matmul %115, %141, %cst_95 {dimension_numbers = #tpu.dot_dimension_numbers<[1], [0], [0], [1], [0, 0, 1, 1], [], []>} : vector<2x32xbf16>, vector<32x32xbf16>, vector<2x32xf32> -> vector<2x32xf32>
    %143 = arith.addf %139, %142 : vector<2x32xf32>
    %cst_96 = arith.constant 0.000000e+00 : f32
    %144 = vector.broadcast %cst_96 : f32 to vector<2x32xf32>
    %145 = arith.subf %144, %122 : vector<2x32xf32>
    %146 = math.exp %145 : vector<2x32xf32>
    %cst_97 = arith.constant 1.000000e+00 : f32
    %147 = vector.broadcast %cst_97 : f32 to vector<2x32xf32>
    %148 = arith.addf %147, %146 : vector<2x32xf32>
    %149 = tpu.reciprocal %148 {approx = true} : vector<2x32xf32> -> vector<2x32xf32>
    %cst_98 = arith.constant 0.000000e+00 : f32
    %150 = vector.broadcast %cst_98 : f32 to vector<2x32xf32>
    %151 = arith.subf %150, %129 : vector<2x32xf32>
    %152 = math.exp %151 : vector<2x32xf32>
    %cst_99 = arith.constant 1.000000e+00 : f32
    %153 = vector.broadcast %cst_99 : f32 to vector<2x32xf32>
    %154 = arith.addf %153, %152 : vector<2x32xf32>
    %155 = tpu.reciprocal %154 {approx = true} : vector<2x32xf32> -> vector<2x32xf32>
    %156 = math.tanh %136 : vector<2x32xf32>
    %cst_100 = arith.constant 0.000000e+00 : f32
    %157 = vector.broadcast %cst_100 : f32 to vector<2x32xf32>
    %158 = arith.subf %157, %143 : vector<2x32xf32>
    %159 = math.exp %158 : vector<2x32xf32>
    %cst_101 = arith.constant 1.000000e+00 : f32
    %160 = vector.broadcast %cst_101 : f32 to vector<2x32xf32>
    %161 = arith.addf %160, %159 : vector<2x32xf32>
    %162 = tpu.reciprocal %161 {approx = true} : vector<2x32xf32> -> vector<2x32xf32>
    %163 = arith.mulf %155, %108 : vector<2x32xf32>
    %164 = arith.mulf %149, %156 : vector<2x32xf32>
    %165 = arith.addf %163, %164 : vector<2x32xf32>
    %166 = math.tanh %165 : vector<2x32xf32>
    %167 = arith.mulf %162, %166 : vector<2x32xf32>
    %168 = arith.index_cast %c2_i32 : i32 to index
    %c0_102 = arith.constant 0 : index
    %c0_103 = arith.constant 0 : index
    %169 = vector.load %arg8[%168, %c0_102, %c0_103] : memref<8x2x32xf32, #tpu.memory_space<vmem>>, vector<1x2x32xf32>
    %170 = vector.shape_cast %169 : vector<1x2x32xf32> to vector<2x32xf32>
    %171 = vector.shape_cast %167 : vector<2x32xf32> to vector<1x2x32xf32>
    tpu.vector_store %arg8[%168, %c0_102, %c0_103], %171 {strides = array<i32>} : memref<8x2x32xf32, #tpu.memory_space<vmem>>, vector<1x2x32xf32>,
    %c3_i32 = arith.constant 3 : i32
    %172 = arith.truncf %167 : vector<2x32xf32> to vector<2x32xbf16>
    %c0_104 = arith.constant 0 : index
    %173 = arith.index_cast %c3_i32 : i32 to index
    %c0_105 = arith.constant 0 : index
    %c0_106 = arith.constant 0 : index
    %174 = vector.load %arg0[%c0_104, %173, %c0_105, %c0_106] : memref<4x8x2x32xf32, #tpu.memory_space<vmem>>, vector<1x1x2x32xf32>
    %175 = vector.shape_cast %174 : vector<1x1x2x32xf32> to vector<2x32xf32>
    %c0_107 = arith.constant 0 : index
    %c0_108 = arith.constant 0 : index
    %c0_109 = arith.constant 0 : index
    %176 = vector.load %arg1[%c0_107, %c0_108, %c0_109] : memref<4x32x32xbf16, #tpu.memory_space<vmem>>, vector<1x32x32xbf16>
    %177 = vector.shape_cast %176 : vector<1x32x32xbf16> to vector<32x32xbf16>
    %cst_110 = arith.constant dense<0.000000e+00> : vector<2x32xf32>
    %178 = tpu.matmul %172, %177, %cst_110 {dimension_numbers = #tpu.dot_dimension_numbers<[1], [0], [0], [1], [0, 0, 1, 1], [], []>} : vector<2x32xbf16>, vector<32x32xbf16>, vector<2x32xf32> -> vector<2x32xf32>
    %179 = arith.addf %175, %178 : vector<2x32xf32>
    %c1_111 = arith.constant 1 : index
    %180 = arith.index_cast %c3_i32 : i32 to index
    %c0_112 = arith.constant 0 : index
    %c0_113 = arith.constant 0 : index
    %181 = vector.load %arg0[%c1_111, %180, %c0_112, %c0_113] : memref<4x8x2x32xf32, #tpu.memory_space<vmem>>, vector<1x1x2x32xf32>
    %182 = vector.shape_cast %181 : vector<1x1x2x32xf32> to vector<2x32xf32>
    %c1_114 = arith.constant 1 : index
    %c0_115 = arith.constant 0 : index
    %c0_116 = arith.constant 0 : index
    %183 = vector.load %arg1[%c1_114, %c0_115, %c0_116] : memref<4x32x32xbf16, #tpu.memory_space<vmem>>, vector<1x32x32xbf16>
    %184 = vector.shape_cast %183 : vector<1x32x32xbf16> to vector<32x32xbf16>
    %cst_117 = arith.constant dense<0.000000e+00> : vector<2x32xf32>
    %185 = tpu.matmul %172, %184, %cst_117 {dimension_numbers = #tpu.dot_dimension_numbers<[1], [0], [0], [1], [0, 0, 1, 1], [], []>} : vector<2x32xbf16>, vector<32x32xbf16>, vector<2x32xf32> -> vector<2x32xf32>
    %186 = arith.addf %182, %185 : vector<2x32xf32>
    %c2_118 = arith.constant 2 : index
    %187 = arith.index_cast %c3_i32 : i32 to index
    %c0_119 = arith.constant 0 : index
    %c0_120 = arith.constant 0 : index
    %188 = vector.load %arg0[%c2_118, %187, %c0_119, %c0_120] : memref<4x8x2x32xf32, #tpu.memory_space<vmem>>, vector<1x1x2x32xf32>
    %189 = vector.shape_cast %188 : vector<1x1x2x32xf32> to vector<2x32xf32>
    %c2_121 = arith.constant 2 : index
    %c0_122 = arith.constant 0 : index
    %c0_123 = arith.constant 0 : index
    %190 = vector.load %arg1[%c2_121, %c0_122, %c0_123] : memref<4x32x32xbf16, #tpu.memory_space<vmem>>, vector<1x32x32xbf16>
    %191 = vector.shape_cast %190 : vector<1x32x32xbf16> to vector<32x32xbf16>
    %cst_124 = arith.constant dense<0.000000e+00> : vector<2x32xf32>
    %192 = tpu.matmul %172, %191, %cst_124 {dimension_numbers = #tpu.dot_dimension_numbers<[1], [0], [0], [1], [0, 0, 1, 1], [], []>} : vector<2x32xbf16>, vector<32x32xbf16>, vector<2x32xf32> -> vector<2x32xf32>
    %193 = arith.addf %189, %192 : vector<2x32xf32>
    %c3_125 = arith.constant 3 : index
    %194 = arith.index_cast %c3_i32 : i32 to index
    %c0_126 = arith.constant 0 : index
    %c0_127 = arith.constant 0 : index
    %195 = vector.load %arg0[%c3_125, %194, %c0_126, %c0_127] : memref<4x8x2x32xf32, #tpu.memory_space<vmem>>, vector<1x1x2x32xf32>
    %196 = vector.shape_cast %195 : vector<1x1x2x32xf32> to vector<2x32xf32>
    %c3_128 = arith.constant 3 : index
    %c0_129 = arith.constant 0 : index
    %c0_130 = arith.constant 0 : index
    %197 = vector.load %arg1[%c3_128, %c0_129, %c0_130] : memref<4x32x32xbf16, #tpu.memory_space<vmem>>, vector<1x32x32xbf16>
    %198 = vector.shape_cast %197 : vector<1x32x32xbf16> to vector<32x32xbf16>
    %cst_131 = arith.constant dense<0.000000e+00> : vector<2x32xf32>
    %199 = tpu.matmul %172, %198, %cst_131 {dimension_numbers = #tpu.dot_dimension_numbers<[1], [0], [0], [1], [0, 0, 1, 1], [], []>} : vector<2x32xbf16>, vector<32x32xbf16>, vector<2x32xf32> -> vector<2x32xf32>
    %200 = arith.addf %196, %199 : vector<2x32xf32>
    %cst_132 = arith.constant 0.000000e+00 : f32
    %201 = vector.broadcast %cst_132 : f32 to vector<2x32xf32>
    %202 = arith.subf %201, %179 : vector<2x32xf32>
    %203 = math.exp %202 : vector<2x32xf32>
    %cst_133 = arith.constant 1.000000e+00 : f32
    %204 = vector.broadcast %cst_133 : f32 to vector<2x32xf32>
    %205 = arith.addf %204, %203 : vector<2x32xf32>
    %206 = tpu.reciprocal %205 {approx = true} : vector<2x32xf32> -> vector<2x32xf32>
    %cst_134 = arith.constant 0.000000e+00 : f32
    %207 = vector.broadcast %cst_134 : f32 to vector<2x32xf32>
    %208 = arith.subf %207, %186 : vector<2x32xf32>
    %209 = math.exp %208 : vector<2x32xf32>
    %cst_135 = arith.constant 1.000000e+00 : f32
    %210 = vector.broadcast %cst_135 : f32 to vector<2x32xf32>
    %211 = arith.addf %210, %209 : vector<2x32xf32>
    %212 = tpu.reciprocal %211 {approx = true} : vector<2x32xf32> -> vector<2x32xf32>
    %213 = math.tanh %193 : vector<2x32xf32>
    %cst_136 = arith.constant 0.000000e+00 : f32
    %214 = vector.broadcast %cst_136 : f32 to vector<2x32xf32>
    %215 = arith.subf %214, %200 : vector<2x32xf32>
    %216 = math.exp %215 : vector<2x32xf32>
    %cst_137 = arith.constant 1.000000e+00 : f32
    %217 = vector.broadcast %cst_137 : f32 to vector<2x32xf32>
    %218 = arith.addf %217, %216 : vector<2x32xf32>
    %219 = tpu.reciprocal %218 {approx = true} : vector<2x32xf32> -> vector<2x32xf32>
    %220 = arith.mulf %212, %165 : vector<2x32xf32>
    %221 = arith.mulf %206, %213 : vector<2x32xf32>
    %222 = arith.addf %220, %221 : vector<2x32xf32>
    %223 = math.tanh %222 : vector<2x32xf32>
    %224 = arith.mulf %219, %223 : vector<2x32xf32>
    %225 = arith.index_cast %c3_i32 : i32 to index
    %c0_138 = arith.constant 0 : index
    %c0_139 = arith.constant 0 : index
    %226 = vector.load %arg8[%225, %c0_138, %c0_139] : memref<8x2x32xf32, #tpu.memory_space<vmem>>, vector<1x2x32xf32>
    %227 = vector.shape_cast %226 : vector<1x2x32xf32> to vector<2x32xf32>
    %228 = vector.shape_cast %224 : vector<2x32xf32> to vector<1x2x32xf32>
    tpu.vector_store %arg8[%225, %c0_138, %c0_139], %228 {strides = array<i32>} : memref<8x2x32xf32, #tpu.memory_space<vmem>>, vector<1x2x32xf32>,
    %c4_i32 = arith.constant 4 : i32
    %229 = arith.truncf %224 : vector<2x32xf32> to vector<2x32xbf16>
    %c0_140 = arith.constant 0 : index
    %230 = arith.index_cast %c4_i32 : i32 to index
    %c0_141 = arith.constant 0 : index
    %c0_142 = arith.constant 0 : index
    %231 = vector.load %arg0[%c0_140, %230, %c0_141, %c0_142] : memref<4x8x2x32xf32, #tpu.memory_space<vmem>>, vector<1x1x2x32xf32>
    %232 = vector.shape_cast %231 : vector<1x1x2x32xf32> to vector<2x32xf32>
    %c0_143 = arith.constant 0 : index
    %c0_144 = arith.constant 0 : index
    %c0_145 = arith.constant 0 : index
    %233 = vector.load %arg1[%c0_143, %c0_144, %c0_145] : memref<4x32x32xbf16, #tpu.memory_space<vmem>>, vector<1x32x32xbf16>
    %234 = vector.shape_cast %233 : vector<1x32x32xbf16> to vector<32x32xbf16>
    %cst_146 = arith.constant dense<0.000000e+00> : vector<2x32xf32>
    %235 = tpu.matmul %229, %234, %cst_146 {dimension_numbers = #tpu.dot_dimension_numbers<[1], [0], [0], [1], [0, 0, 1, 1], [], []>} : vector<2x32xbf16>, vector<32x32xbf16>, vector<2x32xf32> -> vector<2x32xf32>
    %236 = arith.addf %232, %235 : vector<2x32xf32>
    %c1_147 = arith.constant 1 : index
    %237 = arith.index_cast %c4_i32 : i32 to index
    %c0_148 = arith.constant 0 : index
    %c0_149 = arith.constant 0 : index
    %238 = vector.load %arg0[%c1_147, %237, %c0_148, %c0_149] : memref<4x8x2x32xf32, #tpu.memory_space<vmem>>, vector<1x1x2x32xf32>
    %239 = vector.shape_cast %238 : vector<1x1x2x32xf32> to vector<2x32xf32>
    %c1_150 = arith.constant 1 : index
    %c0_151 = arith.constant 0 : index
    %c0_152 = arith.constant 0 : index
    %240 = vector.load %arg1[%c1_150, %c0_151, %c0_152] : memref<4x32x32xbf16, #tpu.memory_space<vmem>>, vector<1x32x32xbf16>
    %241 = vector.shape_cast %240 : vector<1x32x32xbf16> to vector<32x32xbf16>
    %cst_153 = arith.constant dense<0.000000e+00> : vector<2x32xf32>
    %242 = tpu.matmul %229, %241, %cst_153 {dimension_numbers = #tpu.dot_dimension_numbers<[1], [0], [0], [1], [0, 0, 1, 1], [], []>} : vector<2x32xbf16>, vector<32x32xbf16>, vector<2x32xf32> -> vector<2x32xf32>
    %243 = arith.addf %239, %242 : vector<2x32xf32>
    %c2_154 = arith.constant 2 : index
    %244 = arith.index_cast %c4_i32 : i32 to index
    %c0_155 = arith.constant 0 : index
    %c0_156 = arith.constant 0 : index
    %245 = vector.load %arg0[%c2_154, %244, %c0_155, %c0_156] : memref<4x8x2x32xf32, #tpu.memory_space<vmem>>, vector<1x1x2x32xf32>
    %246 = vector.shape_cast %245 : vector<1x1x2x32xf32> to vector<2x32xf32>
    %c2_157 = arith.constant 2 : index
    %c0_158 = arith.constant 0 : index
    %c0_159 = arith.constant 0 : index
    %247 = vector.load %arg1[%c2_157, %c0_158, %c0_159] : memref<4x32x32xbf16, #tpu.memory_space<vmem>>, vector<1x32x32xbf16>
    %248 = vector.shape_cast %247 : vector<1x32x32xbf16> to vector<32x32xbf16>
    %cst_160 = arith.constant dense<0.000000e+00> : vector<2x32xf32>
    %249 = tpu.matmul %229, %248, %cst_160 {dimension_numbers = #tpu.dot_dimension_numbers<[1], [0], [0], [1], [0, 0, 1, 1], [], []>} : vector<2x32xbf16>, vector<32x32xbf16>, vector<2x32xf32> -> vector<2x32xf32>
    %250 = arith.addf %246, %249 : vector<2x32xf32>
    %c3_161 = arith.constant 3 : index
    %251 = arith.index_cast %c4_i32 : i32 to index
    %c0_162 = arith.constant 0 : index
    %c0_163 = arith.constant 0 : index
    %252 = vector.load %arg0[%c3_161, %251, %c0_162, %c0_163] : memref<4x8x2x32xf32, #tpu.memory_space<vmem>>, vector<1x1x2x32xf32>
    %253 = vector.shape_cast %252 : vector<1x1x2x32xf32> to vector<2x32xf32>
    %c3_164 = arith.constant 3 : index
    %c0_165 = arith.constant 0 : index
    %c0_166 = arith.constant 0 : index
    %254 = vector.load %arg1[%c3_164, %c0_165, %c0_166] : memref<4x32x32xbf16, #tpu.memory_space<vmem>>, vector<1x32x32xbf16>
    %255 = vector.shape_cast %254 : vector<1x32x32xbf16> to vector<32x32xbf16>
    %cst_167 = arith.constant dense<0.000000e+00> : vector<2x32xf32>
    %256 = tpu.matmul %229, %255, %cst_167 {dimension_numbers = #tpu.dot_dimension_numbers<[1], [0], [0], [1], [0, 0, 1, 1], [], []>} : vector<2x32xbf16>, vector<32x32xbf16>, vector<2x32xf32> -> vector<2x32xf32>
    %257 = arith.addf %253, %256 : vector<2x32xf32>
    %cst_168 = arith.constant 0.000000e+00 : f32
    %258 = vector.broadcast %cst_168 : f32 to vector<2x32xf32>
    %259 = arith.subf %258, %236 : vector<2x32xf32>
    %260 = math.exp %259 : vector<2x32xf32>
    %cst_169 = arith.constant 1.000000e+00 : f32
    %261 = vector.broadcast %cst_169 : f32 to vector<2x32xf32>
    %262 = arith.addf %261, %260 : vector<2x32xf32>
    %263 = tpu.reciprocal %262 {approx = true} : vector<2x32xf32> -> vector<2x32xf32>
    %cst_170 = arith.constant 0.000000e+00 : f32
    %264 = vector.broadcast %cst_170 : f32 to vector<2x32xf32>
    %265 = arith.subf %264, %243 : vector<2x32xf32>
    %266 = math.exp %265 : vector<2x32xf32>
    %cst_171 = arith.constant 1.000000e+00 : f32
    %267 = vector.broadcast %cst_171 : f32 to vector<2x32xf32>
    %268 = arith.addf %267, %266 : vector<2x32xf32>
    %269 = tpu.reciprocal %268 {approx = true} : vector<2x32xf32> -> vector<2x32xf32>
    %270 = math.tanh %250 : vector<2x32xf32>
    %cst_172 = arith.constant 0.000000e+00 : f32
    %271 = vector.broadcast %cst_172 : f32 to vector<2x32xf32>
    %272 = arith.subf %271, %257 : vector<2x32xf32>
    %273 = math.exp %272 : vector<2x32xf32>
    %cst_173 = arith.constant 1.000000e+00 : f32
    %274 = vector.broadcast %cst_173 : f32 to vector<2x32xf32>
    %275 = arith.addf %274, %273 : vector<2x32xf32>
    %276 = tpu.reciprocal %275 {approx = true} : vector<2x32xf32> -> vector<2x32xf32>
    %277 = arith.mulf %269, %222 : vector<2x32xf32>
    %278 = arith.mulf %263, %270 : vector<2x32xf32>
    %279 = arith.addf %277, %278 : vector<2x32xf32>
    %280 = math.tanh %279 : vector<2x32xf32>
    %281 = arith.mulf %276, %280 : vector<2x32xf32>
    %282 = arith.index_cast %c4_i32 : i32 to index
    %c0_174 = arith.constant 0 : index
    %c0_175 = arith.constant 0 : index
    %283 = vector.load %arg8[%282, %c0_174, %c0_175] : memref<8x2x32xf32, #tpu.memory_space<vmem>>, vector<1x2x32xf32>
    %284 = vector.shape_cast %283 : vector<1x2x32xf32> to vector<2x32xf32>
    %285 = vector.shape_cast %281 : vector<2x32xf32> to vector<1x2x32xf32>
    tpu.vector_store %arg8[%282, %c0_174, %c0_175], %285 {strides = array<i32>} : memref<8x2x32xf32, #tpu.memory_space<vmem>>, vector<1x2x32xf32>,
    %c5_i32 = arith.constant 5 : i32
    %286 = arith.truncf %281 : vector<2x32xf32> to vector<2x32xbf16>
    %c0_176 = arith.constant 0 : index
    %287 = arith.index_cast %c5_i32 : i32 to index
    %c0_177 = arith.constant 0 : index
    %c0_178 = arith.constant 0 : index
    %288 = vector.load %arg0[%c0_176, %287, %c0_177, %c0_178] : memref<4x8x2x32xf32, #tpu.memory_space<vmem>>, vector<1x1x2x32xf32>
    %289 = vector.shape_cast %288 : vector<1x1x2x32xf32> to vector<2x32xf32>
    %c0_179 = arith.constant 0 : index
    %c0_180 = arith.constant 0 : index
    %c0_181 = arith.constant 0 : index
    %290 = vector.load %arg1[%c0_179, %c0_180, %c0_181] : memref<4x32x32xbf16, #tpu.memory_space<vmem>>, vector<1x32x32xbf16>
    %291 = vector.shape_cast %290 : vector<1x32x32xbf16> to vector<32x32xbf16>
    %cst_182 = arith.constant dense<0.000000e+00> : vector<2x32xf32>
    %292 = tpu.matmul %286, %291, %cst_182 {dimension_numbers = #tpu.dot_dimension_numbers<[1], [0], [0], [1], [0, 0, 1, 1], [], []>} : vector<2x32xbf16>, vector<32x32xbf16>, vector<2x32xf32> -> vector<2x32xf32>
    %293 = arith.addf %289, %292 : vector<2x32xf32>
    %c1_183 = arith.constant 1 : index
    %294 = arith.index_cast %c5_i32 : i32 to index
    %c0_184 = arith.constant 0 : index
    %c0_185 = arith.constant 0 : index
    %295 = vector.load %arg0[%c1_183, %294, %c0_184, %c0_185] : memref<4x8x2x32xf32, #tpu.memory_space<vmem>>, vector<1x1x2x32xf32>
    %296 = vector.shape_cast %295 : vector<1x1x2x32xf32> to vector<2x32xf32>
    %c1_186 = arith.constant 1 : index
    %c0_187 = arith.constant 0 : index
    %c0_188 = arith.constant 0 : index
    %297 = vector.load %arg1[%c1_186, %c0_187, %c0_188] : memref<4x32x32xbf16, #tpu.memory_space<vmem>>, vector<1x32x32xbf16>
    %298 = vector.shape_cast %297 : vector<1x32x32xbf16> to vector<32x32xbf16>
    %cst_189 = arith.constant dense<0.000000e+00> : vector<2x32xf32>
    %299 = tpu.matmul %286, %298, %cst_189 {dimension_numbers = #tpu.dot_dimension_numbers<[1], [0], [0], [1], [0, 0, 1, 1], [], []>} : vector<2x32xbf16>, vector<32x32xbf16>, vector<2x32xf32> -> vector<2x32xf32>
    %300 = arith.addf %296, %299 : vector<2x32xf32>
    %c2_190 = arith.constant 2 : index
    %301 = arith.index_cast %c5_i32 : i32 to index
    %c0_191 = arith.constant 0 : index
    %c0_192 = arith.constant 0 : index
    %302 = vector.load %arg0[%c2_190, %301, %c0_191, %c0_192] : memref<4x8x2x32xf32, #tpu.memory_space<vmem>>, vector<1x1x2x32xf32>
    %303 = vector.shape_cast %302 : vector<1x1x2x32xf32> to vector<2x32xf32>
    %c2_193 = arith.constant 2 : index
    %c0_194 = arith.constant 0 : index
    %c0_195 = arith.constant 0 : index
    %304 = vector.load %arg1[%c2_193, %c0_194, %c0_195] : memref<4x32x32xbf16, #tpu.memory_space<vmem>>, vector<1x32x32xbf16>
    %305 = vector.shape_cast %304 : vector<1x32x32xbf16> to vector<32x32xbf16>
    %cst_196 = arith.constant dense<0.000000e+00> : vector<2x32xf32>
    %306 = tpu.matmul %286, %305, %cst_196 {dimension_numbers = #tpu.dot_dimension_numbers<[1], [0], [0], [1], [0, 0, 1, 1], [], []>} : vector<2x32xbf16>, vector<32x32xbf16>, vector<2x32xf32> -> vector<2x32xf32>
    %307 = arith.addf %303, %306 : vector<2x32xf32>
    %c3_197 = arith.constant 3 : index
    %308 = arith.index_cast %c5_i32 : i32 to index
    %c0_198 = arith.constant 0 : index
    %c0_199 = arith.constant 0 : index
    %309 = vector.load %arg0[%c3_197, %308, %c0_198, %c0_199] : memref<4x8x2x32xf32, #tpu.memory_space<vmem>>, vector<1x1x2x32xf32>
    %310 = vector.shape_cast %309 : vector<1x1x2x32xf32> to vector<2x32xf32>
    %c3_200 = arith.constant 3 : index
    %c0_201 = arith.constant 0 : index
    %c0_202 = arith.constant 0 : index
    %311 = vector.load %arg1[%c3_200, %c0_201, %c0_202] : memref<4x32x32xbf16, #tpu.memory_space<vmem>>, vector<1x32x32xbf16>
    %312 = vector.shape_cast %311 : vector<1x32x32xbf16> to vector<32x32xbf16>
    %cst_203 = arith.constant dense<0.000000e+00> : vector<2x32xf32>
    %313 = tpu.matmul %286, %312, %cst_203 {dimension_numbers = #tpu.dot_dimension_numbers<[1], [0], [0], [1], [0, 0, 1, 1], [], []>} : vector<2x32xbf16>, vector<32x32xbf16>, vector<2x32xf32> -> vector<2x32xf32>
    %314 = arith.addf %310, %313 : vector<2x32xf32>
    %cst_204 = arith.constant 0.000000e+00 : f32
    %315 = vector.broadcast %cst_204 : f32 to vector<2x32xf32>
    %316 = arith.subf %315, %293 : vector<2x32xf32>
    %317 = math.exp %316 : vector<2x32xf32>
    %cst_205 = arith.constant 1.000000e+00 : f32
    %318 = vector.broadcast %cst_205 : f32 to vector<2x32xf32>
    %319 = arith.addf %318, %317 : vector<2x32xf32>
    %320 = tpu.reciprocal %319 {approx = true} : vector<2x32xf32> -> vector<2x32xf32>
    %cst_206 = arith.constant 0.000000e+00 : f32
    %321 = vector.broadcast %cst_206 : f32 to vector<2x32xf32>
    %322 = arith.subf %321, %300 : vector<2x32xf32>
    %323 = math.exp %322 : vector<2x32xf32>
    %cst_207 = arith.constant 1.000000e+00 : f32
    %324 = vector.broadcast %cst_207 : f32 to vector<2x32xf32>
    %325 = arith.addf %324, %323 : vector<2x32xf32>
    %326 = tpu.reciprocal %325 {approx = true} : vector<2x32xf32> -> vector<2x32xf32>
    %327 = math.tanh %307 : vector<2x32xf32>
    %cst_208 = arith.constant 0.000000e+00 : f32
    %328 = vector.broadcast %cst_208 : f32 to vector<2x32xf32>
    %329 = arith.subf %328, %314 : vector<2x32xf32>
    %330 = math.exp %329 : vector<2x32xf32>
    %cst_209 = arith.constant 1.000000e+00 : f32
    %331 = vector.broadcast %cst_209 : f32 to vector<2x32xf32>
    %332 = arith.addf %331, %330 : vector<2x32xf32>
    %333 = tpu.reciprocal %332 {approx = true} : vector<2x32xf32> -> vector<2x32xf32>
    %334 = arith.mulf %326, %279 : vector<2x32xf32>
    %335 = arith.mulf %320, %327 : vector<2x32xf32>
    %336 = arith.addf %334, %335 : vector<2x32xf32>
    %337 = math.tanh %336 : vector<2x32xf32>
    %338 = arith.mulf %333, %337 : vector<2x32xf32>
    %339 = arith.index_cast %c5_i32 : i32 to index
    %c0_210 = arith.constant 0 : index
    %c0_211 = arith.constant 0 : index
    %340 = vector.load %arg8[%339, %c0_210, %c0_211] : memref<8x2x32xf32, #tpu.memory_space<vmem>>, vector<1x2x32xf32>
    %341 = vector.shape_cast %340 : vector<1x2x32xf32> to vector<2x32xf32>
    %342 = vector.shape_cast %338 : vector<2x32xf32> to vector<1x2x32xf32>
    tpu.vector_store %arg8[%339, %c0_210, %c0_211], %342 {strides = array<i32>} : memref<8x2x32xf32, #tpu.memory_space<vmem>>, vector<1x2x32xf32>,
    %c6_i32 = arith.constant 6 : i32
    %343 = arith.truncf %338 : vector<2x32xf32> to vector<2x32xbf16>
    %c0_212 = arith.constant 0 : index
    %344 = arith.index_cast %c6_i32 : i32 to index
    %c0_213 = arith.constant 0 : index
    %c0_214 = arith.constant 0 : index
    %345 = vector.load %arg0[%c0_212, %344, %c0_213, %c0_214] : memref<4x8x2x32xf32, #tpu.memory_space<vmem>>, vector<1x1x2x32xf32>
    %346 = vector.shape_cast %345 : vector<1x1x2x32xf32> to vector<2x32xf32>
    %c0_215 = arith.constant 0 : index
    %c0_216 = arith.constant 0 : index
    %c0_217 = arith.constant 0 : index
    %347 = vector.load %arg1[%c0_215, %c0_216, %c0_217] : memref<4x32x32xbf16, #tpu.memory_space<vmem>>, vector<1x32x32xbf16>
    %348 = vector.shape_cast %347 : vector<1x32x32xbf16> to vector<32x32xbf16>
    %cst_218 = arith.constant dense<0.000000e+00> : vector<2x32xf32>
    %349 = tpu.matmul %343, %348, %cst_218 {dimension_numbers = #tpu.dot_dimension_numbers<[1], [0], [0], [1], [0, 0, 1, 1], [], []>} : vector<2x32xbf16>, vector<32x32xbf16>, vector<2x32xf32> -> vector<2x32xf32>
    %350 = arith.addf %346, %349 : vector<2x32xf32>
    %c1_219 = arith.constant 1 : index
    %351 = arith.index_cast %c6_i32 : i32 to index
    %c0_220 = arith.constant 0 : index
    %c0_221 = arith.constant 0 : index
    %352 = vector.load %arg0[%c1_219, %351, %c0_220, %c0_221] : memref<4x8x2x32xf32, #tpu.memory_space<vmem>>, vector<1x1x2x32xf32>
    %353 = vector.shape_cast %352 : vector<1x1x2x32xf32> to vector<2x32xf32>
    %c1_222 = arith.constant 1 : index
    %c0_223 = arith.constant 0 : index
    %c0_224 = arith.constant 0 : index
    %354 = vector.load %arg1[%c1_222, %c0_223, %c0_224] : memref<4x32x32xbf16, #tpu.memory_space<vmem>>, vector<1x32x32xbf16>
    %355 = vector.shape_cast %354 : vector<1x32x32xbf16> to vector<32x32xbf16>
    %cst_225 = arith.constant dense<0.000000e+00> : vector<2x32xf32>
    %356 = tpu.matmul %343, %355, %cst_225 {dimension_numbers = #tpu.dot_dimension_numbers<[1], [0], [0], [1], [0, 0, 1, 1], [], []>} : vector<2x32xbf16>, vector<32x32xbf16>, vector<2x32xf32> -> vector<2x32xf32>
    %357 = arith.addf %353, %356 : vector<2x32xf32>
    %c2_226 = arith.constant 2 : index
    %358 = arith.index_cast %c6_i32 : i32 to index
    %c0_227 = arith.constant 0 : index
    %c0_228 = arith.constant 0 : index
    %359 = vector.load %arg0[%c2_226, %358, %c0_227, %c0_228] : memref<4x8x2x32xf32, #tpu.memory_space<vmem>>, vector<1x1x2x32xf32>
    %360 = vector.shape_cast %359 : vector<1x1x2x32xf32> to vector<2x32xf32>
    %c2_229 = arith.constant 2 : index
    %c0_230 = arith.constant 0 : index
    %c0_231 = arith.constant 0 : index
    %361 = vector.load %arg1[%c2_229, %c0_230, %c0_231] : memref<4x32x32xbf16, #tpu.memory_space<vmem>>, vector<1x32x32xbf16>
    %362 = vector.shape_cast %361 : vector<1x32x32xbf16> to vector<32x32xbf16>
    %cst_232 = arith.constant dense<0.000000e+00> : vector<2x32xf32>
    %363 = tpu.matmul %343, %362, %cst_232 {dimension_numbers = #tpu.dot_dimension_numbers<[1], [0], [0], [1], [0, 0, 1, 1], [], []>} : vector<2x32xbf16>, vector<32x32xbf16>, vector<2x32xf32> -> vector<2x32xf32>
    %364 = arith.addf %360, %363 : vector<2x32xf32>
    %c3_233 = arith.constant 3 : index
    %365 = arith.index_cast %c6_i32 : i32 to index
    %c0_234 = arith.constant 0 : index
    %c0_235 = arith.constant 0 : index
    %366 = vector.load %arg0[%c3_233, %365, %c0_234, %c0_235] : memref<4x8x2x32xf32, #tpu.memory_space<vmem>>, vector<1x1x2x32xf32>
    %367 = vector.shape_cast %366 : vector<1x1x2x32xf32> to vector<2x32xf32>
    %c3_236 = arith.constant 3 : index
    %c0_237 = arith.constant 0 : index
    %c0_238 = arith.constant 0 : index
    %368 = vector.load %arg1[%c3_236, %c0_237, %c0_238] : memref<4x32x32xbf16, #tpu.memory_space<vmem>>, vector<1x32x32xbf16>
    %369 = vector.shape_cast %368 : vector<1x32x32xbf16> to vector<32x32xbf16>
    %cst_239 = arith.constant dense<0.000000e+00> : vector<2x32xf32>
    %370 = tpu.matmul %343, %369, %cst_239 {dimension_numbers = #tpu.dot_dimension_numbers<[1], [0], [0], [1], [0, 0, 1, 1], [], []>} : vector<2x32xbf16>, vector<32x32xbf16>, vector<2x32xf32> -> vector<2x32xf32>
    %371 = arith.addf %367, %370 : vector<2x32xf32>
    %cst_240 = arith.constant 0.000000e+00 : f32
    %372 = vector.broadcast %cst_240 : f32 to vector<2x32xf32>
    %373 = arith.subf %372, %350 : vector<2x32xf32>
    %374 = math.exp %373 : vector<2x32xf32>
    %cst_241 = arith.constant 1.000000e+00 : f32
    %375 = vector.broadcast %cst_241 : f32 to vector<2x32xf32>
    %376 = arith.addf %375, %374 : vector<2x32xf32>
    %377 = tpu.reciprocal %376 {approx = true} : vector<2x32xf32> -> vector<2x32xf32>
    %cst_242 = arith.constant 0.000000e+00 : f32
    %378 = vector.broadcast %cst_242 : f32 to vector<2x32xf32>
    %379 = arith.subf %378, %357 : vector<2x32xf32>
    %380 = math.exp %379 : vector<2x32xf32>
    %cst_243 = arith.constant 1.000000e+00 : f32
    %381 = vector.broadcast %cst_243 : f32 to vector<2x32xf32>
    %382 = arith.addf %381, %380 : vector<2x32xf32>
    %383 = tpu.reciprocal %382 {approx = true} : vector<2x32xf32> -> vector<2x32xf32>
    %384 = math.tanh %364 : vector<2x32xf32>
    %cst_244 = arith.constant 0.000000e+00 : f32
    %385 = vector.broadcast %cst_244 : f32 to vector<2x32xf32>
    %386 = arith.subf %385, %371 : vector<2x32xf32>
    %387 = math.exp %386 : vector<2x32xf32>
    %cst_245 = arith.constant 1.000000e+00 : f32
    %388 = vector.broadcast %cst_245 : f32 to vector<2x32xf32>
    %389 = arith.addf %388, %387 : vector<2x32xf32>
    %390 = tpu.reciprocal %389 {approx = true} : vector<2x32xf32> -> vector<2x32xf32>
    %391 = arith.mulf %383, %336 : vector<2x32xf32>
    %392 = arith.mulf %377, %384 : vector<2x32xf32>
    %393 = arith.addf %391, %392 : vector<2x32xf32>
    %394 = math.tanh %393 : vector<2x32xf32>
    %395 = arith.mulf %390, %394 : vector<2x32xf32>
    %396 = arith.index_cast %c6_i32 : i32 to index
    %c0_246 = arith.constant 0 : index
    %c0_247 = arith.constant 0 : index
    %397 = vector.load %arg8[%396, %c0_246, %c0_247] : memref<8x2x32xf32, #tpu.memory_space<vmem>>, vector<1x2x32xf32>
    %398 = vector.shape_cast %397 : vector<1x2x32xf32> to vector<2x32xf32>
    %399 = vector.shape_cast %395 : vector<2x32xf32> to vector<1x2x32xf32>
    tpu.vector_store %arg8[%396, %c0_246, %c0_247], %399 {strides = array<i32>} : memref<8x2x32xf32, #tpu.memory_space<vmem>>, vector<1x2x32xf32>,
    %c7_i32 = arith.constant 7 : i32
    %400 = arith.truncf %395 : vector<2x32xf32> to vector<2x32xbf16>
    %c0_248 = arith.constant 0 : index
    %401 = arith.index_cast %c7_i32 : i32 to index
    %c0_249 = arith.constant 0 : index
    %c0_250 = arith.constant 0 : index
    %402 = vector.load %arg0[%c0_248, %401, %c0_249, %c0_250] : memref<4x8x2x32xf32, #tpu.memory_space<vmem>>, vector<1x1x2x32xf32>
    %403 = vector.shape_cast %402 : vector<1x1x2x32xf32> to vector<2x32xf32>
    %c0_251 = arith.constant 0 : index
    %c0_252 = arith.constant 0 : index
    %c0_253 = arith.constant 0 : index
    %404 = vector.load %arg1[%c0_251, %c0_252, %c0_253] : memref<4x32x32xbf16, #tpu.memory_space<vmem>>, vector<1x32x32xbf16>
    %405 = vector.shape_cast %404 : vector<1x32x32xbf16> to vector<32x32xbf16>
    %cst_254 = arith.constant dense<0.000000e+00> : vector<2x32xf32>
    %406 = tpu.matmul %400, %405, %cst_254 {dimension_numbers = #tpu.dot_dimension_numbers<[1], [0], [0], [1], [0, 0, 1, 1], [], []>} : vector<2x32xbf16>, vector<32x32xbf16>, vector<2x32xf32> -> vector<2x32xf32>
    %407 = arith.addf %403, %406 : vector<2x32xf32>
    %c1_255 = arith.constant 1 : index
    %408 = arith.index_cast %c7_i32 : i32 to index
    %c0_256 = arith.constant 0 : index
    %c0_257 = arith.constant 0 : index
    %409 = vector.load %arg0[%c1_255, %408, %c0_256, %c0_257] : memref<4x8x2x32xf32, #tpu.memory_space<vmem>>, vector<1x1x2x32xf32>
    %410 = vector.shape_cast %409 : vector<1x1x2x32xf32> to vector<2x32xf32>
    %c1_258 = arith.constant 1 : index
    %c0_259 = arith.constant 0 : index
    %c0_260 = arith.constant 0 : index
    %411 = vector.load %arg1[%c1_258, %c0_259, %c0_260] : memref<4x32x32xbf16, #tpu.memory_space<vmem>>, vector<1x32x32xbf16>
    %412 = vector.shape_cast %411 : vector<1x32x32xbf16> to vector<32x32xbf16>
    %cst_261 = arith.constant dense<0.000000e+00> : vector<2x32xf32>
    %413 = tpu.matmul %400, %412, %cst_261 {dimension_numbers = #tpu.dot_dimension_numbers<[1], [0], [0], [1], [0, 0, 1, 1], [], []>} : vector<2x32xbf16>, vector<32x32xbf16>, vector<2x32xf32> -> vector<2x32xf32>
    %414 = arith.addf %410, %413 : vector<2x32xf32>
    %c2_262 = arith.constant 2 : index
    %415 = arith.index_cast %c7_i32 : i32 to index
    %c0_263 = arith.constant 0 : index
    %c0_264 = arith.constant 0 : index
    %416 = vector.load %arg0[%c2_262, %415, %c0_263, %c0_264] : memref<4x8x2x32xf32, #tpu.memory_space<vmem>>, vector<1x1x2x32xf32>
    %417 = vector.shape_cast %416 : vector<1x1x2x32xf32> to vector<2x32xf32>
    %c2_265 = arith.constant 2 : index
    %c0_266 = arith.constant 0 : index
    %c0_267 = arith.constant 0 : index
    %418 = vector.load %arg1[%c2_265, %c0_266, %c0_267] : memref<4x32x32xbf16, #tpu.memory_space<vmem>>, vector<1x32x32xbf16>
    %419 = vector.shape_cast %418 : vector<1x32x32xbf16> to vector<32x32xbf16>
    %cst_268 = arith.constant dense<0.000000e+00> : vector<2x32xf32>
    %420 = tpu.matmul %400, %419, %cst_268 {dimension_numbers = #tpu.dot_dimension_numbers<[1], [0], [0], [1], [0, 0, 1, 1], [], []>} : vector<2x32xbf16>, vector<32x32xbf16>, vector<2x32xf32> -> vector<2x32xf32>
    %421 = arith.addf %417, %420 : vector<2x32xf32>
    %c3_269 = arith.constant 3 : index
    %422 = arith.index_cast %c7_i32 : i32 to index
    %c0_270 = arith.constant 0 : index
    %c0_271 = arith.constant 0 : index
    %423 = vector.load %arg0[%c3_269, %422, %c0_270, %c0_271] : memref<4x8x2x32xf32, #tpu.memory_space<vmem>>, vector<1x1x2x32xf32>
    %424 = vector.shape_cast %423 : vector<1x1x2x32xf32> to vector<2x32xf32>
    %c3_272 = arith.constant 3 : index
    %c0_273 = arith.constant 0 : index
    %c0_274 = arith.constant 0 : index
    %425 = vector.load %arg1[%c3_272, %c0_273, %c0_274] : memref<4x32x32xbf16, #tpu.memory_space<vmem>>, vector<1x32x32xbf16>
    %426 = vector.shape_cast %425 : vector<1x32x32xbf16> to vector<32x32xbf16>
    %cst_275 = arith.constant dense<0.000000e+00> : vector<2x32xf32>
    %427 = tpu.matmul %400, %426, %cst_275 {dimension_numbers = #tpu.dot_dimension_numbers<[1], [0], [0], [1], [0, 0, 1, 1], [], []>} : vector<2x32xbf16>, vector<32x32xbf16>, vector<2x32xf32> -> vector<2x32xf32>
    %428 = arith.addf %424, %427 : vector<2x32xf32>
    %cst_276 = arith.constant 0.000000e+00 : f32
    %429 = vector.broadcast %cst_276 : f32 to vector<2x32xf32>
    %430 = arith.subf %429, %407 : vector<2x32xf32>
    %431 = math.exp %430 : vector<2x32xf32>
    %cst_277 = arith.constant 1.000000e+00 : f32
    %432 = vector.broadcast %cst_277 : f32 to vector<2x32xf32>
    %433 = arith.addf %432, %431 : vector<2x32xf32>
    %434 = tpu.reciprocal %433 {approx = true} : vector<2x32xf32> -> vector<2x32xf32>
    %cst_278 = arith.constant 0.000000e+00 : f32
    %435 = vector.broadcast %cst_278 : f32 to vector<2x32xf32>
    %436 = arith.subf %435, %414 : vector<2x32xf32>
    %437 = math.exp %436 : vector<2x32xf32>
    %cst_279 = arith.constant 1.000000e+00 : f32
    %438 = vector.broadcast %cst_279 : f32 to vector<2x32xf32>
    %439 = arith.addf %438, %437 : vector<2x32xf32>
    %440 = tpu.reciprocal %439 {approx = true} : vector<2x32xf32> -> vector<2x32xf32>
    %441 = math.tanh %421 : vector<2x32xf32>
    %cst_280 = arith.constant 0.000000e+00 : f32
    %442 = vector.broadcast %cst_280 : f32 to vector<2x32xf32>
    %443 = arith.subf %442, %428 : vector<2x32xf32>
    %444 = math.exp %443 : vector<2x32xf32>
    %cst_281 = arith.constant 1.000000e+00 : f32
    %445 = vector.broadcast %cst_281 : f32 to vector<2x32xf32>
    %446 = arith.addf %445, %444 : vector<2x32xf32>
    %447 = tpu.reciprocal %446 {approx = true} : vector<2x32xf32> -> vector<2x32xf32>
    %448 = arith.mulf %440, %393 : vector<2x32xf32>
    %449 = arith.mulf %434, %441 : vector<2x32xf32>
    %450 = arith.addf %448, %449 : vector<2x32xf32>
    %451 = math.tanh %450 : vector<2x32xf32>
    %452 = arith.mulf %447, %451 : vector<2x32xf32>
    %453 = arith.index_cast %c7_i32 : i32 to index
    %c0_282 = arith.constant 0 : index
    %c0_283 = arith.constant 0 : index
    %454 = vector.load %arg8[%453, %c0_282, %c0_283] : memref<8x2x32xf32, #tpu.memory_space<vmem>>, vector<1x2x32xf32>
    %455 = vector.shape_cast %454 : vector<1x2x32xf32> to vector<2x32xf32>
    %456 = vector.shape_cast %452 : vector<2x32xf32> to vector<1x2x32xf32>
    tpu.vector_store %arg8[%453, %c0_282, %c0_283], %456 {strides = array<i32>} : memref<8x2x32xf32, #tpu.memory_space<vmem>>, vector<1x2x32xf32>,
    %c8_i32 = arith.constant 8 : i32
    %c0_i32_284 = arith.constant 0 : i32
    %457 = arith.index_cast %c0_i32_284 : i32 to index
    %c0_285 = arith.constant 0 : index
    %c0_286 = arith.constant 0 : index
    %458 = vector.load %arg8[%457, %c0_285, %c0_286] : memref<8x2x32xf32, #tpu.memory_space<vmem>>, vector<1x2x32xf32>
    %459 = vector.shape_cast %458 : vector<1x2x32xf32> to vector<2x32xf32>
    %460 = arith.truncf %459 : vector<2x32xf32> to vector<2x32xbf16>
    %c0_287 = arith.constant 0 : index
    %c0_288 = arith.constant 0 : index
    %c0_289 = arith.constant 0 : index
    %461 = vector.load %arg2[%c0_287, %c0_288, %c0_289] : memref<4x32x32xbf16, #tpu.memory_space<vmem>>, vector<1x32x32xbf16>
    %462 = vector.shape_cast %461 : vector<1x32x32xbf16> to vector<32x32xbf16>
    %cst_290 = arith.constant dense<0.000000e+00> : vector<2x32xf32>
    %463 = tpu.matmul %460, %462, %cst_290 {dimension_numbers = #tpu.dot_dimension_numbers<[1], [0], [0], [1], [0, 0, 1, 1], [], []>} : vector<2x32xbf16>, vector<32x32xbf16>, vector<2x32xf32> -> vector<2x32xf32>
    %c0_291 = arith.constant 0 : index
    %c0_292 = arith.constant 0 : index
    %c0_293 = arith.constant 0 : index
    %464 = vector.load %arg4[%c0_291, %c0_292, %c0_293] : memref<4x1x32xf32, #tpu.memory_space<vmem>>, vector<1x1x32xf32>
    %465 = vector.shape_cast %464 : vector<1x1x32xf32> to vector<1x32xf32>
    %466 = vector.broadcast %465 : vector<1x32xf32> to vector<2x32xf32>
    %467 = arith.addf %463, %466 : vector<2x32xf32>
    %c0_294 = arith.constant 0 : index
    %468 = arith.index_cast %c0_i32_284 : i32 to index
    %c0_295 = arith.constant 0 : index
    %c0_296 = arith.constant 0 : index
    %469 = vector.load %arg9[%c0_294, %468, %c0_295, %c0_296] : memref<4x8x2x32xf32, #tpu.memory_space<vmem>>, vector<1x1x2x32xf32>
    %470 = vector.shape_cast %469 : vector<1x1x2x32xf32> to vector<2x32xf32>
    %471 = vector.shape_cast %467 : vector<2x32xf32> to vector<1x1x2x32xf32>
    tpu.vector_store %arg9[%c0_294, %468, %c0_295, %c0_296], %471 {strides = array<i32>} : memref<4x8x2x32xf32, #tpu.memory_space<vmem>>, vector<1x1x2x32xf32>,
    %c1_297 = arith.constant 1 : index
    %c0_298 = arith.constant 0 : index
    %c0_299 = arith.constant 0 : index
    %472 = vector.load %arg2[%c1_297, %c0_298, %c0_299] : memref<4x32x32xbf16, #tpu.memory_space<vmem>>, vector<1x32x32xbf16>
    %473 = vector.shape_cast %472 : vector<1x32x32xbf16> to vector<32x32xbf16>
    %cst_300 = arith.constant dense<0.000000e+00> : vector<2x32xf32>
    %474 = tpu.matmul %460, %473, %cst_300 {dimension_numbers = #tpu.dot_dimension_numbers<[1], [0], [0], [1], [0, 0, 1, 1], [], []>} : vector<2x32xbf16>, vector<32x32xbf16>, vector<2x32xf32> -> vector<2x32xf32>
    %c1_301 = arith.constant 1 : index
    %c0_302 = arith.constant 0 : index
    %c0_303 = arith.constant 0 : index
    %475 = vector.load %arg4[%c1_301, %c0_302, %c0_303] : memref<4x1x32xf32, #tpu.memory_space<vmem>>, vector<1x1x32xf32>
    %476 = vector.shape_cast %475 : vector<1x1x32xf32> to vector<1x32xf32>
    %477 = vector.broadcast %476 : vector<1x32xf32> to vector<2x32xf32>
    %478 = arith.addf %474, %477 : vector<2x32xf32>
    %c1_304 = arith.constant 1 : index
    %479 = arith.index_cast %c0_i32_284 : i32 to index
    %c0_305 = arith.constant 0 : index
    %c0_306 = arith.constant 0 : index
    %480 = vector.load %arg9[%c1_304, %479, %c0_305, %c0_306] : memref<4x8x2x32xf32, #tpu.memory_space<vmem>>, vector<1x1x2x32xf32>
    %481 = vector.shape_cast %480 : vector<1x1x2x32xf32> to vector<2x32xf32>
    %482 = vector.shape_cast %478 : vector<2x32xf32> to vector<1x1x2x32xf32>
    tpu.vector_store %arg9[%c1_304, %479, %c0_305, %c0_306], %482 {strides = array<i32>} : memref<4x8x2x32xf32, #tpu.memory_space<vmem>>, vector<1x1x2x32xf32>,
    %c2_307 = arith.constant 2 : index
    %c0_308 = arith.constant 0 : index
    %c0_309 = arith.constant 0 : index
    %483 = vector.load %arg2[%c2_307, %c0_308, %c0_309] : memref<4x32x32xbf16, #tpu.memory_space<vmem>>, vector<1x32x32xbf16>
    %484 = vector.shape_cast %483 : vector<1x32x32xbf16> to vector<32x32xbf16>
    %cst_310 = arith.constant dense<0.000000e+00> : vector<2x32xf32>
    %485 = tpu.matmul %460, %484, %cst_310 {dimension_numbers = #tpu.dot_dimension_numbers<[1], [0], [0], [1], [0, 0, 1, 1], [], []>} : vector<2x32xbf16>, vector<32x32xbf16>, vector<2x32xf32> -> vector<2x32xf32>
    %c2_311 = arith.constant 2 : index
    %c0_312 = arith.constant 0 : index
    %c0_313 = arith.constant 0 : index
    %486 = vector.load %arg4[%c2_311, %c0_312, %c0_313] : memref<4x1x32xf32, #tpu.memory_space<vmem>>, vector<1x1x32xf32>
    %487 = vector.shape_cast %486 : vector<1x1x32xf32> to vector<1x32xf32>
    %488 = vector.broadcast %487 : vector<1x32xf32> to vector<2x32xf32>
    %489 = arith.addf %485, %488 : vector<2x32xf32>
    %c2_314 = arith.constant 2 : index
    %490 = arith.index_cast %c0_i32_284 : i32 to index
    %c0_315 = arith.constant 0 : index
    %c0_316 = arith.constant 0 : index
    %491 = vector.load %arg9[%c2_314, %490, %c0_315, %c0_316] : memref<4x8x2x32xf32, #tpu.memory_space<vmem>>, vector<1x1x2x32xf32>
    %492 = vector.shape_cast %491 : vector<1x1x2x32xf32> to vector<2x32xf32>
    %493 = vector.shape_cast %489 : vector<2x32xf32> to vector<1x1x2x32xf32>
    tpu.vector_store %arg9[%c2_314, %490, %c0_315, %c0_316], %493 {strides = array<i32>} : memref<4x8x2x32xf32, #tpu.memory_space<vmem>>, vector<1x1x2x32xf32>,
    %c3_317 = arith.constant 3 : index
    %c0_318 = arith.constant 0 : index
    %c0_319 = arith.constant 0 : index
    %494 = vector.load %arg2[%c3_317, %c0_318, %c0_319] : memref<4x32x32xbf16, #tpu.memory_space<vmem>>, vector<1x32x32xbf16>
    %495 = vector.shape_cast %494 : vector<1x32x32xbf16> to vector<32x32xbf16>
    %cst_320 = arith.constant dense<0.000000e+00> : vector<2x32xf32>
    %496 = tpu.matmul %460, %495, %cst_320 {dimension_numbers = #tpu.dot_dimension_numbers<[1], [0], [0], [1], [0, 0, 1, 1], [], []>} : vector<2x32xbf16>, vector<32x32xbf16>, vector<2x32xf32> -> vector<2x32xf32>
    %c3_321 = arith.constant 3 : index
    %c0_322 = arith.constant 0 : index
    %c0_323 = arith.constant 0 : index
    %497 = vector.load %arg4[%c3_321, %c0_322, %c0_323] : memref<4x1x32xf32, #tpu.memory_space<vmem>>, vector<1x1x32xf32>
    %498 = vector.shape_cast %497 : vector<1x1x32xf32> to vector<1x32xf32>
    %499 = vector.broadcast %498 : vector<1x32xf32> to vector<2x32xf32>
    %500 = arith.addf %496, %499 : vector<2x32xf32>
    %c3_324 = arith.constant 3 : index
    %501 = arith.index_cast %c0_i32_284 : i32 to index
    %c0_325 = arith.constant 0 : index
    %c0_326 = arith.constant 0 : index
    %502 = vector.load %arg9[%c3_324, %501, %c0_325, %c0_326] : memref<4x8x2x32xf32, #tpu.memory_space<vmem>>, vector<1x1x2x32xf32>
    %503 = vector.shape_cast %502 : vector<1x1x2x32xf32> to vector<2x32xf32>
    %504 = vector.shape_cast %500 : vector<2x32xf32> to vector<1x1x2x32xf32>
    tpu.vector_store %arg9[%c3_324, %501, %c0_325, %c0_326], %504 {strides = array<i32>} : memref<4x8x2x32xf32, #tpu.memory_space<vmem>>, vector<1x1x2x32xf32>,
    %c1_i32_327 = arith.constant 1 : i32
    %505 = arith.index_cast %c1_i32_327 : i32 to index
    %c0_328 = arith.constant 0 : index
    %c0_329 = arith.constant 0 : index
    %506 = vector.load %arg8[%505, %c0_328, %c0_329] : memref<8x2x32xf32, #tpu.memory_space<vmem>>, vector<1x2x32xf32>
    %507 = vector.shape_cast %506 : vector<1x2x32xf32> to vector<2x32xf32>
    %508 = arith.truncf %507 : vector<2x32xf32> to vector<2x32xbf16>
    %c0_330 = arith.constant 0 : index
    %c0_331 = arith.constant 0 : index
    %c0_332 = arith.constant 0 : index
    %509 = vector.load %arg2[%c0_330, %c0_331, %c0_332] : memref<4x32x32xbf16, #tpu.memory_space<vmem>>, vector<1x32x32xbf16>
    %510 = vector.shape_cast %509 : vector<1x32x32xbf16> to vector<32x32xbf16>
    %cst_333 = arith.constant dense<0.000000e+00> : vector<2x32xf32>
    %511 = tpu.matmul %508, %510, %cst_333 {dimension_numbers = #tpu.dot_dimension_numbers<[1], [0], [0], [1], [0, 0, 1, 1], [], []>} : vector<2x32xbf16>, vector<32x32xbf16>, vector<2x32xf32> -> vector<2x32xf32>
    %c0_334 = arith.constant 0 : index
    %c0_335 = arith.constant 0 : index
    %c0_336 = arith.constant 0 : index
    %512 = vector.load %arg4[%c0_334, %c0_335, %c0_336] : memref<4x1x32xf32, #tpu.memory_space<vmem>>, vector<1x1x32xf32>
    %513 = vector.shape_cast %512 : vector<1x1x32xf32> to vector<1x32xf32>
    %514 = vector.broadcast %513 : vector<1x32xf32> to vector<2x32xf32>
    %515 = arith.addf %511, %514 : vector<2x32xf32>
    %c0_337 = arith.constant 0 : index
    %516 = arith.index_cast %c1_i32_327 : i32 to index
    %c0_338 = arith.constant 0 : index
    %c0_339 = arith.constant 0 : index
    %517 = vector.load %arg9[%c0_337, %516, %c0_338, %c0_339] : memref<4x8x2x32xf32, #tpu.memory_space<vmem>>, vector<1x1x2x32xf32>
    %518 = vector.shape_cast %517 : vector<1x1x2x32xf32> to vector<2x32xf32>
    %519 = vector.shape_cast %515 : vector<2x32xf32> to vector<1x1x2x32xf32>
    tpu.vector_store %arg9[%c0_337, %516, %c0_338, %c0_339], %519 {strides = array<i32>} : memref<4x8x2x32xf32, #tpu.memory_space<vmem>>, vector<1x1x2x32xf32>,
    %c1_340 = arith.constant 1 : index
    %c0_341 = arith.constant 0 : index
    %c0_342 = arith.constant 0 : index
    %520 = vector.load %arg2[%c1_340, %c0_341, %c0_342] : memref<4x32x32xbf16, #tpu.memory_space<vmem>>, vector<1x32x32xbf16>
    %521 = vector.shape_cast %520 : vector<1x32x32xbf16> to vector<32x32xbf16>
    %cst_343 = arith.constant dense<0.000000e+00> : vector<2x32xf32>
    %522 = tpu.matmul %508, %521, %cst_343 {dimension_numbers = #tpu.dot_dimension_numbers<[1], [0], [0], [1], [0, 0, 1, 1], [], []>} : vector<2x32xbf16>, vector<32x32xbf16>, vector<2x32xf32> -> vector<2x32xf32>
    %c1_344 = arith.constant 1 : index
    %c0_345 = arith.constant 0 : index
    %c0_346 = arith.constant 0 : index
    %523 = vector.load %arg4[%c1_344, %c0_345, %c0_346] : memref<4x1x32xf32, #tpu.memory_space<vmem>>, vector<1x1x32xf32>
    %524 = vector.shape_cast %523 : vector<1x1x32xf32> to vector<1x32xf32>
    %525 = vector.broadcast %524 : vector<1x32xf32> to vector<2x32xf32>
    %526 = arith.addf %522, %525 : vector<2x32xf32>
    %c1_347 = arith.constant 1 : index
    %527 = arith.index_cast %c1_i32_327 : i32 to index
    %c0_348 = arith.constant 0 : index
    %c0_349 = arith.constant 0 : index
    %528 = vector.load %arg9[%c1_347, %527, %c0_348, %c0_349] : memref<4x8x2x32xf32, #tpu.memory_space<vmem>>, vector<1x1x2x32xf32>
    %529 = vector.shape_cast %528 : vector<1x1x2x32xf32> to vector<2x32xf32>
    %530 = vector.shape_cast %526 : vector<2x32xf32> to vector<1x1x2x32xf32>
    tpu.vector_store %arg9[%c1_347, %527, %c0_348, %c0_349], %530 {strides = array<i32>} : memref<4x8x2x32xf32, #tpu.memory_space<vmem>>, vector<1x1x2x32xf32>,
    %c2_350 = arith.constant 2 : index
    %c0_351 = arith.constant 0 : index
    %c0_352 = arith.constant 0 : index
    %531 = vector.load %arg2[%c2_350, %c0_351, %c0_352] : memref<4x32x32xbf16, #tpu.memory_space<vmem>>, vector<1x32x32xbf16>
    %532 = vector.shape_cast %531 : vector<1x32x32xbf16> to vector<32x32xbf16>
    %cst_353 = arith.constant dense<0.000000e+00> : vector<2x32xf32>
    %533 = tpu.matmul %508, %532, %cst_353 {dimension_numbers = #tpu.dot_dimension_numbers<[1], [0], [0], [1], [0, 0, 1, 1], [], []>} : vector<2x32xbf16>, vector<32x32xbf16>, vector<2x32xf32> -> vector<2x32xf32>
    %c2_354 = arith.constant 2 : index
    %c0_355 = arith.constant 0 : index
    %c0_356 = arith.constant 0 : index
    %534 = vector.load %arg4[%c2_354, %c0_355, %c0_356] : memref<4x1x32xf32, #tpu.memory_space<vmem>>, vector<1x1x32xf32>
    %535 = vector.shape_cast %534 : vector<1x1x32xf32> to vector<1x32xf32>
    %536 = vector.broadcast %535 : vector<1x32xf32> to vector<2x32xf32>
    %537 = arith.addf %533, %536 : vector<2x32xf32>
    %c2_357 = arith.constant 2 : index
    %538 = arith.index_cast %c1_i32_327 : i32 to index
    %c0_358 = arith.constant 0 : index
    %c0_359 = arith.constant 0 : index
    %539 = vector.load %arg9[%c2_357, %538, %c0_358, %c0_359] : memref<4x8x2x32xf32, #tpu.memory_space<vmem>>, vector<1x1x2x32xf32>
    %540 = vector.shape_cast %539 : vector<1x1x2x32xf32> to vector<2x32xf32>
    %541 = vector.shape_cast %537 : vector<2x32xf32> to vector<1x1x2x32xf32>
    tpu.vector_store %arg9[%c2_357, %538, %c0_358, %c0_359], %541 {strides = array<i32>} : memref<4x8x2x32xf32, #tpu.memory_space<vmem>>, vector<1x1x2x32xf32>,
    %c3_360 = arith.constant 3 : index
    %c0_361 = arith.constant 0 : index
    %c0_362 = arith.constant 0 : index
    %542 = vector.load %arg2[%c3_360, %c0_361, %c0_362] : memref<4x32x32xbf16, #tpu.memory_space<vmem>>, vector<1x32x32xbf16>
    %543 = vector.shape_cast %542 : vector<1x32x32xbf16> to vector<32x32xbf16>
    %cst_363 = arith.constant dense<0.000000e+00> : vector<2x32xf32>
    %544 = tpu.matmul %508, %543, %cst_363 {dimension_numbers = #tpu.dot_dimension_numbers<[1], [0], [0], [1], [0, 0, 1, 1], [], []>} : vector<2x32xbf16>, vector<32x32xbf16>, vector<2x32xf32> -> vector<2x32xf32>
    %c3_364 = arith.constant 3 : index
    %c0_365 = arith.constant 0 : index
    %c0_366 = arith.constant 0 : index
    %545 = vector.load %arg4[%c3_364, %c0_365, %c0_366] : memref<4x1x32xf32, #tpu.memory_space<vmem>>, vector<1x1x32xf32>
    %546 = vector.shape_cast %545 : vector<1x1x32xf32> to vector<1x32xf32>
    %547 = vector.broadcast %546 : vector<1x32xf32> to vector<2x32xf32>
    %548 = arith.addf %544, %547 : vector<2x32xf32>
    %c3_367 = arith.constant 3 : index
    %549 = arith.index_cast %c1_i32_327 : i32 to index
    %c0_368 = arith.constant 0 : index
    %c0_369 = arith.constant 0 : index
    %550 = vector.load %arg9[%c3_367, %549, %c0_368, %c0_369] : memref<4x8x2x32xf32, #tpu.memory_space<vmem>>, vector<1x1x2x32xf32>
    %551 = vector.shape_cast %550 : vector<1x1x2x32xf32> to vector<2x32xf32>
    %552 = vector.shape_cast %548 : vector<2x32xf32> to vector<1x1x2x32xf32>
    tpu.vector_store %arg9[%c3_367, %549, %c0_368, %c0_369], %552 {strides = array<i32>} : memref<4x8x2x32xf32, #tpu.memory_space<vmem>>, vector<1x1x2x32xf32>,
    %c2_i32_370 = arith.constant 2 : i32
    %553 = arith.index_cast %c2_i32_370 : i32 to index
    %c0_371 = arith.constant 0 : index
    %c0_372 = arith.constant 0 : index
    %554 = vector.load %arg8[%553, %c0_371, %c0_372] : memref<8x2x32xf32, #tpu.memory_space<vmem>>, vector<1x2x32xf32>
    %555 = vector.shape_cast %554 : vector<1x2x32xf32> to vector<2x32xf32>
    %556 = arith.truncf %555 : vector<2x32xf32> to vector<2x32xbf16>
    %c0_373 = arith.constant 0 : index
    %c0_374 = arith.constant 0 : index
    %c0_375 = arith.constant 0 : index
    %557 = vector.load %arg2[%c0_373, %c0_374, %c0_375] : memref<4x32x32xbf16, #tpu.memory_space<vmem>>, vector<1x32x32xbf16>
    %558 = vector.shape_cast %557 : vector<1x32x32xbf16> to vector<32x32xbf16>
    %cst_376 = arith.constant dense<0.000000e+00> : vector<2x32xf32>
    %559 = tpu.matmul %556, %558, %cst_376 {dimension_numbers = #tpu.dot_dimension_numbers<[1], [0], [0], [1], [0, 0, 1, 1], [], []>} : vector<2x32xbf16>, vector<32x32xbf16>, vector<2x32xf32> -> vector<2x32xf32>
    %c0_377 = arith.constant 0 : index
    %c0_378 = arith.constant 0 : index
    %c0_379 = arith.constant 0 : index
    %560 = vector.load %arg4[%c0_377, %c0_378, %c0_379] : memref<4x1x32xf32, #tpu.memory_space<vmem>>, vector<1x1x32xf32>
    %561 = vector.shape_cast %560 : vector<1x1x32xf32> to vector<1x32xf32>
    %562 = vector.broadcast %561 : vector<1x32xf32> to vector<2x32xf32>
    %563 = arith.addf %559, %562 : vector<2x32xf32>
    %c0_380 = arith.constant 0 : index
    %564 = arith.index_cast %c2_i32_370 : i32 to index
    %c0_381 = arith.constant 0 : index
    %c0_382 = arith.constant 0 : index
    %565 = vector.load %arg9[%c0_380, %564, %c0_381, %c0_382] : memref<4x8x2x32xf32, #tpu.memory_space<vmem>>, vector<1x1x2x32xf32>
    %566 = vector.shape_cast %565 : vector<1x1x2x32xf32> to vector<2x32xf32>
    %567 = vector.shape_cast %563 : vector<2x32xf32> to vector<1x1x2x32xf32>
    tpu.vector_store %arg9[%c0_380, %564, %c0_381, %c0_382], %567 {strides = array<i32>} : memref<4x8x2x32xf32, #tpu.memory_space<vmem>>, vector<1x1x2x32xf32>,
    %c1_383 = arith.constant 1 : index
    %c0_384 = arith.constant 0 : index
    %c0_385 = arith.constant 0 : index
    %568 = vector.load %arg2[%c1_383, %c0_384, %c0_385] : memref<4x32x32xbf16, #tpu.memory_space<vmem>>, vector<1x32x32xbf16>
    %569 = vector.shape_cast %568 : vector<1x32x32xbf16> to vector<32x32xbf16>
    %cst_386 = arith.constant dense<0.000000e+00> : vector<2x32xf32>
    %570 = tpu.matmul %556, %569, %cst_386 {dimension_numbers = #tpu.dot_dimension_numbers<[1], [0], [0], [1], [0, 0, 1, 1], [], []>} : vector<2x32xbf16>, vector<32x32xbf16>, vector<2x32xf32> -> vector<2x32xf32>
    %c1_387 = arith.constant 1 : index
    %c0_388 = arith.constant 0 : index
    %c0_389 = arith.constant 0 : index
    %571 = vector.load %arg4[%c1_387, %c0_388, %c0_389] : memref<4x1x32xf32, #tpu.memory_space<vmem>>, vector<1x1x32xf32>
    %572 = vector.shape_cast %571 : vector<1x1x32xf32> to vector<1x32xf32>
    %573 = vector.broadcast %572 : vector<1x32xf32> to vector<2x32xf32>
    %574 = arith.addf %570, %573 : vector<2x32xf32>
    %c1_390 = arith.constant 1 : index
    %575 = arith.index_cast %c2_i32_370 : i32 to index
    %c0_391 = arith.constant 0 : index
    %c0_392 = arith.constant 0 : index
    %576 = vector.load %arg9[%c1_390, %575, %c0_391, %c0_392] : memref<4x8x2x32xf32, #tpu.memory_space<vmem>>, vector<1x1x2x32xf32>
    %577 = vector.shape_cast %576 : vector<1x1x2x32xf32> to vector<2x32xf32>
    %578 = vector.shape_cast %574 : vector<2x32xf32> to vector<1x1x2x32xf32>
    tpu.vector_store %arg9[%c1_390, %575, %c0_391, %c0_392], %578 {strides = array<i32>} : memref<4x8x2x32xf32, #tpu.memory_space<vmem>>, vector<1x1x2x32xf32>,
    %c2_393 = arith.constant 2 : index
    %c0_394 = arith.constant 0 : index
    %c0_395 = arith.constant 0 : index
    %579 = vector.load %arg2[%c2_393, %c0_394, %c0_395] : memref<4x32x32xbf16, #tpu.memory_space<vmem>>, vector<1x32x32xbf16>
    %580 = vector.shape_cast %579 : vector<1x32x32xbf16> to vector<32x32xbf16>
    %cst_396 = arith.constant dense<0.000000e+00> : vector<2x32xf32>
    %581 = tpu.matmul %556, %580, %cst_396 {dimension_numbers = #tpu.dot_dimension_numbers<[1], [0], [0], [1], [0, 0, 1, 1], [], []>} : vector<2x32xbf16>, vector<32x32xbf16>, vector<2x32xf32> -> vector<2x32xf32>
    %c2_397 = arith.constant 2 : index
    %c0_398 = arith.constant 0 : index
    %c0_399 = arith.constant 0 : index
    %582 = vector.load %arg4[%c2_397, %c0_398, %c0_399] : memref<4x1x32xf32, #tpu.memory_space<vmem>>, vector<1x1x32xf32>
    %583 = vector.shape_cast %582 : vector<1x1x32xf32> to vector<1x32xf32>
    %584 = vector.broadcast %583 : vector<1x32xf32> to vector<2x32xf32>
    %585 = arith.addf %581, %584 : vector<2x32xf32>
    %c2_400 = arith.constant 2 : index
    %586 = arith.index_cast %c2_i32_370 : i32 to index
    %c0_401 = arith.constant 0 : index
    %c0_402 = arith.constant 0 : index
    %587 = vector.load %arg9[%c2_400, %586, %c0_401, %c0_402] : memref<4x8x2x32xf32, #tpu.memory_space<vmem>>, vector<1x1x2x32xf32>
    %588 = vector.shape_cast %587 : vector<1x1x2x32xf32> to vector<2x32xf32>
    %589 = vector.shape_cast %585 : vector<2x32xf32> to vector<1x1x2x32xf32>
    tpu.vector_store %arg9[%c2_400, %586, %c0_401, %c0_402], %589 {strides = array<i32>} : memref<4x8x2x32xf32, #tpu.memory_space<vmem>>, vector<1x1x2x32xf32>,
    %c3_403 = arith.constant 3 : index
    %c0_404 = arith.constant 0 : index
    %c0_405 = arith.constant 0 : index
    %590 = vector.load %arg2[%c3_403, %c0_404, %c0_405] : memref<4x32x32xbf16, #tpu.memory_space<vmem>>, vector<1x32x32xbf16>
    %591 = vector.shape_cast %590 : vector<1x32x32xbf16> to vector<32x32xbf16>
    %cst_406 = arith.constant dense<0.000000e+00> : vector<2x32xf32>
    %592 = tpu.matmul %556, %591, %cst_406 {dimension_numbers = #tpu.dot_dimension_numbers<[1], [0], [0], [1], [0, 0, 1, 1], [], []>} : vector<2x32xbf16>, vector<32x32xbf16>, vector<2x32xf32> -> vector<2x32xf32>
    %c3_407 = arith.constant 3 : index
    %c0_408 = arith.constant 0 : index
    %c0_409 = arith.constant 0 : index
    %593 = vector.load %arg4[%c3_407, %c0_408, %c0_409] : memref<4x1x32xf32, #tpu.memory_space<vmem>>, vector<1x1x32xf32>
    %594 = vector.shape_cast %593 : vector<1x1x32xf32> to vector<1x32xf32>
    %595 = vector.broadcast %594 : vector<1x32xf32> to vector<2x32xf32>
    %596 = arith.addf %592, %595 : vector<2x32xf32>
    %c3_410 = arith.constant 3 : index
    %597 = arith.index_cast %c2_i32_370 : i32 to index
    %c0_411 = arith.constant 0 : index
    %c0_412 = arith.constant 0 : index
    %598 = vector.load %arg9[%c3_410, %597, %c0_411, %c0_412] : memref<4x8x2x32xf32, #tpu.memory_space<vmem>>, vector<1x1x2x32xf32>
    %599 = vector.shape_cast %598 : vector<1x1x2x32xf32> to vector<2x32xf32>
    %600 = vector.shape_cast %596 : vector<2x32xf32> to vector<1x1x2x32xf32>
    tpu.vector_store %arg9[%c3_410, %597, %c0_411, %c0_412], %600 {strides = array<i32>} : memref<4x8x2x32xf32, #tpu.memory_space<vmem>>, vector<1x1x2x32xf32>,
    %c3_i32_413 = arith.constant 3 : i32
    %601 = arith.index_cast %c3_i32_413 : i32 to index
    %c0_414 = arith.constant 0 : index
    %c0_415 = arith.constant 0 : index
    %602 = vector.load %arg8[%601, %c0_414, %c0_415] : memref<8x2x32xf32, #tpu.memory_space<vmem>>, vector<1x2x32xf32>
    %603 = vector.shape_cast %602 : vector<1x2x32xf32> to vector<2x32xf32>
    %604 = arith.truncf %603 : vector<2x32xf32> to vector<2x32xbf16>
    %c0_416 = arith.constant 0 : index
    %c0_417 = arith.constant 0 : index
    %c0_418 = arith.constant 0 : index
    %605 = vector.load %arg2[%c0_416, %c0_417, %c0_418] : memref<4x32x32xbf16, #tpu.memory_space<vmem>>, vector<1x32x32xbf16>
    %606 = vector.shape_cast %605 : vector<1x32x32xbf16> to vector<32x32xbf16>
    %cst_419 = arith.constant dense<0.000000e+00> : vector<2x32xf32>
    %607 = tpu.matmul %604, %606, %cst_419 {dimension_numbers = #tpu.dot_dimension_numbers<[1], [0], [0], [1], [0, 0, 1, 1], [], []>} : vector<2x32xbf16>, vector<32x32xbf16>, vector<2x32xf32> -> vector<2x32xf32>
    %c0_420 = arith.constant 0 : index
    %c0_421 = arith.constant 0 : index
    %c0_422 = arith.constant 0 : index
    %608 = vector.load %arg4[%c0_420, %c0_421, %c0_422] : memref<4x1x32xf32, #tpu.memory_space<vmem>>, vector<1x1x32xf32>
    %609 = vector.shape_cast %608 : vector<1x1x32xf32> to vector<1x32xf32>
    %610 = vector.broadcast %609 : vector<1x32xf32> to vector<2x32xf32>
    %611 = arith.addf %607, %610 : vector<2x32xf32>
    %c0_423 = arith.constant 0 : index
    %612 = arith.index_cast %c3_i32_413 : i32 to index
    %c0_424 = arith.constant 0 : index
    %c0_425 = arith.constant 0 : index
    %613 = vector.load %arg9[%c0_423, %612, %c0_424, %c0_425] : memref<4x8x2x32xf32, #tpu.memory_space<vmem>>, vector<1x1x2x32xf32>
    %614 = vector.shape_cast %613 : vector<1x1x2x32xf32> to vector<2x32xf32>
    %615 = vector.shape_cast %611 : vector<2x32xf32> to vector<1x1x2x32xf32>
    tpu.vector_store %arg9[%c0_423, %612, %c0_424, %c0_425], %615 {strides = array<i32>} : memref<4x8x2x32xf32, #tpu.memory_space<vmem>>, vector<1x1x2x32xf32>,
    %c1_426 = arith.constant 1 : index
    %c0_427 = arith.constant 0 : index
    %c0_428 = arith.constant 0 : index
    %616 = vector.load %arg2[%c1_426, %c0_427, %c0_428] : memref<4x32x32xbf16, #tpu.memory_space<vmem>>, vector<1x32x32xbf16>
    %617 = vector.shape_cast %616 : vector<1x32x32xbf16> to vector<32x32xbf16>
    %cst_429 = arith.constant dense<0.000000e+00> : vector<2x32xf32>
    %618 = tpu.matmul %604, %617, %cst_429 {dimension_numbers = #tpu.dot_dimension_numbers<[1], [0], [0], [1], [0, 0, 1, 1], [], []>} : vector<2x32xbf16>, vector<32x32xbf16>, vector<2x32xf32> -> vector<2x32xf32>
    %c1_430 = arith.constant 1 : index
    %c0_431 = arith.constant 0 : index
    %c0_432 = arith.constant 0 : index
    %619 = vector.load %arg4[%c1_430, %c0_431, %c0_432] : memref<4x1x32xf32, #tpu.memory_space<vmem>>, vector<1x1x32xf32>
    %620 = vector.shape_cast %619 : vector<1x1x32xf32> to vector<1x32xf32>
    %621 = vector.broadcast %620 : vector<1x32xf32> to vector<2x32xf32>
    %622 = arith.addf %618, %621 : vector<2x32xf32>
    %c1_433 = arith.constant 1 : index
    %623 = arith.index_cast %c3_i32_413 : i32 to index
    %c0_434 = arith.constant 0 : index
    %c0_435 = arith.constant 0 : index
    %624 = vector.load %arg9[%c1_433, %623, %c0_434, %c0_435] : memref<4x8x2x32xf32, #tpu.memory_space<vmem>>, vector<1x1x2x32xf32>
    %625 = vector.shape_cast %624 : vector<1x1x2x32xf32> to vector<2x32xf32>
    %626 = vector.shape_cast %622 : vector<2x32xf32> to vector<1x1x2x32xf32>
    tpu.vector_store %arg9[%c1_433, %623, %c0_434, %c0_435], %626 {strides = array<i32>} : memref<4x8x2x32xf32, #tpu.memory_space<vmem>>, vector<1x1x2x32xf32>,
    %c2_436 = arith.constant 2 : index
    %c0_437 = arith.constant 0 : index
    %c0_438 = arith.constant 0 : index
    %627 = vector.load %arg2[%c2_436, %c0_437, %c0_438] : memref<4x32x32xbf16, #tpu.memory_space<vmem>>, vector<1x32x32xbf16>
    %628 = vector.shape_cast %627 : vector<1x32x32xbf16> to vector<32x32xbf16>
    %cst_439 = arith.constant dense<0.000000e+00> : vector<2x32xf32>
    %629 = tpu.matmul %604, %628, %cst_439 {dimension_numbers = #tpu.dot_dimension_numbers<[1], [0], [0], [1], [0, 0, 1, 1], [], []>} : vector<2x32xbf16>, vector<32x32xbf16>, vector<2x32xf32> -> vector<2x32xf32>
    %c2_440 = arith.constant 2 : index
    %c0_441 = arith.constant 0 : index
    %c0_442 = arith.constant 0 : index
    %630 = vector.load %arg4[%c2_440, %c0_441, %c0_442] : memref<4x1x32xf32, #tpu.memory_space<vmem>>, vector<1x1x32xf32>
    %631 = vector.shape_cast %630 : vector<1x1x32xf32> to vector<1x32xf32>
    %632 = vector.broadcast %631 : vector<1x32xf32> to vector<2x32xf32>
    %633 = arith.addf %629, %632 : vector<2x32xf32>
    %c2_443 = arith.constant 2 : index
    %634 = arith.index_cast %c3_i32_413 : i32 to index
    %c0_444 = arith.constant 0 : index
    %c0_445 = arith.constant 0 : index
    %635 = vector.load %arg9[%c2_443, %634, %c0_444, %c0_445] : memref<4x8x2x32xf32, #tpu.memory_space<vmem>>, vector<1x1x2x32xf32>
    %636 = vector.shape_cast %635 : vector<1x1x2x32xf32> to vector<2x32xf32>
    %637 = vector.shape_cast %633 : vector<2x32xf32> to vector<1x1x2x32xf32>
    tpu.vector_store %arg9[%c2_443, %634, %c0_444, %c0_445], %637 {strides = array<i32>} : memref<4x8x2x32xf32, #tpu.memory_space<vmem>>, vector<1x1x2x32xf32>,
    %c3_446 = arith.constant 3 : index
    %c0_447 = arith.constant 0 : index
    %c0_448 = arith.constant 0 : index
    %638 = vector.load %arg2[%c3_446, %c0_447, %c0_448] : memref<4x32x32xbf16, #tpu.memory_space<vmem>>, vector<1x32x32xbf16>
    %639 = vector.shape_cast %638 : vector<1x32x32xbf16> to vector<32x32xbf16>
    %cst_449 = arith.constant dense<0.000000e+00> : vector<2x32xf32>
    %640 = tpu.matmul %604, %639, %cst_449 {dimension_numbers = #tpu.dot_dimension_numbers<[1], [0], [0], [1], [0, 0, 1, 1], [], []>} : vector<2x32xbf16>, vector<32x32xbf16>, vector<2x32xf32> -> vector<2x32xf32>
    %c3_450 = arith.constant 3 : index
    %c0_451 = arith.constant 0 : index
    %c0_452 = arith.constant 0 : index
    %641 = vector.load %arg4[%c3_450, %c0_451, %c0_452] : memref<4x1x32xf32, #tpu.memory_space<vmem>>, vector<1x1x32xf32>
    %642 = vector.shape_cast %641 : vector<1x1x32xf32> to vector<1x32xf32>
    %643 = vector.broadcast %642 : vector<1x32xf32> to vector<2x32xf32>
    %644 = arith.addf %640, %643 : vector<2x32xf32>
    %c3_453 = arith.constant 3 : index
    %645 = arith.index_cast %c3_i32_413 : i32 to index
    %c0_454 = arith.constant 0 : index
    %c0_455 = arith.constant 0 : index
    %646 = vector.load %arg9[%c3_453, %645, %c0_454, %c0_455] : memref<4x8x2x32xf32, #tpu.memory_space<vmem>>, vector<1x1x2x32xf32>
    %647 = vector.shape_cast %646 : vector<1x1x2x32xf32> to vector<2x32xf32>
    %648 = vector.shape_cast %644 : vector<2x32xf32> to vector<1x1x2x32xf32>
    tpu.vector_store %arg9[%c3_453, %645, %c0_454, %c0_455], %648 {strides = array<i32>} : memref<4x8x2x32xf32, #tpu.memory_space<vmem>>, vector<1x1x2x32xf32>,
    %c4_i32_456 = arith.constant 4 : i32
    %649 = arith.index_cast %c4_i32_456 : i32 to index
    %c0_457 = arith.constant 0 : index
    %c0_458 = arith.constant 0 : index
    %650 = vector.load %arg8[%649, %c0_457, %c0_458] : memref<8x2x32xf32, #tpu.memory_space<vmem>>, vector<1x2x32xf32>
    %651 = vector.shape_cast %650 : vector<1x2x32xf32> to vector<2x32xf32>
    %652 = arith.truncf %651 : vector<2x32xf32> to vector<2x32xbf16>
    %c0_459 = arith.constant 0 : index
    %c0_460 = arith.constant 0 : index
    %c0_461 = arith.constant 0 : index
    %653 = vector.load %arg2[%c0_459, %c0_460, %c0_461] : memref<4x32x32xbf16, #tpu.memory_space<vmem>>, vector<1x32x32xbf16>
    %654 = vector.shape_cast %653 : vector<1x32x32xbf16> to vector<32x32xbf16>
    %cst_462 = arith.constant dense<0.000000e+00> : vector<2x32xf32>
    %655 = tpu.matmul %652, %654, %cst_462 {dimension_numbers = #tpu.dot_dimension_numbers<[1], [0], [0], [1], [0, 0, 1, 1], [], []>} : vector<2x32xbf16>, vector<32x32xbf16>, vector<2x32xf32> -> vector<2x32xf32>
    %c0_463 = arith.constant 0 : index
    %c0_464 = arith.constant 0 : index
    %c0_465 = arith.constant 0 : index
    %656 = vector.load %arg4[%c0_463, %c0_464, %c0_465] : memref<4x1x32xf32, #tpu.memory_space<vmem>>, vector<1x1x32xf32>
    %657 = vector.shape_cast %656 : vector<1x1x32xf32> to vector<1x32xf32>
    %658 = vector.broadcast %657 : vector<1x32xf32> to vector<2x32xf32>
    %659 = arith.addf %655, %658 : vector<2x32xf32>
    %c0_466 = arith.constant 0 : index
    %660 = arith.index_cast %c4_i32_456 : i32 to index
    %c0_467 = arith.constant 0 : index
    %c0_468 = arith.constant 0 : index
    %661 = vector.load %arg9[%c0_466, %660, %c0_467, %c0_468] : memref<4x8x2x32xf32, #tpu.memory_space<vmem>>, vector<1x1x2x32xf32>
    %662 = vector.shape_cast %661 : vector<1x1x2x32xf32> to vector<2x32xf32>
    %663 = vector.shape_cast %659 : vector<2x32xf32> to vector<1x1x2x32xf32>
    tpu.vector_store %arg9[%c0_466, %660, %c0_467, %c0_468], %663 {strides = array<i32>} : memref<4x8x2x32xf32, #tpu.memory_space<vmem>>, vector<1x1x2x32xf32>,
    %c1_469 = arith.constant 1 : index
    %c0_470 = arith.constant 0 : index
    %c0_471 = arith.constant 0 : index
    %664 = vector.load %arg2[%c1_469, %c0_470, %c0_471] : memref<4x32x32xbf16, #tpu.memory_space<vmem>>, vector<1x32x32xbf16>
    %665 = vector.shape_cast %664 : vector<1x32x32xbf16> to vector<32x32xbf16>
    %cst_472 = arith.constant dense<0.000000e+00> : vector<2x32xf32>
    %666 = tpu.matmul %652, %665, %cst_472 {dimension_numbers = #tpu.dot_dimension_numbers<[1], [0], [0], [1], [0, 0, 1, 1], [], []>} : vector<2x32xbf16>, vector<32x32xbf16>, vector<2x32xf32> -> vector<2x32xf32>
    %c1_473 = arith.constant 1 : index
    %c0_474 = arith.constant 0 : index
    %c0_475 = arith.constant 0 : index
    %667 = vector.load %arg4[%c1_473, %c0_474, %c0_475] : memref<4x1x32xf32, #tpu.memory_space<vmem>>, vector<1x1x32xf32>
    %668 = vector.shape_cast %667 : vector<1x1x32xf32> to vector<1x32xf32>
    %669 = vector.broadcast %668 : vector<1x32xf32> to vector<2x32xf32>
    %670 = arith.addf %666, %669 : vector<2x32xf32>
    %c1_476 = arith.constant 1 : index
    %671 = arith.index_cast %c4_i32_456 : i32 to index
    %c0_477 = arith.constant 0 : index
    %c0_478 = arith.constant 0 : index
    %672 = vector.load %arg9[%c1_476, %671, %c0_477, %c0_478] : memref<4x8x2x32xf32, #tpu.memory_space<vmem>>, vector<1x1x2x32xf32>
    %673 = vector.shape_cast %672 : vector<1x1x2x32xf32> to vector<2x32xf32>
    %674 = vector.shape_cast %670 : vector<2x32xf32> to vector<1x1x2x32xf32>
    tpu.vector_store %arg9[%c1_476, %671, %c0_477, %c0_478], %674 {strides = array<i32>} : memref<4x8x2x32xf32, #tpu.memory_space<vmem>>, vector<1x1x2x32xf32>,
    %c2_479 = arith.constant 2 : index
    %c0_480 = arith.constant 0 : index
    %c0_481 = arith.constant 0 : index
    %675 = vector.load %arg2[%c2_479, %c0_480, %c0_481] : memref<4x32x32xbf16, #tpu.memory_space<vmem>>, vector<1x32x32xbf16>
    %676 = vector.shape_cast %675 : vector<1x32x32xbf16> to vector<32x32xbf16>
    %cst_482 = arith.constant dense<0.000000e+00> : vector<2x32xf32>
    %677 = tpu.matmul %652, %676, %cst_482 {dimension_numbers = #tpu.dot_dimension_numbers<[1], [0], [0], [1], [0, 0, 1, 1], [], []>} : vector<2x32xbf16>, vector<32x32xbf16>, vector<2x32xf32> -> vector<2x32xf32>
    %c2_483 = arith.constant 2 : index
    %c0_484 = arith.constant 0 : index
    %c0_485 = arith.constant 0 : index
    %678 = vector.load %arg4[%c2_483, %c0_484, %c0_485] : memref<4x1x32xf32, #tpu.memory_space<vmem>>, vector<1x1x32xf32>
    %679 = vector.shape_cast %678 : vector<1x1x32xf32> to vector<1x32xf32>
    %680 = vector.broadcast %679 : vector<1x32xf32> to vector<2x32xf32>
    %681 = arith.addf %677, %680 : vector<2x32xf32>
    %c2_486 = arith.constant 2 : index
    %682 = arith.index_cast %c4_i32_456 : i32 to index
    %c0_487 = arith.constant 0 : index
    %c0_488 = arith.constant 0 : index
    %683 = vector.load %arg9[%c2_486, %682, %c0_487, %c0_488] : memref<4x8x2x32xf32, #tpu.memory_space<vmem>>, vector<1x1x2x32xf32>
    %684 = vector.shape_cast %683 : vector<1x1x2x32xf32> to vector<2x32xf32>
    %685 = vector.shape_cast %681 : vector<2x32xf32> to vector<1x1x2x32xf32>
    tpu.vector_store %arg9[%c2_486, %682, %c0_487, %c0_488], %685 {strides = array<i32>} : memref<4x8x2x32xf32, #tpu.memory_space<vmem>>, vector<1x1x2x32xf32>,
    %c3_489 = arith.constant 3 : index
    %c0_490 = arith.constant 0 : index
    %c0_491 = arith.constant 0 : index
    %686 = vector.load %arg2[%c3_489, %c0_490, %c0_491] : memref<4x32x32xbf16, #tpu.memory_space<vmem>>, vector<1x32x32xbf16>
    %687 = vector.shape_cast %686 : vector<1x32x32xbf16> to vector<32x32xbf16>
    %cst_492 = arith.constant dense<0.000000e+00> : vector<2x32xf32>
    %688 = tpu.matmul %652, %687, %cst_492 {dimension_numbers = #tpu.dot_dimension_numbers<[1], [0], [0], [1], [0, 0, 1, 1], [], []>} : vector<2x32xbf16>, vector<32x32xbf16>, vector<2x32xf32> -> vector<2x32xf32>
    %c3_493 = arith.constant 3 : index
    %c0_494 = arith.constant 0 : index
    %c0_495 = arith.constant 0 : index
    %689 = vector.load %arg4[%c3_493, %c0_494, %c0_495] : memref<4x1x32xf32, #tpu.memory_space<vmem>>, vector<1x1x32xf32>
    %690 = vector.shape_cast %689 : vector<1x1x32xf32> to vector<1x32xf32>
    %691 = vector.broadcast %690 : vector<1x32xf32> to vector<2x32xf32>
    %692 = arith.addf %688, %691 : vector<2x32xf32>
    %c3_496 = arith.constant 3 : index
    %693 = arith.index_cast %c4_i32_456 : i32 to index
    %c0_497 = arith.constant 0 : index
    %c0_498 = arith.constant 0 : index
    %694 = vector.load %arg9[%c3_496, %693, %c0_497, %c0_498] : memref<4x8x2x32xf32, #tpu.memory_space<vmem>>, vector<1x1x2x32xf32>
    %695 = vector.shape_cast %694 : vector<1x1x2x32xf32> to vector<2x32xf32>
    %696 = vector.shape_cast %692 : vector<2x32xf32> to vector<1x1x2x32xf32>
    tpu.vector_store %arg9[%c3_496, %693, %c0_497, %c0_498], %696 {strides = array<i32>} : memref<4x8x2x32xf32, #tpu.memory_space<vmem>>, vector<1x1x2x32xf32>,
    %c5_i32_499 = arith.constant 5 : i32
    %697 = arith.index_cast %c5_i32_499 : i32 to index
    %c0_500 = arith.constant 0 : index
    %c0_501 = arith.constant 0 : index
    %698 = vector.load %arg8[%697, %c0_500, %c0_501] : memref<8x2x32xf32, #tpu.memory_space<vmem>>, vector<1x2x32xf32>
    %699 = vector.shape_cast %698 : vector<1x2x32xf32> to vector<2x32xf32>
    %700 = arith.truncf %699 : vector<2x32xf32> to vector<2x32xbf16>
    %c0_502 = arith.constant 0 : index
    %c0_503 = arith.constant 0 : index
    %c0_504 = arith.constant 0 : index
    %701 = vector.load %arg2[%c0_502, %c0_503, %c0_504] : memref<4x32x32xbf16, #tpu.memory_space<vmem>>, vector<1x32x32xbf16>
    %702 = vector.shape_cast %701 : vector<1x32x32xbf16> to vector<32x32xbf16>
    %cst_505 = arith.constant dense<0.000000e+00> : vector<2x32xf32>
    %703 = tpu.matmul %700, %702, %cst_505 {dimension_numbers = #tpu.dot_dimension_numbers<[1], [0], [0], [1], [0, 0, 1, 1], [], []>} : vector<2x32xbf16>, vector<32x32xbf16>, vector<2x32xf32> -> vector<2x32xf32>
    %c0_506 = arith.constant 0 : index
    %c0_507 = arith.constant 0 : index
    %c0_508 = arith.constant 0 : index
    %704 = vector.load %arg4[%c0_506, %c0_507, %c0_508] : memref<4x1x32xf32, #tpu.memory_space<vmem>>, vector<1x1x32xf32>
    %705 = vector.shape_cast %704 : vector<1x1x32xf32> to vector<1x32xf32>
    %706 = vector.broadcast %705 : vector<1x32xf32> to vector<2x32xf32>
    %707 = arith.addf %703, %706 : vector<2x32xf32>
    %c0_509 = arith.constant 0 : index
    %708 = arith.index_cast %c5_i32_499 : i32 to index
    %c0_510 = arith.constant 0 : index
    %c0_511 = arith.constant 0 : index
    %709 = vector.load %arg9[%c0_509, %708, %c0_510, %c0_511] : memref<4x8x2x32xf32, #tpu.memory_space<vmem>>, vector<1x1x2x32xf32>
    %710 = vector.shape_cast %709 : vector<1x1x2x32xf32> to vector<2x32xf32>
    %711 = vector.shape_cast %707 : vector<2x32xf32> to vector<1x1x2x32xf32>
    tpu.vector_store %arg9[%c0_509, %708, %c0_510, %c0_511], %711 {strides = array<i32>} : memref<4x8x2x32xf32, #tpu.memory_space<vmem>>, vector<1x1x2x32xf32>,
    %c1_512 = arith.constant 1 : index
    %c0_513 = arith.constant 0 : index
    %c0_514 = arith.constant 0 : index
    %712 = vector.load %arg2[%c1_512, %c0_513, %c0_514] : memref<4x32x32xbf16, #tpu.memory_space<vmem>>, vector<1x32x32xbf16>
    %713 = vector.shape_cast %712 : vector<1x32x32xbf16> to vector<32x32xbf16>
    %cst_515 = arith.constant dense<0.000000e+00> : vector<2x32xf32>
    %714 = tpu.matmul %700, %713, %cst_515 {dimension_numbers = #tpu.dot_dimension_numbers<[1], [0], [0], [1], [0, 0, 1, 1], [], []>} : vector<2x32xbf16>, vector<32x32xbf16>, vector<2x32xf32> -> vector<2x32xf32>
    %c1_516 = arith.constant 1 : index
    %c0_517 = arith.constant 0 : index
    %c0_518 = arith.constant 0 : index
    %715 = vector.load %arg4[%c1_516, %c0_517, %c0_518] : memref<4x1x32xf32, #tpu.memory_space<vmem>>, vector<1x1x32xf32>
    %716 = vector.shape_cast %715 : vector<1x1x32xf32> to vector<1x32xf32>
    %717 = vector.broadcast %716 : vector<1x32xf32> to vector<2x32xf32>
    %718 = arith.addf %714, %717 : vector<2x32xf32>
    %c1_519 = arith.constant 1 : index
    %719 = arith.index_cast %c5_i32_499 : i32 to index
    %c0_520 = arith.constant 0 : index
    %c0_521 = arith.constant 0 : index
    %720 = vector.load %arg9[%c1_519, %719, %c0_520, %c0_521] : memref<4x8x2x32xf32, #tpu.memory_space<vmem>>, vector<1x1x2x32xf32>
    %721 = vector.shape_cast %720 : vector<1x1x2x32xf32> to vector<2x32xf32>
    %722 = vector.shape_cast %718 : vector<2x32xf32> to vector<1x1x2x32xf32>
    tpu.vector_store %arg9[%c1_519, %719, %c0_520, %c0_521], %722 {strides = array<i32>} : memref<4x8x2x32xf32, #tpu.memory_space<vmem>>, vector<1x1x2x32xf32>,
    %c2_522 = arith.constant 2 : index
    %c0_523 = arith.constant 0 : index
    %c0_524 = arith.constant 0 : index
    %723 = vector.load %arg2[%c2_522, %c0_523, %c0_524] : memref<4x32x32xbf16, #tpu.memory_space<vmem>>, vector<1x32x32xbf16>
    %724 = vector.shape_cast %723 : vector<1x32x32xbf16> to vector<32x32xbf16>
    %cst_525 = arith.constant dense<0.000000e+00> : vector<2x32xf32>
    %725 = tpu.matmul %700, %724, %cst_525 {dimension_numbers = #tpu.dot_dimension_numbers<[1], [0], [0], [1], [0, 0, 1, 1], [], []>} : vector<2x32xbf16>, vector<32x32xbf16>, vector<2x32xf32> -> vector<2x32xf32>
    %c2_526 = arith.constant 2 : index
    %c0_527 = arith.constant 0 : index
    %c0_528 = arith.constant 0 : index
    %726 = vector.load %arg4[%c2_526, %c0_527, %c0_528] : memref<4x1x32xf32, #tpu.memory_space<vmem>>, vector<1x1x32xf32>
    %727 = vector.shape_cast %726 : vector<1x1x32xf32> to vector<1x32xf32>
    %728 = vector.broadcast %727 : vector<1x32xf32> to vector<2x32xf32>
    %729 = arith.addf %725, %728 : vector<2x32xf32>
    %c2_529 = arith.constant 2 : index
    %730 = arith.index_cast %c5_i32_499 : i32 to index
    %c0_530 = arith.constant 0 : index
    %c0_531 = arith.constant 0 : index
    %731 = vector.load %arg9[%c2_529, %730, %c0_530, %c0_531] : memref<4x8x2x32xf32, #tpu.memory_space<vmem>>, vector<1x1x2x32xf32>
    %732 = vector.shape_cast %731 : vector<1x1x2x32xf32> to vector<2x32xf32>
    %733 = vector.shape_cast %729 : vector<2x32xf32> to vector<1x1x2x32xf32>
    tpu.vector_store %arg9[%c2_529, %730, %c0_530, %c0_531], %733 {strides = array<i32>} : memref<4x8x2x32xf32, #tpu.memory_space<vmem>>, vector<1x1x2x32xf32>,
    %c3_532 = arith.constant 3 : index
    %c0_533 = arith.constant 0 : index
    %c0_534 = arith.constant 0 : index
    %734 = vector.load %arg2[%c3_532, %c0_533, %c0_534] : memref<4x32x32xbf16, #tpu.memory_space<vmem>>, vector<1x32x32xbf16>
    %735 = vector.shape_cast %734 : vector<1x32x32xbf16> to vector<32x32xbf16>
    %cst_535 = arith.constant dense<0.000000e+00> : vector<2x32xf32>
    %736 = tpu.matmul %700, %735, %cst_535 {dimension_numbers = #tpu.dot_dimension_numbers<[1], [0], [0], [1], [0, 0, 1, 1], [], []>} : vector<2x32xbf16>, vector<32x32xbf16>, vector<2x32xf32> -> vector<2x32xf32>
    %c3_536 = arith.constant 3 : index
    %c0_537 = arith.constant 0 : index
    %c0_538 = arith.constant 0 : index
    %737 = vector.load %arg4[%c3_536, %c0_537, %c0_538] : memref<4x1x32xf32, #tpu.memory_space<vmem>>, vector<1x1x32xf32>
    %738 = vector.shape_cast %737 : vector<1x1x32xf32> to vector<1x32xf32>
    %739 = vector.broadcast %738 : vector<1x32xf32> to vector<2x32xf32>
    %740 = arith.addf %736, %739 : vector<2x32xf32>
    %c3_539 = arith.constant 3 : index
    %741 = arith.index_cast %c5_i32_499 : i32 to index
    %c0_540 = arith.constant 0 : index
    %c0_541 = arith.constant 0 : index
    %742 = vector.load %arg9[%c3_539, %741, %c0_540, %c0_541] : memref<4x8x2x32xf32, #tpu.memory_space<vmem>>, vector<1x1x2x32xf32>
    %743 = vector.shape_cast %742 : vector<1x1x2x32xf32> to vector<2x32xf32>
    %744 = vector.shape_cast %740 : vector<2x32xf32> to vector<1x1x2x32xf32>
    tpu.vector_store %arg9[%c3_539, %741, %c0_540, %c0_541], %744 {strides = array<i32>} : memref<4x8x2x32xf32, #tpu.memory_space<vmem>>, vector<1x1x2x32xf32>,
    %c6_i32_542 = arith.constant 6 : i32
    %745 = arith.index_cast %c6_i32_542 : i32 to index
    %c0_543 = arith.constant 0 : index
    %c0_544 = arith.constant 0 : index
    %746 = vector.load %arg8[%745, %c0_543, %c0_544] : memref<8x2x32xf32, #tpu.memory_space<vmem>>, vector<1x2x32xf32>
    %747 = vector.shape_cast %746 : vector<1x2x32xf32> to vector<2x32xf32>
    %748 = arith.truncf %747 : vector<2x32xf32> to vector<2x32xbf16>
    %c0_545 = arith.constant 0 : index
    %c0_546 = arith.constant 0 : index
    %c0_547 = arith.constant 0 : index
    %749 = vector.load %arg2[%c0_545, %c0_546, %c0_547] : memref<4x32x32xbf16, #tpu.memory_space<vmem>>, vector<1x32x32xbf16>
    %750 = vector.shape_cast %749 : vector<1x32x32xbf16> to vector<32x32xbf16>
    %cst_548 = arith.constant dense<0.000000e+00> : vector<2x32xf32>
    %751 = tpu.matmul %748, %750, %cst_548 {dimension_numbers = #tpu.dot_dimension_numbers<[1], [0], [0], [1], [0, 0, 1, 1], [], []>} : vector<2x32xbf16>, vector<32x32xbf16>, vector<2x32xf32> -> vector<2x32xf32>
    %c0_549 = arith.constant 0 : index
    %c0_550 = arith.constant 0 : index
    %c0_551 = arith.constant 0 : index
    %752 = vector.load %arg4[%c0_549, %c0_550, %c0_551] : memref<4x1x32xf32, #tpu.memory_space<vmem>>, vector<1x1x32xf32>
    %753 = vector.shape_cast %752 : vector<1x1x32xf32> to vector<1x32xf32>
    %754 = vector.broadcast %753 : vector<1x32xf32> to vector<2x32xf32>
    %755 = arith.addf %751, %754 : vector<2x32xf32>
    %c0_552 = arith.constant 0 : index
    %756 = arith.index_cast %c6_i32_542 : i32 to index
    %c0_553 = arith.constant 0 : index
    %c0_554 = arith.constant 0 : index
    %757 = vector.load %arg9[%c0_552, %756, %c0_553, %c0_554] : memref<4x8x2x32xf32, #tpu.memory_space<vmem>>, vector<1x1x2x32xf32>
    %758 = vector.shape_cast %757 : vector<1x1x2x32xf32> to vector<2x32xf32>
    %759 = vector.shape_cast %755 : vector<2x32xf32> to vector<1x1x2x32xf32>
    tpu.vector_store %arg9[%c0_552, %756, %c0_553, %c0_554], %759 {strides = array<i32>} : memref<4x8x2x32xf32, #tpu.memory_space<vmem>>, vector<1x1x2x32xf32>,
    %c1_555 = arith.constant 1 : index
    %c0_556 = arith.constant 0 : index
    %c0_557 = arith.constant 0 : index
    %760 = vector.load %arg2[%c1_555, %c0_556, %c0_557] : memref<4x32x32xbf16, #tpu.memory_space<vmem>>, vector<1x32x32xbf16>
    %761 = vector.shape_cast %760 : vector<1x32x32xbf16> to vector<32x32xbf16>
    %cst_558 = arith.constant dense<0.000000e+00> : vector<2x32xf32>
    %762 = tpu.matmul %748, %761, %cst_558 {dimension_numbers = #tpu.dot_dimension_numbers<[1], [0], [0], [1], [0, 0, 1, 1], [], []>} : vector<2x32xbf16>, vector<32x32xbf16>, vector<2x32xf32> -> vector<2x32xf32>
    %c1_559 = arith.constant 1 : index
    %c0_560 = arith.constant 0 : index
    %c0_561 = arith.constant 0 : index
    %763 = vector.load %arg4[%c1_559, %c0_560, %c0_561] : memref<4x1x32xf32, #tpu.memory_space<vmem>>, vector<1x1x32xf32>
    %764 = vector.shape_cast %763 : vector<1x1x32xf32> to vector<1x32xf32>
    %765 = vector.broadcast %764 : vector<1x32xf32> to vector<2x32xf32>
    %766 = arith.addf %762, %765 : vector<2x32xf32>
    %c1_562 = arith.constant 1 : index
    %767 = arith.index_cast %c6_i32_542 : i32 to index
    %c0_563 = arith.constant 0 : index
    %c0_564 = arith.constant 0 : index
    %768 = vector.load %arg9[%c1_562, %767, %c0_563, %c0_564] : memref<4x8x2x32xf32, #tpu.memory_space<vmem>>, vector<1x1x2x32xf32>
    %769 = vector.shape_cast %768 : vector<1x1x2x32xf32> to vector<2x32xf32>
    %770 = vector.shape_cast %766 : vector<2x32xf32> to vector<1x1x2x32xf32>
    tpu.vector_store %arg9[%c1_562, %767, %c0_563, %c0_564], %770 {strides = array<i32>} : memref<4x8x2x32xf32, #tpu.memory_space<vmem>>, vector<1x1x2x32xf32>,
    %c2_565 = arith.constant 2 : index
    %c0_566 = arith.constant 0 : index
    %c0_567 = arith.constant 0 : index
    %771 = vector.load %arg2[%c2_565, %c0_566, %c0_567] : memref<4x32x32xbf16, #tpu.memory_space<vmem>>, vector<1x32x32xbf16>
    %772 = vector.shape_cast %771 : vector<1x32x32xbf16> to vector<32x32xbf16>
    %cst_568 = arith.constant dense<0.000000e+00> : vector<2x32xf32>
    %773 = tpu.matmul %748, %772, %cst_568 {dimension_numbers = #tpu.dot_dimension_numbers<[1], [0], [0], [1], [0, 0, 1, 1], [], []>} : vector<2x32xbf16>, vector<32x32xbf16>, vector<2x32xf32> -> vector<2x32xf32>
    %c2_569 = arith.constant 2 : index
    %c0_570 = arith.constant 0 : index
    %c0_571 = arith.constant 0 : index
    %774 = vector.load %arg4[%c2_569, %c0_570, %c0_571] : memref<4x1x32xf32, #tpu.memory_space<vmem>>, vector<1x1x32xf32>
    %775 = vector.shape_cast %774 : vector<1x1x32xf32> to vector<1x32xf32>
    %776 = vector.broadcast %775 : vector<1x32xf32> to vector<2x32xf32>
    %777 = arith.addf %773, %776 : vector<2x32xf32>
    %c2_572 = arith.constant 2 : index
    %778 = arith.index_cast %c6_i32_542 : i32 to index
    %c0_573 = arith.constant 0 : index
    %c0_574 = arith.constant 0 : index
    %779 = vector.load %arg9[%c2_572, %778, %c0_573, %c0_574] : memref<4x8x2x32xf32, #tpu.memory_space<vmem>>, vector<1x1x2x32xf32>
    %780 = vector.shape_cast %779 : vector<1x1x2x32xf32> to vector<2x32xf32>
    %781 = vector.shape_cast %777 : vector<2x32xf32> to vector<1x1x2x32xf32>
    tpu.vector_store %arg9[%c2_572, %778, %c0_573, %c0_574], %781 {strides = array<i32>} : memref<4x8x2x32xf32, #tpu.memory_space<vmem>>, vector<1x1x2x32xf32>,
    %c3_575 = arith.constant 3 : index
    %c0_576 = arith.constant 0 : index
    %c0_577 = arith.constant 0 : index
    %782 = vector.load %arg2[%c3_575, %c0_576, %c0_577] : memref<4x32x32xbf16, #tpu.memory_space<vmem>>, vector<1x32x32xbf16>
    %783 = vector.shape_cast %782 : vector<1x32x32xbf16> to vector<32x32xbf16>
    %cst_578 = arith.constant dense<0.000000e+00> : vector<2x32xf32>
    %784 = tpu.matmul %748, %783, %cst_578 {dimension_numbers = #tpu.dot_dimension_numbers<[1], [0], [0], [1], [0, 0, 1, 1], [], []>} : vector<2x32xbf16>, vector<32x32xbf16>, vector<2x32xf32> -> vector<2x32xf32>
    %c3_579 = arith.constant 3 : index
    %c0_580 = arith.constant 0 : index
    %c0_581 = arith.constant 0 : index
    %785 = vector.load %arg4[%c3_579, %c0_580, %c0_581] : memref<4x1x32xf32, #tpu.memory_space<vmem>>, vector<1x1x32xf32>
    %786 = vector.shape_cast %785 : vector<1x1x32xf32> to vector<1x32xf32>
    %787 = vector.broadcast %786 : vector<1x32xf32> to vector<2x32xf32>
    %788 = arith.addf %784, %787 : vector<2x32xf32>
    %c3_582 = arith.constant 3 : index
    %789 = arith.index_cast %c6_i32_542 : i32 to index
    %c0_583 = arith.constant 0 : index
    %c0_584 = arith.constant 0 : index
    %790 = vector.load %arg9[%c3_582, %789, %c0_583, %c0_584] : memref<4x8x2x32xf32, #tpu.memory_space<vmem>>, vector<1x1x2x32xf32>
    %791 = vector.shape_cast %790 : vector<1x1x2x32xf32> to vector<2x32xf32>
    %792 = vector.shape_cast %788 : vector<2x32xf32> to vector<1x1x2x32xf32>
    tpu.vector_store %arg9[%c3_582, %789, %c0_583, %c0_584], %792 {strides = array<i32>} : memref<4x8x2x32xf32, #tpu.memory_space<vmem>>, vector<1x1x2x32xf32>,
    %c7_i32_585 = arith.constant 7 : i32
    %793 = arith.index_cast %c7_i32_585 : i32 to index
    %c0_586 = arith.constant 0 : index
    %c0_587 = arith.constant 0 : index
    %794 = vector.load %arg8[%793, %c0_586, %c0_587] : memref<8x2x32xf32, #tpu.memory_space<vmem>>, vector<1x2x32xf32>
    %795 = vector.shape_cast %794 : vector<1x2x32xf32> to vector<2x32xf32>
    %796 = arith.truncf %795 : vector<2x32xf32> to vector<2x32xbf16>
    %c0_588 = arith.constant 0 : index
    %c0_589 = arith.constant 0 : index
    %c0_590 = arith.constant 0 : index
    %797 = vector.load %arg2[%c0_588, %c0_589, %c0_590] : memref<4x32x32xbf16, #tpu.memory_space<vmem>>, vector<1x32x32xbf16>
    %798 = vector.shape_cast %797 : vector<1x32x32xbf16> to vector<32x32xbf16>
    %cst_591 = arith.constant dense<0.000000e+00> : vector<2x32xf32>
    %799 = tpu.matmul %796, %798, %cst_591 {dimension_numbers = #tpu.dot_dimension_numbers<[1], [0], [0], [1], [0, 0, 1, 1], [], []>} : vector<2x32xbf16>, vector<32x32xbf16>, vector<2x32xf32> -> vector<2x32xf32>
    %c0_592 = arith.constant 0 : index
    %c0_593 = arith.constant 0 : index
    %c0_594 = arith.constant 0 : index
    %800 = vector.load %arg4[%c0_592, %c0_593, %c0_594] : memref<4x1x32xf32, #tpu.memory_space<vmem>>, vector<1x1x32xf32>
    %801 = vector.shape_cast %800 : vector<1x1x32xf32> to vector<1x32xf32>
    %802 = vector.broadcast %801 : vector<1x32xf32> to vector<2x32xf32>
    %803 = arith.addf %799, %802 : vector<2x32xf32>
    %c0_595 = arith.constant 0 : index
    %804 = arith.index_cast %c7_i32_585 : i32 to index
    %c0_596 = arith.constant 0 : index
    %c0_597 = arith.constant 0 : index
    %805 = vector.load %arg9[%c0_595, %804, %c0_596, %c0_597] : memref<4x8x2x32xf32, #tpu.memory_space<vmem>>, vector<1x1x2x32xf32>
    %806 = vector.shape_cast %805 : vector<1x1x2x32xf32> to vector<2x32xf32>
    %807 = vector.shape_cast %803 : vector<2x32xf32> to vector<1x1x2x32xf32>
    tpu.vector_store %arg9[%c0_595, %804, %c0_596, %c0_597], %807 {strides = array<i32>} : memref<4x8x2x32xf32, #tpu.memory_space<vmem>>, vector<1x1x2x32xf32>,
    %c1_598 = arith.constant 1 : index
    %c0_599 = arith.constant 0 : index
    %c0_600 = arith.constant 0 : index
    %808 = vector.load %arg2[%c1_598, %c0_599, %c0_600] : memref<4x32x32xbf16, #tpu.memory_space<vmem>>, vector<1x32x32xbf16>
    %809 = vector.shape_cast %808 : vector<1x32x32xbf16> to vector<32x32xbf16>
    %cst_601 = arith.constant dense<0.000000e+00> : vector<2x32xf32>
    %810 = tpu.matmul %796, %809, %cst_601 {dimension_numbers = #tpu.dot_dimension_numbers<[1], [0], [0], [1], [0, 0, 1, 1], [], []>} : vector<2x32xbf16>, vector<32x32xbf16>, vector<2x32xf32> -> vector<2x32xf32>
    %c1_602 = arith.constant 1 : index
    %c0_603 = arith.constant 0 : index
    %c0_604 = arith.constant 0 : index
    %811 = vector.load %arg4[%c1_602, %c0_603, %c0_604] : memref<4x1x32xf32, #tpu.memory_space<vmem>>, vector<1x1x32xf32>
    %812 = vector.shape_cast %811 : vector<1x1x32xf32> to vector<1x32xf32>
    %813 = vector.broadcast %812 : vector<1x32xf32> to vector<2x32xf32>
    %814 = arith.addf %810, %813 : vector<2x32xf32>
    %c1_605 = arith.constant 1 : index
    %815 = arith.index_cast %c7_i32_585 : i32 to index
    %c0_606 = arith.constant 0 : index
    %c0_607 = arith.constant 0 : index
    %816 = vector.load %arg9[%c1_605, %815, %c0_606, %c0_607] : memref<4x8x2x32xf32, #tpu.memory_space<vmem>>, vector<1x1x2x32xf32>
    %817 = vector.shape_cast %816 : vector<1x1x2x32xf32> to vector<2x32xf32>
    %818 = vector.shape_cast %814 : vector<2x32xf32> to vector<1x1x2x32xf32>
    tpu.vector_store %arg9[%c1_605, %815, %c0_606, %c0_607], %818 {strides = array<i32>} : memref<4x8x2x32xf32, #tpu.memory_space<vmem>>, vector<1x1x2x32xf32>,
    %c2_608 = arith.constant 2 : index
    %c0_609 = arith.constant 0 : index
    %c0_610 = arith.constant 0 : index
    %819 = vector.load %arg2[%c2_608, %c0_609, %c0_610] : memref<4x32x32xbf16, #tpu.memory_space<vmem>>, vector<1x32x32xbf16>
    %820 = vector.shape_cast %819 : vector<1x32x32xbf16> to vector<32x32xbf16>
    %cst_611 = arith.constant dense<0.000000e+00> : vector<2x32xf32>
    %821 = tpu.matmul %796, %820, %cst_611 {dimension_numbers = #tpu.dot_dimension_numbers<[1], [0], [0], [1], [0, 0, 1, 1], [], []>} : vector<2x32xbf16>, vector<32x32xbf16>, vector<2x32xf32> -> vector<2x32xf32>
    %c2_612 = arith.constant 2 : index
    %c0_613 = arith.constant 0 : index
    %c0_614 = arith.constant 0 : index
    %822 = vector.load %arg4[%c2_612, %c0_613, %c0_614] : memref<4x1x32xf32, #tpu.memory_space<vmem>>, vector<1x1x32xf32>
    %823 = vector.shape_cast %822 : vector<1x1x32xf32> to vector<1x32xf32>
    %824 = vector.broadcast %823 : vector<1x32xf32> to vector<2x32xf32>
    %825 = arith.addf %821, %824 : vector<2x32xf32>
    %c2_615 = arith.constant 2 : index
    %826 = arith.index_cast %c7_i32_585 : i32 to index
    %c0_616 = arith.constant 0 : index
    %c0_617 = arith.constant 0 : index
    %827 = vector.load %arg9[%c2_615, %826, %c0_616, %c0_617] : memref<4x8x2x32xf32, #tpu.memory_space<vmem>>, vector<1x1x2x32xf32>
    %828 = vector.shape_cast %827 : vector<1x1x2x32xf32> to vector<2x32xf32>
    %829 = vector.shape_cast %825 : vector<2x32xf32> to vector<1x1x2x32xf32>
    tpu.vector_store %arg9[%c2_615, %826, %c0_616, %c0_617], %829 {strides = array<i32>} : memref<4x8x2x32xf32, #tpu.memory_space<vmem>>, vector<1x1x2x32xf32>,
    %c3_618 = arith.constant 3 : index
    %c0_619 = arith.constant 0 : index
    %c0_620 = arith.constant 0 : index
    %830 = vector.load %arg2[%c3_618, %c0_619, %c0_620] : memref<4x32x32xbf16, #tpu.memory_space<vmem>>, vector<1x32x32xbf16>
    %831 = vector.shape_cast %830 : vector<1x32x32xbf16> to vector<32x32xbf16>
    %cst_621 = arith.constant dense<0.000000e+00> : vector<2x32xf32>
    %832 = tpu.matmul %796, %831, %cst_621 {dimension_numbers = #tpu.dot_dimension_numbers<[1], [0], [0], [1], [0, 0, 1, 1], [], []>} : vector<2x32xbf16>, vector<32x32xbf16>, vector<2x32xf32> -> vector<2x32xf32>
    %c3_622 = arith.constant 3 : index
    %c0_623 = arith.constant 0 : index
    %c0_624 = arith.constant 0 : index
    %833 = vector.load %arg4[%c3_622, %c0_623, %c0_624] : memref<4x1x32xf32, #tpu.memory_space<vmem>>, vector<1x1x32xf32>
    %834 = vector.shape_cast %833 : vector<1x1x32xf32> to vector<1x32xf32>
    %835 = vector.broadcast %834 : vector<1x32xf32> to vector<2x32xf32>
    %836 = arith.addf %832, %835 : vector<2x32xf32>
    %c3_625 = arith.constant 3 : index
    %837 = arith.index_cast %c7_i32_585 : i32 to index
    %c0_626 = arith.constant 0 : index
    %c0_627 = arith.constant 0 : index
    %838 = vector.load %arg9[%c3_625, %837, %c0_626, %c0_627] : memref<4x8x2x32xf32, #tpu.memory_space<vmem>>, vector<1x1x2x32xf32>
    %839 = vector.shape_cast %838 : vector<1x1x2x32xf32> to vector<2x32xf32>
    %840 = vector.shape_cast %836 : vector<2x32xf32> to vector<1x1x2x32xf32>
    tpu.vector_store %arg9[%c3_625, %837, %c0_626, %c0_627], %840 {strides = array<i32>} : memref<4x8x2x32xf32, #tpu.memory_space<vmem>>, vector<1x1x2x32xf32>,
    %c8_i32_628 = arith.constant 8 : i32
    %cst_629 = arith.constant 0.000000e+00 : f32
    %841 = vector.broadcast %cst_629 : f32 to vector<2x32xf32>
    %c0_i32_630 = arith.constant 0 : i32
    %842 = arith.truncf %841 : vector<2x32xf32> to vector<2x32xbf16>
    %c0_631 = arith.constant 0 : index
    %843 = arith.index_cast %c0_i32_630 : i32 to index
    %c0_632 = arith.constant 0 : index
    %c0_633 = arith.constant 0 : index
    %844 = vector.load %arg9[%c0_631, %843, %c0_632, %c0_633] : memref<4x8x2x32xf32, #tpu.memory_space<vmem>>, vector<1x1x2x32xf32>
    %845 = vector.shape_cast %844 : vector<1x1x2x32xf32> to vector<2x32xf32>
    %c0_634 = arith.constant 0 : index
    %c0_635 = arith.constant 0 : index
    %c0_636 = arith.constant 0 : index
    %846 = vector.load %arg3[%c0_634, %c0_635, %c0_636] : memref<4x32x32xbf16, #tpu.memory_space<vmem>>, vector<1x32x32xbf16>
    %847 = vector.shape_cast %846 : vector<1x32x32xbf16> to vector<32x32xbf16>
    %cst_637 = arith.constant dense<0.000000e+00> : vector<2x32xf32>
    %848 = tpu.matmul %842, %847, %cst_637 {dimension_numbers = #tpu.dot_dimension_numbers<[1], [0], [0], [1], [0, 0, 1, 1], [], []>} : vector<2x32xbf16>, vector<32x32xbf16>, vector<2x32xf32> -> vector<2x32xf32>
    %849 = arith.addf %845, %848 : vector<2x32xf32>
    %c1_638 = arith.constant 1 : index
    %850 = arith.index_cast %c0_i32_630 : i32 to index
    %c0_639 = arith.constant 0 : index
    %c0_640 = arith.constant 0 : index
    %851 = vector.load %arg9[%c1_638, %850, %c0_639, %c0_640] : memref<4x8x2x32xf32, #tpu.memory_space<vmem>>, vector<1x1x2x32xf32>
    %852 = vector.shape_cast %851 : vector<1x1x2x32xf32> to vector<2x32xf32>
    %c1_641 = arith.constant 1 : index
    %c0_642 = arith.constant 0 : index
    %c0_643 = arith.constant 0 : index
    %853 = vector.load %arg3[%c1_641, %c0_642, %c0_643] : memref<4x32x32xbf16, #tpu.memory_space<vmem>>, vector<1x32x32xbf16>
    %854 = vector.shape_cast %853 : vector<1x32x32xbf16> to vector<32x32xbf16>
    %cst_644 = arith.constant dense<0.000000e+00> : vector<2x32xf32>
    %855 = tpu.matmul %842, %854, %cst_644 {dimension_numbers = #tpu.dot_dimension_numbers<[1], [0], [0], [1], [0, 0, 1, 1], [], []>} : vector<2x32xbf16>, vector<32x32xbf16>, vector<2x32xf32> -> vector<2x32xf32>
    %856 = arith.addf %852, %855 : vector<2x32xf32>
    %c2_645 = arith.constant 2 : index
    %857 = arith.index_cast %c0_i32_630 : i32 to index
    %c0_646 = arith.constant 0 : index
    %c0_647 = arith.constant 0 : index
    %858 = vector.load %arg9[%c2_645, %857, %c0_646, %c0_647] : memref<4x8x2x32xf32, #tpu.memory_space<vmem>>, vector<1x1x2x32xf32>
    %859 = vector.shape_cast %858 : vector<1x1x2x32xf32> to vector<2x32xf32>
    %c2_648 = arith.constant 2 : index
    %c0_649 = arith.constant 0 : index
    %c0_650 = arith.constant 0 : index
    %860 = vector.load %arg3[%c2_648, %c0_649, %c0_650] : memref<4x32x32xbf16, #tpu.memory_space<vmem>>, vector<1x32x32xbf16>
    %861 = vector.shape_cast %860 : vector<1x32x32xbf16> to vector<32x32xbf16>
    %cst_651 = arith.constant dense<0.000000e+00> : vector<2x32xf32>
    %862 = tpu.matmul %842, %861, %cst_651 {dimension_numbers = #tpu.dot_dimension_numbers<[1], [0], [0], [1], [0, 0, 1, 1], [], []>} : vector<2x32xbf16>, vector<32x32xbf16>, vector<2x32xf32> -> vector<2x32xf32>
    %863 = arith.addf %859, %862 : vector<2x32xf32>
    %c3_652 = arith.constant 3 : index
    %864 = arith.index_cast %c0_i32_630 : i32 to index
    %c0_653 = arith.constant 0 : index
    %c0_654 = arith.constant 0 : index
    %865 = vector.load %arg9[%c3_652, %864, %c0_653, %c0_654] : memref<4x8x2x32xf32, #tpu.memory_space<vmem>>, vector<1x1x2x32xf32>
    %866 = vector.shape_cast %865 : vector<1x1x2x32xf32> to vector<2x32xf32>
    %c3_655 = arith.constant 3 : index
    %c0_656 = arith.constant 0 : index
    %c0_657 = arith.constant 0 : index
    %867 = vector.load %arg3[%c3_655, %c0_656, %c0_657] : memref<4x32x32xbf16, #tpu.memory_space<vmem>>, vector<1x32x32xbf16>
    %868 = vector.shape_cast %867 : vector<1x32x32xbf16> to vector<32x32xbf16>
    %cst_658 = arith.constant dense<0.000000e+00> : vector<2x32xf32>
    %869 = tpu.matmul %842, %868, %cst_658 {dimension_numbers = #tpu.dot_dimension_numbers<[1], [0], [0], [1], [0, 0, 1, 1], [], []>} : vector<2x32xbf16>, vector<32x32xbf16>, vector<2x32xf32> -> vector<2x32xf32>
    %870 = arith.addf %866, %869 : vector<2x32xf32>
    %cst_659 = arith.constant 0.000000e+00 : f32
    %871 = vector.broadcast %cst_659 : f32 to vector<2x32xf32>
    %872 = arith.subf %871, %849 : vector<2x32xf32>
    %873 = math.exp %872 : vector<2x32xf32>
    %cst_660 = arith.constant 1.000000e+00 : f32
    %874 = vector.broadcast %cst_660 : f32 to vector<2x32xf32>
    %875 = arith.addf %874, %873 : vector<2x32xf32>
    %876 = tpu.reciprocal %875 {approx = true} : vector<2x32xf32> -> vector<2x32xf32>
    %cst_661 = arith.constant 0.000000e+00 : f32
    %877 = vector.broadcast %cst_661 : f32 to vector<2x32xf32>
    %878 = arith.subf %877, %856 : vector<2x32xf32>
    %879 = math.exp %878 : vector<2x32xf32>
    %cst_662 = arith.constant 1.000000e+00 : f32
    %880 = vector.broadcast %cst_662 : f32 to vector<2x32xf32>
    %881 = arith.addf %880, %879 : vector<2x32xf32>
    %882 = tpu.reciprocal %881 {approx = true} : vector<2x32xf32> -> vector<2x32xf32>
    %883 = math.tanh %863 : vector<2x32xf32>
    %cst_663 = arith.constant 0.000000e+00 : f32
    %884 = vector.broadcast %cst_663 : f32 to vector<2x32xf32>
    %885 = arith.subf %884, %870 : vector<2x32xf32>
    %886 = math.exp %885 : vector<2x32xf32>
    %cst_664 = arith.constant 1.000000e+00 : f32
    %887 = vector.broadcast %cst_664 : f32 to vector<2x32xf32>
    %888 = arith.addf %887, %886 : vector<2x32xf32>
    %889 = tpu.reciprocal %888 {approx = true} : vector<2x32xf32> -> vector<2x32xf32>
    %890 = arith.mulf %882, %841 : vector<2x32xf32>
    %891 = arith.mulf %876, %883 : vector<2x32xf32>
    %892 = arith.addf %890, %891 : vector<2x32xf32>
    %893 = math.tanh %892 : vector<2x32xf32>
    %894 = arith.mulf %889, %893 : vector<2x32xf32>
    %895 = arith.truncf %894 : vector<2x32xf32> to vector<2x32xbf16>
    %c0_665 = arith.constant 0 : index
    %c0_666 = arith.constant 0 : index
    %896 = vector.load %arg5[%c0_665, %c0_666] : memref<32x2xbf16, #tpu.memory_space<vmem>>, vector<32x2xbf16>
    %cst_667 = arith.constant dense<0.000000e+00> : vector<2x2xf32>
    %897 = tpu.matmul %895, %896, %cst_667 {dimension_numbers = #tpu.dot_dimension_numbers<[1], [0], [0], [1], [0, 0, 1, 1], [], []>} : vector<2x32xbf16>, vector<32x2xbf16>, vector<2x2xf32> -> vector<2x2xf32>
    %c0_668 = arith.constant 0 : index
    %c0_669 = arith.constant 0 : index
    %898 = vector.load %arg6[%c0_668, %c0_669] : memref<1x2xf32, #tpu.memory_space<vmem>>, vector<1x2xf32>
    %899 = vector.broadcast %898 : vector<1x2xf32> to vector<2x2xf32>
    %900 = arith.addf %897, %899 : vector<2x2xf32>
    %901 = arith.index_cast %c0_i32_630 : i32 to index
    %c0_670 = arith.constant 0 : index
    %c0_671 = arith.constant 0 : index
    %902 = vector.load %arg7[%901, %c0_670, %c0_671] : memref<8x2x2xf32, #tpu.memory_space<vmem>>, vector<1x2x2xf32>
    %903 = vector.shape_cast %902 : vector<1x2x2xf32> to vector<2x2xf32>
    %904 = vector.shape_cast %900 : vector<2x2xf32> to vector<1x2x2xf32>
    tpu.vector_store %arg7[%901, %c0_670, %c0_671], %904 {strides = array<i32>} : memref<8x2x2xf32, #tpu.memory_space<vmem>>, vector<1x2x2xf32>,
    %c1_i32_672 = arith.constant 1 : i32
    %905 = arith.truncf %894 : vector<2x32xf32> to vector<2x32xbf16>
    %c0_673 = arith.constant 0 : index
    %906 = arith.index_cast %c1_i32_672 : i32 to index
    %c0_674 = arith.constant 0 : index
    %c0_675 = arith.constant 0 : index
    %907 = vector.load %arg9[%c0_673, %906, %c0_674, %c0_675] : memref<4x8x2x32xf32, #tpu.memory_space<vmem>>, vector<1x1x2x32xf32>
    %908 = vector.shape_cast %907 : vector<1x1x2x32xf32> to vector<2x32xf32>
    %c0_676 = arith.constant 0 : index
    %c0_677 = arith.constant 0 : index
    %c0_678 = arith.constant 0 : index
    %909 = vector.load %arg3[%c0_676, %c0_677, %c0_678] : memref<4x32x32xbf16, #tpu.memory_space<vmem>>, vector<1x32x32xbf16>
    %910 = vector.shape_cast %909 : vector<1x32x32xbf16> to vector<32x32xbf16>
    %cst_679 = arith.constant dense<0.000000e+00> : vector<2x32xf32>
    %911 = tpu.matmul %905, %910, %cst_679 {dimension_numbers = #tpu.dot_dimension_numbers<[1], [0], [0], [1], [0, 0, 1, 1], [], []>} : vector<2x32xbf16>, vector<32x32xbf16>, vector<2x32xf32> -> vector<2x32xf32>
    %912 = arith.addf %908, %911 : vector<2x32xf32>
    %c1_680 = arith.constant 1 : index
    %913 = arith.index_cast %c1_i32_672 : i32 to index
    %c0_681 = arith.constant 0 : index
    %c0_682 = arith.constant 0 : index
    %914 = vector.load %arg9[%c1_680, %913, %c0_681, %c0_682] : memref<4x8x2x32xf32, #tpu.memory_space<vmem>>, vector<1x1x2x32xf32>
    %915 = vector.shape_cast %914 : vector<1x1x2x32xf32> to vector<2x32xf32>
    %c1_683 = arith.constant 1 : index
    %c0_684 = arith.constant 0 : index
    %c0_685 = arith.constant 0 : index
    %916 = vector.load %arg3[%c1_683, %c0_684, %c0_685] : memref<4x32x32xbf16, #tpu.memory_space<vmem>>, vector<1x32x32xbf16>
    %917 = vector.shape_cast %916 : vector<1x32x32xbf16> to vector<32x32xbf16>
    %cst_686 = arith.constant dense<0.000000e+00> : vector<2x32xf32>
    %918 = tpu.matmul %905, %917, %cst_686 {dimension_numbers = #tpu.dot_dimension_numbers<[1], [0], [0], [1], [0, 0, 1, 1], [], []>} : vector<2x32xbf16>, vector<32x32xbf16>, vector<2x32xf32> -> vector<2x32xf32>
    %919 = arith.addf %915, %918 : vector<2x32xf32>
    %c2_687 = arith.constant 2 : index
    %920 = arith.index_cast %c1_i32_672 : i32 to index
    %c0_688 = arith.constant 0 : index
    %c0_689 = arith.constant 0 : index
    %921 = vector.load %arg9[%c2_687, %920, %c0_688, %c0_689] : memref<4x8x2x32xf32, #tpu.memory_space<vmem>>, vector<1x1x2x32xf32>
    %922 = vector.shape_cast %921 : vector<1x1x2x32xf32> to vector<2x32xf32>
    %c2_690 = arith.constant 2 : index
    %c0_691 = arith.constant 0 : index
    %c0_692 = arith.constant 0 : index
    %923 = vector.load %arg3[%c2_690, %c0_691, %c0_692] : memref<4x32x32xbf16, #tpu.memory_space<vmem>>, vector<1x32x32xbf16>
    %924 = vector.shape_cast %923 : vector<1x32x32xbf16> to vector<32x32xbf16>
    %cst_693 = arith.constant dense<0.000000e+00> : vector<2x32xf32>
    %925 = tpu.matmul %905, %924, %cst_693 {dimension_numbers = #tpu.dot_dimension_numbers<[1], [0], [0], [1], [0, 0, 1, 1], [], []>} : vector<2x32xbf16>, vector<32x32xbf16>, vector<2x32xf32> -> vector<2x32xf32>
    %926 = arith.addf %922, %925 : vector<2x32xf32>
    %c3_694 = arith.constant 3 : index
    %927 = arith.index_cast %c1_i32_672 : i32 to index
    %c0_695 = arith.constant 0 : index
    %c0_696 = arith.constant 0 : index
    %928 = vector.load %arg9[%c3_694, %927, %c0_695, %c0_696] : memref<4x8x2x32xf32, #tpu.memory_space<vmem>>, vector<1x1x2x32xf32>
    %929 = vector.shape_cast %928 : vector<1x1x2x32xf32> to vector<2x32xf32>
    %c3_697 = arith.constant 3 : index
    %c0_698 = arith.constant 0 : index
    %c0_699 = arith.constant 0 : index
    %930 = vector.load %arg3[%c3_697, %c0_698, %c0_699] : memref<4x32x32xbf16, #tpu.memory_space<vmem>>, vector<1x32x32xbf16>
    %931 = vector.shape_cast %930 : vector<1x32x32xbf16> to vector<32x32xbf16>
    %cst_700 = arith.constant dense<0.000000e+00> : vector<2x32xf32>
    %932 = tpu.matmul %905, %931, %cst_700 {dimension_numbers = #tpu.dot_dimension_numbers<[1], [0], [0], [1], [0, 0, 1, 1], [], []>} : vector<2x32xbf16>, vector<32x32xbf16>, vector<2x32xf32> -> vector<2x32xf32>
    %933 = arith.addf %929, %932 : vector<2x32xf32>
    %cst_701 = arith.constant 0.000000e+00 : f32
    %934 = vector.broadcast %cst_701 : f32 to vector<2x32xf32>
    %935 = arith.subf %934, %912 : vector<2x32xf32>
    %936 = math.exp %935 : vector<2x32xf32>
    %cst_702 = arith.constant 1.000000e+00 : f32
    %937 = vector.broadcast %cst_702 : f32 to vector<2x32xf32>
    %938 = arith.addf %937, %936 : vector<2x32xf32>
    %939 = tpu.reciprocal %938 {approx = true} : vector<2x32xf32> -> vector<2x32xf32>
    %cst_703 = arith.constant 0.000000e+00 : f32
    %940 = vector.broadcast %cst_703 : f32 to vector<2x32xf32>
    %941 = arith.subf %940, %919 : vector<2x32xf32>
    %942 = math.exp %941 : vector<2x32xf32>
    %cst_704 = arith.constant 1.000000e+00 : f32
    %943 = vector.broadcast %cst_704 : f32 to vector<2x32xf32>
    %944 = arith.addf %943, %942 : vector<2x32xf32>
    %945 = tpu.reciprocal %944 {approx = true} : vector<2x32xf32> -> vector<2x32xf32>
    %946 = math.tanh %926 : vector<2x32xf32>
    %cst_705 = arith.constant 0.000000e+00 : f32
    %947 = vector.broadcast %cst_705 : f32 to vector<2x32xf32>
    %948 = arith.subf %947, %933 : vector<2x32xf32>
    %949 = math.exp %948 : vector<2x32xf32>
    %cst_706 = arith.constant 1.000000e+00 : f32
    %950 = vector.broadcast %cst_706 : f32 to vector<2x32xf32>
    %951 = arith.addf %950, %949 : vector<2x32xf32>
    %952 = tpu.reciprocal %951 {approx = true} : vector<2x32xf32> -> vector<2x32xf32>
    %953 = arith.mulf %945, %892 : vector<2x32xf32>
    %954 = arith.mulf %939, %946 : vector<2x32xf32>
    %955 = arith.addf %953, %954 : vector<2x32xf32>
    %956 = math.tanh %955 : vector<2x32xf32>
    %957 = arith.mulf %952, %956 : vector<2x32xf32>
    %958 = arith.truncf %957 : vector<2x32xf32> to vector<2x32xbf16>
    %c0_707 = arith.constant 0 : index
    %c0_708 = arith.constant 0 : index
    %959 = vector.load %arg5[%c0_707, %c0_708] : memref<32x2xbf16, #tpu.memory_space<vmem>>, vector<32x2xbf16>
    %cst_709 = arith.constant dense<0.000000e+00> : vector<2x2xf32>
    %960 = tpu.matmul %958, %959, %cst_709 {dimension_numbers = #tpu.dot_dimension_numbers<[1], [0], [0], [1], [0, 0, 1, 1], [], []>} : vector<2x32xbf16>, vector<32x2xbf16>, vector<2x2xf32> -> vector<2x2xf32>
    %c0_710 = arith.constant 0 : index
    %c0_711 = arith.constant 0 : index
    %961 = vector.load %arg6[%c0_710, %c0_711] : memref<1x2xf32, #tpu.memory_space<vmem>>, vector<1x2xf32>
    %962 = vector.broadcast %961 : vector<1x2xf32> to vector<2x2xf32>
    %963 = arith.addf %960, %962 : vector<2x2xf32>
    %964 = arith.index_cast %c1_i32_672 : i32 to index
    %c0_712 = arith.constant 0 : index
    %c0_713 = arith.constant 0 : index
    %965 = vector.load %arg7[%964, %c0_712, %c0_713] : memref<8x2x2xf32, #tpu.memory_space<vmem>>, vector<1x2x2xf32>
    %966 = vector.shape_cast %965 : vector<1x2x2xf32> to vector<2x2xf32>
    %967 = vector.shape_cast %963 : vector<2x2xf32> to vector<1x2x2xf32>
    tpu.vector_store %arg7[%964, %c0_712, %c0_713], %967 {strides = array<i32>} : memref<8x2x2xf32, #tpu.memory_space<vmem>>, vector<1x2x2xf32>,
    %c2_i32_714 = arith.constant 2 : i32
    %968 = arith.truncf %957 : vector<2x32xf32> to vector<2x32xbf16>
    %c0_715 = arith.constant 0 : index
    %969 = arith.index_cast %c2_i32_714 : i32 to index
    %c0_716 = arith.constant 0 : index
    %c0_717 = arith.constant 0 : index
    %970 = vector.load %arg9[%c0_715, %969, %c0_716, %c0_717] : memref<4x8x2x32xf32, #tpu.memory_space<vmem>>, vector<1x1x2x32xf32>
    %971 = vector.shape_cast %970 : vector<1x1x2x32xf32> to vector<2x32xf32>
    %c0_718 = arith.constant 0 : index
    %c0_719 = arith.constant 0 : index
    %c0_720 = arith.constant 0 : index
    %972 = vector.load %arg3[%c0_718, %c0_719, %c0_720] : memref<4x32x32xbf16, #tpu.memory_space<vmem>>, vector<1x32x32xbf16>
    %973 = vector.shape_cast %972 : vector<1x32x32xbf16> to vector<32x32xbf16>
    %cst_721 = arith.constant dense<0.000000e+00> : vector<2x32xf32>
    %974 = tpu.matmul %968, %973, %cst_721 {dimension_numbers = #tpu.dot_dimension_numbers<[1], [0], [0], [1], [0, 0, 1, 1], [], []>} : vector<2x32xbf16>, vector<32x32xbf16>, vector<2x32xf32> -> vector<2x32xf32>
    %975 = arith.addf %971, %974 : vector<2x32xf32>
    %c1_722 = arith.constant 1 : index
    %976 = arith.index_cast %c2_i32_714 : i32 to index
    %c0_723 = arith.constant 0 : index
    %c0_724 = arith.constant 0 : index
    %977 = vector.load %arg9[%c1_722, %976, %c0_723, %c0_724] : memref<4x8x2x32xf32, #tpu.memory_space<vmem>>, vector<1x1x2x32xf32>
    %978 = vector.shape_cast %977 : vector<1x1x2x32xf32> to vector<2x32xf32>
    %c1_725 = arith.constant 1 : index
    %c0_726 = arith.constant 0 : index
    %c0_727 = arith.constant 0 : index
    %979 = vector.load %arg3[%c1_725, %c0_726, %c0_727] : memref<4x32x32xbf16, #tpu.memory_space<vmem>>, vector<1x32x32xbf16>
    %980 = vector.shape_cast %979 : vector<1x32x32xbf16> to vector<32x32xbf16>
    %cst_728 = arith.constant dense<0.000000e+00> : vector<2x32xf32>
    %981 = tpu.matmul %968, %980, %cst_728 {dimension_numbers = #tpu.dot_dimension_numbers<[1], [0], [0], [1], [0, 0, 1, 1], [], []>} : vector<2x32xbf16>, vector<32x32xbf16>, vector<2x32xf32> -> vector<2x32xf32>
    %982 = arith.addf %978, %981 : vector<2x32xf32>
    %c2_729 = arith.constant 2 : index
    %983 = arith.index_cast %c2_i32_714 : i32 to index
    %c0_730 = arith.constant 0 : index
    %c0_731 = arith.constant 0 : index
    %984 = vector.load %arg9[%c2_729, %983, %c0_730, %c0_731] : memref<4x8x2x32xf32, #tpu.memory_space<vmem>>, vector<1x1x2x32xf32>
    %985 = vector.shape_cast %984 : vector<1x1x2x32xf32> to vector<2x32xf32>
    %c2_732 = arith.constant 2 : index
    %c0_733 = arith.constant 0 : index
    %c0_734 = arith.constant 0 : index
    %986 = vector.load %arg3[%c2_732, %c0_733, %c0_734] : memref<4x32x32xbf16, #tpu.memory_space<vmem>>, vector<1x32x32xbf16>
    %987 = vector.shape_cast %986 : vector<1x32x32xbf16> to vector<32x32xbf16>
    %cst_735 = arith.constant dense<0.000000e+00> : vector<2x32xf32>
    %988 = tpu.matmul %968, %987, %cst_735 {dimension_numbers = #tpu.dot_dimension_numbers<[1], [0], [0], [1], [0, 0, 1, 1], [], []>} : vector<2x32xbf16>, vector<32x32xbf16>, vector<2x32xf32> -> vector<2x32xf32>
    %989 = arith.addf %985, %988 : vector<2x32xf32>
    %c3_736 = arith.constant 3 : index
    %990 = arith.index_cast %c2_i32_714 : i32 to index
    %c0_737 = arith.constant 0 : index
    %c0_738 = arith.constant 0 : index
    %991 = vector.load %arg9[%c3_736, %990, %c0_737, %c0_738] : memref<4x8x2x32xf32, #tpu.memory_space<vmem>>, vector<1x1x2x32xf32>
    %992 = vector.shape_cast %991 : vector<1x1x2x32xf32> to vector<2x32xf32>
    %c3_739 = arith.constant 3 : index
    %c0_740 = arith.constant 0 : index
    %c0_741 = arith.constant 0 : index
    %993 = vector.load %arg3[%c3_739, %c0_740, %c0_741] : memref<4x32x32xbf16, #tpu.memory_space<vmem>>, vector<1x32x32xbf16>
    %994 = vector.shape_cast %993 : vector<1x32x32xbf16> to vector<32x32xbf16>
    %cst_742 = arith.constant dense<0.000000e+00> : vector<2x32xf32>
    %995 = tpu.matmul %968, %994, %cst_742 {dimension_numbers = #tpu.dot_dimension_numbers<[1], [0], [0], [1], [0, 0, 1, 1], [], []>} : vector<2x32xbf16>, vector<32x32xbf16>, vector<2x32xf32> -> vector<2x32xf32>
    %996 = arith.addf %992, %995 : vector<2x32xf32>
    %cst_743 = arith.constant 0.000000e+00 : f32
    %997 = vector.broadcast %cst_743 : f32 to vector<2x32xf32>
    %998 = arith.subf %997, %975 : vector<2x32xf32>
    %999 = math.exp %998 : vector<2x32xf32>
    %cst_744 = arith.constant 1.000000e+00 : f32
    %1000 = vector.broadcast %cst_744 : f32 to vector<2x32xf32>
    %1001 = arith.addf %1000, %999 : vector<2x32xf32>
    %1002 = tpu.reciprocal %1001 {approx = true} : vector<2x32xf32> -> vector<2x32xf32>
    %cst_745 = arith.constant 0.000000e+00 : f32
    %1003 = vector.broadcast %cst_745 : f32 to vector<2x32xf32>
    %1004 = arith.subf %1003, %982 : vector<2x32xf32>
    %1005 = math.exp %1004 : vector<2x32xf32>
    %cst_746 = arith.constant 1.000000e+00 : f32
    %1006 = vector.broadcast %cst_746 : f32 to vector<2x32xf32>
    %1007 = arith.addf %1006, %1005 : vector<2x32xf32>
    %1008 = tpu.reciprocal %1007 {approx = true} : vector<2x32xf32> -> vector<2x32xf32>
    %1009 = math.tanh %989 : vector<2x32xf32>
    %cst_747 = arith.constant 0.000000e+00 : f32
    %1010 = vector.broadcast %cst_747 : f32 to vector<2x32xf32>
    %1011 = arith.subf %1010, %996 : vector<2x32xf32>
    %1012 = math.exp %1011 : vector<2x32xf32>
    %cst_748 = arith.constant 1.000000e+00 : f32
    %1013 = vector.broadcast %cst_748 : f32 to vector<2x32xf32>
    %1014 = arith.addf %1013, %1012 : vector<2x32xf32>
    %1015 = tpu.reciprocal %1014 {approx = true} : vector<2x32xf32> -> vector<2x32xf32>
    %1016 = arith.mulf %1008, %955 : vector<2x32xf32>
    %1017 = arith.mulf %1002, %1009 : vector<2x32xf32>
    %1018 = arith.addf %1016, %1017 : vector<2x32xf32>
    %1019 = math.tanh %1018 : vector<2x32xf32>
    %1020 = arith.mulf %1015, %1019 : vector<2x32xf32>
    %1021 = arith.truncf %1020 : vector<2x32xf32> to vector<2x32xbf16>
    %c0_749 = arith.constant 0 : index
    %c0_750 = arith.constant 0 : index
    %1022 = vector.load %arg5[%c0_749, %c0_750] : memref<32x2xbf16, #tpu.memory_space<vmem>>, vector<32x2xbf16>
    %cst_751 = arith.constant dense<0.000000e+00> : vector<2x2xf32>
    %1023 = tpu.matmul %1021, %1022, %cst_751 {dimension_numbers = #tpu.dot_dimension_numbers<[1], [0], [0], [1], [0, 0, 1, 1], [], []>} : vector<2x32xbf16>, vector<32x2xbf16>, vector<2x2xf32> -> vector<2x2xf32>
    %c0_752 = arith.constant 0 : index
    %c0_753 = arith.constant 0 : index
    %1024 = vector.load %arg6[%c0_752, %c0_753] : memref<1x2xf32, #tpu.memory_space<vmem>>, vector<1x2xf32>
    %1025 = vector.broadcast %1024 : vector<1x2xf32> to vector<2x2xf32>
    %1026 = arith.addf %1023, %1025 : vector<2x2xf32>
    %1027 = arith.index_cast %c2_i32_714 : i32 to index
    %c0_754 = arith.constant 0 : index
    %c0_755 = arith.constant 0 : index
    %1028 = vector.load %arg7[%1027, %c0_754, %c0_755] : memref<8x2x2xf32, #tpu.memory_space<vmem>>, vector<1x2x2xf32>
    %1029 = vector.shape_cast %1028 : vector<1x2x2xf32> to vector<2x2xf32>
    %1030 = vector.shape_cast %1026 : vector<2x2xf32> to vector<1x2x2xf32>
    tpu.vector_store %arg7[%1027, %c0_754, %c0_755], %1030 {strides = array<i32>} : memref<8x2x2xf32, #tpu.memory_space<vmem>>, vector<1x2x2xf32>,
    %c3_i32_756 = arith.constant 3 : i32
    %1031 = arith.truncf %1020 : vector<2x32xf32> to vector<2x32xbf16>
    %c0_757 = arith.constant 0 : index
    %1032 = arith.index_cast %c3_i32_756 : i32 to index
    %c0_758 = arith.constant 0 : index
    %c0_759 = arith.constant 0 : index
    %1033 = vector.load %arg9[%c0_757, %1032, %c0_758, %c0_759] : memref<4x8x2x32xf32, #tpu.memory_space<vmem>>, vector<1x1x2x32xf32>
    %1034 = vector.shape_cast %1033 : vector<1x1x2x32xf32> to vector<2x32xf32>
    %c0_760 = arith.constant 0 : index
    %c0_761 = arith.constant 0 : index
    %c0_762 = arith.constant 0 : index
    %1035 = vector.load %arg3[%c0_760, %c0_761, %c0_762] : memref<4x32x32xbf16, #tpu.memory_space<vmem>>, vector<1x32x32xbf16>
    %1036 = vector.shape_cast %1035 : vector<1x32x32xbf16> to vector<32x32xbf16>
    %cst_763 = arith.constant dense<0.000000e+00> : vector<2x32xf32>
    %1037 = tpu.matmul %1031, %1036, %cst_763 {dimension_numbers = #tpu.dot_dimension_numbers<[1], [0], [0], [1], [0, 0, 1, 1], [], []>} : vector<2x32xbf16>, vector<32x32xbf16>, vector<2x32xf32> -> vector<2x32xf32>
    %1038 = arith.addf %1034, %1037 : vector<2x32xf32>
    %c1_764 = arith.constant 1 : index
    %1039 = arith.index_cast %c3_i32_756 : i32 to index
    %c0_765 = arith.constant 0 : index
    %c0_766 = arith.constant 0 : index
    %1040 = vector.load %arg9[%c1_764, %1039, %c0_765, %c0_766] : memref<4x8x2x32xf32, #tpu.memory_space<vmem>>, vector<1x1x2x32xf32>
    %1041 = vector.shape_cast %1040 : vector<1x1x2x32xf32> to vector<2x32xf32>
    %c1_767 = arith.constant 1 : index
    %c0_768 = arith.constant 0 : index
    %c0_769 = arith.constant 0 : index
    %1042 = vector.load %arg3[%c1_767, %c0_768, %c0_769] : memref<4x32x32xbf16, #tpu.memory_space<vmem>>, vector<1x32x32xbf16>
    %1043 = vector.shape_cast %1042 : vector<1x32x32xbf16> to vector<32x32xbf16>
    %cst_770 = arith.constant dense<0.000000e+00> : vector<2x32xf32>
    %1044 = tpu.matmul %1031, %1043, %cst_770 {dimension_numbers = #tpu.dot_dimension_numbers<[1], [0], [0], [1], [0, 0, 1, 1], [], []>} : vector<2x32xbf16>, vector<32x32xbf16>, vector<2x32xf32> -> vector<2x32xf32>
    %1045 = arith.addf %1041, %1044 : vector<2x32xf32>
    %c2_771 = arith.constant 2 : index
    %1046 = arith.index_cast %c3_i32_756 : i32 to index
    %c0_772 = arith.constant 0 : index
    %c0_773 = arith.constant 0 : index
    %1047 = vector.load %arg9[%c2_771, %1046, %c0_772, %c0_773] : memref<4x8x2x32xf32, #tpu.memory_space<vmem>>, vector<1x1x2x32xf32>
    %1048 = vector.shape_cast %1047 : vector<1x1x2x32xf32> to vector<2x32xf32>
    %c2_774 = arith.constant 2 : index
    %c0_775 = arith.constant 0 : index
    %c0_776 = arith.constant 0 : index
    %1049 = vector.load %arg3[%c2_774, %c0_775, %c0_776] : memref<4x32x32xbf16, #tpu.memory_space<vmem>>, vector<1x32x32xbf16>
    %1050 = vector.shape_cast %1049 : vector<1x32x32xbf16> to vector<32x32xbf16>
    %cst_777 = arith.constant dense<0.000000e+00> : vector<2x32xf32>
    %1051 = tpu.matmul %1031, %1050, %cst_777 {dimension_numbers = #tpu.dot_dimension_numbers<[1], [0], [0], [1], [0, 0, 1, 1], [], []>} : vector<2x32xbf16>, vector<32x32xbf16>, vector<2x32xf32> -> vector<2x32xf32>
    %1052 = arith.addf %1048, %1051 : vector<2x32xf32>
    %c3_778 = arith.constant 3 : index
    %1053 = arith.index_cast %c3_i32_756 : i32 to index
    %c0_779 = arith.constant 0 : index
    %c0_780 = arith.constant 0 : index
    %1054 = vector.load %arg9[%c3_778, %1053, %c0_779, %c0_780] : memref<4x8x2x32xf32, #tpu.memory_space<vmem>>, vector<1x1x2x32xf32>
    %1055 = vector.shape_cast %1054 : vector<1x1x2x32xf32> to vector<2x32xf32>
    %c3_781 = arith.constant 3 : index
    %c0_782 = arith.constant 0 : index
    %c0_783 = arith.constant 0 : index
    %1056 = vector.load %arg3[%c3_781, %c0_782, %c0_783] : memref<4x32x32xbf16, #tpu.memory_space<vmem>>, vector<1x32x32xbf16>
    %1057 = vector.shape_cast %1056 : vector<1x32x32xbf16> to vector<32x32xbf16>
    %cst_784 = arith.constant dense<0.000000e+00> : vector<2x32xf32>
    %1058 = tpu.matmul %1031, %1057, %cst_784 {dimension_numbers = #tpu.dot_dimension_numbers<[1], [0], [0], [1], [0, 0, 1, 1], [], []>} : vector<2x32xbf16>, vector<32x32xbf16>, vector<2x32xf32> -> vector<2x32xf32>
    %1059 = arith.addf %1055, %1058 : vector<2x32xf32>
    %cst_785 = arith.constant 0.000000e+00 : f32
    %1060 = vector.broadcast %cst_785 : f32 to vector<2x32xf32>
    %1061 = arith.subf %1060, %1038 : vector<2x32xf32>
    %1062 = math.exp %1061 : vector<2x32xf32>
    %cst_786 = arith.constant 1.000000e+00 : f32
    %1063 = vector.broadcast %cst_786 : f32 to vector<2x32xf32>
    %1064 = arith.addf %1063, %1062 : vector<2x32xf32>
    %1065 = tpu.reciprocal %1064 {approx = true} : vector<2x32xf32> -> vector<2x32xf32>
    %cst_787 = arith.constant 0.000000e+00 : f32
    %1066 = vector.broadcast %cst_787 : f32 to vector<2x32xf32>
    %1067 = arith.subf %1066, %1045 : vector<2x32xf32>
    %1068 = math.exp %1067 : vector<2x32xf32>
    %cst_788 = arith.constant 1.000000e+00 : f32
    %1069 = vector.broadcast %cst_788 : f32 to vector<2x32xf32>
    %1070 = arith.addf %1069, %1068 : vector<2x32xf32>
    %1071 = tpu.reciprocal %1070 {approx = true} : vector<2x32xf32> -> vector<2x32xf32>
    %1072 = math.tanh %1052 : vector<2x32xf32>
    %cst_789 = arith.constant 0.000000e+00 : f32
    %1073 = vector.broadcast %cst_789 : f32 to vector<2x32xf32>
    %1074 = arith.subf %1073, %1059 : vector<2x32xf32>
    %1075 = math.exp %1074 : vector<2x32xf32>
    %cst_790 = arith.constant 1.000000e+00 : f32
    %1076 = vector.broadcast %cst_790 : f32 to vector<2x32xf32>
    %1077 = arith.addf %1076, %1075 : vector<2x32xf32>
    %1078 = tpu.reciprocal %1077 {approx = true} : vector<2x32xf32> -> vector<2x32xf32>
    %1079 = arith.mulf %1071, %1018 : vector<2x32xf32>
    %1080 = arith.mulf %1065, %1072 : vector<2x32xf32>
    %1081 = arith.addf %1079, %1080 : vector<2x32xf32>
    %1082 = math.tanh %1081 : vector<2x32xf32>
    %1083 = arith.mulf %1078, %1082 : vector<2x32xf32>
    %1084 = arith.truncf %1083 : vector<2x32xf32> to vector<2x32xbf16>
    %c0_791 = arith.constant 0 : index
    %c0_792 = arith.constant 0 : index
    %1085 = vector.load %arg5[%c0_791, %c0_792] : memref<32x2xbf16, #tpu.memory_space<vmem>>, vector<32x2xbf16>
    %cst_793 = arith.constant dense<0.000000e+00> : vector<2x2xf32>
    %1086 = tpu.matmul %1084, %1085, %cst_793 {dimension_numbers = #tpu.dot_dimension_numbers<[1], [0], [0], [1], [0, 0, 1, 1], [], []>} : vector<2x32xbf16>, vector<32x2xbf16>, vector<2x2xf32> -> vector<2x2xf32>
    %c0_794 = arith.constant 0 : index
    %c0_795 = arith.constant 0 : index
    %1087 = vector.load %arg6[%c0_794, %c0_795] : memref<1x2xf32, #tpu.memory_space<vmem>>, vector<1x2xf32>
    %1088 = vector.broadcast %1087 : vector<1x2xf32> to vector<2x2xf32>
    %1089 = arith.addf %1086, %1088 : vector<2x2xf32>
    %1090 = arith.index_cast %c3_i32_756 : i32 to index
    %c0_796 = arith.constant 0 : index
    %c0_797 = arith.constant 0 : index
    %1091 = vector.load %arg7[%1090, %c0_796, %c0_797] : memref<8x2x2xf32, #tpu.memory_space<vmem>>, vector<1x2x2xf32>
    %1092 = vector.shape_cast %1091 : vector<1x2x2xf32> to vector<2x2xf32>
    %1093 = vector.shape_cast %1089 : vector<2x2xf32> to vector<1x2x2xf32>
    tpu.vector_store %arg7[%1090, %c0_796, %c0_797], %1093 {strides = array<i32>} : memref<8x2x2xf32, #tpu.memory_space<vmem>>, vector<1x2x2xf32>,
    %c4_i32_798 = arith.constant 4 : i32
    %1094 = arith.truncf %1083 : vector<2x32xf32> to vector<2x32xbf16>
    %c0_799 = arith.constant 0 : index
    %1095 = arith.index_cast %c4_i32_798 : i32 to index
    %c0_800 = arith.constant 0 : index
    %c0_801 = arith.constant 0 : index
    %1096 = vector.load %arg9[%c0_799, %1095, %c0_800, %c0_801] : memref<4x8x2x32xf32, #tpu.memory_space<vmem>>, vector<1x1x2x32xf32>
    %1097 = vector.shape_cast %1096 : vector<1x1x2x32xf32> to vector<2x32xf32>
    %c0_802 = arith.constant 0 : index
    %c0_803 = arith.constant 0 : index
    %c0_804 = arith.constant 0 : index
    %1098 = vector.load %arg3[%c0_802, %c0_803, %c0_804] : memref<4x32x32xbf16, #tpu.memory_space<vmem>>, vector<1x32x32xbf16>
    %1099 = vector.shape_cast %1098 : vector<1x32x32xbf16> to vector<32x32xbf16>
    %cst_805 = arith.constant dense<0.000000e+00> : vector<2x32xf32>
    %1100 = tpu.matmul %1094, %1099, %cst_805 {dimension_numbers = #tpu.dot_dimension_numbers<[1], [0], [0], [1], [0, 0, 1, 1], [], []>} : vector<2x32xbf16>, vector<32x32xbf16>, vector<2x32xf32> -> vector<2x32xf32>
    %1101 = arith.addf %1097, %1100 : vector<2x32xf32>
    %c1_806 = arith.constant 1 : index
    %1102 = arith.index_cast %c4_i32_798 : i32 to index
    %c0_807 = arith.constant 0 : index
    %c0_808 = arith.constant 0 : index
    %1103 = vector.load %arg9[%c1_806, %1102, %c0_807, %c0_808] : memref<4x8x2x32xf32, #tpu.memory_space<vmem>>, vector<1x1x2x32xf32>
    %1104 = vector.shape_cast %1103 : vector<1x1x2x32xf32> to vector<2x32xf32>
    %c1_809 = arith.constant 1 : index
    %c0_810 = arith.constant 0 : index
    %c0_811 = arith.constant 0 : index
    %1105 = vector.load %arg3[%c1_809, %c0_810, %c0_811] : memref<4x32x32xbf16, #tpu.memory_space<vmem>>, vector<1x32x32xbf16>
    %1106 = vector.shape_cast %1105 : vector<1x32x32xbf16> to vector<32x32xbf16>
    %cst_812 = arith.constant dense<0.000000e+00> : vector<2x32xf32>
    %1107 = tpu.matmul %1094, %1106, %cst_812 {dimension_numbers = #tpu.dot_dimension_numbers<[1], [0], [0], [1], [0, 0, 1, 1], [], []>} : vector<2x32xbf16>, vector<32x32xbf16>, vector<2x32xf32> -> vector<2x32xf32>
    %1108 = arith.addf %1104, %1107 : vector<2x32xf32>
    %c2_813 = arith.constant 2 : index
    %1109 = arith.index_cast %c4_i32_798 : i32 to index
    %c0_814 = arith.constant 0 : index
    %c0_815 = arith.constant 0 : index
    %1110 = vector.load %arg9[%c2_813, %1109, %c0_814, %c0_815] : memref<4x8x2x32xf32, #tpu.memory_space<vmem>>, vector<1x1x2x32xf32>
    %1111 = vector.shape_cast %1110 : vector<1x1x2x32xf32> to vector<2x32xf32>
    %c2_816 = arith.constant 2 : index
    %c0_817 = arith.constant 0 : index
    %c0_818 = arith.constant 0 : index
    %1112 = vector.load %arg3[%c2_816, %c0_817, %c0_818] : memref<4x32x32xbf16, #tpu.memory_space<vmem>>, vector<1x32x32xbf16>
    %1113 = vector.shape_cast %1112 : vector<1x32x32xbf16> to vector<32x32xbf16>
    %cst_819 = arith.constant dense<0.000000e+00> : vector<2x32xf32>
    %1114 = tpu.matmul %1094, %1113, %cst_819 {dimension_numbers = #tpu.dot_dimension_numbers<[1], [0], [0], [1], [0, 0, 1, 1], [], []>} : vector<2x32xbf16>, vector<32x32xbf16>, vector<2x32xf32> -> vector<2x32xf32>
    %1115 = arith.addf %1111, %1114 : vector<2x32xf32>
    %c3_820 = arith.constant 3 : index
    %1116 = arith.index_cast %c4_i32_798 : i32 to index
    %c0_821 = arith.constant 0 : index
    %c0_822 = arith.constant 0 : index
    %1117 = vector.load %arg9[%c3_820, %1116, %c0_821, %c0_822] : memref<4x8x2x32xf32, #tpu.memory_space<vmem>>, vector<1x1x2x32xf32>
    %1118 = vector.shape_cast %1117 : vector<1x1x2x32xf32> to vector<2x32xf32>
    %c3_823 = arith.constant 3 : index
    %c0_824 = arith.constant 0 : index
    %c0_825 = arith.constant 0 : index
    %1119 = vector.load %arg3[%c3_823, %c0_824, %c0_825] : memref<4x32x32xbf16, #tpu.memory_space<vmem>>, vector<1x32x32xbf16>
    %1120 = vector.shape_cast %1119 : vector<1x32x32xbf16> to vector<32x32xbf16>
    %cst_826 = arith.constant dense<0.000000e+00> : vector<2x32xf32>
    %1121 = tpu.matmul %1094, %1120, %cst_826 {dimension_numbers = #tpu.dot_dimension_numbers<[1], [0], [0], [1], [0, 0, 1, 1], [], []>} : vector<2x32xbf16>, vector<32x32xbf16>, vector<2x32xf32> -> vector<2x32xf32>
    %1122 = arith.addf %1118, %1121 : vector<2x32xf32>
    %cst_827 = arith.constant 0.000000e+00 : f32
    %1123 = vector.broadcast %cst_827 : f32 to vector<2x32xf32>
    %1124 = arith.subf %1123, %1101 : vector<2x32xf32>
    %1125 = math.exp %1124 : vector<2x32xf32>
    %cst_828 = arith.constant 1.000000e+00 : f32
    %1126 = vector.broadcast %cst_828 : f32 to vector<2x32xf32>
    %1127 = arith.addf %1126, %1125 : vector<2x32xf32>
    %1128 = tpu.reciprocal %1127 {approx = true} : vector<2x32xf32> -> vector<2x32xf32>
    %cst_829 = arith.constant 0.000000e+00 : f32
    %1129 = vector.broadcast %cst_829 : f32 to vector<2x32xf32>
    %1130 = arith.subf %1129, %1108 : vector<2x32xf32>
    %1131 = math.exp %1130 : vector<2x32xf32>
    %cst_830 = arith.constant 1.000000e+00 : f32
    %1132 = vector.broadcast %cst_830 : f32 to vector<2x32xf32>
    %1133 = arith.addf %1132, %1131 : vector<2x32xf32>
    %1134 = tpu.reciprocal %1133 {approx = true} : vector<2x32xf32> -> vector<2x32xf32>
    %1135 = math.tanh %1115 : vector<2x32xf32>
    %cst_831 = arith.constant 0.000000e+00 : f32
    %1136 = vector.broadcast %cst_831 : f32 to vector<2x32xf32>
    %1137 = arith.subf %1136, %1122 : vector<2x32xf32>
    %1138 = math.exp %1137 : vector<2x32xf32>
    %cst_832 = arith.constant 1.000000e+00 : f32
    %1139 = vector.broadcast %cst_832 : f32 to vector<2x32xf32>
    %1140 = arith.addf %1139, %1138 : vector<2x32xf32>
    %1141 = tpu.reciprocal %1140 {approx = true} : vector<2x32xf32> -> vector<2x32xf32>
    %1142 = arith.mulf %1134, %1081 : vector<2x32xf32>
    %1143 = arith.mulf %1128, %1135 : vector<2x32xf32>
    %1144 = arith.addf %1142, %1143 : vector<2x32xf32>
    %1145 = math.tanh %1144 : vector<2x32xf32>
    %1146 = arith.mulf %1141, %1145 : vector<2x32xf32>
    %1147 = arith.truncf %1146 : vector<2x32xf32> to vector<2x32xbf16>
    %c0_833 = arith.constant 0 : index
    %c0_834 = arith.constant 0 : index
    %1148 = vector.load %arg5[%c0_833, %c0_834] : memref<32x2xbf16, #tpu.memory_space<vmem>>, vector<32x2xbf16>
    %cst_835 = arith.constant dense<0.000000e+00> : vector<2x2xf32>
    %1149 = tpu.matmul %1147, %1148, %cst_835 {dimension_numbers = #tpu.dot_dimension_numbers<[1], [0], [0], [1], [0, 0, 1, 1], [], []>} : vector<2x32xbf16>, vector<32x2xbf16>, vector<2x2xf32> -> vector<2x2xf32>
    %c0_836 = arith.constant 0 : index
    %c0_837 = arith.constant 0 : index
    %1150 = vector.load %arg6[%c0_836, %c0_837] : memref<1x2xf32, #tpu.memory_space<vmem>>, vector<1x2xf32>
    %1151 = vector.broadcast %1150 : vector<1x2xf32> to vector<2x2xf32>
    %1152 = arith.addf %1149, %1151 : vector<2x2xf32>
    %1153 = arith.index_cast %c4_i32_798 : i32 to index
    %c0_838 = arith.constant 0 : index
    %c0_839 = arith.constant 0 : index
    %1154 = vector.load %arg7[%1153, %c0_838, %c0_839] : memref<8x2x2xf32, #tpu.memory_space<vmem>>, vector<1x2x2xf32>
    %1155 = vector.shape_cast %1154 : vector<1x2x2xf32> to vector<2x2xf32>
    %1156 = vector.shape_cast %1152 : vector<2x2xf32> to vector<1x2x2xf32>
    tpu.vector_store %arg7[%1153, %c0_838, %c0_839], %1156 {strides = array<i32>} : memref<8x2x2xf32, #tpu.memory_space<vmem>>, vector<1x2x2xf32>,
    %c5_i32_840 = arith.constant 5 : i32
    %1157 = arith.truncf %1146 : vector<2x32xf32> to vector<2x32xbf16>
    %c0_841 = arith.constant 0 : index
    %1158 = arith.index_cast %c5_i32_840 : i32 to index
    %c0_842 = arith.constant 0 : index
    %c0_843 = arith.constant 0 : index
    %1159 = vector.load %arg9[%c0_841, %1158, %c0_842, %c0_843] : memref<4x8x2x32xf32, #tpu.memory_space<vmem>>, vector<1x1x2x32xf32>
    %1160 = vector.shape_cast %1159 : vector<1x1x2x32xf32> to vector<2x32xf32>
    %c0_844 = arith.constant 0 : index
    %c0_845 = arith.constant 0 : index
    %c0_846 = arith.constant 0 : index
    %1161 = vector.load %arg3[%c0_844, %c0_845, %c0_846] : memref<4x32x32xbf16, #tpu.memory_space<vmem>>, vector<1x32x32xbf16>
    %1162 = vector.shape_cast %1161 : vector<1x32x32xbf16> to vector<32x32xbf16>
    %cst_847 = arith.constant dense<0.000000e+00> : vector<2x32xf32>
    %1163 = tpu.matmul %1157, %1162, %cst_847 {dimension_numbers = #tpu.dot_dimension_numbers<[1], [0], [0], [1], [0, 0, 1, 1], [], []>} : vector<2x32xbf16>, vector<32x32xbf16>, vector<2x32xf32> -> vector<2x32xf32>
    %1164 = arith.addf %1160, %1163 : vector<2x32xf32>
    %c1_848 = arith.constant 1 : index
    %1165 = arith.index_cast %c5_i32_840 : i32 to index
    %c0_849 = arith.constant 0 : index
    %c0_850 = arith.constant 0 : index
    %1166 = vector.load %arg9[%c1_848, %1165, %c0_849, %c0_850] : memref<4x8x2x32xf32, #tpu.memory_space<vmem>>, vector<1x1x2x32xf32>
    %1167 = vector.shape_cast %1166 : vector<1x1x2x32xf32> to vector<2x32xf32>
    %c1_851 = arith.constant 1 : index
    %c0_852 = arith.constant 0 : index
    %c0_853 = arith.constant 0 : index
    %1168 = vector.load %arg3[%c1_851, %c0_852, %c0_853] : memref<4x32x32xbf16, #tpu.memory_space<vmem>>, vector<1x32x32xbf16>
    %1169 = vector.shape_cast %1168 : vector<1x32x32xbf16> to vector<32x32xbf16>
    %cst_854 = arith.constant dense<0.000000e+00> : vector<2x32xf32>
    %1170 = tpu.matmul %1157, %1169, %cst_854 {dimension_numbers = #tpu.dot_dimension_numbers<[1], [0], [0], [1], [0, 0, 1, 1], [], []>} : vector<2x32xbf16>, vector<32x32xbf16>, vector<2x32xf32> -> vector<2x32xf32>
    %1171 = arith.addf %1167, %1170 : vector<2x32xf32>
    %c2_855 = arith.constant 2 : index
    %1172 = arith.index_cast %c5_i32_840 : i32 to index
    %c0_856 = arith.constant 0 : index
    %c0_857 = arith.constant 0 : index
    %1173 = vector.load %arg9[%c2_855, %1172, %c0_856, %c0_857] : memref<4x8x2x32xf32, #tpu.memory_space<vmem>>, vector<1x1x2x32xf32>
    %1174 = vector.shape_cast %1173 : vector<1x1x2x32xf32> to vector<2x32xf32>
    %c2_858 = arith.constant 2 : index
    %c0_859 = arith.constant 0 : index
    %c0_860 = arith.constant 0 : index
    %1175 = vector.load %arg3[%c2_858, %c0_859, %c0_860] : memref<4x32x32xbf16, #tpu.memory_space<vmem>>, vector<1x32x32xbf16>
    %1176 = vector.shape_cast %1175 : vector<1x32x32xbf16> to vector<32x32xbf16>
    %cst_861 = arith.constant dense<0.000000e+00> : vector<2x32xf32>
    %1177 = tpu.matmul %1157, %1176, %cst_861 {dimension_numbers = #tpu.dot_dimension_numbers<[1], [0], [0], [1], [0, 0, 1, 1], [], []>} : vector<2x32xbf16>, vector<32x32xbf16>, vector<2x32xf32> -> vector<2x32xf32>
    %1178 = arith.addf %1174, %1177 : vector<2x32xf32>
    %c3_862 = arith.constant 3 : index
    %1179 = arith.index_cast %c5_i32_840 : i32 to index
    %c0_863 = arith.constant 0 : index
    %c0_864 = arith.constant 0 : index
    %1180 = vector.load %arg9[%c3_862, %1179, %c0_863, %c0_864] : memref<4x8x2x32xf32, #tpu.memory_space<vmem>>, vector<1x1x2x32xf32>
    %1181 = vector.shape_cast %1180 : vector<1x1x2x32xf32> to vector<2x32xf32>
    %c3_865 = arith.constant 3 : index
    %c0_866 = arith.constant 0 : index
    %c0_867 = arith.constant 0 : index
    %1182 = vector.load %arg3[%c3_865, %c0_866, %c0_867] : memref<4x32x32xbf16, #tpu.memory_space<vmem>>, vector<1x32x32xbf16>
    %1183 = vector.shape_cast %1182 : vector<1x32x32xbf16> to vector<32x32xbf16>
    %cst_868 = arith.constant dense<0.000000e+00> : vector<2x32xf32>
    %1184 = tpu.matmul %1157, %1183, %cst_868 {dimension_numbers = #tpu.dot_dimension_numbers<[1], [0], [0], [1], [0, 0, 1, 1], [], []>} : vector<2x32xbf16>, vector<32x32xbf16>, vector<2x32xf32> -> vector<2x32xf32>
    %1185 = arith.addf %1181, %1184 : vector<2x32xf32>
    %cst_869 = arith.constant 0.000000e+00 : f32
    %1186 = vector.broadcast %cst_869 : f32 to vector<2x32xf32>
    %1187 = arith.subf %1186, %1164 : vector<2x32xf32>
    %1188 = math.exp %1187 : vector<2x32xf32>
    %cst_870 = arith.constant 1.000000e+00 : f32
    %1189 = vector.broadcast %cst_870 : f32 to vector<2x32xf32>
    %1190 = arith.addf %1189, %1188 : vector<2x32xf32>
    %1191 = tpu.reciprocal %1190 {approx = true} : vector<2x32xf32> -> vector<2x32xf32>
    %cst_871 = arith.constant 0.000000e+00 : f32
    %1192 = vector.broadcast %cst_871 : f32 to vector<2x32xf32>
    %1193 = arith.subf %1192, %1171 : vector<2x32xf32>
    %1194 = math.exp %1193 : vector<2x32xf32>
    %cst_872 = arith.constant 1.000000e+00 : f32
    %1195 = vector.broadcast %cst_872 : f32 to vector<2x32xf32>
    %1196 = arith.addf %1195, %1194 : vector<2x32xf32>
    %1197 = tpu.reciprocal %1196 {approx = true} : vector<2x32xf32> -> vector<2x32xf32>
    %1198 = math.tanh %1178 : vector<2x32xf32>
    %cst_873 = arith.constant 0.000000e+00 : f32
    %1199 = vector.broadcast %cst_873 : f32 to vector<2x32xf32>
    %1200 = arith.subf %1199, %1185 : vector<2x32xf32>
    %1201 = math.exp %1200 : vector<2x32xf32>
    %cst_874 = arith.constant 1.000000e+00 : f32
    %1202 = vector.broadcast %cst_874 : f32 to vector<2x32xf32>
    %1203 = arith.addf %1202, %1201 : vector<2x32xf32>
    %1204 = tpu.reciprocal %1203 {approx = true} : vector<2x32xf32> -> vector<2x32xf32>
    %1205 = arith.mulf %1197, %1144 : vector<2x32xf32>
    %1206 = arith.mulf %1191, %1198 : vector<2x32xf32>
    %1207 = arith.addf %1205, %1206 : vector<2x32xf32>
    %1208 = math.tanh %1207 : vector<2x32xf32>
    %1209 = arith.mulf %1204, %1208 : vector<2x32xf32>
    %1210 = arith.truncf %1209 : vector<2x32xf32> to vector<2x32xbf16>
    %c0_875 = arith.constant 0 : index
    %c0_876 = arith.constant 0 : index
    %1211 = vector.load %arg5[%c0_875, %c0_876] : memref<32x2xbf16, #tpu.memory_space<vmem>>, vector<32x2xbf16>
    %cst_877 = arith.constant dense<0.000000e+00> : vector<2x2xf32>
    %1212 = tpu.matmul %1210, %1211, %cst_877 {dimension_numbers = #tpu.dot_dimension_numbers<[1], [0], [0], [1], [0, 0, 1, 1], [], []>} : vector<2x32xbf16>, vector<32x2xbf16>, vector<2x2xf32> -> vector<2x2xf32>
    %c0_878 = arith.constant 0 : index
    %c0_879 = arith.constant 0 : index
    %1213 = vector.load %arg6[%c0_878, %c0_879] : memref<1x2xf32, #tpu.memory_space<vmem>>, vector<1x2xf32>
    %1214 = vector.broadcast %1213 : vector<1x2xf32> to vector<2x2xf32>
    %1215 = arith.addf %1212, %1214 : vector<2x2xf32>
    %1216 = arith.index_cast %c5_i32_840 : i32 to index
    %c0_880 = arith.constant 0 : index
    %c0_881 = arith.constant 0 : index
    %1217 = vector.load %arg7[%1216, %c0_880, %c0_881] : memref<8x2x2xf32, #tpu.memory_space<vmem>>, vector<1x2x2xf32>
    %1218 = vector.shape_cast %1217 : vector<1x2x2xf32> to vector<2x2xf32>
    %1219 = vector.shape_cast %1215 : vector<2x2xf32> to vector<1x2x2xf32>
    tpu.vector_store %arg7[%1216, %c0_880, %c0_881], %1219 {strides = array<i32>} : memref<8x2x2xf32, #tpu.memory_space<vmem>>, vector<1x2x2xf32>,
    %c6_i32_882 = arith.constant 6 : i32
    %1220 = arith.truncf %1209 : vector<2x32xf32> to vector<2x32xbf16>
    %c0_883 = arith.constant 0 : index
    %1221 = arith.index_cast %c6_i32_882 : i32 to index
    %c0_884 = arith.constant 0 : index
    %c0_885 = arith.constant 0 : index
    %1222 = vector.load %arg9[%c0_883, %1221, %c0_884, %c0_885] : memref<4x8x2x32xf32, #tpu.memory_space<vmem>>, vector<1x1x2x32xf32>
    %1223 = vector.shape_cast %1222 : vector<1x1x2x32xf32> to vector<2x32xf32>
    %c0_886 = arith.constant 0 : index
    %c0_887 = arith.constant 0 : index
    %c0_888 = arith.constant 0 : index
    %1224 = vector.load %arg3[%c0_886, %c0_887, %c0_888] : memref<4x32x32xbf16, #tpu.memory_space<vmem>>, vector<1x32x32xbf16>
    %1225 = vector.shape_cast %1224 : vector<1x32x32xbf16> to vector<32x32xbf16>
    %cst_889 = arith.constant dense<0.000000e+00> : vector<2x32xf32>
    %1226 = tpu.matmul %1220, %1225, %cst_889 {dimension_numbers = #tpu.dot_dimension_numbers<[1], [0], [0], [1], [0, 0, 1, 1], [], []>} : vector<2x32xbf16>, vector<32x32xbf16>, vector<2x32xf32> -> vector<2x32xf32>
    %1227 = arith.addf %1223, %1226 : vector<2x32xf32>
    %c1_890 = arith.constant 1 : index
    %1228 = arith.index_cast %c6_i32_882 : i32 to index
    %c0_891 = arith.constant 0 : index
    %c0_892 = arith.constant 0 : index
    %1229 = vector.load %arg9[%c1_890, %1228, %c0_891, %c0_892] : memref<4x8x2x32xf32, #tpu.memory_space<vmem>>, vector<1x1x2x32xf32>
    %1230 = vector.shape_cast %1229 : vector<1x1x2x32xf32> to vector<2x32xf32>
    %c1_893 = arith.constant 1 : index
    %c0_894 = arith.constant 0 : index
    %c0_895 = arith.constant 0 : index
    %1231 = vector.load %arg3[%c1_893, %c0_894, %c0_895] : memref<4x32x32xbf16, #tpu.memory_space<vmem>>, vector<1x32x32xbf16>
    %1232 = vector.shape_cast %1231 : vector<1x32x32xbf16> to vector<32x32xbf16>
    %cst_896 = arith.constant dense<0.000000e+00> : vector<2x32xf32>
    %1233 = tpu.matmul %1220, %1232, %cst_896 {dimension_numbers = #tpu.dot_dimension_numbers<[1], [0], [0], [1], [0, 0, 1, 1], [], []>} : vector<2x32xbf16>, vector<32x32xbf16>, vector<2x32xf32> -> vector<2x32xf32>
    %1234 = arith.addf %1230, %1233 : vector<2x32xf32>
    %c2_897 = arith.constant 2 : index
    %1235 = arith.index_cast %c6_i32_882 : i32 to index
    %c0_898 = arith.constant 0 : index
    %c0_899 = arith.constant 0 : index
    %1236 = vector.load %arg9[%c2_897, %1235, %c0_898, %c0_899] : memref<4x8x2x32xf32, #tpu.memory_space<vmem>>, vector<1x1x2x32xf32>
    %1237 = vector.shape_cast %1236 : vector<1x1x2x32xf32> to vector<2x32xf32>
    %c2_900 = arith.constant 2 : index
    %c0_901 = arith.constant 0 : index
    %c0_902 = arith.constant 0 : index
    %1238 = vector.load %arg3[%c2_900, %c0_901, %c0_902] : memref<4x32x32xbf16, #tpu.memory_space<vmem>>, vector<1x32x32xbf16>
    %1239 = vector.shape_cast %1238 : vector<1x32x32xbf16> to vector<32x32xbf16>
    %cst_903 = arith.constant dense<0.000000e+00> : vector<2x32xf32>
    %1240 = tpu.matmul %1220, %1239, %cst_903 {dimension_numbers = #tpu.dot_dimension_numbers<[1], [0], [0], [1], [0, 0, 1, 1], [], []>} : vector<2x32xbf16>, vector<32x32xbf16>, vector<2x32xf32> -> vector<2x32xf32>
    %1241 = arith.addf %1237, %1240 : vector<2x32xf32>
    %c3_904 = arith.constant 3 : index
    %1242 = arith.index_cast %c6_i32_882 : i32 to index
    %c0_905 = arith.constant 0 : index
    %c0_906 = arith.constant 0 : index
    %1243 = vector.load %arg9[%c3_904, %1242, %c0_905, %c0_906] : memref<4x8x2x32xf32, #tpu.memory_space<vmem>>, vector<1x1x2x32xf32>
    %1244 = vector.shape_cast %1243 : vector<1x1x2x32xf32> to vector<2x32xf32>
    %c3_907 = arith.constant 3 : index
    %c0_908 = arith.constant 0 : index
    %c0_909 = arith.constant 0 : index
    %1245 = vector.load %arg3[%c3_907, %c0_908, %c0_909] : memref<4x32x32xbf16, #tpu.memory_space<vmem>>, vector<1x32x32xbf16>
    %1246 = vector.shape_cast %1245 : vector<1x32x32xbf16> to vector<32x32xbf16>
    %cst_910 = arith.constant dense<0.000000e+00> : vector<2x32xf32>
    %1247 = tpu.matmul %1220, %1246, %cst_910 {dimension_numbers = #tpu.dot_dimension_numbers<[1], [0], [0], [1], [0, 0, 1, 1], [], []>} : vector<2x32xbf16>, vector<32x32xbf16>, vector<2x32xf32> -> vector<2x32xf32>
    %1248 = arith.addf %1244, %1247 : vector<2x32xf32>
    %cst_911 = arith.constant 0.000000e+00 : f32
    %1249 = vector.broadcast %cst_911 : f32 to vector<2x32xf32>
    %1250 = arith.subf %1249, %1227 : vector<2x32xf32>
    %1251 = math.exp %1250 : vector<2x32xf32>
    %cst_912 = arith.constant 1.000000e+00 : f32
    %1252 = vector.broadcast %cst_912 : f32 to vector<2x32xf32>
    %1253 = arith.addf %1252, %1251 : vector<2x32xf32>
    %1254 = tpu.reciprocal %1253 {approx = true} : vector<2x32xf32> -> vector<2x32xf32>
    %cst_913 = arith.constant 0.000000e+00 : f32
    %1255 = vector.broadcast %cst_913 : f32 to vector<2x32xf32>
    %1256 = arith.subf %1255, %1234 : vector<2x32xf32>
    %1257 = math.exp %1256 : vector<2x32xf32>
    %cst_914 = arith.constant 1.000000e+00 : f32
    %1258 = vector.broadcast %cst_914 : f32 to vector<2x32xf32>
    %1259 = arith.addf %1258, %1257 : vector<2x32xf32>
    %1260 = tpu.reciprocal %1259 {approx = true} : vector<2x32xf32> -> vector<2x32xf32>
    %1261 = math.tanh %1241 : vector<2x32xf32>
    %cst_915 = arith.constant 0.000000e+00 : f32
    %1262 = vector.broadcast %cst_915 : f32 to vector<2x32xf32>
    %1263 = arith.subf %1262, %1248 : vector<2x32xf32>
    %1264 = math.exp %1263 : vector<2x32xf32>
    %cst_916 = arith.constant 1.000000e+00 : f32
    %1265 = vector.broadcast %cst_916 : f32 to vector<2x32xf32>
    %1266 = arith.addf %1265, %1264 : vector<2x32xf32>
    %1267 = tpu.reciprocal %1266 {approx = true} : vector<2x32xf32> -> vector<2x32xf32>
    %1268 = arith.mulf %1260, %1207 : vector<2x32xf32>
    %1269 = arith.mulf %1254, %1261 : vector<2x32xf32>
    %1270 = arith.addf %1268, %1269 : vector<2x32xf32>
    %1271 = math.tanh %1270 : vector<2x32xf32>
    %1272 = arith.mulf %1267, %1271 : vector<2x32xf32>
    %1273 = arith.truncf %1272 : vector<2x32xf32> to vector<2x32xbf16>
    %c0_917 = arith.constant 0 : index
    %c0_918 = arith.constant 0 : index
    %1274 = vector.load %arg5[%c0_917, %c0_918] : memref<32x2xbf16, #tpu.memory_space<vmem>>, vector<32x2xbf16>
    %cst_919 = arith.constant dense<0.000000e+00> : vector<2x2xf32>
    %1275 = tpu.matmul %1273, %1274, %cst_919 {dimension_numbers = #tpu.dot_dimension_numbers<[1], [0], [0], [1], [0, 0, 1, 1], [], []>} : vector<2x32xbf16>, vector<32x2xbf16>, vector<2x2xf32> -> vector<2x2xf32>
    %c0_920 = arith.constant 0 : index
    %c0_921 = arith.constant 0 : index
    %1276 = vector.load %arg6[%c0_920, %c0_921] : memref<1x2xf32, #tpu.memory_space<vmem>>, vector<1x2xf32>
    %1277 = vector.broadcast %1276 : vector<1x2xf32> to vector<2x2xf32>
    %1278 = arith.addf %1275, %1277 : vector<2x2xf32>
    %1279 = arith.index_cast %c6_i32_882 : i32 to index
    %c0_922 = arith.constant 0 : index
    %c0_923 = arith.constant 0 : index
    %1280 = vector.load %arg7[%1279, %c0_922, %c0_923] : memref<8x2x2xf32, #tpu.memory_space<vmem>>, vector<1x2x2xf32>
    %1281 = vector.shape_cast %1280 : vector<1x2x2xf32> to vector<2x2xf32>
    %1282 = vector.shape_cast %1278 : vector<2x2xf32> to vector<1x2x2xf32>
    tpu.vector_store %arg7[%1279, %c0_922, %c0_923], %1282 {strides = array<i32>} : memref<8x2x2xf32, #tpu.memory_space<vmem>>, vector<1x2x2xf32>,
    %c7_i32_924 = arith.constant 7 : i32
    %1283 = arith.truncf %1272 : vector<2x32xf32> to vector<2x32xbf16>
    %c0_925 = arith.constant 0 : index
    %1284 = arith.index_cast %c7_i32_924 : i32 to index
    %c0_926 = arith.constant 0 : index
    %c0_927 = arith.constant 0 : index
    %1285 = vector.load %arg9[%c0_925, %1284, %c0_926, %c0_927] : memref<4x8x2x32xf32, #tpu.memory_space<vmem>>, vector<1x1x2x32xf32>
    %1286 = vector.shape_cast %1285 : vector<1x1x2x32xf32> to vector<2x32xf32>
    %c0_928 = arith.constant 0 : index
    %c0_929 = arith.constant 0 : index
    %c0_930 = arith.constant 0 : index
    %1287 = vector.load %arg3[%c0_928, %c0_929, %c0_930] : memref<4x32x32xbf16, #tpu.memory_space<vmem>>, vector<1x32x32xbf16>
    %1288 = vector.shape_cast %1287 : vector<1x32x32xbf16> to vector<32x32xbf16>
    %cst_931 = arith.constant dense<0.000000e+00> : vector<2x32xf32>
    %1289 = tpu.matmul %1283, %1288, %cst_931 {dimension_numbers = #tpu.dot_dimension_numbers<[1], [0], [0], [1], [0, 0, 1, 1], [], []>} : vector<2x32xbf16>, vector<32x32xbf16>, vector<2x32xf32> -> vector<2x32xf32>
    %1290 = arith.addf %1286, %1289 : vector<2x32xf32>
    %c1_932 = arith.constant 1 : index
    %1291 = arith.index_cast %c7_i32_924 : i32 to index
    %c0_933 = arith.constant 0 : index
    %c0_934 = arith.constant 0 : index
    %1292 = vector.load %arg9[%c1_932, %1291, %c0_933, %c0_934] : memref<4x8x2x32xf32, #tpu.memory_space<vmem>>, vector<1x1x2x32xf32>
    %1293 = vector.shape_cast %1292 : vector<1x1x2x32xf32> to vector<2x32xf32>
    %c1_935 = arith.constant 1 : index
    %c0_936 = arith.constant 0 : index
    %c0_937 = arith.constant 0 : index
    %1294 = vector.load %arg3[%c1_935, %c0_936, %c0_937] : memref<4x32x32xbf16, #tpu.memory_space<vmem>>, vector<1x32x32xbf16>
    %1295 = vector.shape_cast %1294 : vector<1x32x32xbf16> to vector<32x32xbf16>
    %cst_938 = arith.constant dense<0.000000e+00> : vector<2x32xf32>
    %1296 = tpu.matmul %1283, %1295, %cst_938 {dimension_numbers = #tpu.dot_dimension_numbers<[1], [0], [0], [1], [0, 0, 1, 1], [], []>} : vector<2x32xbf16>, vector<32x32xbf16>, vector<2x32xf32> -> vector<2x32xf32>
    %1297 = arith.addf %1293, %1296 : vector<2x32xf32>
    %c2_939 = arith.constant 2 : index
    %1298 = arith.index_cast %c7_i32_924 : i32 to index
    %c0_940 = arith.constant 0 : index
    %c0_941 = arith.constant 0 : index
    %1299 = vector.load %arg9[%c2_939, %1298, %c0_940, %c0_941] : memref<4x8x2x32xf32, #tpu.memory_space<vmem>>, vector<1x1x2x32xf32>
    %1300 = vector.shape_cast %1299 : vector<1x1x2x32xf32> to vector<2x32xf32>
    %c2_942 = arith.constant 2 : index
    %c0_943 = arith.constant 0 : index
    %c0_944 = arith.constant 0 : index
    %1301 = vector.load %arg3[%c2_942, %c0_943, %c0_944] : memref<4x32x32xbf16, #tpu.memory_space<vmem>>, vector<1x32x32xbf16>
    %1302 = vector.shape_cast %1301 : vector<1x32x32xbf16> to vector<32x32xbf16>
    %cst_945 = arith.constant dense<0.000000e+00> : vector<2x32xf32>
    %1303 = tpu.matmul %1283, %1302, %cst_945 {dimension_numbers = #tpu.dot_dimension_numbers<[1], [0], [0], [1], [0, 0, 1, 1], [], []>} : vector<2x32xbf16>, vector<32x32xbf16>, vector<2x32xf32> -> vector<2x32xf32>
    %1304 = arith.addf %1300, %1303 : vector<2x32xf32>
    %c3_946 = arith.constant 3 : index
    %1305 = arith.index_cast %c7_i32_924 : i32 to index
    %c0_947 = arith.constant 0 : index
    %c0_948 = arith.constant 0 : index
    %1306 = vector.load %arg9[%c3_946, %1305, %c0_947, %c0_948] : memref<4x8x2x32xf32, #tpu.memory_space<vmem>>, vector<1x1x2x32xf32>
    %1307 = vector.shape_cast %1306 : vector<1x1x2x32xf32> to vector<2x32xf32>
    %c3_949 = arith.constant 3 : index
    %c0_950 = arith.constant 0 : index
    %c0_951 = arith.constant 0 : index
    %1308 = vector.load %arg3[%c3_949, %c0_950, %c0_951] : memref<4x32x32xbf16, #tpu.memory_space<vmem>>, vector<1x32x32xbf16>
    %1309 = vector.shape_cast %1308 : vector<1x32x32xbf16> to vector<32x32xbf16>
    %cst_952 = arith.constant dense<0.000000e+00> : vector<2x32xf32>
    %1310 = tpu.matmul %1283, %1309, %cst_952 {dimension_numbers = #tpu.dot_dimension_numbers<[1], [0], [0], [1], [0, 0, 1, 1], [], []>} : vector<2x32xbf16>, vector<32x32xbf16>, vector<2x32xf32> -> vector<2x32xf32>
    %1311 = arith.addf %1307, %1310 : vector<2x32xf32>
    %cst_953 = arith.constant 0.000000e+00 : f32
    %1312 = vector.broadcast %cst_953 : f32 to vector<2x32xf32>
    %1313 = arith.subf %1312, %1290 : vector<2x32xf32>
    %1314 = math.exp %1313 : vector<2x32xf32>
    %cst_954 = arith.constant 1.000000e+00 : f32
    %1315 = vector.broadcast %cst_954 : f32 to vector<2x32xf32>
    %1316 = arith.addf %1315, %1314 : vector<2x32xf32>
    %1317 = tpu.reciprocal %1316 {approx = true} : vector<2x32xf32> -> vector<2x32xf32>
    %cst_955 = arith.constant 0.000000e+00 : f32
    %1318 = vector.broadcast %cst_955 : f32 to vector<2x32xf32>
    %1319 = arith.subf %1318, %1297 : vector<2x32xf32>
    %1320 = math.exp %1319 : vector<2x32xf32>
    %cst_956 = arith.constant 1.000000e+00 : f32
    %1321 = vector.broadcast %cst_956 : f32 to vector<2x32xf32>
    %1322 = arith.addf %1321, %1320 : vector<2x32xf32>
    %1323 = tpu.reciprocal %1322 {approx = true} : vector<2x32xf32> -> vector<2x32xf32>
    %1324 = math.tanh %1304 : vector<2x32xf32>
    %cst_957 = arith.constant 0.000000e+00 : f32
    %1325 = vector.broadcast %cst_957 : f32 to vector<2x32xf32>
    %1326 = arith.subf %1325, %1311 : vector<2x32xf32>
    %1327 = math.exp %1326 : vector<2x32xf32>
    %cst_958 = arith.constant 1.000000e+00 : f32
    %1328 = vector.broadcast %cst_958 : f32 to vector<2x32xf32>
    %1329 = arith.addf %1328, %1327 : vector<2x32xf32>
    %1330 = tpu.reciprocal %1329 {approx = true} : vector<2x32xf32> -> vector<2x32xf32>
    %1331 = arith.mulf %1323, %1270 : vector<2x32xf32>
    %1332 = arith.mulf %1317, %1324 : vector<2x32xf32>
    %1333 = arith.addf %1331, %1332 : vector<2x32xf32>
    %1334 = math.tanh %1333 : vector<2x32xf32>
    %1335 = arith.mulf %1330, %1334 : vector<2x32xf32>
    %1336 = arith.truncf %1335 : vector<2x32xf32> to vector<2x32xbf16>
    %c0_959 = arith.constant 0 : index
    %c0_960 = arith.constant 0 : index
    %1337 = vector.load %arg5[%c0_959, %c0_960] : memref<32x2xbf16, #tpu.memory_space<vmem>>, vector<32x2xbf16>
    %cst_961 = arith.constant dense<0.000000e+00> : vector<2x2xf32>
    %1338 = tpu.matmul %1336, %1337, %cst_961 {dimension_numbers = #tpu.dot_dimension_numbers<[1], [0], [0], [1], [0, 0, 1, 1], [], []>} : vector<2x32xbf16>, vector<32x2xbf16>, vector<2x2xf32> -> vector<2x2xf32>
    %c0_962 = arith.constant 0 : index
    %c0_963 = arith.constant 0 : index
    %1339 = vector.load %arg6[%c0_962, %c0_963] : memref<1x2xf32, #tpu.memory_space<vmem>>, vector<1x2xf32>
    %1340 = vector.broadcast %1339 : vector<1x2xf32> to vector<2x2xf32>
    %1341 = arith.addf %1338, %1340 : vector<2x2xf32>
    %1342 = arith.index_cast %c7_i32_924 : i32 to index
    %c0_964 = arith.constant 0 : index
    %c0_965 = arith.constant 0 : index
    %1343 = vector.load %arg7[%1342, %c0_964, %c0_965] : memref<8x2x2xf32, #tpu.memory_space<vmem>>, vector<1x2x2xf32>
    %1344 = vector.shape_cast %1343 : vector<1x2x2xf32> to vector<2x2xf32>
    %1345 = vector.shape_cast %1341 : vector<2x2xf32> to vector<1x2x2xf32>
    tpu.vector_store %arg7[%1342, %c0_964, %c0_965], %1345 {strides = array<i32>} : memref<8x2x2xf32, #tpu.memory_space<vmem>>, vector<1x2x2xf32>,
    %c8_i32_966 = arith.constant 8 : i32
    return
  }
}

</mosaic_0001>

<bundles_post_ra>
// kernel: eou_vad_forward.2
= control target key start
LH: loop header
LB: loop body
LE: loop exit
PB: predicated region body
PF: predicated region fallthrough
CT: control target
= control target key end

     0   :  { %vm89_vm0 = vcmask 130048   ;;  %vm1722_vm1 = vcmask 523264   ;;  %vm3919_vm2 = vmmov 0   ;;  %vm2743_vm3 = vcmask 261120   ;;  %s5502_s1 = inlined_call_operand.vmem [shape: bf16[3,16,128], index: 1, kind: input, shape index: {}]   ;;  %s5503_s0 = inlined_call_operand.vmem [shape: f32[10,16,16], index: 0, kind: input, shape index: {}]   ;;  %s5504_s5 = inlined_call_operand.vmem [shape: bf16[128,64], index: 5, kind: input, shape index: {}]   ;;  %s5505_s4 = inlined_call_operand.vmem [shape: bf16[128,64], index: 4, kind: input, shape index: {}]   ;;  %s5506_s9 = inlined_call_operand.vmem [shape: bf16[128,64], index: 9, kind: input, shape index: {}]   ;;  %s5507_s3 = inlined_call_operand.vmem [shape: f32[7,128], index: 3, kind: input, shape index: {}]   ;;  %s5508_s2 = inlined_call_operand.vmem [shape: f32[1,128], index: 2, kind: input, shape index: {}]   ;;  %s5509_s8 = inlined_call_operand.vmem [shape: bf16[64,64], index: 8, kind: input, shape index: {}]   ;;  %s5510_s11 = inlined_call_operand.vmem [shape: bf16[10,64,32], index: 11, kind: input, shape index: {}]   ;;  %s5511_s6 = inlined_call_operand.vmem [shape: f32[1,64], index: 6, kind: input, shape index: {}]   ;;  %s5512_s7 = inlined_call_operand.vmem [shape: f32[7,64], index: 7, kind: input, shape index: {}]   ;;  %s5513_s10 = inlined_call_operand.vmem [shape: f32[1,64], index: 10, kind: input, shape index: {}]   ;;  %s5514_s13 = inlined_call_operand.vmem [shape: bf16[4,32,32], index: 13, kind: input, shape index: {}]   ;;  %s5515_s12 = inlined_call_operand.vmem [shape: f32[1,32], index: 12, kind: input, shape index: {}]   ;;  %s5516_s14 = inlined_call_operand.vmem [shape: f32[4,1,32], index: 14, kind: input, shape index: {}]   ;;  %s5517_s15 = inlined_call_operand.vmem [shape: f32[4,8,2,32], index: 15, kind: output, shape index: {}]  }
   0x1   :  { %v3839_v0 = vld [vmem:[%s5502_s1] sm:$0xff]   ;;  %v52_v2 = vld [vmem:[%s5503_s0 + $0x8] sm:$0xff]  ;;  %v53_v3 = vld [vmem:[%s5503_s0 + $0x10] sm:$0xff]  ;;  %vm2788_vm4 = vcmask 254976   ;;  %vm2791_vm5 = vcmask 257026   ;;  %vm2794_vm6 = vcmask 259076  }
   0x2   :  { %v51_v1 = vld [vmem:[%s5503_s0] sm:$0xff]  ;;  %3483 = vmatprep.subr.bf16.mxu0 %v3839_v0  ;;  %v54_v5 = vld [vmem:[%s5503_s0 + $0x18] sm:$0xff]  ;;  %v3840_v7 = vld [vmem:[%s5502_s1 + $0x8] sm:$0xff]   ;;  %vm2797_vm7 = vcmask 261126  }
   0x3   :  { %v71_v4 = vpack.c.bf16 %v52_v2, %v51_v1  ;;  %3484 = vmatpush3.bf16.msra.mxu0 %v3839_v0  ;;  %v72_v6 = vpack.c.bf16 %v54_v5, %v53_v3  ;;  %v55_v8 = vld [vmem:[%s5503_s0 + $0x20] sm:$0xff]  ;;  %v56_v9 = vld [vmem:[%s5503_s0 + $0x28] sm:$0xff]  ;;  %v57_v11 = vld [vmem:[%s5503_s0 + $0x30] sm:$0xff] }
   0x4   :  { %v73_v10 = vpack.c.bf16 %v56_v9, %v55_v8  ;;  %3527 = vmatprep.subr.bf16.mxu0 %v3840_v7  ;;  %v58_v12 = vld [vmem:[%s5503_s0 + $0x38] sm:$0xff]  ;;  %v59_v13 = vld [vmem:[%s5503_s0 + $0x40] sm:$0xff]  ;;  %v60_v14 = vld [vmem:[%s5503_s0 + $0x48] sm:$0xff] }
   0x5   :  { %3485 = vmatprep.mubr.msk.bf16.mxu0 %vm89_vm0, %v71_v4  ;;  %3507 = vmatprep.mubr.msk.bf16.mxu1 %vm89_vm0, %v71_v4  ;;  %v3841_v15 = vld [vmem:[%s5502_s1 + $0x10] sm:$0xff]   ;;  %v74_v16 = vpack.c.bf16 %v58_v12, %v57_v11  ;;  %v75_v17 = vpack.c.bf16 %v60_v14, %v59_v13  ;;  %v62_v19 = vld [vmem:[%s5503_s0 + $0x58] sm:$0xff]  ;;  %v63_v20 = vld [vmem:[%s5503_s0 + $0x60] sm:$0xff]  ;;  %v551_v12 = vlaneseq }
   0x6   :  { %3486 = vmatmul.mubr.msk.bf16.vlgmr.msra.gmra.mxu0 %vm89_vm0, %v72_v6  ;;  %3505 = vmatprep.subr.bf16.mxu1 %v3841_v15  ;;  %v61_v18 = vld [vmem:[%s5503_s0 + $0x50] sm:$0xff]  ;;  %v64_v21 = vld [vmem:[%s5503_s0 + $0x68] sm:$0xff]  ;;  %v66_v25 = vld [vmem:[%s5503_s0 + $0x78] sm:$0xff] }
   0x7   :  { %3528 = vmatpush3.bf16.msra.mxu0 %v3840_v7  ;;  %3489 = vmatprep.mubr.msk.bf16.mxu0 %vm89_vm0, %v73_v10  ;;  %v76_v22 = vpack.c.bf16 %v62_v19, %v61_v18  ;;  %v77_v23 = vpack.c.bf16 %v64_v21, %v63_v20  ;;  %v65_v24 = vld [vmem:[%s5503_s0 + $0x70] sm:$0xff]  ;;  %v67_v26 = vld [vmem:[%s5503_s0 + $0x80] sm:$0xff]  ;;  %v68_v27 = vld [vmem:[%s5503_s0 + $0x88] sm:$0xff] }
   0x8   :  { %3506 = vmatpush3.bf16.msra.mxu1 %v3841_v15  ;;  %v78_v28 = vpack.c.bf16 %v66_v25, %v65_v24  ;;  %v79_v29 = vpack.c.bf16 %v68_v27, %v67_v26  ;;  %v69_v30 = vld [vmem:[%s5503_s0 + $0x90] sm:$0xff]  ;;  %v70_v31 = vld [vmem:[%s5503_s0 + $0x98] sm:$0xff]  ;;  %v3844_v35 = vld [vmem:[%s5504_s5 + $0x28] sm:$0xff]  }
   0x9   :  { %v80_v32 = vpack.c.bf16 %v70_v31, %v69_v30  ;;  %v3842_v33 = vld [vmem:[%s5504_s5 + $0x38] sm:$0xff]   ;;  %v3843_v34 = vld [vmem:[%s5504_s5 + $0x30] sm:$0xff]   ;;  %v3845_v36 = vld [vmem:[%s5504_s5 + $0x20] sm:$0xff]  }
   0xa   :  { %3549 = vmatprep.subr.bf16.mxu1 %v3842_v33  ;;  %v3846_v37 = vld [vmem:[%s5505_s4 + $0x38] sm:$0xff]   ;;  %v3849_v39 = vld [vmem:[%s5504_s5 + $0x10] sm:$0xff]   ;;  %v3851_v41 = vld [vmem:[%s5504_s5 + $0x8] sm:$0xff]  }
   0xb   :  { %3508 = vmatmul.mubr.msk.bf16.vlgmr.msra.gmra.mxu1 %vm89_vm0, %v72_v6  ;;  %v3847_v38 = vld [vmem:[%s5504_s5 + $0x18] sm:$0xff]   ;;  %3585 = vmatprep.subr.bf16.mxu0 %v3846_v37  ;;  %v3848_v40 = vld [vmem:[%s5505_s4 + $0x30] sm:$0xff]   ;;  %v3852_v42 = vld [vmem:[%s5504_s5] sm:$0xff]  }
   0xc   :  { %3511 = vmatprep.mubr.msk.bf16.mxu1 %vm89_vm0, %v73_v10  ;;  %3550 = vmatpush3.bf16.msra.mxu1 %v3842_v33  ;;  %v3850_v43 = vld [vmem:[%s5505_s4 + $0x28] sm:$0xff]   ;;  %v3853_v44 = vld [vmem:[%s5505_s4 + $0x20] sm:$0xff]   ;;  %v3854_v45 = vld [vmem:[%s5505_s4 + $0x18] sm:$0xff]  }
   0xd   :  { %3551 = vmatprep.subr.bf16.mxu1 %v3843_v34  ;;  %v3855_v46 = vld [vmem:[%s5505_s4 + $0x10] sm:$0xff]   ;;  %v4144_v47 = vld [vmem:[%s5506_s9 + $0x38] sm:$0xff]   ;;  %v3857_v48 = vld [vmem:[%s5505_s4 + $0x8] sm:$0xff]  }
   0xe   :  { %3490 = vmatmul.mubr.msk.bf16.gmra.mxu0 %vm89_vm0, %v74_v16  ;;  %v3859_v49 = vld [vmem:[%s5505_s4] sm:$0xff]  }
   0xf   :  { %3493 = vmatprep.mubr.msk.bf16.mxu0 %vm89_vm0, %v75_v17  ;;  %v550_v21 = vld [vmem:[%s5507_s3] sm:$0x7f] }
  0x10   :  { %3552 = vmatpush3.bf16.msra.mxu1 %v3843_v34 }
  0x11   :  { %3553 = vmatprep.subr.bf16.mxu1 %v3844_v35 }
  0x13   :  { %3512 = vmatmul.mubr.msk.bf16.gmra.mxu1 %vm89_vm0, %v74_v16 }
  0x14   :  { %3515 = vmatprep.mubr.msk.bf16.mxu1 %vm89_vm0, %v75_v17  ;;  %3554 = vmatpush3.bf16.msra.mxu1 %v3844_v35 }
  0x15   :  { %3555 = vmatprep.subr.bf16.mxu1 %v3845_v36 }
  0x16   :  { %3494 = vmatmul.mubr.msk.bf16.gmra.mxu0 %vm89_vm0, %v76_v22 }
  0x17   :  { %3497 = vmatprep.mubr.msk.bf16.mxu0 %vm89_vm0, %v77_v23 }
  0x18   :  { %3556 = vmatpush3.bf16.msra.mxu1 %v3845_v36 }
  0x19   :  { %3557 = vmatprep.subr.bf16.mxu1 %v3847_v38 }
  0x1b   :  { %3516 = vmatmul.mubr.msk.bf16.gmra.mxu1 %vm89_vm0, %v76_v22 }
  0x1c   :  { %3519 = vmatprep.mubr.msk.bf16.mxu1 %vm89_vm0, %v77_v23  ;;  %3558 = vmatpush3.bf16.msra.mxu1 %v3847_v38 }
  0x1d   :  { %3559 = vmatprep.subr.bf16.mxu1 %v3849_v39 }
  0x1e   :  { %3498 = vmatmul.mubr.msk.bf16.gmra.mxu0 %vm89_vm0, %v78_v28 }
  0x1f   :  { %3501 = vmatprep.mubr.msk.bf16.mxu0 %vm89_vm0, %v79_v29 }
  0x20   :  { %3560 = vmatpush3.bf16.msra.mxu1 %v3849_v39 }
  0x21   :  { %3561 = vmatprep.subr.bf16.mxu1 %v3851_v41 }
  0x23   :  { %3520 = vmatmul.mubr.msk.bf16.gmra.mxu1 %vm89_vm0, %v78_v28 }
  0x24   :  { %3523 = vmatprep.mubr.msk.bf16.mxu1 %vm89_vm0, %v79_v29  ;;  %3562 = vmatpush3.bf16.msra.mxu1 %v3851_v41 }
  0x25   :  { %3563 = vmatprep.subr.bf16.mxu1 %v3852_v42 }
  0x26   :  { %3502 = vmatmul.mubr.msk.bf16.gmra.mxu0 %vm89_vm0, %v80_v32 }
  0x27   :  { %3529 = vmatprep.mubr.msk.bf16.mxu0 %vm89_vm0, %v71_v4 }
  0x28   :  { %3564 = vmatpush3.bf16.msra.mxu1 %v3852_v42 }
  0x29   :  { %3621 = vmatprep.subr.bf16.mxu1 %v4144_v47 }
  0x2b   :  { %3524 = vmatmul.mubr.msk.bf16.gmra.mxu1 %vm89_vm0, %v80_v32 }
  0x2e   :  { %3530 = vmatmul.mubr.msk.bf16.vlgmr.msra.gmra.mxu0 %vm89_vm0, %v72_v6 }
  0x2f   :  { %3533 = vmatprep.mubr.msk.bf16.mxu0 %vm89_vm0, %v73_v10  ;;  %3586 = vmatpush3.bf16.msra.mxu0 %v3846_v37 }
  0x30   :  { %3587 = vmatprep.subr.bf16.mxu0 %v3848_v40 }
  0x33   :  { %3588 = vmatpush3.bf16.msra.mxu0 %v3848_v40 }
  0x34   :  { %3589 = vmatprep.subr.bf16.mxu0 %v3850_v43 }
  0x36   :  { %3534 = vmatmul.mubr.msk.bf16.gmra.mxu0 %vm89_vm0, %v74_v16  ;;  %v4193_v16 = vshrl.u32 %v551_v12, 7 }
  0x37   :  { %3537 = vmatprep.mubr.msk.bf16.mxu0 %vm89_vm0, %v75_v17  ;;  %3590 = vmatpush3.bf16.msra.mxu0 %v3850_v43 }
  0x38   :  { %3591 = vmatprep.subr.bf16.mxu0 %v3853_v44  ;;  %5528 = vst [vmem:[#allocation2_spill] sm:$0xff] %v4193_v16  ;;  %v5523_v20 = vsub.s32 0, %v4193_v16  ;;  %v5522_v24 = vsub.s32 1, %v4193_v16  ;;  %v5521_v27 = vsub.s32 2, %v4193_v16  ;;  %v5520_v31 = vsub.s32 4, %v4193_v16 }
  0x39   :  { %v5518_v39 = vsub.s32 5, %v4193_v16 }
  0x3a   :  { %v4215_v30 = vrot.slane %v550_v21, %v5523_v20  ;;  %v4225_v36 = vrot.slane %v550_v21, %v5522_v24  ;;  %v4234_v42 = vrot.slane %v550_v21, %v5521_v27 }
  0x3b   :  { %3592 = vmatpush3.bf16.msra.mxu0 %v3853_v44 }
  0x3c   :  { %3593 = vmatprep.subr.bf16.mxu0 %v3854_v45  ;;  %v4237_v44 = vmul.f32 0.0, %v4215_v30  ;;  %v4255_v12 = vmul.f32 0.0, %v4234_v42 }
  0x3e   :  { %3538 = vmatmul.mubr.msk.bf16.gmra.mxu0 %vm89_vm0, %v76_v22 }
  0x3f   :  { %3541 = vmatprep.mubr.msk.bf16.mxu0 %vm89_vm0, %v77_v23  ;;  %3594 = vmatpush3.bf16.msra.mxu0 %v3854_v45  ;;  %v5524_v23 = vsub.s32 3, %v4193_v16  ;;  %v4240_v45 = vmul.f32 0.0, %v4225_v36 }
  0x40   :  { %3595 = vmatprep.subr.bf16.mxu0 %v3855_v46 }
  0x41   :  { %v4221_v35 = vrot.slane %v550_v21, %v5524_v23 }
  0x43   :  { %3596 = vmatpush3.bf16.msra.mxu0 %v3855_v46 }
  0x44   :  { %3597 = vmatprep.subr.bf16.mxu0 %v3857_v48 }
  0x46   :  { %3542 = vmatmul.mubr.msk.bf16.gmra.mxu0 %vm89_vm0, %v78_v28  ;;  %v4211_v28 = vld [vmem:[%s5508_s2] ss:$0 sm:$0xff] }
  0x47   :  { %3545 = vmatprep.mubr.msk.bf16.mxu0 %vm89_vm0, %v79_v29  ;;  %3598 = vmatpush3.bf16.msra.mxu0 %v3857_v48  ;;  %v4244_v48 = vrot.slane %v550_v21, %v5520_v31 }
  0x48   :  { %3599 = vmatprep.subr.bf16.mxu0 %v3859_v49 }
  0x4b   :  { %3600 = vmatpush3.bf16.msra.mxu0 %v3859_v49 }
  0x4e   :  { %3546 = vmatmul.mubr.msk.bf16.gmra.mxu0 %vm89_vm0, %v80_v32  ;;  %v5519_v32 = vsub.s32 6, %v4193_v16 }
  0x50   :  { %v4248_v49 = vrot.slane %v550_v21, %v5519_v32 }
  0xc6   :  { %v4153_v50 = vpop.f32.mrf.mxu0 }
  0xc8   :  { %v154_v51 = vpop.f32.mrf.mxu0 }
  0xca   :  { %v4155_v52 = vpop.f32.mrf.mxu0 }
  0xcb   :  { %v3509_v55 = vpop.f32.mrf.mxu1 }
  0xcc   :  { %v157_v53 = vpop.f32.mrf.mxu0 }
  0xcd   :  { %v277_v57 = vpop.f32.mrf.mxu1 }
  0xce   :  { %v4157_v54 = vpop.f32.mrf.mxu0 }
  0xcf   :  { %v3510_v59 = vpop.f32.mrf.mxu1 }
  0xd0   :  { %v4159_v56 = vpop.f32.mrf.mxu0 }
  0xd1   :  { %v279_v61 = vpop.f32.mrf.mxu1 }
  0xd2   :  { %v4161_v58 = vpop.f32.mrf.mxu0 }
  0xd3   :  { %v4167_v63 = vpop.f32.mrf.mxu1 }
  0xd4   :  { %v4163_v60 = vpop.f32.mrf.mxu0 }
  0xd5   :  { %v291_v1 = vpop.f32.mrf.mxu1 }
  0xd6   :  { %v4165_v62 = vpop.f32.mrf.mxu0 }
  0xd7   :  { %v4173_v3 = vpop.f32.mrf.mxu1 }
  0xd8   :  { %v4169_v0 = vpop.f32.mrf.mxu0 }
  0xd9   :  { %v294_v5 = vpop.f32.mrf.mxu1 }
  0xda   :  { %v4171_v2 = vpop.f32.mrf.mxu0 }
  0xdb   :  { %v4179_v7 = vpop.f32.mrf.mxu1 }
  0xdc   :  { %v4175_v4 = vpop.f32.mrf.mxu0 }
  0xdd   :  { %v4185_v10 = vpop.f32.mrf.mxu1 }
  0xde   :  { %v4177_v6 = vpop.f32.mrf.mxu0 }
  0xdf   :  { %v4189_v14 = vpop.f32.mrf.mxu1 }
  0xe0   :  { %v4181_v8 = vpop.f32.mrf.mxu0 }
  0xe1   :  { %v4195_v18 = vpop.f32.mrf.mxu1 }
  0xe2   :  { %v4183_v9 = vpop.f32.mrf.mxu0 }
  0xe3   :  { %v4205_v25 = vpop.f32.mrf.mxu1 }
  0xe4   :  { %v4187_v11 = vpop.f32.mrf.mxu0 }
  0xe5   :  { %v4227_v38 = vpop.f32.mrf.mxu1 }
  0xe6   :  { %v3503_v13 = vpop.f32.mrf.mxu0 }
  0xe7   :  { %v4259_v13 = vrot.slane %v550_v21, %v5518_v39 }
  0xe8   :  { %v4191_v15 = vpop.f32.mrf.mxu0 }
  0xea   :  { %v3504_v17 = vpop.f32.mrf.mxu0 }
  0xeb   :  { %v4262_v17 = vmul.f32 0.0, %v4248_v49 }
  0xec   :  { %v4197_v19 = vpop.f32.mrf.mxu0 }
  0xee   :  { %v3531_v22 = vpop.f32.mrf.mxu0 }
  0xef   :  { %v403_v26 = vadd.f32 %v3531_v22, %v154_v51  ;;  %v4265_v22 = vmul.f32 0.0, %v4244_v48 }
  0xf0   :  { %v394_v29 = vpop.f32.mrf.mxu0 }
  0xf1   :  { %v475_v33 = vadd.f32 %v403_v26, %v291_v1  ;;  %v473_v34 = vadd.f32 %v3509_v55, %v394_v29  ;;  %v4252_v1 = vpop.f32.mrf.mxu1  ;;  %5529 = vst [vmem:[#allocation3_spill] sm:$0xff] %v4265_v22 }
  0xf2   :  { %v3532_v37 = vpop.f32.mrf.mxu0 }
  0xf3   :  { %v502_v40 = vadd.f32 %v4211_v28, %v475_v33  ;;  %v500_v41 = vadd.f32 %v4211_v28, %v473_v34  ;;  %v406_v43 = vadd.f32 %v3532_v37, %v157_v53  ;;  %v326_v24 = vpop.f32.mrf.mxu1 }
  0xf4   :  { %v397_v46 = vpop.f32.mrf.mxu0 }
  0xf5   :  { %v4250_v51 = vmax.f32 %v502_v40, 0.0  ;;  %v520_v55 = vmax.f32 %v500_v41, 0.0  ;;  %v476_v57 = vadd.f32 %v406_v43, %v294_v5  ;;  %v474_v53 = vadd.f32 %v3510_v59, %v397_v46  ;;  %v4315_v16 = vpop.f32.mrf.mxu1 }
  0xf6   :  { %v3535_v61 = vpop.f32.mrf.mxu0 }
  0xf7   :  { %v557_v5 = vmul.f32 %v4221_v35, %v4250_v51  ;;  %v555_v59 = vmul.f32 %v4221_v35, %v520_v55  ;;  %v4271_v26 = vmul.f32 %v4215_v30, %v520_v55  ;;  %v4274_v29 = vmul.f32 %v4225_v36, %v520_v55 }
  0xf8   :  { %v660_v21 = vmul.f32 %v4234_v42, %v520_v55  ;;  %v503_v33 = vadd.f32 %v4211_v28, %v476_v57  ;;  %v501_v34 = vadd.f32 %v4211_v28, %v474_v53  ;;  %v419_v37 = vadd.f32 %v3535_v61, %v4159_v56  ;;  %v410_v40 = vpop.f32.mrf.mxu0 }
  0xf9   :  { %v596_v41 = vadd.f32 %v4237_v44, %v557_v5  ;;  %v411_v43 = vadd.f32 %v4153_v50, %v410_v40  ;;  %v594_v46 = vadd.f32 %v4237_v44, %v555_v59  ;;  %v702_v39 = vmul.f32 %v4244_v48, %v4250_v51 }
  0xfa   :  { %v4285_v32 = vmax.f32 %v503_v33, 0.0  ;;  %v521_v31 = vmax.f32 %v501_v34, 0.0  ;;  %v479_v27 = vadd.f32 %v419_v37, %v4185_v10  ;;  %v3536_v57 = vpop.f32.mrf.mxu0  ;;  %v4290_v56 = vmul.f32 %v4234_v42, %v4250_v51 }
  0xfb   :  { %v637_v53 = vadd.f32 %v4240_v45, %v596_v41  ;;  %v477_v50 = vadd.f32 %v4167_v63, %v411_v43  ;;  %v422_v61 = vadd.f32 %v3536_v57, %v4163_v60  ;;  %v635_v5 = vadd.f32 %v4240_v45, %v594_v46 }
  0xfc   :  { %v558_v59 = vmul.f32 %v4221_v35, %v4285_v32  ;;  %v556_v33 = vmul.f32 %v4221_v35, %v521_v31  ;;  %v4300_v10 = vmul.f32 %v4215_v30, %v521_v31  ;;  %v4303_v34 = vmul.f32 %v4225_v36, %v521_v31  ;;  %v413_v37 = vpop.f32.mrf.mxu0 }
  0xfd   :  { %v4305_v40 = vadd.f32 %v660_v21, %v637_v53  ;;  %v661_v63 = vmul.f32 %v4234_v42, %v521_v31  ;;  %v506_v60 = vadd.f32 %v4211_v28, %v479_v27  ;;  %v504_v41 = vadd.f32 %v4211_v28, %v477_v50 }
  0xfe   :  { %v597_v43 = vadd.f32 %v4237_v44, %v558_v59  ;;  %v480_v46 = vadd.f32 %v422_v61, %v4195_v18  ;;  %v414_v57 = vadd.f32 %v4155_v52, %v413_v37  ;;  %v4313_v20 = vpack.c.bf16 %v521_v31, %v520_v55  ;;  %v3539_v23 = vpop.f32.mrf.mxu0  ;;  %v3858_v18 = vld [vmem:[%s5506_s9 + $0x30] sm:$0xff]  }
  0xff   :  { %v4317_v22 = vmax.f32 %v506_v60, 0.0  ;;  %v4319_v21 = vmax.f32 %v504_v41, 0.0  ;;  %v435_v53 = vadd.f32 %v3539_v23, %v4169_v0  ;;  %v4324_v27 = vpack.c.bf16 %v4285_v32, %v4250_v51 }
 0x100   :  { %v638_v52 = vadd.f32 %v4240_v45, %v597_v43  ;;  %v507_v31 = vadd.f32 %v4211_v28, %v480_v46  ;;  %v478_v55 = vadd.f32 %v4173_v3, %v414_v57  ;;  %3565 = vmatprep.mubr.bf16.mxu1 %v4313_v20  ;;  %v426_v50 = vpop.f32.mrf.mxu0  ;;  %v595_v61 = vadd.f32 %v4237_v44, %v556_v33  ;;  %v339_v46 = vpop.f32.mrf.mxu1 }
 0x101   :  { %3566 = vmatmul.mubr.bf16.vlgmr.msra.gmra.mxu1 %v4324_v27  ;;  %v483_v0 = vadd.f32 %v435_v53, %v4227_v38  ;;  %v427_v23 = vadd.f32 %v4157_v54, %v426_v50  ;;  %v678_v59 = vadd.f32 %v4255_v12, %v635_v5  ;;  %v703_v37 = vmul.f32 %v4244_v48, %v4285_v32 }
 0x102   :  { %v681_v60 = vadd.f32 %v661_v63, %v638_v52  ;;  %v4340_v41 = vmax.f32 %v507_v31, 0.0  ;;  %v505_v3 = vadd.f32 %v4211_v28, %v478_v55  ;;  %v3540_v43 = vpop.f32.mrf.mxu0  ;;  %3622 = vmatpush3.bf16.msra.mxu1 %v4144_v47  ;;  %v636_v33 = vadd.f32 %v4240_v45, %v595_v61  ;;  %v3860_v63 = vld [vmem:[%s5506_s9 + $0x28] sm:$0xff]  }
 0x103   :  { %v510_v38 = vadd.f32 %v4211_v28, %v483_v0  ;;  %v481_v54 = vadd.f32 %v4179_v7, %v427_v23  ;;  %v438_v5 = vadd.f32 %v3540_v43, %v4175_v4  ;;  %3623 = vmatprep.subr.bf16.mxu1 %v3858_v18  ;;  %v721_v57 = vadd.f32 %v702_v39, %v678_v59  ;;  %v4368_v0 = vpop.f32.mrf.mxu1 }
 0x104   :  { %v4351_v53 = vmax.f32 %v505_v3, 0.0  ;;  %v429_v52 = vpop.f32.mrf.mxu0  ;;  %v4355_v47 = vpack.c.bf16 %v4340_v41, %v4317_v22  ;;  %v679_v45 = vadd.f32 %v4255_v12, %v636_v33  ;;  %v745_v7 = vmul.f32 %v4259_v13, %v4319_v21  ;;  %v3861_v33 = vld [vmem:[%s5506_s9 + $0x20] sm:$0xff]  }
 0x105   :  { %v4360_v31 = vmax.f32 %v510_v38, 0.0  ;;  %v508_v4 = vadd.f32 %v4211_v28, %v481_v54  ;;  %v484_v39 = vadd.f32 %v438_v5, %v326_v24  ;;  %v430_v55 = vadd.f32 %v4161_v58, %v429_v52 }
 0x106   :  { %v3543_v50 = vpop.f32.mrf.mxu0  ;;  %v4366_v61 = vpack.c.bf16 %v4351_v53, %v4319_v21  ;;  %v722_v23 = vadd.f32 %v703_v37, %v679_v45  ;;  %v746_v12 = vmul.f32 %v4259_v13, %v4351_v53  ;;  %v762_v59 = vadd.f32 %v745_v7, %v721_v57  ;;  %3624 = vmatpush3.bf16.msra.mxu1 %v3858_v18  ;;  %v342_v7 = vpop.f32.mrf.mxu1 }
 0x107   :  { %v4372_v3 = vmax.f32 %v508_v4, 0.0  ;;  %v511_v43 = vadd.f32 %v4211_v28, %v484_v39  ;;  %v482_v24 = vadd.f32 %v4189_v14, %v430_v55  ;;  %v451_v58 = vadd.f32 %v3543_v50, %v4181_v8  ;;  %3625 = vmatprep.subr.bf16.mxu1 %v3860_v63 }
 0x108   :  { %3569 = vmatprep.mubr.bf16.mxu1 %v4366_v61  ;;  %v442_v37 = vpop.f32.mrf.mxu0  ;;  %v763_v38 = vadd.f32 %v746_v12, %v722_v23  ;;  %v786_v18 = vmul.f32 %v4248_v49, %v4317_v22  ;;  %v787_v54 = vmul.f32 %v4248_v49, %v4340_v41  ;;  %v704_v14 = vmul.f32 %v4244_v48, %v4319_v21 }
 0x109   :  { %v4387_v5 = vmax.f32 %v511_v43, 0.0  ;;  %v509_v8 = vadd.f32 %v4211_v28, %v482_v24  ;;  %v487_v57 = vadd.f32 %v451_v58, %v339_v46  ;;  %v443_v52 = vadd.f32 %v4165_v62, %v442_v37  ;;  %3570 = vmatmul.mubr.bf16.gmra.mxu1 %v4355_v47 }
 0x10a   :  { %v3544_v45 = vpop.f32.mrf.mxu0  ;;  %v801_v4 = vadd.f32 %v786_v18, %v762_v59  ;;  %v802_v39 = vadd.f32 %v787_v54, %v763_v38  ;;  %3626 = vmatpush3.bf16.msra.mxu1 %v3860_v63  ;;  %v705_v55 = vmul.f32 %v4244_v48, %v4351_v53  ;;  %v723_v50 = vadd.f32 %v704_v14, %v4305_v40 }
 0x10b   :  { %v4395_v23 = vmax.f32 %v509_v8, 0.0  ;;  %v514_v12 = vadd.f32 %v4211_v28, %v487_v57  ;;  %v485_v46 = vadd.f32 %v4205_v25, %v443_v52  ;;  %v454_v62 = vadd.f32 %v3544_v45, %v4187_v11  ;;  %3627 = vmatprep.subr.bf16.mxu1 %v3861_v33  ;;  %v3862_v11 = vld [vmem:[%s5506_s9 + $0x18] sm:$0xff]  }
 0x10c   :  { %v445_v43 = vpop.f32.mrf.mxu0  ;;  %v821_v24 = vpack.c.bf16 %v802_v39, %v801_v4  ;;  %v4402_v59 = vpack.c.bf16 %v4387_v5, %v4360_v31  ;;  %v724_v63 = vadd.f32 %v705_v55, %v681_v60  ;;  %v747_v58 = vmul.f32 %v4259_v13, %v4317_v22 }
 0x10d   :  { %v4406_v40 = vmax.f32 %v514_v12, 0.0  ;;  %v512_v37 = vadd.f32 %v4211_v28, %v485_v46  ;;  %v488_v38 = vadd.f32 %v454_v62, %v342_v7  ;;  %v446_v25 = vadd.f32 %v4171_v2, %v445_v43  ;;  %v3863_v12 = vld [vmem:[%s5506_s9 + $0x10] sm:$0xff]  }
 0x10e   :  { %3601 = vmatprep.mubr.bf16.mxu0 %v821_v24  ;;  %v3547_v18 = vpop.f32.mrf.mxu0  ;;  %v4415_v54 = vpack.c.bf16 %v4395_v23, %v4372_v3  ;;  %v748_v60 = vmul.f32 %v4259_v13, %v4340_v41  ;;  %v764_v14 = vadd.f32 %v747_v58, %v723_v50  ;;  %v788_v8 = vmul.f32 %v4248_v49, %v4372_v3 }
 0x10f   :  { %v4421_v57 = vmax.f32 %v512_v37, 0.0  ;;  %v515_v2 = vadd.f32 %v4211_v28, %v488_v38  ;;  %v486_v52 = vadd.f32 %v4252_v1, %v446_v25  ;;  %v467_v45 = vadd.f32 %v3547_v18, %v4191_v15  ;;  %3628 = vmatpush3.bf16.msra.mxu1 %v3861_v33 }
 0x110   :  { %3573 = vmatprep.mubr.bf16.mxu1 %v4415_v54  ;;  %v458_v7 = vpop.f32.mrf.mxu0  ;;  %v765_v4 = vadd.f32 %v748_v60, %v724_v63  ;;  %v789_v39 = vmul.f32 %v4248_v49, %v4395_v23  ;;  %v803_v55 = vadd.f32 %v788_v8, %v764_v14  ;;  %v559_v50 = vmul.f32 %v4221_v35, %v4319_v21 }
 0x111   :  { %v4434_v46 = vmax.f32 %v515_v2, 0.0  ;;  %v513_v15 = vadd.f32 %v4211_v28, %v486_v52  ;;  %v518_v1 = vadd.f32 %v4211_v28, %v467_v45  ;;  %v459_v33 = vadd.f32 %v4177_v6, %v458_v7  ;;  %3574 = vmatmul.mubr.bf16.gmra.mxu1 %v4402_v59  ;;  %3629 = vmatprep.subr.bf16.mxu1 %v3862_v11  ;;  %v3864_v52 = vld [vmem:[%s5506_s9 + $0x8] sm:$0xff]  }
 0x112   :  { %v3548_v62 = vpop.f32.mrf.mxu0  ;;  %v804_v43 = vadd.f32 %v789_v39, %v765_v4  ;;  %v560_v24 = vmul.f32 %v4221_v35, %v4351_v53  ;;  %v598_v63 = vadd.f32 %v4237_v44, %v559_v50  ;;  %v663_v58 = vmul.f32 %v4234_v42, %v4285_v32 }
 0x113   :  { %v4445_v37 = vmax.f32 %v513_v15, 0.0  ;;  %v4447_v38 = vmax.f32 %v518_v1, 0.0  ;;  %v489_v25 = vadd.f32 %v4315_v16, %v459_v33  ;;  %v470_v6 = vadd.f32 %v3548_v62, %v4197_v19  ;;  %3630 = vmatpush3.bf16.msra.mxu1 %v3862_v11 }
 0x114   :  { %v822_v18 = vpack.c.bf16 %v804_v43, %v803_v55  ;;  %v461_v60 = vpop.f32.mrf.mxu0  ;;  %v599_v14 = vadd.f32 %v4237_v44, %v560_v24  ;;  %v639_v8 = vadd.f32 %v4274_v29, %v598_v63  ;;  %v706_v2 = vmul.f32 %v4244_v48, %v4317_v22  ;;  %3631 = vmatprep.subr.bf16.mxu1 %v3863_v12  ;;  %v3865_v43 = vld [vmem:[%s5506_s9] sm:$0xff]  }
 0x115   :  { %v4460_v16 = vmul.f32 %v4221_v35, %v4447_v38  ;;  %v516_v19 = vadd.f32 %v4211_v28, %v489_v25  ;;  %v519_v11 = vadd.f32 %v4211_v28, %v470_v6  ;;  %v462_v44 = vadd.f32 %v4183_v9, %v461_v60 }
 0x116   :  { %3602 = vmatmul.mubr.bf16.vlgmr.msra.gmra.mxu0 %v822_v18  ;;  %v640_v29 = vadd.f32 %v4303_v34, %v599_v14  ;;  %v682_v45 = vadd.f32 %v4290_v56, %v639_v8  ;;  %v707_v7 = vmul.f32 %v4244_v48, %v4340_v41  ;;  %v749_v4 = vmul.f32 %v4259_v13, %v4372_v3 }
 0x117   :  { %v4471_v39 = vmax.f32 %v516_v19, 0.0  ;;  %v4473_v55 = vmax.f32 %v519_v11, 0.0  ;;  %v490_v50 = vadd.f32 %v4368_v0, %v462_v44  ;;  %v750_v9 = vmul.f32 %v4259_v13, %v4395_v23  ;;  %3632 = vmatpush3.bf16.msra.mxu1 %v3863_v12 }
 0x118   :  { %v683_v15 = vadd.f32 %v663_v58, %v640_v29  ;;  %v725_v34 = vadd.f32 %v706_v2, %v682_v45  ;;  %v790_v56 = vmul.f32 %v4248_v49, %v4360_v31  ;;  %v791_v1 = vmul.f32 %v4248_v49, %v4387_v5  ;;  %3633 = vmatprep.subr.bf16.mxu1 %v3864_v52 }
 0x119   :  { %v4484_v33 = vmul.f32 %v4221_v35, %v4473_v55  ;;  %v517_v62 = vadd.f32 %v4211_v28, %v490_v50  ;;  %v4489_v0 = vpack.c.bf16 %v4445_v37, %v4421_v57  ;;  %v4493_v12 = vpack.c.bf16 %v4434_v46, %v4406_v40 }
 0x11a   :  { %v726_v24 = vadd.f32 %v707_v7, %v683_v15  ;;  %v766_v63 = vadd.f32 %v749_v4, %v725_v34  ;;  %v561_v58 = vmul.f32 %v4221_v35, %v4317_v22  ;;  %v562_v28 = vmul.f32 %v4221_v35, %v4340_v41 }
 0x11b   :  { %v4502_v25 = vmax.f32 %v517_v62, 0.0  ;;  %3577 = vmatprep.mubr.bf16.mxu1 %v4489_v0  ;;  %v621_v6 = vmul.f32 %v4225_v36, %v4250_v51  ;;  %v622_v18 = vmul.f32 %v4225_v36, %v4285_v32  ;;  %v664_v60 = vmul.f32 %v4234_v42, %v4319_v21  ;;  %3634 = vmatpush3.bf16.msra.mxu1 %v3864_v52 }
 0x11c   :  { %v767_v14 = vadd.f32 %v750_v9, %v726_v24  ;;  %v805_v8 = vadd.f32 %v790_v56, %v766_v63  ;;  %3578 = vmatmul.mubr.bf16.gmra.mxu1 %v4493_v12  ;;  %v600_v2 = vadd.f32 %v4271_v26, %v561_v58  ;;  %v601_v19 = vadd.f32 %v4300_v10, %v562_v28 }
 0x11d   :  { %v665_v11 = vmul.f32 %v4234_v42, %v4351_v53  ;;  %v708_v44 = vmul.f32 %v4244_v48, %v4372_v3  ;;  %v709_v29 = vmul.f32 %v4244_v48, %v4395_v23  ;;  %v751_v52 = vmul.f32 %v4259_v13, %v4360_v31  ;;  %3635 = vmatprep.subr.bf16.mxu1 %v3865_v43 }
 0x11e   :  { %v806_v45 = vadd.f32 %v791_v1, %v767_v14  ;;  %v641_v7 = vadd.f32 %v621_v6, %v600_v2  ;;  %v642_v4 = vadd.f32 %v622_v18, %v601_v19  ;;  %v752_v26 = vmul.f32 %v4259_v13, %v4387_v5 }
 0x11f   :  { %v792_v10 = vmul.f32 %v4248_v49, %v4421_v57  ;;  %v793_v50 = vmul.f32 %v4248_v49, %v4445_v37  ;;  %v563_v9 = vmul.f32 %v4221_v35, %v4372_v3  ;;  %v564_v15 = vmul.f32 %v4221_v35, %v4395_v23  ;;  %3636 = vmatpush3.bf16.msra.mxu1 %v3865_v43 }
 0x120   :  { %v823_v34 = vpack.c.bf16 %v806_v45, %v805_v8  ;;  %v684_v56 = vadd.f32 %v664_v60, %v641_v7  ;;  %v685_v1 = vadd.f32 %v665_v11, %v642_v4  ;;  %v582_v62 = vmul.f32 %v4215_v30, %v4250_v51 }
 0x121   :  { %v583_v24 = vmul.f32 %v4215_v30, %v4285_v32  ;;  %v623_v63 = vmul.f32 %v4225_v36, %v4319_v21  ;;  %v624_v58 = vmul.f32 %v4225_v36, %v4351_v53  ;;  %v666_v28 = vmul.f32 %v4234_v42, %v4317_v22 }
 0x122   :  { %3605 = vmatprep.mubr.bf16.mxu0 %v823_v34  ;;  %v727_v43 = vadd.f32 %v708_v44, %v684_v56  ;;  %v728_v6 = vadd.f32 %v709_v29, %v685_v1  ;;  %v602_v18 = vadd.f32 %v582_v62, %v563_v9  ;;  %v667_v60 = vmul.f32 %v4234_v42, %v4340_v41 }
 0x123   :  { %v603_v51 = vadd.f32 %v583_v24, %v564_v15  ;;  %v710_v32 = vmul.f32 %v4244_v48, %v4360_v31  ;;  %v711_v14 = vmul.f32 %v4244_v48, %v4387_v5  ;;  %v753_v8 = vmul.f32 %v4259_v13, %v4421_v57 }
 0x124   :  { %v768_v2 = vadd.f32 %v751_v52, %v727_v43  ;;  %v769_v19 = vadd.f32 %v752_v26, %v728_v6  ;;  %v643_v11 = vadd.f32 %v623_v63, %v602_v18  ;;  %v754_v44 = vmul.f32 %v4259_v13, %v4445_v37 }
 0x125   :  { %v644_v29 = vadd.f32 %v624_v58, %v603_v51  ;;  %v794_v45 = vmul.f32 %v4248_v49, %v4406_v40  ;;  %v795_v7 = vmul.f32 %v4248_v49, %v4434_v46  ;;  %v4558_v4 = vpack.c.bf16 %v4502_v25, %v4471_v39 }
 0x126   :  { %v807_v9 = vadd.f32 %v792_v10, %v768_v2  ;;  %v808_v15 = vadd.f32 %v793_v50, %v769_v19  ;;  %v686_v34 = vadd.f32 %v666_v28, %v643_v11  ;;  %v4562_v52 = vpack.c.bf16 %v4473_v55, %v4447_v38 }
 0x127   :  { %v687_v26 = vadd.f32 %v667_v60, %v644_v29  ;;  %3581 = vmatprep.mubr.bf16.mxu1 %v4558_v4  ;;  %v565_v56 = vmul.f32 %v4221_v35, %v4360_v31  ;;  %v566_v1 = vmul.f32 %v4221_v35, %v4387_v5  ;;  %v584_v62 = vmul.f32 %v4215_v30, %v4319_v21 }
 0x128   :  { %v824_v24 = vpack.c.bf16 %v808_v15, %v807_v9  ;;  %v729_v10 = vadd.f32 %v710_v32, %v686_v34  ;;  %3582 = vmatmul.mubr.bf16.gmra.mxu1 %v4562_v52  ;;  %v585_v50 = vmul.f32 %v4215_v30, %v4351_v53  ;;  %v625_v63 = vmul.f32 %v4225_v36, %v4317_v22 }
 0x129   :  { %v730_v58 = vadd.f32 %v711_v14, %v687_v26  ;;  %3637 = vmatprep.mubr.bf16.mxu1 %v4313_v20  ;;  %v604_v28 = vadd.f32 %v584_v62, %v565_v56  ;;  %v626_v43 = vmul.f32 %v4225_v36, %v4340_v41  ;;  %v668_v21 = vmul.f32 %v4234_v42, %v4372_v3 }
 0x12a   :  { %3606 = vmatmul.mubr.bf16.gmra.mxu0 %v824_v24  ;;  %v770_v6 = vadd.f32 %v753_v8, %v729_v10  ;;  %v605_v18 = vadd.f32 %v585_v50, %v566_v1  ;;  %v669_v60 = vmul.f32 %v4234_v42, %v4395_v23  ;;  %v712_v53 = vmul.f32 %v4244_v48, %v4421_v57 }
 0x12b   :  { %v771_v51 = vadd.f32 %v754_v44, %v730_v58  ;;  %v645_v32 = vadd.f32 %v625_v63, %v604_v28  ;;  %v713_v20 = vmul.f32 %v4244_v48, %v4445_v37  ;;  %v755_v14 = vmul.f32 %v4259_v13, %v4406_v40 }
 0x12c   :  { %v809_v2 = vadd.f32 %v794_v45, %v770_v6  ;;  %v646_v19 = vadd.f32 %v626_v43, %v605_v18  ;;  %v756_v8 = vmul.f32 %v4259_v13, %v4434_v46  ;;  %v796_v11 = vmul.f32 %v4248_v49, %v4471_v39 }
 0x12d   :  { %v810_v29 = vadd.f32 %v795_v7, %v771_v51  ;;  %v688_v9 = vadd.f32 %v668_v21, %v645_v32  ;;  %v797_v44 = vmul.f32 %v4248_v49, %v4502_v25  ;;  %v567_v15 = vmul.f32 %v4221_v35, %v4421_v57 }
 0x12e   :  { %v689_v34 = vadd.f32 %v669_v60, %v646_v19  ;;  %v568_v26 = vmul.f32 %v4221_v35, %v4445_v37  ;;  %v586_v45 = vmul.f32 %v4215_v30, %v4317_v22  ;;  %v587_v56 = vmul.f32 %v4215_v30, %v4340_v41 }
 0x12f   :  { %v825_v1 = vpack.c.bf16 %v810_v29, %v809_v2  ;;  %v731_v62 = vadd.f32 %v712_v53, %v688_v9  ;;  %v627_v7 = vmul.f32 %v4225_v36, %v4372_v3  ;;  %v628_v24 = vmul.f32 %v4225_v36, %v4395_v23 }
 0x130   :  { %v732_v10 = vadd.f32 %v713_v20, %v689_v34  ;;  %v606_v50 = vadd.f32 %v586_v45, %v567_v15  ;;  %v607_v63 = vadd.f32 %v587_v56, %v568_v26  ;;  %v670_v58 = vmul.f32 %v4234_v42, %v4360_v31  ;;  %3638 = vmatmul.mubr.bf16.vlgmr.msra.gmra.mxu1 %v4324_v27 }
 0x131   :  { %3609 = vmatprep.mubr.bf16.mxu0 %v825_v1  ;;  %v772_v22 = vadd.f32 %v755_v14, %v731_v62  ;;  %v671_v41 = vmul.f32 %v4234_v42, %v4387_v5  ;;  %v714_v28 = vmul.f32 %v4244_v48, %v4406_v40  ;;  %v715_v43 = vmul.f32 %v4244_v48, %v4434_v46 }
 0x132   :  { %v773_v21 = vadd.f32 %v756_v8, %v732_v10  ;;  %v647_v6 = vadd.f32 %v627_v7, %v606_v50  ;;  %v648_v18 = vadd.f32 %v628_v24, %v607_v63  ;;  %v757_v60 = vmul.f32 %v4259_v13, %v4471_v39  ;;  %3641 = vmatprep.mubr.bf16.mxu1 %v4366_v61 }
 0x133   :  { %v811_v27 = vadd.f32 %v796_v11, %v772_v22  ;;  %v758_v53 = vmul.f32 %v4259_v13, %v4502_v25  ;;  %v798_v51 = vmul.f32 %v4248_v49, %v4447_v38  ;;  %v799_v32 = vmul.f32 %v4248_v49, %v4473_v55 }
 0x134   :  { %v812_v20 = vadd.f32 %v797_v44, %v773_v21  ;;  %v690_v14 = vadd.f32 %v670_v58, %v647_v6  ;;  %v691_v2 = vadd.f32 %v671_v41, %v648_v18  ;;  %v569_v19 = vmul.f32 %v4221_v35, %v4406_v40 }
 0x135   :  { %v570_v8 = vmul.f32 %v4221_v35, %v4434_v46  ;;  %v588_v61 = vmul.f32 %v4215_v30, %v4372_v3  ;;  %v589_v11 = vmul.f32 %v4215_v30, %v4395_v23  ;;  %v629_v29 = vmul.f32 %v4225_v36, %v4360_v31 }
 0x136   :  { %v826_v9 = vpack.c.bf16 %v812_v20, %v811_v27  ;;  %v733_v49 = vadd.f32 %v714_v28, %v690_v14  ;;  %v734_v44 = vadd.f32 %v715_v43, %v691_v2  ;;  %v630_v15 = vmul.f32 %v4225_v36, %v4387_v5 }
 0x137   :  { %v608_v34 = vadd.f32 %v588_v61, %v569_v19  ;;  %v609_v26 = vadd.f32 %v589_v11, %v570_v8  ;;  %v672_v45 = vmul.f32 %v4234_v42, %v4421_v57  ;;  %v673_v3 = vmul.f32 %v4234_v42, %v4445_v37 }
 0x138   :  { %3610 = vmatmul.mubr.bf16.gmra.mxu0 %v826_v9  ;;  %v774_v56 = vadd.f32 %v757_v60, %v733_v49  ;;  %v775_v23 = vadd.f32 %v758_v53, %v734_v44  ;;  %v716_v1 = vmul.f32 %v4244_v48, %v4471_v39  ;;  %v717_v62 = vmul.f32 %v4244_v48, %v4502_v25 }
 0x139   :  { %v649_v7 = vadd.f32 %v629_v29, %v608_v34  ;;  %v650_v24 = vadd.f32 %v630_v15, %v609_v26  ;;  %v759_v10 = vmul.f32 %v4259_v13, %v4447_v38  ;;  %v760_v50 = vmul.f32 %v4259_v13, %v4473_v55  ;;  %3642 = vmatmul.mubr.bf16.gmra.mxu1 %v4355_v47 }
 0x13a   :  { %v813_v63 = vadd.f32 %v798_v51, %v774_v56  ;;  %v814_v58 = vadd.f32 %v799_v32, %v775_v23  ;;  %v571_v22 = vmul.f32 %v4221_v35, %v4471_v39  ;;  %v572_v41 = vmul.f32 %v4221_v35, %v4502_v25  ;;  %3645 = vmatprep.mubr.bf16.mxu1 %v4415_v54 }
 0x13b   :  { %v692_v28 = vadd.f32 %v672_v45, %v649_v7  ;;  %v693_v43 = vadd.f32 %v673_v3, %v650_v24  ;;  %v590_v21 = vmul.f32 %v4215_v30, %v4360_v31  ;;  %v591_v6 = vmul.f32 %v4215_v30, %v4387_v5  ;;  %v5530_v45 = vld [vmem:[#allocation3_spill] sm:$0xff]  ;;  %v3866_v7 = vld [vmem:[%s5509_s8 + $0x18] sm:$0xff]  }
 0x13c   :  { %v827_v18 = vpack.c.bf16 %v814_v58, %v813_v63  ;;  %v631_v47 = vmul.f32 %v4225_v36, %v4421_v57  ;;  %v632_v60 = vmul.f32 %v4225_v36, %v4445_v37  ;;  %v674_v35 = vmul.f32 %v4234_v42, %v4406_v40  ;;  %3657 = vmatprep.subr.bf16.mxu0 %v3866_v7  ;;  %v3870_v24 = vld [vmem:[%s5510_s11 + $0x38] sm:$0xff]  }
 0x13d   :  { %v735_v27 = vadd.f32 %v716_v1, %v692_v28  ;;  %v736_v54 = vadd.f32 %v717_v62, %v693_v43  ;;  %v610_v53 = vadd.f32 %v590_v21, %v571_v22  ;;  %v611_v51 = vadd.f32 %v591_v6, %v572_v41  ;;  %3658 = vmatpush3.bf16.msra.mxu0 %v3866_v7  ;;  %v4728_v22 = vld [vmem:[%s5511_s6] ss:$0 sm:$0xff] }
 0x13e   :  { %3613 = vmatprep.mubr.bf16.mxu0 %v827_v18  ;;  %v675_v31 = vmul.f32 %v4234_v42, %v4434_v46  ;;  %v718_v5 = vmul.f32 %v4244_v48, %v4447_v38  ;;  %v719_v32 = vmul.f32 %v4244_v48, %v4473_v55  ;;  %v592_v20 = vmul.f32 %v4215_v30, %v4421_v57 }
 0x13f   :  { %v776_v14 = vadd.f32 %v759_v10, %v735_v27  ;;  %v777_v2 = vadd.f32 %v760_v50, %v736_v54  ;;  %v651_v19 = vadd.f32 %v631_v47, %v610_v53  ;;  %v652_v8 = vadd.f32 %v632_v60, %v611_v51  ;;  %v3871_v10 = vld [vmem:[%s5510_s11 + $0x30] sm:$0xff]   ;;  %v3872_v50 = vld [vmem:[%s5510_s11 + $0x28] sm:$0xff]   ;;  %v1232_v60 = vld [vmem:[%s5512_s7] sm:$0x7f] }
 0x140   :  { %v593_v61 = vmul.f32 %v4215_v30, %v4445_v37  ;;  %v612_v11 = vadd.f32 %v592_v20, %v4460_v16  ;;  %v633_v29 = vmul.f32 %v4225_v36, %v4406_v40  ;;  %v634_v38 = vmul.f32 %v4225_v36, %v4434_v46 }
 0x141   :  { %v815_v48 = vadd.f32 %v4262_v17, %v776_v14  ;;  %v816_v55 = vadd.f32 %v4262_v17, %v777_v2  ;;  %v694_v57 = vadd.f32 %v674_v35, %v651_v19  ;;  %v695_v9 = vadd.f32 %v675_v31, %v652_v8  ;;  %3646 = vmatmul.mubr.bf16.gmra.mxu1 %v4402_v59 }
 0x142   :  { %v613_v49 = vadd.f32 %v593_v61, %v4484_v33  ;;  %v653_v44 = vadd.f32 %v633_v29, %v612_v11  ;;  %v676_v30 = vmul.f32 %v4234_v42, %v4471_v39  ;;  %v677_v40 = vmul.f32 %v4234_v42, %v4502_v25  ;;  %3649 = vmatprep.mubr.bf16.mxu1 %v4489_v0 }
 0x143   :  { %v828_v36 = vpack.c.bf16 %v816_v55, %v815_v48  ;;  %v737_v46 = vadd.f32 %v718_v5, %v694_v57  ;;  %v738_v37 = vadd.f32 %v719_v32, %v695_v9  ;;  %v761_v16 = vmul.f32 0.0, %v4259_v13  ;;  %v5531_v5 = vld [vmem:[#allocation2_spill] sm:$0xff] }
 0x144   :  { %v654_v15 = vadd.f32 %v634_v38, %v613_v49  ;;  %v696_v34 = vadd.f32 %v676_v30, %v653_v44  ;;  %v5532_v32 = vsub.s32 3, %v5531_v5  ;;  %v5533_v14 = vsub.s32 0, %v5531_v5 }
 0x145   :  { %3614 = vmatmul.mubr.bf16.gmra.mxu0 %v828_v36  ;;  %v778_v59 = vadd.f32 %v761_v16, %v737_v46  ;;  %v779_v26 = vadd.f32 %v761_v16, %v738_v37  ;;  %v5534_v49 = vsub.s32 1, %v5531_v5 }
 0x146   :  { %v697_v33 = vadd.f32 %v677_v40, %v654_v15  ;;  %v739_v3 = vadd.f32 %v5530_v45, %v696_v34  ;;  %v4737_v20 = vrot.slane %v1232_v60, %v5532_v32  ;;  %v4741_v2 = vrot.slane %v1232_v60, %v5533_v14 }
 0x147   :  { %v817_v39 = vadd.f32 %v4262_v17, %v778_v59  ;;  %v818_v56 = vadd.f32 %v4262_v17, %v779_v26  ;;  %v4752_v44 = vrot.slane %v1232_v60, %v5534_v49  ;;  %v5536_v26 = vsub.s32 4, %v5531_v5 }
 0x148   :  { %v740_v42 = vadd.f32 %v5530_v45, %v697_v33  ;;  %v780_v0 = vadd.f32 %v761_v16, %v739_v3  ;;  %v4747_v48 = vmul.f32 0.0, %v4741_v2  ;;  %v5537_v45 = vsub.s32 6, %v5531_v5 }
 0x149   :  { %v829_v25 = vpack.c.bf16 %v818_v56, %v817_v39  ;;  %3650 = vmatmul.mubr.bf16.gmra.mxu1 %v4493_v12  ;;  %v3867_v12 = vld [vmem:[%s5509_s8 + $0x10] sm:$0xff]   ;;  %v1300_v37 = vmul.f32 0.0, %v4752_v44  ;;  %v4765_v33 = vrot.slane %v1232_v60, %v5536_v26 }
 0x14a   :  { %v781_v23 = vadd.f32 %v761_v16, %v740_v42  ;;  %3653 = vmatprep.mubr.bf16.mxu1 %v4558_v4  ;;  %v819_v13 = vadd.f32 %v4262_v17, %v780_v0  ;;  %3659 = vmatprep.subr.bf16.mxu0 %v3867_v12  ;;  %v3869_v4 = vld [vmem:[%s5509_s8] sm:$0xff]   ;;  %v5535_v16 = vsub.s32 2, %v5531_v5  ;;  %v4769_v3 = vrot.slane %v1232_v60, %v5537_v45 }
 0x14b   :  { %3617 = vmatprep.mubr.bf16.mxu0 %v829_v25  ;;  %3660 = vmatpush3.bf16.msra.mxu0 %v3867_v12  ;;  %v5538_v25 = vsub.s32 5, %v5531_v5 }
 0x14c   :  { %v820_v1 = vadd.f32 %v4262_v17, %v781_v23  ;;  %v3868_v17 = vld [vmem:[%s5509_s8 + $0x8] sm:$0xff]   ;;  %v4760_v15 = vrot.slane %v1232_v60, %v5535_v16 }
 0x14d   :  { %3661 = vmatprep.subr.bf16.mxu0 %v3868_v17  ;;  %v4776_v23 = vrot.slane %v1232_v60, %v5538_v25 }
 0x14e   :  { %v830_v62 = vpack.c.bf16 %v820_v1, %v819_v13  ;;  %v1341_v0 = vmul.f32 0.0, %v4760_v15  ;;  %v4779_v1 = vmul.f32 0.0, %v4769_v3 }
 0x14f   :  { %3662 = vmatpush3.bf16.msra.mxu0 %v3868_v17 }
 0x150   :  { %3618 = vmatmul.mubr.bf16.gmra.mxu0 %v830_v62  ;;  %3663 = vmatprep.subr.bf16.mxu0 %v3869_v4  ;;  %v4782_v62 = vmul.f32 0.0, %v4765_v33 }
 0x151   :  { %3654 = vmatmul.mubr.bf16.gmra.mxu1 %v4562_v52  ;;  %v3918_v52 = vmov 0.0  }
 0x152   :  { %3685 = vmatprep.subr.bf16.mxu1 %v3918_v52  ;;  %3693 = vmatprep.mubr.msk.bf16.mxu1 %vm3919_vm2, %v3918_v52 }
 0x153   :  { %3664 = vmatpush3.bf16.msra.mxu0 %v3869_v4  ;;  %3686 = vmatpush3.bf16.msra.mxu1 %v3870_v24 }
 0x154   :  { %3721 = vmatprep.subr.bf16.mxu0 %v3918_v52  ;;  %3687 = vmatprep.subr.bf16.mxu1 %v3918_v52 }
 0x157   :  { %3688 = vmatpush3.bf16.msra.mxu1 %v3871_v10 }
 0x158   :  { %3689 = vmatprep.subr.bf16.mxu1 %v3918_v52 }
 0x15b   :  { %3690 = vmatpush3.bf16.msra.mxu1 %v3872_v50 }
 0x15c   :  { %3691 = vmatprep.subr.bf16.mxu1 %v3918_v52 }
 0x1c1   :  { %v3567_v63 = vpop.f32.mrf.mxu1 }
 0x1c3   :  { %v945_v58 = vpop.f32.mrf.mxu1 }
 0x1c5   :  { %v3568_v41 = vpop.f32.mrf.mxu1 }
 0x1c7   :  { %v948_v6 = vpop.f32.mrf.mxu1 }
 0x1c9   :  { %v3571_v27 = vpop.f32.mrf.mxu1 }
 0x1cb   :  { %v961_v11 = vpop.f32.mrf.mxu1 }
 0x1cd   :  { %v3572_v9 = vpop.f32.mrf.mxu1 }
 0x1cf   :  { %v964_v59 = vpop.f32.mrf.mxu1 }
 0x1d1   :  { %v4791_v10 = vpop.f32.mrf.mxu1 }
 0x1d3   :  { %v977_v32 = vpop.f32.mrf.mxu1 }
 0x1d6   :  { %v3603_v28 = vpop.f32.mrf.mxu0 }
 0x1d7   :  { %v1115_v43 = vadd.f32 %v3603_v28, %v3567_v63 }
 0x1d8   :  { %v1106_v21 = vpop.f32.mrf.mxu0 }
 0x1d9   :  { %v1194_v18 = vadd.f32 %v4728_v22, %v1115_v43  ;;  %v1107_v47 = vadd.f32 %v1106_v21, %v945_v58 }
 0x1da   :  { %v3604_v35 = vpop.f32.mrf.mxu0 }
 0x1db   :  { %v1192_v54 = vadd.f32 %v4728_v22, %v1107_v47  ;;  %v1118_v53 = vadd.f32 %v3604_v35, %v3568_v41  ;;  %v1214_v31 = vmax.f32 %v1194_v18, 0.0 }
 0x1dc   :  { %v1109_v51 = vpop.f32.mrf.mxu0 }
 0x1dd   :  { %v1212_v19 = vmax.f32 %v1192_v54, 0.0  ;;  %v1195_v8 = vadd.f32 %v4728_v22, %v1118_v53  ;;  %v1110_v61 = vadd.f32 %v1109_v51, %v948_v6  ;;  %v1239_v38 = vmul.f32 %v4737_v20, %v1214_v31 }
 0x1de   :  { %v4785_v7 = vmul.f32 %v4741_v2, %v1214_v31  ;;  %v1303_v12 = vmul.f32 %v4752_v44, %v1214_v31  ;;  %v4789_v17 = vmul.f32 %v4760_v15, %v1214_v31  ;;  %v1384_v41 = vmul.f32 %v4765_v33, %v1214_v31 }
 0x1df   :  { %v1237_v29 = vmul.f32 %v4737_v20, %v1212_v19  ;;  %v1215_v55 = vmax.f32 %v1195_v8, 0.0  ;;  %v1193_v57 = vadd.f32 %v4728_v22, %v1110_v61  ;;  %v1278_v46 = vadd.f32 %v4747_v48, %v1239_v38 }
 0x1e0   :  { %v1262_v50 = vmul.f32 %v4741_v2, %v1212_v19  ;;  %v1342_v63 = vmul.f32 %v4760_v15, %v1212_v19  ;;  %v1301_v28 = vmul.f32 %v4752_v44, %v1212_v19 }
 0x1e1   :  { %v1276_v30 = vadd.f32 %v4747_v48, %v1237_v29  ;;  %v1240_v40 = vmul.f32 %v4737_v20, %v1215_v55  ;;  %v1213_v36 = vmax.f32 %v1193_v57, 0.0  ;;  %v1319_v13 = vadd.f32 %v1300_v37, %v1278_v46 }
 0x1e2   :  { %v4798_v60 = vmul.f32 %v4741_v2, %v1215_v55  ;;  %v4802_v53 = vmul.f32 %v4752_v44, %v1215_v55  ;;  %v1385_v5 = vmul.f32 %v4765_v33, %v1215_v55 }
 0x1e3   :  { %v1238_v34 = vmul.f32 %v4737_v20, %v1213_v36  ;;  %v1317_v39 = vadd.f32 %v1300_v37, %v1276_v30  ;;  %v1279_v42 = vadd.f32 %v4747_v48, %v1240_v40  ;;  %v1362_v47 = vadd.f32 %v1342_v63, %v1319_v13 }
 0x1e4   :  { %v1343_v51 = vmul.f32 %v4760_v15, %v1213_v36  ;;  %v1263_v14 = vmul.f32 %v4741_v2, %v1213_v36 }
 0x1e5   :  { %v1277_v56 = vadd.f32 %v4747_v48, %v1238_v34  ;;  %v1320_v43 = vadd.f32 %v1300_v37, %v1279_v42  ;;  %v1360_v6 = vadd.f32 %v1341_v0, %v1317_v39  ;;  %v3576_v34 = vpop.f32.mrf.mxu1 }
 0x1e7   :  { %v1318_v4 = vadd.f32 %v1300_v37, %v1277_v56  ;;  %v1363_v29 = vadd.f32 %v1343_v51, %v1320_v43  ;;  %v1403_v57 = vadd.f32 %v1384_v41, %v1360_v6 }
 0x1e9   :  { %v1361_v18 = vadd.f32 %v1341_v0, %v1318_v4 }
 0x1ea   :  { %v3607_v24 = vpop.f32.mrf.mxu0 }
 0x1eb   :  { %v1131_v58 = vadd.f32 %v3607_v24, %v3571_v27  ;;  %v4805_v27 = vmul.f32 %v4760_v15, %v1215_v55  ;;  %v1404_v49 = vadd.f32 %v1385_v5, %v1361_v18 }
 0x1ec   :  { %v1122_v21 = vpop.f32.mrf.mxu0 }
 0x1ed   :  { %v1198_v35 = vadd.f32 %v4728_v22, %v1131_v58  ;;  %v1123_v54 = vadd.f32 %v1122_v21, %v961_v11  ;;  %v1302_v11 = vmul.f32 %v4752_v44, %v1213_v36  ;;  %v980_v21 = vpop.f32.mrf.mxu1 }
 0x1ee   :  { %v3608_v31 = vpop.f32.mrf.mxu0 }
 0x1ef   :  { %v4810_v19 = vmax.f32 %v1198_v35, 0.0  ;;  %v1196_v8 = vadd.f32 %v4728_v22, %v1123_v54  ;;  %v1134_v61 = vadd.f32 %v3608_v31, %v3572_v9 }
 0x1f0   :  { %v1125_v38 = vpop.f32.mrf.mxu0 }
 0x1f1   :  { %v1216_v30 = vmax.f32 %v1196_v8, 0.0  ;;  %v1199_v40 = vadd.f32 %v4728_v22, %v1134_v61  ;;  %v1126_v46 = vadd.f32 %v1125_v38, %v964_v59  ;;  %v1468_v55 = vmul.f32 %v4769_v3, %v4810_v19 }
 0x1f2   :  { %v1429_v37 = vmul.f32 %v4776_v23, %v4810_v19  ;;  %v1388_v16 = vmul.f32 %v4765_v33, %v4810_v19  ;;  %v1243_v9 = vmul.f32 %v4737_v20, %v4810_v19  ;;  %v4825_v36 = vmul.f32 %v4760_v15, %v4810_v19 }
 0x1f3   :  { %v1241_v26 = vmul.f32 %v4737_v20, %v1216_v30  ;;  %v4829_v59 = vmul.f32 %v4741_v2, %v1216_v30  ;;  %v1386_v45 = vmul.f32 %v4765_v33, %v1216_v30  ;;  %v4832_v39 = vmax.f32 %v1199_v40, 0.0 }
 0x1f4   :  { %v1197_v56 = vadd.f32 %v4728_v22, %v1126_v46  ;;  %v1427_v42 = vmul.f32 %v4776_v23, %v1216_v30  ;;  %v1282_v0 = vadd.f32 %v1262_v50, %v1243_v9  ;;  %v1346_v25 = vmul.f32 %v4760_v15, %v1216_v30  ;;  %v3579_v9 = vpop.f32.mrf.mxu1 }
 0x1f5   :  { %v1405_v13 = vadd.f32 %v1386_v45, %v1362_v47  ;;  %v1469_v4 = vmul.f32 %v4769_v3, %v4832_v39  ;;  %v1430_v24 = vmul.f32 %v4776_v23, %v4832_v39  ;;  %v1280_v63 = vadd.f32 %v4747_v48, %v1241_v26 }
 0x1f6   :  { %v1217_v58 = vmax.f32 %v1197_v56, 0.0  ;;  %v1444_v41 = vadd.f32 %v1427_v42, %v1403_v57  ;;  %v1389_v43 = vmul.f32 %v4765_v33, %v4832_v39  ;;  %v1244_v50 = vmul.f32 %v4737_v20, %v4832_v39 }
 0x1f7   :  { %v1446_v6 = vadd.f32 %v1429_v37, %v1405_v13  ;;  %v1321_v18 = vadd.f32 %v1301_v28, %v1280_v63  ;;  %v1323_v47 = vadd.f32 %v1303_v12, %v1282_v0  ;;  %v4847_v35 = vmul.f32 %v4752_v44, %v1216_v30 }
 0x1f8   :  { %v1242_v54 = vmul.f32 %v4737_v20, %v1217_v58  ;;  %v4851_v51 = vmul.f32 %v4741_v2, %v1217_v58  ;;  %v1387_v31 = vmul.f32 %v4765_v33, %v1217_v58  ;;  %v3611_v5 = vpop.f32.mrf.mxu0  ;;  %v1428_v8 = vmul.f32 %v4776_v23, %v1217_v58 }
 0x1f9   :  { %v1147_v61 = vadd.f32 %v3611_v5, %v4791_v10  ;;  %v1483_v38 = vadd.f32 %v1468_v55, %v1444_v41  ;;  %v1364_v57 = vadd.f32 %v4789_v17, %v1321_v18  ;;  %v1283_v28 = vadd.f32 %v1263_v14, %v1244_v50 }
 0x1fa   :  { %v1406_v12 = vadd.f32 %v1387_v31, %v1363_v29  ;;  %v1138_v40 = vpop.f32.mrf.mxu0  ;;  %v1445_v30 = vadd.f32 %v1428_v8, %v1404_v49  ;;  %v1281_v46 = vadd.f32 %v4747_v48, %v1242_v54  ;;  %v1347_v37 = vmul.f32 %v4760_v15, %v1217_v58 }
 0x1fb   :  { %v1202_v26 = vadd.f32 %v4728_v22, %v1147_v61  ;;  %v1139_v45 = vadd.f32 %v1138_v40, %v977_v32  ;;  %v1407_v56 = vadd.f32 %v1388_v16, %v1364_v57  ;;  %v1324_v42 = vadd.f32 %v4802_v53, %v1283_v28  ;;  %v993_v16 = vpop.f32.mrf.mxu1 }
 0x1fc   :  { %v3612_v0 = vpop.f32.mrf.mxu0  ;;  %v1484_v10 = vadd.f32 %v1469_v4, %v1445_v30  ;;  %v1447_v55 = vadd.f32 %v1430_v24, %v1406_v12  ;;  %v1322_v13 = vadd.f32 %v1302_v11, %v1281_v46  ;;  %v1366_v17 = vadd.f32 %v1346_v25, %v1323_v47 }
 0x1fd   :  { %v4861_v14 = vmax.f32 %v1202_v26, 0.0  ;;  %v1200_v29 = vadd.f32 %v4728_v22, %v1139_v45  ;;  %v1150_v49 = vadd.f32 %v3612_v0, %v3576_v34  ;;  %v1367_v48 = vadd.f32 %v1347_v37, %v1324_v42 }
 0x1fe   :  { %v1141_v63 = vpop.f32.mrf.mxu0  ;;  %v1503_v41 = vpack.c.bf16 %v1484_v10, %v1483_v38  ;;  %v1365_v50 = vadd.f32 %v4805_v27, %v1322_v13  ;;  %v1306_v32 = vmul.f32 %v4752_v44, %v1217_v58  ;;  %v4868_v53 = vmul.f32 %v4760_v15, %v4832_v39  ;;  %v3580_v38 = vpop.f32.mrf.mxu1 }
 0x1ff   :  { %v4870_v4 = vmax.f32 %v1200_v29, 0.0  ;;  %v1203_v11 = vadd.f32 %v4728_v22, %v1150_v49  ;;  %v1142_v25 = vadd.f32 %v1141_v63, %v980_v21  ;;  %v4875_v34 = vmul.f32 %v4741_v2, %v4861_v14 }
 0x200   :  { %3665 = vmatprep.mubr.msk.bf16.mxu0 %vm1722_vm1, %v1503_v41  ;;  %v1408_v24 = vadd.f32 %v1389_v43, %v1365_v50  ;;  %v1472_v27 = vmul.f32 %v4769_v3, %v4861_v14  ;;  %v1433_v58 = vmul.f32 %v4776_v23, %v4861_v14  ;;  %v1392_v18 = vmul.f32 %v4765_v33, %v4861_v14  ;;  %v996_v49 = vpop.f32.mrf.mxu1 }
 0x201   :  { %v4884_v47 = vmax.f32 %v1203_v11, 0.0  ;;  %v1201_v21 = vadd.f32 %v4728_v22, %v1142_v25  ;;  %v1470_v54 = vmul.f32 %v4769_v3, %v4870_v4  ;;  %v1431_v31 = vmul.f32 %v4776_v23, %v4870_v4 }
 0x202   :  { %v1390_v43 = vmul.f32 %v4765_v33, %v4870_v4  ;;  %v1245_v5 = vmul.f32 %v4737_v20, %v4870_v4  ;;  %v1247_v8 = vmul.f32 %v4737_v20, %v4861_v14  ;;  %v1307_v61 = vmul.f32 %v4752_v44, %v4810_v19 }
 0x203   :  { %v4899_v57 = vmax.f32 %v1201_v21, 0.0  ;;  %v1485_v28 = vadd.f32 %v1470_v54, %v1446_v6  ;;  %v1448_v12 = vadd.f32 %v1431_v31, %v1407_v56  ;;  %v1473_v40 = vmul.f32 %v4769_v3, %v4884_v47 }
 0x204   :  { %v4905_v30 = vmul.f32 %v4741_v2, %v4884_v47  ;;  %v1409_v46 = vadd.f32 %v1390_v43, %v1366_v17  ;;  %v1434_v37 = vmul.f32 %v4776_v23, %v4884_v47  ;;  %v1284_v26 = vadd.f32 %v4785_v7, %v1245_v5 }
 0x205   :  { %v3615_v45 = vpop.f32.mrf.mxu0  ;;  %v1471_v42 = vmul.f32 %v4769_v3, %v4899_v57  ;;  %v1432_v6 = vmul.f32 %v4776_v23, %v4899_v57  ;;  %v1487_v56 = vadd.f32 %v1472_v27, %v1448_v12  ;;  %v1391_v0 = vmul.f32 %v4765_v33, %v4899_v57  ;;  %v3583_v12 = vpop.f32.mrf.mxu1 }
 0x206   :  { %v1163_v10 = vadd.f32 %v3615_v45, %v3579_v9  ;;  %v1450_v13 = vadd.f32 %v1433_v58, %v1409_v46  ;;  %v1246_v17 = vmul.f32 %v4737_v20, %v4899_v57  ;;  %v1325_v29 = vadd.f32 %v4847_v35, %v1284_v26 }
 0x207   :  { %v1154_v7 = vpop.f32.mrf.mxu0  ;;  %v1486_v63 = vadd.f32 %v1471_v42, %v1447_v55  ;;  %v1449_v41 = vadd.f32 %v1432_v6, %v1408_v24  ;;  %v1410_v50 = vadd.f32 %v1391_v0, %v1367_v48  ;;  %v1393_v11 = vmul.f32 %v4765_v33, %v4884_v47 }
 0x208   :  { %v1206_v25 = vadd.f32 %v4728_v22, %v1163_v10  ;;  %v1155_v27 = vadd.f32 %v1154_v7, %v993_v16  ;;  %v1285_v21 = vadd.f32 %v4798_v60, %v1246_v17  ;;  %v1368_v9 = vadd.f32 %v4825_v36, %v1325_v29 }
 0x209   :  { %v3616_v58 = vpop.f32.mrf.mxu0  ;;  %v1504_v54 = vpack.c.bf16 %v1486_v63, %v1485_v28  ;;  %v1488_v31 = vadd.f32 %v1473_v40, %v1449_v41  ;;  %v1451_v43 = vadd.f32 %v1434_v37, %v1410_v50  ;;  %v1248_v35 = vmul.f32 %v4737_v20, %v4884_v47 }
 0x20a   :  { %v4926_v55 = vmax.f32 %v1206_v25, 0.0  ;;  %v1204_v48 = vadd.f32 %v4728_v22, %v1155_v27  ;;  %v1166_v24 = vadd.f32 %v3616_v58, %v3580_v38  ;;  %v1326_v5 = vadd.f32 %v1306_v32, %v1285_v21 }
 0x20b   :  { %v1157_v46 = vpop.f32.mrf.mxu0  ;;  %3666 = vmatmul.mubr.msk.bf16.vlgmr.msra.gmra.mxu0 %vm1722_vm1, %v1504_v54  ;;  %v1505_v60 = vpack.c.bf16 %v1488_v31, %v1487_v56  ;;  %v1411_v16 = vadd.f32 %v1392_v18, %v1368_v9  ;;  %v1286_v36 = vadd.f32 %v4829_v59, %v1247_v8  ;;  %v1287_v28 = vadd.f32 %v4851_v51, %v1248_v35  ;;  %v1009_v56 = vpop.f32.mrf.mxu1 }
 0x20c   :  { %v4934_v40 = vmul.f32 %v4737_v20, %v4926_v55  ;;  %v4936_v37 = vmax.f32 %v1204_v48, 0.0  ;;  %v1207_v26 = vadd.f32 %v4728_v22, %v1166_v24  ;;  %v1158_v38 = vadd.f32 %v1157_v46, %v996_v49 }
 0x20d   :  { %v4941_v32 = vmul.f32 %v4752_v44, %v4926_v55  ;;  %3669 = vmatprep.mubr.msk.bf16.mxu0 %vm1722_vm1, %v1505_v60  ;;  %v1369_v18 = vadd.f32 %v4868_v53, %v1326_v5  ;;  %v1476_v59 = vmul.f32 %v4769_v3, %v4926_v55  ;;  %v1308_v51 = vmul.f32 %v4752_v44, %v4832_v39  ;;  %v3584_v54 = vpop.f32.mrf.mxu1 }
 0x20e   :  { %v4949_v8 = vmax.f32 %v1207_v26, 0.0  ;;  %v1205_v45 = vadd.f32 %v4728_v22, %v1158_v38  ;;  %v1274_v42 = vmul.f32 %v4741_v2, %v4936_v37  ;;  %v1474_v6 = vmul.f32 %v4769_v3, %v4936_v37 }
 0x20f   :  { %v1412_v0 = vadd.f32 %v1393_v11, %v1369_v18  ;;  %v1435_v53 = vmul.f32 %v4776_v23, %v4936_v37  ;;  %v1327_v10 = vadd.f32 %v1307_v61, %v1286_v36  ;;  %v1328_v17 = vadd.f32 %v1308_v51, %v1287_v28 }
 0x210   :  { %v4960_v29 = vmul.f32 %v4737_v20, %v4949_v8  ;;  %v4962_v49 = vmax.f32 %v1205_v45, 0.0  ;;  %v3619_v7 = vpop.f32.mrf.mxu0  ;;  %v4966_v63 = vmul.f32 %v4752_v44, %v4949_v8  ;;  %v1489_v41 = vadd.f32 %v1474_v6, %v1450_v13 }
 0x211   :  { %v1179_v50 = vadd.f32 %v3619_v7, %v3583_v12  ;;  %v1452_v25 = vadd.f32 %v1435_v53, %v1411_v16  ;;  %v1477_v11 = vmul.f32 %v4769_v3, %v4949_v8  ;;  %v1350_v61 = vmul.f32 %v4760_v15, %v4870_v4 }
 0x212   :  { %v1170_v27 = vpop.f32.mrf.mxu0  ;;  %v1275_v21 = vmul.f32 %v4741_v2, %v4962_v49  ;;  %v1475_v9 = vmul.f32 %v4769_v3, %v4962_v49  ;;  %v1436_v58 = vmul.f32 %v4776_v23, %v4962_v49  ;;  %v1351_v13 = vmul.f32 %v4760_v15, %v4899_v57 }
 0x213   :  { %v1210_v31 = vadd.f32 %v4728_v22, %v1179_v50  ;;  %v1171_v35 = vadd.f32 %v1170_v27, %v1009_v56  ;;  %v1491_v48 = vadd.f32 %v1476_v59, %v1452_v25  ;;  %v1370_v24 = vadd.f32 %v1350_v61, %v1327_v10 }
 0x214   :  { %v3620_v5 = vpop.f32.mrf.mxu0  ;;  %v1490_v12 = vadd.f32 %v1475_v9, %v1451_v43  ;;  %v1453_v46 = vadd.f32 %v1436_v58, %v1412_v0  ;;  %v1371_v60 = vadd.f32 %v1351_v13, %v1328_v17  ;;  %v1394_v16 = vmul.f32 %v4765_v33, %v4936_v37  ;;  %v1012_v43 = vpop.f32.mrf.mxu1 }
 0x215   :  { %v1230_v36 = vmax.f32 %v1210_v31, 0.0  ;;  %v1208_v28 = vadd.f32 %v4728_v22, %v1171_v35  ;;  %v1182_v26 = vadd.f32 %v3620_v5, %v3584_v54  ;;  %v1395_v38 = vmul.f32 %v4765_v33, %v4962_v49 }
 0x216   :  { %v1173_v18 = vpop.f32.mrf.mxu0  ;;  %v1506_v51 = vpack.c.bf16 %v1490_v12, %v1489_v41  ;;  %v1492_v45 = vadd.f32 %v1477_v11, %v1453_v46  ;;  %v1413_v6 = vadd.f32 %v1394_v16, %v1370_v24  ;;  %v1437_v59 = vmul.f32 %v4776_v23, %v4926_v55 }
 0x217   :  { %v1255_v56 = vmul.f32 %v4737_v20, %v1230_v36  ;;  %v4990_v0 = vmul.f32 %v4765_v33, %v1230_v36  ;;  %v4993_v53 = vmul.f32 %v4776_v23, %v1230_v36  ;;  %v4996_v10 = vmul.f32 %v4769_v3, %v1230_v36 }
 0x218   :  { %v1228_v17 = vmax.f32 %v1208_v28, 0.0  ;;  %v1211_v7 = vadd.f32 %v4728_v22, %v1182_v26  ;;  %v1174_v41 = vadd.f32 %v1173_v18, %v1012_v43  ;;  %3670 = vmatmul.mubr.msk.bf16.gmra.mxu0 %vm1722_vm1, %v1506_v51  ;;  %v1507_v50 = vpack.c.bf16 %v1492_v45, %v1491_v48 }
 0x219   :  { %v1294_v25 = vadd.f32 %v1274_v42, %v1255_v56  ;;  %v1414_v11 = vadd.f32 %v1395_v38, %v1371_v60  ;;  %v1438_v61 = vmul.f32 %v4776_v23, %v4949_v8  ;;  %v1454_v27 = vadd.f32 %v1437_v59, %v1413_v6 }
 0x21a   :  { %v1253_v9 = vmul.f32 %v4737_v20, %v1228_v17  ;;  %v5004_v58 = vmul.f32 %v4760_v15, %v1228_v17  ;;  %v1231_v13 = vmax.f32 %v1211_v7, 0.0  ;;  %v1209_v54 = vadd.f32 %v4728_v22, %v1174_v41  ;;  %3673 = vmatprep.mubr.msk.bf16.mxu0 %vm1722_vm1, %v1507_v50 }
 0x21b   :  { %v5009_v31 = vadd.f32 %v4941_v32, %v1294_v25  ;;  %v1455_v35 = vadd.f32 %v1438_v61, %v1414_v11  ;;  %v1478_v42 = vmul.f32 %v4769_v3, %v1228_v17  ;;  %v1249_v48 = vmul.f32 %v4737_v20, %v4936_v37 }
 0x21c   :  { %v1292_v24 = vadd.f32 %v4875_v34, %v1253_v9  ;;  %v1256_v5 = vmul.f32 %v4737_v20, %v1231_v13  ;;  %v5017_v12 = vmul.f32 %v4765_v33, %v1231_v13  ;;  %v5020_v22 = vmul.f32 %v4776_v23, %v1231_v13 }
 0x21d   :  { %v1481_v46 = vmul.f32 %v4769_v3, %v1231_v13  ;;  %v1229_v32 = vmax.f32 %v1209_v54, 0.0  ;;  %v1493_v60 = vadd.f32 %v1478_v42, %v1454_v27  ;;  %v1250_v16 = vmul.f32 %v4737_v20, %v4962_v49 }
 0x21e   :  { %v1295_v36 = vadd.f32 %v1275_v21, %v1256_v5  ;;  %v1268_v28 = vmul.f32 %v4741_v2, %v4810_v19  ;;  %v1269_v34 = vmul.f32 %v4741_v2, %v4832_v39  ;;  %v1309_v26 = vmul.f32 %v4752_v44, %v4870_v4 }
 0x21f   :  { %v1254_v38 = vmul.f32 %v4737_v20, %v1229_v32  ;;  %v1359_v18 = vmul.f32 %v4760_v15, %v1229_v32  ;;  %v1479_v51 = vmul.f32 %v4769_v3, %v1229_v32  ;;  %v1310_v45 = vmul.f32 %v4752_v44, %v4899_v57 }
 0x220   :  { %v1336_v21 = vadd.f32 %v4966_v63, %v1295_v36  ;;  %v1288_v6 = vadd.f32 %v1268_v28, %v1249_v48  ;;  %v1289_v59 = vadd.f32 %v1269_v34, %v1250_v16  ;;  %v1352_v19 = vmul.f32 %v4760_v15, %v4861_v14 }
 0x221   :  { %v1293_v39 = vadd.f32 %v4905_v30, %v1254_v38  ;;  %v1494_v43 = vadd.f32 %v1479_v51, %v1455_v35  ;;  %v1353_v20 = vmul.f32 %v4760_v15, %v4884_v47  ;;  %v1396_v56 = vmul.f32 %v4765_v33, %v4926_v55 }
 0x222   :  { %v1329_v3 = vadd.f32 %v1309_v26, %v1288_v6  ;;  %v1330_v7 = vadd.f32 %v1310_v45, %v1289_v59  ;;  %v1397_v41 = vmul.f32 %v4765_v33, %v4949_v8  ;;  %v1439_v63 = vmul.f32 %v4776_v23, %v1228_v17 }
 0x223   :  { %v1508_v50 = vpack.c.bf16 %v1494_v43, %v1493_v60  ;;  %v1440_v25 = vmul.f32 %v4776_v23, %v1229_v32  ;;  %v1270_v30 = vmul.f32 %v4741_v2, %v4870_v4  ;;  %v1271_v11 = vmul.f32 %v4741_v2, %v4899_v57 }
 0x224   :  { %v1372_v61 = vadd.f32 %v1352_v19, %v1329_v3  ;;  %v1373_v27 = vadd.f32 %v1353_v20, %v1330_v7  ;;  %v1311_v9 = vmul.f32 %v4752_v44, %v4861_v14  ;;  %v1312_v13 = vmul.f32 %v4752_v44, %v4884_v47  ;;  %v3874_v3 = vld [vmem:[%s5510_s11 + $0x78] sm:$0xff]   ;;  %v3877_v7 = vld [vmem:[%s5510_s11 + $0x68] sm:$0xff]  }
 0x225   :  { %3674 = vmatmul.mubr.msk.bf16.gmra.mxu0 %vm1722_vm1, %v1508_v50  ;;  %v1290_v54 = vadd.f32 %v1270_v30, %v4934_v40  ;;  %v1291_v35 = vadd.f32 %v1271_v11, %v4960_v29  ;;  %v1354_v4 = vmul.f32 %v4760_v15, %v4936_v37  ;;  %v1355_v2 = vmul.f32 %v4760_v15, %v4962_v49 }
 0x226   :  { %v1415_v57 = vadd.f32 %v1396_v56, %v1372_v61  ;;  %v1416_v42 = vadd.f32 %v1397_v41, %v1373_v27  ;;  %v1398_v48 = vmul.f32 %v4765_v33, %v1228_v17  ;;  %v1399_v14 = vmul.f32 %v4765_v33, %v1229_v32  ;;  %v3873_v56 = vld [vmem:[%s5510_s11 + $0x20] sm:$0xff]   ;;  %3722 = vmatpush3.bf16.msra.mxu0 %v3874_v3 }
 0x227   :  { %v1331_v5 = vadd.f32 %v1311_v9, %v1290_v54  ;;  %v1332_v47 = vadd.f32 %v1312_v13, %v1291_v35  ;;  %v1313_v60 = vmul.f32 %v4752_v44, %v4936_v37  ;;  %v1314_v40 = vmul.f32 %v4752_v44, %v4962_v49  ;;  %3692 = vmatpush3.bf16.msra.mxu1 %v3873_v56  ;;  %v3879_v41 = vld [vmem:[%s5510_s11 + $0x60] sm:$0xff]  }
 0x228   :  { %v1456_v29 = vadd.f32 %v1439_v63, %v1415_v57  ;;  %v1457_v16 = vadd.f32 %v1440_v25, %v1416_v42  ;;  %v1356_v36 = vmul.f32 %v4760_v15, %v4926_v55  ;;  %v1357_v28 = vmul.f32 %v4760_v15, %v4949_v8  ;;  %3723 = vmatprep.subr.bf16.mxu0 %v3918_v52  ;;  %v3639_v63 = vpop.f32.mrf.mxu1  ;;  %v5120_v27 = vld [vmem:[%s5513_s10] ss:$0 sm:$0xff] }
 0x229   :  { %v1374_v34 = vadd.f32 %v1354_v4, %v1331_v5  ;;  %v1375_v17 = vadd.f32 %v1355_v2, %v1332_v47  ;;  %v1333_v26 = vadd.f32 %v1313_v60, %v1292_v24  ;;  %v1334_v33 = vadd.f32 %v1314_v40, %v1293_v39  ;;  %3697 = vmatprep.subr.bf16.mxu1 %v3918_v52  ;;  %v3876_v5 = vld [vmem:[%s5510_s11 + $0x18] sm:$0xff]  }
 0x22a   :  { %v1495_v32 = vadd.f32 %v4996_v10, %v1456_v29  ;;  %v1496_v38 = vadd.f32 %v1481_v46, %v1457_v16  ;;  %v1378_v37 = vadd.f32 %v5004_v58, %v5009_v31  ;;  %v1379_v51 = vadd.f32 %v1359_v18, %v1336_v21  ;;  %v1619_v50 = vpop.f32.mrf.mxu1  ;;  %v3878_v16 = vld [vmem:[%s5510_s11 + $0x10] sm:$0xff]  }
 0x22b   :  { %v1417_v44 = vadd.f32 %v1398_v48, %v1374_v34  ;;  %v1418_v49 = vadd.f32 %v1399_v14, %v1375_v17  ;;  %v1376_v45 = vadd.f32 %v1356_v36, %v1333_v26  ;;  %v1377_v6 = vadd.f32 %v1357_v28, %v1334_v33 }
 0x22c   :  { %v1509_v59 = vpack.c.bf16 %v1496_v38, %v1495_v32  ;;  %v1443_v55 = vmul.f32 0.0, %v4776_v23  ;;  %v1422_v15 = vadd.f32 %v4782_v62, %v1379_v51  ;;  %v1421_v58 = vadd.f32 %v4782_v62, %v1378_v37  ;;  %v3640_v25 = vpop.f32.mrf.mxu1  ;;  %v3880_v38 = vld [vmem:[%s5510_s11 + $0x8] sm:$0xff]  }
 0x22d   :  { %v1458_v8 = vadd.f32 %v4993_v53, %v1417_v44  ;;  %v1459_v24 = vadd.f32 %v5020_v22, %v1418_v49  ;;  %v1419_v10 = vadd.f32 %v4990_v0, %v1376_v45  ;;  %v1420_v46 = vadd.f32 %v5017_v12, %v1377_v6 }
 0x22e   :  { %3677 = vmatprep.mubr.msk.bf16.mxu0 %vm1722_vm1, %v1509_v59  ;;  %v1463_v22 = vadd.f32 %v1443_v55, %v1422_v15  ;;  %v1462_v12 = vadd.f32 %v1443_v55, %v1421_v58  ;;  %v1622_v30 = vpop.f32.mrf.mxu1 }
 0x22f   :  { %v1497_v31 = vadd.f32 %v4779_v1, %v1458_v8  ;;  %v1498_v18 = vadd.f32 %v4779_v1, %v1459_v24  ;;  %v1460_v21 = vadd.f32 %v1443_v55, %v1419_v10  ;;  %v1461_v23 = vadd.f32 %v1443_v55, %v1420_v46  ;;  %v3882_v55 = vld [vmem:[%s5510_s11] sm:$0xff]   ;;  %v3881_v24 = vld [vmem:[%s5510_s11 + $0xb8] sm:$0xff]  }
 0x230   :  { %v1502_v62 = vadd.f32 %v4779_v1, %v1463_v22  ;;  %v1501_v43 = vadd.f32 %v4779_v1, %v1462_v12  ;;  %v3643_v13 = vpop.f32.mrf.mxu1  ;;  %v3886_v22 = vld [vmem:[%s5510_s11 + $0x50] sm:$0xff]  }
 0x231   :  { %v1510_v19 = vpack.c.bf16 %v1498_v18, %v1497_v31  ;;  %v1499_v39 = vadd.f32 %v4779_v1, %v1460_v21  ;;  %v1500_v53 = vadd.f32 %v4779_v1, %v1461_v23  ;;  %v3875_v1 = vld [vmem:[%s5510_s11 + $0x70] sm:$0xff]   ;;  %v3884_v31 = vld [vmem:[%s5510_s11 + $0x58] sm:$0xff]  }
 0x232   :  { %v1512_v20 = vpack.c.bf16 %v1502_v62, %v1501_v43  ;;  %3724 = vmatpush3.bf16.msra.mxu0 %v3875_v1  ;;  %v5123_v2 = vpop.f32.mrf.mxu1  ;;  %v3883_v23 = vld [vmem:[%s5510_s11 + $0xb0] sm:$0xff]   ;;  %v3885_v43 = vld [vmem:[%s5510_s11 + $0xa8] sm:$0xff]  }
 0x233   :  { %3678 = vmatmul.mubr.msk.bf16.gmra.mxu0 %vm1722_vm1, %v1510_v19  ;;  %v1511_v0 = vpack.c.bf16 %v1500_v53, %v1499_v39  ;;  %3725 = vmatprep.subr.bf16.mxu0 %v3918_v52  ;;  %v3888_v1 = vld [vmem:[%s5510_s11 + $0x48] sm:$0xff]  }
 0x234   :  { %v3644_v47 = vpop.f32.mrf.mxu1 }
 0x235   :  { %3681 = vmatprep.mubr.msk.bf16.mxu0 %vm1722_vm1, %v1511_v0 }
 0x236   :  { %3726 = vmatpush3.bf16.msra.mxu0 %v3877_v7  ;;  %v1638_v36 = vpop.f32.mrf.mxu1 }
 0x237   :  { %3727 = vmatprep.subr.bf16.mxu0 %v3918_v52 }
 0x238   :  { %v3647_v37 = vpop.f32.mrf.mxu1 }
 0x23a   :  { %3728 = vmatpush3.bf16.msra.mxu0 %v3879_v41  ;;  %v5147_v15 = vpop.f32.mrf.mxu1 }
 0x23b   :  { %3682 = vmatmul.mubr.msk.bf16.gmra.mxu0 %vm1722_vm1, %v1512_v20  ;;  %3745 = vmatprep.subr.bf16.mxu0 %v3918_v52 }
 0x23c   :  { %3729 = vmatprep.mubr.msk.bf16.mxu0 %vm3919_vm2, %v3918_v52  ;;  %v3648_v18 = vpop.f32.mrf.mxu1 }
 0x23e   :  { %v1654_v0 = vpop.f32.mrf.mxu1 }
 0x240   :  { %v3651_v7 = vpop.f32.mrf.mxu1 }
 0x2cb   :  { %v3667_v11 = vpop.f32.mrf.mxu0 }
 0x2cc   :  { %v1796_v61 = vadd.f32 %v3667_v11, %v3639_v63  ;;  %v3887_v63 = vld [vmem:[%s5510_s11 + $0xa0] sm:$0xff]  }
 0x2cd   :  { %v1787_v9 = vpop.f32.mrf.mxu0 }
 0x2ce   :  { %v1875_v35 = vadd.f32 %v5120_v27, %v1796_v61  ;;  %v1788_v17 = vadd.f32 %v1787_v9, %v1619_v50  ;;  %v3890_v61 = vld [vmem:[%s5510_s11 + $0x40] sm:$0xff]   ;;  %v5193_v9 = vpop.f32.mrf.mxu1 }
 0x2cf   :  { %v3668_v54 = vpop.f32.mrf.mxu0 }
 0x2d0   :  { %v1799_v4 = vadd.f32 %v3668_v54, %v3640_v25  ;;  %v1895_v42 = vmax.f32 %v1875_v35, 0.0  ;;  %v1873_v49 = vadd.f32 %v5120_v27, %v1788_v17  ;;  %v3889_v54 = vld [vmem:[%s5510_s11 + $0xf8] sm:$0xff]  }
 0x2d1   :  { %v1790_v14 = vpop.f32.mrf.mxu0 }
 0x2d2   :  { %v1876_v57 = vadd.f32 %v5120_v27, %v1799_v4  ;;  %v1791_v28 = vadd.f32 %v1790_v14, %v1622_v30  ;;  %v1893_v46 = vmax.f32 %v1873_v49, 0.0 }
 0x2d4   :  { %v1896_v48 = vmax.f32 %v1876_v57, 0.0  ;;  %v1874_v51 = vadd.f32 %v5120_v27, %v1791_v28 }
 0x2d6   :  { %v1914_v60 = vpack.c.bf16 %v1896_v48, %v1895_v42  ;;  %v1894_v8 = vmax.f32 %v1874_v51, 0.0  ;;  %v3892_v42 = vld [vmem:[%s5510_s11 + $0x98] sm:$0xff]   ;;  %v3652_v48 = vpop.f32.mrf.mxu1 }
 0x2d8   :  { %v3671_v40 = vpop.f32.mrf.mxu0  ;;  %3694 = vmatmul.mubr.msk.bf16.vlgmr.msra.gmra.mxu1 %vm1722_vm1, %v1914_v60  ;;  %v1913_v21 = vpack.c.bf16 %v1894_v8, %v1893_v46 }
 0x2d9   :  { %v1812_v29 = vadd.f32 %v3671_v40, %v3643_v13  ;;  %3698 = vmatpush3.bf16.msra.mxu1 %v3876_v5  ;;  %3705 = vmatprep.mubr.msk.bf16.mxu1 %vm3919_vm2, %v3918_v52  ;;  %v3891_v5 = vld [vmem:[%s5510_s11 + $0xf0] sm:$0xff]  }
 0x2da   :  { %v1803_v34 = vpop.f32.mrf.mxu0  ;;  %3699 = vmatprep.subr.bf16.mxu1 %v3918_v52 }
 0x2db   :  { %v1879_v33 = vadd.f32 %v5120_v27, %v1812_v29  ;;  %v1804_v20 = vadd.f32 %v1803_v34, %v5123_v2  ;;  %v3893_v34 = vld [vmem:[%s5510_s11 + $0xe8] sm:$0xff]  }
 0x2dc   :  { %v3672_v26 = vpop.f32.mrf.mxu0 }
 0x2dd   :  { %v1815_v32 = vadd.f32 %v3672_v26, %v3644_v47  ;;  %3700 = vmatpush3.bf16.msra.mxu1 %v3878_v16  ;;  %v1899_v45 = vmax.f32 %v1879_v33, 0.0  ;;  %v1877_v30 = vadd.f32 %v5120_v27, %v1804_v20  ;;  %v3894_v16 = vld [vmem:[%s5510_s11 + $0x90] sm:$0xff]   ;;  %v3904_v20 = vld [vmem:[%s5510_s11 + $0xc8] sm:$0xff]  }
 0x2de   :  { %3701 = vmatprep.subr.bf16.mxu1 %v3918_v52  ;;  %v1806_v59 = vpop.f32.mrf.mxu0 }
 0x2df   :  { %v1880_v44 = vadd.f32 %v5120_v27, %v1815_v32  ;;  %v1807_v12 = vadd.f32 %v1806_v59, %v1638_v36  ;;  %v1897_v2 = vmax.f32 %v1877_v30, 0.0  ;;  %v1670_v36 = vpop.f32.mrf.mxu1 }
 0x2e1   :  { %v1900_v6 = vmax.f32 %v1880_v44, 0.0  ;;  %3702 = vmatpush3.bf16.msra.mxu1 %v3880_v38  ;;  %v1878_v41 = vadd.f32 %v5120_v27, %v1807_v12  ;;  %v3896_v38 = vld [vmem:[%s5510_s11 + $0x88] sm:$0xff]   ;;  %v3895_v44 = vld [vmem:[%s5510_s11 + $0xe0] sm:$0xff]  }
 0x2e2   :  { %3703 = vmatprep.subr.bf16.mxu1 %v3918_v52 }
 0x2e3   :  { %v1916_v10 = vpack.c.bf16 %v1900_v6, %v1899_v45  ;;  %v1898_v13 = vmax.f32 %v1878_v41, 0.0 }
 0x2e5   :  { %v3675_v58 = vpop.f32.mrf.mxu0  ;;  %3730 = vmatmul.mubr.msk.bf16.vlgmr.msra.gmra.mxu0 %vm1722_vm1, %v1916_v10  ;;  %3704 = vmatpush3.bf16.msra.mxu1 %v3882_v55  ;;  %v1915_v14 = vpack.c.bf16 %v1898_v13, %v1897_v2  ;;  %v3898_v55 = vld [vmem:[%s5510_s11 + $0x80] sm:$0xff]   ;;  %v3908_v2 = vld [vmem:[%s5510_s11 + $0x108] sm:$0xff]  }
 0x2e6   :  { %3746 = vmatpush3.bf16.msra.mxu0 %v3881_v24  ;;  %3709 = vmatprep.subr.bf16.mxu1 %v3918_v52  ;;  %v1828_v39 = vadd.f32 %v3675_v58, %v3647_v37  ;;  %v3655_v37 = vpop.f32.mrf.mxu1  ;;  %v3897_v24 = vld [vmem:[%s5510_s11 + $0x138] sm:$0xff]  }
 0x2e7   :  { %v5161_v19 = vpop.f32.mrf.mxu0  ;;  %3747 = vmatprep.subr.bf16.mxu0 %v3918_v52  ;;  %3753 = vmatprep.mubr.msk.bf16.mxu0 %vm3919_vm2, %v3918_v52 }
 0x2e8   :  { %3706 = vmatmul.mubr.msk.bf16.vlgmr.msra.gmra.mxu1 %vm1722_vm1, %v1913_v21  ;;  %v1883_v3 = vadd.f32 %v5120_v27, %v1828_v39  ;;  %v1820_v26 = vadd.f32 %v5161_v19, %v5147_v15  ;;  %v5243_v15 = vpop.f32.mrf.mxu1 }
 0x2e9   :  { %v3676_v53 = vpop.f32.mrf.mxu0  ;;  %3710 = vmatpush3.bf16.msra.mxu1 %v3884_v31  ;;  %3717 = vmatprep.mubr.msk.bf16.mxu1 %vm3919_vm2, %v3918_v52  ;;  %v3900_v31 = vld [vmem:[%s5510_s11 + $0xd8] sm:$0xff]  }
 0x2ea   :  { %v1831_v62 = vadd.f32 %v3676_v53, %v3648_v18  ;;  %3748 = vmatpush3.bf16.msra.mxu0 %v3883_v23  ;;  %3711 = vmatprep.subr.bf16.mxu1 %v3918_v52  ;;  %v1903_v11 = vmax.f32 %v1883_v3, 0.0  ;;  %v1881_v45 = vadd.f32 %v5120_v27, %v1820_v26  ;;  %v3656_v18 = vpop.f32.mrf.mxu1  ;;  %v3899_v23 = vld [vmem:[%s5510_s11 + $0x130] sm:$0xff]   ;;  %v3903_v3 = vld [vmem:[%s5510_s11 + $0x120] sm:$0xff]  }
 0x2eb   :  { %3749 = vmatprep.subr.bf16.mxu0 %v3918_v52  ;;  %v1822_v25 = vpop.f32.mrf.mxu0  ;;  %v3902_v53 = vld [vmem:[%s5510_s11 + $0xd0] sm:$0xff]  }
 0x2ec   :  { %v1884_v56 = vadd.f32 %v5120_v27, %v1831_v62  ;;  %v1823_v28 = vadd.f32 %v1822_v25, %v1654_v0  ;;  %v1901_v46 = vmax.f32 %v1881_v45, 0.0  ;;  %v3901_v0 = vld [vmem:[%s5510_s11 + $0x128] sm:$0xff]   ;;  %v1686_v13 = vpop.f32.mrf.mxu1 }
 0x2ed   :  { %3712 = vmatpush3.bf16.msra.mxu1 %v3886_v22 }
 0x2ee   :  { %3750 = vmatpush3.bf16.msra.mxu0 %v3885_v43  ;;  %3713 = vmatprep.subr.bf16.mxu1 %v3918_v52  ;;  %v1904_v50 = vmax.f32 %v1884_v56, 0.0  ;;  %v1882_v51 = vadd.f32 %v5120_v27, %v1823_v28 }
 0x2ef   :  { %3751 = vmatprep.subr.bf16.mxu0 %v3918_v52 }
 0x2f0   :  { %v1918_v35 = vpack.c.bf16 %v1904_v50, %v1903_v11  ;;  %v1902_v8 = vmax.f32 %v1882_v51, 0.0  ;;  %v3906_v11 = vld [vmem:[%s5510_s11 + $0x118] sm:$0xff]  }
 0x2f1   :  { %3714 = vmatpush3.bf16.msra.mxu1 %v3888_v1 }
 0x2f2   :  { %3752 = vmatpush3.bf16.msra.mxu0 %v3887_v63  ;;  %3715 = vmatprep.subr.bf16.mxu1 %v3918_v52  ;;  %v1917_v21 = vpack.c.bf16 %v1902_v8, %v1901_v46  ;;  %v3905_v63 = vld [vmem:[%s5510_s11 + $0xc0] sm:$0xff]  }
 0x2f3   :  { %v3679_v4 = vpop.f32.mrf.mxu0  ;;  %3769 = vmatprep.subr.bf16.mxu0 %v3918_v52 }
 0x2f4   :  { %v1844_v40 = vadd.f32 %v3679_v4, %v3651_v7 }
 0x2f5   :  { %v5200_v57 = vpop.f32.mrf.mxu0  ;;  %3754 = vmatmul.mubr.msk.bf16.vlgmr.msra.gmra.mxu0 %vm1722_vm1, %v1918_v35  ;;  %3716 = vmatpush3.bf16.msra.mxu1 %v3890_v61 }
 0x2f6   :  { %3770 = vmatpush3.bf16.msra.mxu0 %v3889_v54  ;;  %3733 = vmatprep.subr.bf16.mxu1 %v3918_v52  ;;  %v1887_v32 = vadd.f32 %v5120_v27, %v1844_v40  ;;  %v1836_v62 = vadd.f32 %v5200_v57, %v5193_v9  ;;  %v3907_v54 = vld [vmem:[%s5510_s11 + $0x110] sm:$0xff]   ;;  %v3912_v40 = vld [vmem:[%s5514_s13] sm:$0xff]  }
 0x2f7   :  { %v3680_v47 = vpop.f32.mrf.mxu0  ;;  %3771 = vmatprep.subr.bf16.mxu0 %v3918_v52  ;;  %3777 = vmatprep.mubr.msk.bf16.mxu0 %vm3919_vm2, %v3918_v52 }
 0x2f8   :  { %v1847_v60 = vadd.f32 %v3680_v47, %v3652_v48  ;;  %3718 = vmatmul.mubr.msk.bf16.vlgmr.msra.gmra.mxu1 %vm1722_vm1, %v1915_v14  ;;  %v1907_v59 = vmax.f32 %v1887_v32, 0.0  ;;  %v1885_v7 = vadd.f32 %v5120_v27, %v1836_v62  ;;  %v3909_v48 = vld [vmem:[%s5510_s11 + $0x100] sm:$0xff]  }
 0x2f9   :  { %v1838_v29 = vpop.f32.mrf.mxu0  ;;  %3734 = vmatpush3.bf16.msra.mxu1 %v3892_v42  ;;  %3741 = vmatprep.mubr.msk.bf16.mxu1 %vm3919_vm2, %v3918_v52 }
 0x2fa   :  { %3772 = vmatpush3.bf16.msra.mxu0 %v3891_v5  ;;  %3735 = vmatprep.subr.bf16.mxu1 %v3918_v52  ;;  %v1888_v17 = vadd.f32 %v5120_v27, %v1847_v60  ;;  %v1839_v22 = vadd.f32 %v1838_v29, %v1670_v36  ;;  %v1905_v30 = vmax.f32 %v1885_v7, 0.0  ;;  %v3911_v60 = vld [vmem:[%s5514_s13 + $0x18] sm:$0xff]   ;;  %v3913_v29 = vld [vmem:[%s5514_s13 + $0x10] sm:$0xff]  }
 0x2fb   :  { %3773 = vmatprep.subr.bf16.mxu0 %v3918_v52  ;;  %v3683_v33 = vpop.f32.mrf.mxu0 }
 0x2fc   :  { %v1908_v49 = vmax.f32 %v1888_v17, 0.0  ;;  %v1860_v39 = vadd.f32 %v3683_v33, %v3655_v37  ;;  %v1886_v56 = vadd.f32 %v5120_v27, %v1839_v22 }
 0x2fd   :  { %3736 = vmatpush3.bf16.msra.mxu1 %v3894_v16  ;;  %v5238_v6 = vpop.f32.mrf.mxu0 }
 0x2fe   :  { %3774 = vmatpush3.bf16.msra.mxu0 %v3893_v34  ;;  %3737 = vmatprep.subr.bf16.mxu1 %v3918_v52  ;;  %v1920_v10 = vpack.c.bf16 %v1908_v49, %v1907_v59  ;;  %v1891_v43 = vadd.f32 %v5120_v27, %v1860_v39  ;;  %v1906_v50 = vmax.f32 %v1886_v56, 0.0  ;;  %v1852_v4 = vadd.f32 %v5238_v6, %v5243_v15 }
 0x2ff   :  { %3775 = vmatprep.subr.bf16.mxu0 %v3918_v52  ;;  %v3684_v58 = vpop.f32.mrf.mxu0 }
 0x300   :  { %v1863_v19 = vadd.f32 %v3684_v58, %v3656_v18  ;;  %v1911_v41 = vmax.f32 %v1891_v43, 0.0  ;;  %v1919_v61 = vpack.c.bf16 %v1906_v50, %v1905_v30  ;;  %v1889_v42 = vadd.f32 %v5120_v27, %v1852_v4 }
 0x301   :  { %3738 = vmatpush3.bf16.msra.mxu1 %v3896_v38  ;;  %v1854_v9 = vpop.f32.mrf.mxu0 }
 0x302   :  { %3776 = vmatpush3.bf16.msra.mxu0 %v3895_v44  ;;  %3739 = vmatprep.subr.bf16.mxu1 %v3918_v52  ;;  %v1892_v12 = vadd.f32 %v5120_v27, %v1863_v19  ;;  %v1855_v35 = vadd.f32 %v1854_v9, %v1686_v13  ;;  %v1909_v5 = vmax.f32 %v1889_v42, 0.0  ;;  %v3257_v42 = vld [vmem:[%s5515_s12] ss:$0 sm:$0xff] }
 0x303   :  { %3793 = vmatprep.subr.bf16.mxu0 %v3918_v52 }
 0x304   :  { %v1912_v1 = vmax.f32 %v1892_v12, 0.0  ;;  %v1890_v57 = vadd.f32 %v5120_v27, %v1855_v35  ;;  %v3910_v27 = vld [vmem:[%s5514_s13 + $0x8] sm:$0xff]  }
 0x305   :  { %3778 = vmatmul.mubr.msk.bf16.vlgmr.msra.gmra.mxu0 %vm1722_vm1, %v1920_v10  ;;  %3740 = vmatpush3.bf16.msra.mxu1 %v3898_v55 }
 0x306   :  { %3794 = vmatpush3.bf16.msra.mxu0 %v3897_v24  ;;  %3757 = vmatprep.subr.bf16.mxu1 %v3918_v52  ;;  %v1922_v25 = vpack.c.bf16 %v1912_v1, %v1911_v41  ;;  %v1910_v14 = vmax.f32 %v1890_v57, 0.0 }
 0x307   :  { %3795 = vmatprep.subr.bf16.mxu0 %v3918_v52  ;;  %3801 = vmatprep.mubr.msk.bf16.mxu0 %vm3919_vm2, %v3918_v52 }
 0x308   :  { %3742 = vmatmul.mubr.msk.bf16.vlgmr.msra.gmra.mxu1 %vm1722_vm1, %v1917_v21  ;;  %v1921_v47 = vpack.c.bf16 %v1910_v14, %v1909_v5 }
 0x309   :  { %3758 = vmatpush3.bf16.msra.mxu1 %v3900_v31  ;;  %3765 = vmatprep.mubr.msk.bf16.mxu1 %vm3919_vm2, %v3918_v52 }
 0x30a   :  { %3796 = vmatpush3.bf16.msra.mxu0 %v3899_v23  ;;  %3759 = vmatprep.subr.bf16.mxu1 %v3918_v52 }
 0x30b   :  { %3797 = vmatprep.subr.bf16.mxu0 %v3918_v52 }
 0x30d   :  { %3760 = vmatpush3.bf16.msra.mxu1 %v3902_v53 }
 0x30e   :  { %3798 = vmatpush3.bf16.msra.mxu0 %v3901_v0  ;;  %3761 = vmatprep.subr.bf16.mxu1 %v3918_v52 }
 0x30f   :  { %3799 = vmatprep.subr.bf16.mxu0 %v3918_v52 }
 0x311   :  { %3762 = vmatpush3.bf16.msra.mxu1 %v3904_v20 }
 0x312   :  { %3800 = vmatpush3.bf16.msra.mxu0 %v3903_v3  ;;  %3763 = vmatprep.subr.bf16.mxu1 %v3918_v52 }
 0x313   :  { %3813 = vmatprep.subr.bf16.mxu0 %v3918_v52 }
 0x315   :  { %3802 = vmatmul.mubr.msk.bf16.vlgmr.msra.gmra.mxu0 %vm1722_vm1, %v1922_v25  ;;  %3764 = vmatpush3.bf16.msra.mxu1 %v3905_v63 }
 0x316   :  { %3781 = vmatprep.subr.bf16.mxu1 %v3918_v52  ;;  %3817 = vmatprep.mubr.msk.bf16.mxu0 %vm3919_vm2, %v3918_v52 }
 0x317   :  { %3814 = vmatpush3.bf16.msra.mxu0 %v3911_v60 }
 0x318   :  { %3766 = vmatmul.mubr.msk.bf16.vlgmr.msra.gmra.mxu1 %vm1722_vm1, %v1919_v61  ;;  %3815 = vmatprep.subr.bf16.mxu0 %v3918_v52 }
 0x319   :  { %3782 = vmatpush3.bf16.msra.mxu1 %v3906_v11  ;;  %3789 = vmatprep.mubr.msk.bf16.mxu1 %vm3919_vm2, %v3918_v52 }
 0x31a   :  { %3783 = vmatprep.subr.bf16.mxu1 %v3918_v52 }
 0x31b   :  { %3816 = vmatpush3.bf16.msra.mxu0 %v3913_v29 }
 0x31c   :  { %3829 = vmatprep.subr.bf16.mxu0 %v3918_v52 }
 0x31d   :  { %3784 = vmatpush3.bf16.msra.mxu1 %v3907_v54 }
 0x31e   :  { %3785 = vmatprep.subr.bf16.mxu1 %v3918_v52 }
 0x321   :  { %3786 = vmatpush3.bf16.msra.mxu1 %v3908_v2 }
 0x322   :  { %3787 = vmatprep.subr.bf16.mxu1 %v3918_v52 }
 0x325   :  { %3788 = vmatpush3.bf16.msra.mxu1 %v3909_v48 }
 0x326   :  { %3805 = vmatprep.subr.bf16.mxu1 %v3918_v52 }
 0x328   :  { %3790 = vmatmul.mubr.msk.bf16.vlgmr.msra.gmra.mxu1 %vm1722_vm1, %v1921_v47 }
 0x329   :  { %3809 = vmatprep.mubr.msk.bf16.mxu1 %vm3919_vm2, %v3918_v52  ;;  %3806 = vmatpush3.bf16.msra.mxu1 %v3910_v27 }
 0x32a   :  { %3807 = vmatprep.subr.bf16.mxu1 %v3918_v52 }
 0x32d   :  { %3808 = vmatpush3.bf16.msra.mxu1 %v3912_v40 }
 0x32e   :  { %3821 = vmatprep.subr.bf16.mxu1 %v3918_v52 }
 0x398   :  { %v2001_v16 = vpop.f32.mrf.mxu1 }
 0x39a   :  { %v3695_v36 = vpop.f32.mrf.mxu1 }
 0x39b   :  { %v3915_v36 = vld [vmem:[%s5514_s13 + $0x38] sm:$0xff]  }
 0x39c   :  { %v2004_v28 = vpop.f32.mrf.mxu1 }
 0x39e   :  { %v3696_v34 = vpop.f32.mrf.mxu1 }
 0x39f   :  { %v3916_v34 = vld [vmem:[%s5514_s13 + $0x20] sm:$0xff]  }
 0x3a5   :  { %v2225_v17 = vpop.f32.mrf.mxu0 }
 0x3a7   :  { %v3731_v26 = vpop.f32.mrf.mxu0 }
 0x3a8   :  { %v2069_v33 = vpop.f32.mrf.mxu1  ;;  %v3258_v26 = vld [vmem:[%s5516_s14] ss:$0 sm:$0xff] }
 0x3a9   :  { %v2228_v32 = vpop.f32.mrf.mxu0  ;;  %v2070_v39 = vadd.f32 %v2069_v33, %v2001_v16  ;;  %v3914_v16 = vld [vmem:[%s5514_s13 + $0x28] sm:$0xff]   ;;  %v3274_v33 = vld [vmem:[%s5516_s14 + $0x1] ss:$0 sm:$0xff] }
 0x3aa   :  { %v3707_v38 = vpop.f32.mrf.mxu1 }
 0x3ab   :  { %v3732_v37 = vpop.f32.mrf.mxu0 }
 0x3ac   :  { %v2072_v51 = vpop.f32.mrf.mxu1 }
 0x3ad   :  { %v2073_v62 = vadd.f32 %v2072_v51, %v2004_v28 }
 0x3ae   :  { %v3708_v44 = vpop.f32.mrf.mxu1 }
 0x3b5   :  { %v2383_v49 = vpop.f32.mrf.mxu0 }
 0x3b7   :  { %v3755_v45 = vpop.f32.mrf.mxu0 }
 0x3b8   :  { %v2146_v6 = vpop.f32.mrf.mxu1 }
 0x3b9   :  { %v2386_v59 = vpop.f32.mrf.mxu0  ;;  %v2153_v22 = vadd.f32 %v2146_v6, %v2070_v39 }
 0x3ba   :  { %v3719_v55 = vpop.f32.mrf.mxu1 }
 0x3bb   :  { %v3756_v15 = vpop.f32.mrf.mxu0  ;;  %v2232_v3 = vadd.f32 %v2225_v17, %v2153_v22  ;;  %v3917_v17 = vld [vmem:[%s5514_s13 + $0x30] sm:$0xff]  }
 0x3bc   :  { %v2149_v8 = vpop.f32.mrf.mxu1 }
 0x3bd   :  { %v2154_v56 = vadd.f32 %v2149_v8, %v2073_v62  ;;  %v3291_v8 = vld [vmem:[%s5516_s14 + $0x2] ss:$0 sm:$0xff] }
 0x3be   :  { %v3720_v24 = vpop.f32.mrf.mxu1 }
 0x3bf   :  { %v2233_v50 = vadd.f32 %v2228_v32, %v2154_v56  ;;  %v3308_v24 = vld [vmem:[%s5516_s14 + $0x3] ss:$0 sm:$0xff] }
 0x3c5   :  { %v2541_v10 = vpop.f32.mrf.mxu0 }
 0x3c7   :  { %v3779_v46 = vpop.f32.mrf.mxu0 }
 0x3c8   :  { %v2304_v58 = vpop.f32.mrf.mxu1 }
 0x3c9   :  { %v2544_v31 = vpop.f32.mrf.mxu0  ;;  %v2311_v41 = vadd.f32 %v2304_v58, %v2232_v3 }
 0x3ca   :  { %v3743_v18 = vpop.f32.mrf.mxu1 }
 0x3cb   :  { %v3780_v21 = vpop.f32.mrf.mxu0  ;;  %v2390_v30 = vadd.f32 %v2383_v49, %v2311_v41 }
 0x3cc   :  { %v2307_v23 = vpop.f32.mrf.mxu1 }
 0x3cd   :  { %v2312_v25 = vadd.f32 %v2307_v23, %v2233_v50 }
 0x3ce   :  { %v3744_v19 = vpop.f32.mrf.mxu1 }
 0x3cf   :  { %v2391_v61 = vadd.f32 %v2386_v59, %v2312_v25 }
 0x3d5   :  { %v2699_v53 = vpop.f32.mrf.mxu0 }
 0x3d7   :  { %v3803_v0 = vpop.f32.mrf.mxu0 }
 0x3d8   :  { %v2462_v12 = vpop.f32.mrf.mxu1 }
 0x3d9   :  { %v2702_v43 = vpop.f32.mrf.mxu0  ;;  %v2469_v11 = vadd.f32 %v2462_v12, %v2390_v30 }
 0x3da   :  { %v3767_v20 = vpop.f32.mrf.mxu1 }
 0x3db   :  { %v3804_v1 = vpop.f32.mrf.mxu0  ;;  %v2548_v13 = vadd.f32 %v2541_v10, %v2469_v11 }
 0x3dc   :  { %v2465_v7 = vpop.f32.mrf.mxu1 }
 0x3dd   :  { %v2470_v9 = vadd.f32 %v2465_v7, %v2391_v61 }
 0x3de   :  { %v3768_v63 = vpop.f32.mrf.mxu1 }
 0x3df   :  { %v2549_v57 = vadd.f32 %v2544_v31, %v2470_v9 }
 0x3e8   :  { %v2620_v54 = vpop.f32.mrf.mxu1 }
 0x3e9   :  { %v2627_v35 = vadd.f32 %v2620_v54, %v2548_v13 }
 0x3ea   :  { %v3791_v4 = vpop.f32.mrf.mxu1 }
 0x3eb   :  { %v2706_v2 = vadd.f32 %v2699_v53, %v2627_v35 }
 0x3ec   :  { %v2623_v48 = vpop.f32.mrf.mxu1 }
 0x3ed   :  { %v2628_v14 = vadd.f32 %v2623_v48, %v2549_v57  ;;  %v2715_v47 = vadd.f32 %v3257_v42, %v2706_v2 }
 0x3ee   :  { %v3792_v5 = vpop.f32.mrf.mxu1 }
 0x3ef   :  { %v2707_v27 = vadd.f32 %v2702_v43, %v2628_v14  ;;  %v2717_v40 = vmax.f32 %v2715_v47, 0.0 }
 0x3f1   :  { %v2716_v60 = vadd.f32 %v3257_v42, %v2707_v27 }
 0x3f3   :  { %v2718_v29 = vmax.f32 %v2716_v60, 0.0 }
 0x3f5   :  { %v2719_v28 = vpack.c.bf16 %v2718_v29, %v2717_v40 }
 0x3f7   :  { %3810 = vmatmul.mubr.msk.bf16.vlgmr.msra.gmra.mxu1 %vm2743_vm3, %v2719_v28  ;;  %3818 = vmatmul.mubr.msk.bf16.vlgmr.msra.gmra.mxu0 %vm2743_vm3, %v2719_v28 }
 0x3f8   :  { %3822 = vmatpush3.bf16.msra.mxu1 %v3914_v16  ;;  %3830 = vmatpush3.bf16.msra.mxu0 %v3915_v36 }
 0x3f9   :  { %3823 = vmatprep.subr.bf16.mxu1 %v3918_v52  ;;  %3831 = vmatprep.subr.bf16.mxu0 %v3918_v52 }
 0x3fa   :  { %3825 = vmatprep.mubr.msk.bf16.mxu1 %vm3919_vm2, %v3918_v52  ;;  %3833 = vmatprep.mubr.msk.bf16.mxu0 %vm3919_vm2, %v3918_v52 }
 0x3fc   :  { %3824 = vmatpush3.bf16.msra.mxu1 %v3916_v34  ;;  %3832 = vmatpush3.bf16.msra.mxu0 %v3917_v17 }
 0x3ff   :  { %3826 = vmatmul.mubr.msk.bf16.vlgmr.msra.gmra.mxu1 %vm2743_vm3, %v2719_v28  ;;  %3834 = vmatmul.mubr.msk.bf16.vlgmr.msra.gmra.mxu0 %vm2743_vm3, %v2719_v28 }
 0x4b7   :  { %v2781_v32 = vpop.f32.mrf.mxu1  ;;  %v2866_v52 = vpop.f32.mrf.mxu0 }
 0x4b8   :  { %v2782_v38 = vadd.f32 %v3258_v26, %v2781_v32  ;;  %v2867_v37 = vadd.f32 %v3274_v33, %v2866_v52 }
 0x4b9   :  { %v3811_v51 = vpop.f32.mrf.mxu1  ;;  %v3819_v44 = vpop.f32.mrf.mxu0 }
 0x4ba   :  { %2789 = vst.msk [vmem:[%s5517_s15] sm:$0x3] %vm2788_vm4, %v2782_v38  ;;  %3278 = vst.msk [vmem:[%s5517_s15 + $0x10] sm:$0x3] %vm2788_vm4, %v2867_v37 }
 0x4bb   :  { %3262 = vst.msk [vmem:[%s5517_s15] sm:$0xc] %vm2791_vm5, %v2782_v38  ;;  %3279 = vst.msk [vmem:[%s5517_s15 + $0x10] sm:$0xc] %vm2791_vm5, %v2867_v37  ;;  %v2784_v49 = vpop.f32.mrf.mxu1  ;;  %v2869_v45 = vpop.f32.mrf.mxu0 }
 0x4bc   :  { %3263 = vst.msk [vmem:[%s5517_s15] sm:$0x30] %vm2794_vm6, %v2782_v38  ;;  %3280 = vst.msk [vmem:[%s5517_s15 + $0x10] sm:$0x30] %vm2794_vm6, %v2867_v37  ;;  %v2785_v6 = vadd.f32 %v3258_v26, %v2784_v49  ;;  %v2870_v59 = vadd.f32 %v3274_v33, %v2869_v45 }
 0x4bd   :  { %3264 = vst.msk [vmem:[%s5517_s15] sm:$0xc0] %vm2797_vm7, %v2782_v38  ;;  %3281 = vst.msk [vmem:[%s5517_s15 + $0x10] sm:$0xc0] %vm2797_vm7, %v2867_v37  ;;  %v3812_v55 = vpop.f32.mrf.mxu1  ;;  %v3820_v15 = vpop.f32.mrf.mxu0 }
 0x4be   :  { %3265 = vst.msk [vmem:[%s5517_s15 + $0x8] sm:$0x3] %vm2788_vm4, %v2785_v6  ;;  %3282 = vst.msk [vmem:[%s5517_s15 + $0x18] sm:$0x3] %vm2788_vm4, %v2870_v59 }
 0x4bf   :  { %3266 = vst.msk [vmem:[%s5517_s15 + $0x8] sm:$0xc] %vm2791_vm5, %v2785_v6  ;;  %3283 = vst.msk [vmem:[%s5517_s15 + $0x18] sm:$0xc] %vm2791_vm5, %v2870_v59  ;;  %v2948_v10 = vpop.f32.mrf.mxu1  ;;  %v3030_v46 = vpop.f32.mrf.mxu0 }
 0x4c0   :  { %3267 = vst.msk [vmem:[%s5517_s15 + $0x8] sm:$0x30] %vm2794_vm6, %v2785_v6  ;;  %3284 = vst.msk [vmem:[%s5517_s15 + $0x18] sm:$0x30] %vm2794_vm6, %v2870_v59  ;;  %v2949_v58 = vadd.f32 %v3291_v8, %v2948_v10  ;;  %v3031_v31 = vadd.f32 %v3308_v24, %v3030_v46 }
 0x4c1   :  { %3268 = vst.msk [vmem:[%s5517_s15 + $0x8] sm:$0xc0] %vm2797_vm7, %v2785_v6  ;;  %3285 = vst.msk [vmem:[%s5517_s15 + $0x18] sm:$0xc0] %vm2797_vm7, %v2870_v59  ;;  %v3827_v18 = vpop.f32.mrf.mxu1  ;;  %v3835_v21 = vpop.f32.mrf.mxu0 }
 0x4c2   :  { %3295 = vst.msk [vmem:[%s5517_s15 + $0x20] sm:$0x3] %vm2788_vm4, %v2949_v58  ;;  %3312 = vst.msk [vmem:[%s5517_s15 + $0x30] sm:$0x3] %vm2788_vm4, %v3031_v31 }
 0x4c3   :  { %3296 = vst.msk [vmem:[%s5517_s15 + $0x20] sm:$0xc] %vm2791_vm5, %v2949_v58  ;;  %3313 = vst.msk [vmem:[%s5517_s15 + $0x30] sm:$0xc] %vm2791_vm5, %v3031_v31  ;;  %v2951_v23 = vpop.f32.mrf.mxu1  ;;  %v3033_v19 = vpop.f32.mrf.mxu0 }
 0x4c4   :  { %3297 = vst.msk [vmem:[%s5517_s15 + $0x20] sm:$0x30] %vm2794_vm6, %v2949_v58  ;;  %3314 = vst.msk [vmem:[%s5517_s15 + $0x30] sm:$0x30] %vm2794_vm6, %v3031_v31  ;;  %v2952_v39 = vadd.f32 %v3291_v8, %v2951_v23  ;;  %v3034_v53 = vadd.f32 %v3308_v24, %v3033_v19 }
 0x4c5   :  { %3298 = vst.msk [vmem:[%s5517_s15 + $0x20] sm:$0xc0] %vm2797_vm7, %v2949_v58  ;;  %3315 = vst.msk [vmem:[%s5517_s15 + $0x30] sm:$0xc0] %vm2797_vm7, %v3031_v31  ;;  %v3828_v22 = vpop.f32.mrf.mxu1  ;;  %v3836_v0 = vpop.f32.mrf.mxu0 }
 0x4c6   :  { %3299 = vst.msk [vmem:[%s5517_s15 + $0x28] sm:$0x3] %vm2788_vm4, %v2952_v39  ;;  %3316 = vst.msk [vmem:[%s5517_s15 + $0x38] sm:$0x3] %vm2788_vm4, %v3034_v53 }
 0x4c7   :  { %3300 = vst.msk [vmem:[%s5517_s15 + $0x28] sm:$0xc] %vm2791_vm5, %v2952_v39  ;;  %3317 = vst.msk [vmem:[%s5517_s15 + $0x38] sm:$0xc] %vm2791_vm5, %v3034_v53 }
 0x4c8   :  { %3301 = vst.msk [vmem:[%s5517_s15 + $0x28] sm:$0x30] %vm2794_vm6, %v2952_v39  ;;  %3318 = vst.msk [vmem:[%s5517_s15 + $0x38] sm:$0x30] %vm2794_vm6, %v3034_v53 }
 0x4c9   :  { %3302 = vst.msk [vmem:[%s5517_s15 + $0x28] sm:$0xc0] %vm2797_vm7, %v2952_v39  ;;  %3319 = vst.msk [vmem:[%s5517_s15 + $0x38] sm:$0xc0] %vm2797_vm7, %v3034_v53 }

// kernel: eou_vad_forward.3
= control target key start
LH: loop header
LB: loop body
LE: loop exit
PB: predicated region body
PF: predicated region fallthrough
CT: control target
= control target key end

     0   :  { %v9146_v0 = vmov 0.0   ;;  %vm9147_vm0 = vmmov 0   ;;  %v9148_v8 = vmov 0   ;;  %vm290_vm1 = vcmask 254976   ;;  %s10627_s1 = inlined_call_operand.vmem [shape: bf16[4,32,32], index: 1, kind: input, shape index: {}]   ;;  %s10628_s0 = inlined_call_operand.vmem [shape: f32[4,8,2,32], index: 0, kind: input, shape index: {}]   ;;  %s10629_s2 = inlined_call_operand.vmem [shape: bf16[4,32,32], index: 2, kind: input, shape index: {}]   ;;  %s10630_s3 = inlined_call_operand.vmem [shape: bf16[4,32,32], index: 3, kind: input, shape index: {}]   ;;  %s10631_s4 = inlined_call_operand.vmem [shape: f32[4,1,32], index: 4, kind: input, shape index: {}]   ;;  %s10632_s5 = inlined_call_operand.vmem [shape: bf16[32,2], index: 5, kind: input, shape index: {}]   ;;  %s10633_s6 = inlined_call_operand.vmem [shape: f32[1,2], index: 6, kind: input, shape index: {}]   ;;  %s10634_s7 = inlined_call_operand.vmem [shape: f32[8,2,2], index: 7, kind: output, shape index: {}]  }
   0x1   :  { %7847 = vmatprep.subr.bf16.mxu0 %v9146_v0  ;;  %7855 = vmatprep.subr.bf16.mxu1 %v9146_v0  ;;  %v8682_v1 = vld [vmem:[%s10627_s1 + $0x8] sm:$0xff]   ;;  %v8683_v2 = vld [vmem:[%s10627_s1 + $0x18] sm:$0xff]   ;;  %v8684_v3 = vld [vmem:[%s10627_s1] sm:$0xff]   ;;  %vm44_vm2 = vcmask 261120   ;;  %vm4581_vm3 = vcmask 9216  }
   0x2   :  { %7851 = vmatprep.mubr.msk.bf16.mxu0 %vm9147_vm0, %v9146_v0  ;;  %7859 = vmatprep.mubr.msk.bf16.mxu1 %vm9147_vm0, %v9146_v0  ;;  %v8685_v4 = vld [vmem:[%s10627_s1 + $0x10] sm:$0xff]   ;;  %v8687_v5 = vld [vmem:[%s10627_s1 + $0x28] sm:$0xff]   ;;  %v8686_v6 = vld [vmem:[%s10627_s1 + $0x38] sm:$0xff]  }
   0x3   :  { %7848 = vmatpush3.bf16.msra.mxu0 %v8682_v1  ;;  %7856 = vmatpush3.bf16.msra.mxu1 %v8683_v2  ;;  %v8689_v7 = vld [vmem:[%s10627_s1 + $0x20] sm:$0xff]   ;;  %v8688_v9 = vld [vmem:[%s10627_s1 + $0x30] sm:$0xff]   ;;  %v8690_v10 = vld [vmem:[%s10627_s1 + $0x8] sm:$0xff]  }
   0x4   :  { %7849 = vmatprep.subr.bf16.mxu0 %v9146_v0  ;;  %7857 = vmatprep.subr.bf16.mxu1 %v9146_v0  ;;  %v8691_v11 = vld [vmem:[%s10627_s1 + $0x18] sm:$0xff]   ;;  %v8692_v12 = vld [vmem:[%s10627_s1] sm:$0xff]   ;;  %v8693_v13 = vld [vmem:[%s10627_s1 + $0x10] sm:$0xff]  }
   0x5   :  { %v27_v14 = vld [vmem:[%s10628_s0] sm:$0x3]  ;;  %v6843_v15 = vld [vmem:[%s10628_s0 + $0x10] sm:$0x3]  ;;  %v8694_v59 = vld [vmem:[%s10627_s1 + $0x28] sm:$0xff]  }
   0x6   :  { %v6857_v30 = vld [vmem:[%s10628_s0 + $0x30] sm:$0x3]  ;;  %v6850_v39 = vld [vmem:[%s10628_s0 + $0x20] sm:$0x3]  ;;  %v8695_v60 = vld [vmem:[%s10627_s1 + $0x38] sm:$0xff]  }
   0x7   :  { %7850 = vmatpush3.bf16.msra.mxu0 %v8684_v3  ;;  %7858 = vmatpush3.bf16.msra.mxu1 %v8685_v4  ;;  %v8696_v62 = vld [vmem:[%s10627_s1 + $0x20] sm:$0xff]   ;;  %v8697_v63 = vld [vmem:[%s10627_s1 + $0x30] sm:$0xff]   ;;  %v8698_v1 = vld [vmem:[%s10627_s1 + $0x8] sm:$0xff]  }
   0x8   :  { %7863 = vmatprep.subr.bf16.mxu0 %v9146_v0  ;;  %7871 = vmatprep.subr.bf16.mxu1 %v9146_v0  ;;  %v8699_v2 = vld [vmem:[%s10627_s1 + $0x18] sm:$0xff]   ;;  %v8700_v3 = vld [vmem:[%s10627_s1] sm:$0xff]   ;;  %v8701_v4 = vld [vmem:[%s10627_s1 + $0x10] sm:$0xff]  }
   0xa   :  { %7852 = vmatmul.mubr.bf16.vlgmr.msra.gmra.mxu0 %v9148_v8  ;;  %7860 = vmatmul.mubr.bf16.vlgmr.msra.gmra.mxu1 %v9148_v8 }
   0xb   :  { %7864 = vmatpush3.bf16.msra.mxu0 %v8687_v5  ;;  %7872 = vmatpush3.bf16.msra.mxu1 %v8686_v6  ;;  %v6864_v5 = vld [vmem:[%s10628_s0 + $0x2] sm:$0x3]  ;;  %v6868_v6 = vld [vmem:[%s10628_s0 + $0x12] sm:$0x3] }
   0xc   :  { %7865 = vmatprep.subr.bf16.mxu0 %v9146_v0  ;;  %7873 = vmatprep.subr.bf16.mxu1 %v9146_v0 }
   0xd   :  { %7875 = vmatprep.mubr.msk.bf16.mxu1 %vm9147_vm0, %v9146_v0  ;;  %7867 = vmatprep.mubr.msk.bf16.mxu0 %vm9147_vm0, %v9146_v0 }
   0xf   :  { %7866 = vmatpush3.bf16.msra.mxu0 %v8689_v7  ;;  %7874 = vmatpush3.bf16.msra.mxu1 %v8688_v9 }
  0x10   :  { %7879 = vmatprep.subr.bf16.mxu0 %v9146_v0  ;;  %7887 = vmatprep.subr.bf16.mxu1 %v9146_v0 }
  0x12   :  { %7868 = vmatmul.mubr.bf16.vlgmr.msra.gmra.mxu0 %v9148_v8  ;;  %7876 = vmatmul.mubr.bf16.vlgmr.msra.gmra.mxu1 %v9148_v8 }
  0x13   :  { %7883 = vmatprep.mubr.msk.bf16.mxu0 %vm9147_vm0, %v9146_v0  ;;  %7891 = vmatprep.mubr.msk.bf16.mxu1 %vm9147_vm0, %v9146_v0 }
  0x14   :  { %7880 = vmatpush3.bf16.msra.mxu0 %v8690_v10  ;;  %7888 = vmatpush3.bf16.msra.mxu1 %v8691_v11 }
  0x15   :  { %7881 = vmatprep.subr.bf16.mxu0 %v9146_v0  ;;  %7889 = vmatprep.subr.bf16.mxu1 %v9146_v0 }
  0x18   :  { %7882 = vmatpush3.bf16.msra.mxu0 %v8692_v12  ;;  %7890 = vmatpush3.bf16.msra.mxu1 %v8693_v13 }
  0x19   :  { %7895 = vmatprep.subr.bf16.mxu0 %v9146_v0  ;;  %7903 = vmatprep.subr.bf16.mxu1 %v9146_v0 }
  0xca   :  { %v82_v16 = vpop.f32.mrf.mxu0  ;;  %v142_v18 = vpop.f32.mrf.mxu1 }
  0xcb   :  { %v88_v17 = vadd.f32 %v82_v16, %v27_v14  ;;  %v148_v19 = vadd.f32 %v6843_v15, %v142_v18 }
  0xcc   :  { %v7853_v20 = vpop.f32.mrf.mxu0  ;;  %v7861_v22 = vpop.f32.mrf.mxu1 }
  0xcd   :  { %v269_v21 = vsub.f32 0.0, %v88_v17  ;;  %v274_v23 = vsub.f32 0.0, %v148_v19  ;;  %v6884_v22 = vld [vmem:[%s10628_s0 + $0x32] sm:$0x3] }
  0xce   :  { %v85_v24 = vpop.f32.mrf.mxu0  ;;  %v145_v26 = vpop.f32.mrf.mxu1 }
  0xcf   :  { %v270_v25 = vmul.f32 1.442695, %v269_v21  ;;  %v275_v27 = vmul.f32 1.442695, %v274_v23 }
  0xd0   :  { %v7854_v28 = vpop.f32.mrf.mxu0  ;;  %v7862_v29 = vpop.f32.mrf.mxu1 }
  0xd1   :  { %8890 = vpow2.f32 %v270_v25 }
  0xd2   :  { %8892 = vpow2.f32 %v275_v27  ;;  %v202_v31 = vpop.f32.mrf.mxu0  ;;  %v262_v32 = vpop.f32.mrf.mxu1 }
  0xd3   :  { %v268_v33 = vadd.f32 %v6857_v30, %v262_v32  ;;  %v208_v43 = vadd.f32 %v6850_v39, %v202_v31 }
  0xd4   :  { %v7869_v34 = vpop.f32.mrf.mxu0  ;;  %v7877_v35 = vpop.f32.mrf.mxu1 }
  0xd5   :  { %v280_v36 = vsub.f32 0.0, %v268_v33  ;;  %v6876_v33 = vld [vmem:[%s10628_s0 + $0x22] sm:$0x3] }
  0xd6   :  { %v205_v37 = vpop.f32.mrf.mxu0  ;;  %v265_v38 = vpop.f32.mrf.mxu1 }
  0xd7   :  { %v281_v42 = vmul.f32 1.442695, %v280_v36 }
  0xd8   :  { %v7870_v40 = vpop.f32.mrf.mxu0  ;;  %v7878_v41 = vpop.f32.mrf.mxu1 }
  0xd9   :  { %8894 = vpow2.f32 %v281_v42 }
  0xda   :  { %8896 = vtanh.f32 %v208_v43 }
  0xde   :  { %v8891_v44 = vpop.eup %8890 }
  0xdf   :  { %v8893_v45 = vpop.eup %8892  ;;  %v272_v46 = vadd.f32 1.0, %v8891_v44 }
  0xe0   :  { %v277_v47 = vadd.f32 1.0, %v8893_v45 }
  0xe1   :  { %8898 = vrcp.f32 %v272_v46 }
  0xe2   :  { %8900 = vrcp.f32 %v277_v47 }
  0xe6   :  { %v8895_v48 = vpop.eup %8894 }
  0xe7   :  { %v8897_v49 = vpop.eup %8896  ;;  %v283_v51 = vadd.f32 1.0, %v8895_v48 }
  0xe9   :  { %8902 = vrcp.f32 %v283_v51  ;;  %v8702_v51 = vld [vmem:[%s10627_s1 + $0x28] sm:$0xff]  }
  0xee   :  { %v8899_v50 = vpop.eup %8898 }
  0xef   :  { %v8901_v52 = vpop.eup %8900  ;;  %v286_v53 = vmul.f32 %v8899_v50, %v8897_v49 }
  0xf0   :  { %v285_v54 = vmul.f32 0.0, %v8901_v52  ;;  %v8703_v52 = vld [vmem:[%s10627_s1 + $0x38] sm:$0xff]  }
  0xf2   :  { %v9267_v55 = vadd.f32 %v286_v53, %v285_v54  ;;  %v8704_v54 = vld [vmem:[%s10627_s1 + $0x20] sm:$0xff]  }
  0xf4   :  { %8904 = vtanh.f32 %v9267_v55 }
  0xf6   :  { %v8903_v56 = vpop.eup %8902 }
 0x101   :  { %v8905_v57 = vpop.eup %8904 }
 0x102   :  { %v289_v58 = vmul.f32 %v8905_v57, %v8903_v56  ;;  %v8706_v56 = vld [vmem:[%s10627_s1 + $0x8] sm:$0xff]   ;;  %v8707_v57 = vld [vmem:[%s10627_s1 + $0x18] sm:$0xff]  }
 0x104   :  { %291 = vst.msk [vmem:[#allocation2] sm:$0x3] %vm290_vm1, %v289_v58  ;;  %v292_v61 = vpack.c.bf16 %v289_v58, %v289_v58  ;;  %v8708_v58 = vld [vmem:[%s10627_s1] sm:$0xff]  }
 0x106   :  { %7884 = vmatmul.mubr.msk.bf16.vlgmr.msra.gmra.mxu0 %vm44_vm2, %v292_v61  ;;  %7892 = vmatmul.mubr.msk.bf16.vlgmr.msra.gmra.mxu1 %vm44_vm2, %v292_v61 }
 0x107   :  { %7896 = vmatpush3.bf16.msra.mxu0 %v8694_v59  ;;  %7904 = vmatpush3.bf16.msra.mxu1 %v8695_v60  ;;  %v8709_v59 = vld [vmem:[%s10627_s1 + $0x10] sm:$0xff]   ;;  %v6892_v60 = vld [vmem:[%s10628_s0 + $0x4] sm:$0x3] }
 0x108   :  { %7897 = vmatprep.subr.bf16.mxu0 %v9146_v0  ;;  %7905 = vmatprep.subr.bf16.mxu1 %v9146_v0 }
 0x109   :  { %7899 = vmatprep.mubr.msk.bf16.mxu0 %vm9147_vm0, %v9146_v0  ;;  %7907 = vmatprep.mubr.msk.bf16.mxu1 %vm9147_vm0, %v9146_v0 }
 0x10b   :  { %7898 = vmatpush3.bf16.msra.mxu0 %v8696_v62  ;;  %7906 = vmatpush3.bf16.msra.mxu1 %v8697_v63 }
 0x10c   :  { %7911 = vmatprep.subr.bf16.mxu0 %v9146_v0  ;;  %7919 = vmatprep.subr.bf16.mxu1 %v9146_v0 }
 0x10e   :  { %7900 = vmatmul.mubr.msk.bf16.vlgmr.msra.gmra.mxu0 %vm44_vm2, %v292_v61  ;;  %7908 = vmatmul.mubr.msk.bf16.vlgmr.msra.gmra.mxu1 %vm44_vm2, %v292_v61  ;;  %v6896_v61 = vld [vmem:[%s10628_s0 + $0x14] sm:$0x3] }
 0x10f   :  { %7915 = vmatprep.mubr.msk.bf16.mxu0 %vm9147_vm0, %v9146_v0  ;;  %7923 = vmatprep.mubr.msk.bf16.mxu1 %vm9147_vm0, %v9146_v0 }
 0x110   :  { %7912 = vmatpush3.bf16.msra.mxu0 %v8698_v1  ;;  %7920 = vmatpush3.bf16.msra.mxu1 %v8699_v2 }
 0x111   :  { %7913 = vmatprep.subr.bf16.mxu0 %v9146_v0  ;;  %7921 = vmatprep.subr.bf16.mxu1 %v9146_v0 }
 0x114   :  { %7914 = vmatpush3.bf16.msra.mxu0 %v8700_v3  ;;  %7922 = vmatpush3.bf16.msra.mxu1 %v8701_v4 }
 0x115   :  { %7927 = vmatprep.subr.bf16.mxu0 %v9146_v0  ;;  %7935 = vmatprep.subr.bf16.mxu1 %v9146_v0 }
 0x1c6   :  { %v348_v7 = vpop.f32.mrf.mxu0  ;;  %v407_v9 = vpop.f32.mrf.mxu1 }
 0x1c7   :  { %v354_v10 = vadd.f32 %v6864_v5, %v348_v7  ;;  %v413_v11 = vadd.f32 %v6868_v6, %v407_v9 }
 0x1c8   :  { %v7885_v12 = vpop.f32.mrf.mxu0  ;;  %v7893_v13 = vpop.f32.mrf.mxu1 }
 0x1c9   :  { %v532_v14 = vsub.f32 0.0, %v354_v10  ;;  %v537_v15 = vsub.f32 0.0, %v413_v11 }
 0x1ca   :  { %v351_v16 = vpop.f32.mrf.mxu0  ;;  %v410_v17 = vpop.f32.mrf.mxu1 }
 0x1cb   :  { %v533_v18 = vmul.f32 1.442695, %v532_v14  ;;  %v538_v19 = vmul.f32 1.442695, %v537_v15  ;;  %v6912_v14 = vld [vmem:[%s10628_s0 + $0x34] sm:$0x3] }
 0x1cc   :  { %v7886_v20 = vpop.f32.mrf.mxu0  ;;  %v7894_v21 = vpop.f32.mrf.mxu1 }
 0x1cd   :  { %8906 = vpow2.f32 %v533_v18 }
 0x1ce   :  { %8908 = vpow2.f32 %v538_v19  ;;  %v466_v23 = vpop.f32.mrf.mxu0  ;;  %v525_v24 = vpop.f32.mrf.mxu1 }
 0x1cf   :  { %v531_v25 = vadd.f32 %v6884_v22, %v525_v24  ;;  %v472_v35 = vadd.f32 %v6876_v33, %v466_v23 }
 0x1d0   :  { %v7901_v26 = vpop.f32.mrf.mxu0  ;;  %v7909_v27 = vpop.f32.mrf.mxu1 }
 0x1d1   :  { %v543_v30 = vsub.f32 0.0, %v531_v25  ;;  %v6904_v25 = vld [vmem:[%s10628_s0 + $0x24] sm:$0x3] }
 0x1d2   :  { %v469_v28 = vpop.f32.mrf.mxu0  ;;  %v528_v29 = vpop.f32.mrf.mxu1 }
 0x1d3   :  { %v544_v34 = vmul.f32 1.442695, %v543_v30 }
 0x1d4   :  { %v7902_v31 = vpop.f32.mrf.mxu0  ;;  %v7910_v32 = vpop.f32.mrf.mxu1 }
 0x1d5   :  { %8910 = vpow2.f32 %v544_v34 }
 0x1d6   :  { %8912 = vtanh.f32 %v472_v35 }
 0x1da   :  { %v8907_v36 = vpop.eup %8906 }
 0x1db   :  { %v8909_v37 = vpop.eup %8908  ;;  %v535_v38 = vadd.f32 1.0, %v8907_v36 }
 0x1dc   :  { %v540_v39 = vadd.f32 1.0, %v8909_v37 }
 0x1dd   :  { %8914 = vrcp.f32 %v535_v38 }
 0x1de   :  { %8916 = vrcp.f32 %v540_v39 }
 0x1e2   :  { %v8911_v40 = vpop.eup %8910 }
 0x1e3   :  { %v8913_v41 = vpop.eup %8912  ;;  %v546_v45 = vadd.f32 1.0, %v8911_v40 }
 0x1e5   :  { %8918 = vrcp.f32 %v546_v45 }
 0x1ea   :  { %v8915_v42 = vpop.eup %8914 }
 0x1eb   :  { %v8917_v43 = vpop.eup %8916  ;;  %v549_v44 = vmul.f32 %v8915_v42, %v8913_v41 }
 0x1ec   :  { %v548_v46 = vmul.f32 %v8917_v43, %v9267_v55  ;;  %v8705_v55 = vld [vmem:[%s10627_s1 + $0x30] sm:$0xff]   ;;  %v8710_v43 = vld [vmem:[%s10627_s1 + $0x28] sm:$0xff]  }
 0x1ee   :  { %v9328_v47 = vadd.f32 %v549_v44, %v548_v46  ;;  %v8711_v44 = vld [vmem:[%s10627_s1 + $0x38] sm:$0xff]   ;;  %v8712_v46 = vld [vmem:[%s10627_s1 + $0x20] sm:$0xff]  }
 0x1f0   :  { %8920 = vtanh.f32 %v9328_v47 }
 0x1f2   :  { %v8919_v48 = vpop.eup %8918 }
 0x1fd   :  { %v8921_v49 = vpop.eup %8920 }
 0x1fe   :  { %v552_v50 = vmul.f32 %v8921_v49, %v8919_v48  ;;  %v8714_v48 = vld [vmem:[%s10627_s1 + $0x8] sm:$0xff]   ;;  %v8715_v49 = vld [vmem:[%s10627_s1 + $0x18] sm:$0xff]  }
 0x200   :  { %554 = vst.msk [vmem:[#allocation2 + $0x2] sm:$0x3] %vm290_vm1, %v552_v50  ;;  %v555_v53 = vpack.c.bf16 %v552_v50, %v552_v50  ;;  %v8716_v50 = vld [vmem:[%s10627_s1] sm:$0xff]  }
 0x202   :  { %7916 = vmatmul.mubr.msk.bf16.vlgmr.msra.gmra.mxu0 %vm44_vm2, %v555_v53  ;;  %7924 = vmatmul.mubr.msk.bf16.vlgmr.msra.gmra.mxu1 %vm44_vm2, %v555_v53 }
 0x203   :  { %7928 = vmatpush3.bf16.msra.mxu0 %v8702_v51  ;;  %7936 = vmatpush3.bf16.msra.mxu1 %v8703_v52  ;;  %v8717_v51 = vld [vmem:[%s10627_s1 + $0x10] sm:$0xff]   ;;  %v6920_v52 = vld [vmem:[%s10628_s0 + $0x6] sm:$0x3] }
 0x204   :  { %7929 = vmatprep.subr.bf16.mxu0 %v9146_v0  ;;  %7937 = vmatprep.subr.bf16.mxu1 %v9146_v0 }
 0x205   :  { %7931 = vmatprep.mubr.msk.bf16.mxu0 %vm9147_vm0, %v9146_v0  ;;  %7939 = vmatprep.mubr.msk.bf16.mxu1 %vm9147_vm0, %v9146_v0 }
 0x207   :  { %7930 = vmatpush3.bf16.msra.mxu0 %v8704_v54  ;;  %7938 = vmatpush3.bf16.msra.mxu1 %v8705_v55 }
 0x208   :  { %7943 = vmatprep.subr.bf16.mxu0 %v9146_v0  ;;  %7951 = vmatprep.subr.bf16.mxu1 %v9146_v0 }
 0x20a   :  { %7932 = vmatmul.mubr.msk.bf16.vlgmr.msra.gmra.mxu0 %vm44_vm2, %v555_v53  ;;  %7940 = vmatmul.mubr.msk.bf16.vlgmr.msra.gmra.mxu1 %vm44_vm2, %v555_v53  ;;  %v6924_v53 = vld [vmem:[%s10628_s0 + $0x16] sm:$0x3] }
 0x20b   :  { %7947 = vmatprep.mubr.msk.bf16.mxu0 %vm9147_vm0, %v9146_v0  ;;  %7955 = vmatprep.mubr.msk.bf16.mxu1 %vm9147_vm0, %v9146_v0 }
 0x20c   :  { %7944 = vmatpush3.bf16.msra.mxu0 %v8706_v56  ;;  %7952 = vmatpush3.bf16.msra.mxu1 %v8707_v57 }
 0x20d   :  { %7945 = vmatprep.subr.bf16.mxu0 %v9146_v0  ;;  %7953 = vmatprep.subr.bf16.mxu1 %v9146_v0 }
 0x210   :  { %7946 = vmatpush3.bf16.msra.mxu0 %v8708_v58  ;;  %7954 = vmatpush3.bf16.msra.mxu1 %v8709_v59 }
 0x211   :  { %7959 = vmatprep.subr.bf16.mxu0 %v9146_v0  ;;  %7967 = vmatprep.subr.bf16.mxu1 %v9146_v0 }
 0x2c2   :  { %v611_v62 = vpop.f32.mrf.mxu0  ;;  %v670_v63 = vpop.f32.mrf.mxu1 }
 0x2c3   :  { %v617_v1 = vadd.f32 %v6892_v60, %v611_v62  ;;  %v676_v2 = vadd.f32 %v6896_v61, %v670_v63 }
 0x2c4   :  { %v7917_v3 = vpop.f32.mrf.mxu0  ;;  %v7925_v4 = vpop.f32.mrf.mxu1 }
 0x2c5   :  { %v795_v5 = vsub.f32 0.0, %v617_v1  ;;  %v800_v6 = vsub.f32 0.0, %v676_v2 }
 0x2c6   :  { %v614_v7 = vpop.f32.mrf.mxu0  ;;  %v673_v9 = vpop.f32.mrf.mxu1 }
 0x2c7   :  { %v796_v10 = vmul.f32 1.442695, %v795_v5  ;;  %v801_v11 = vmul.f32 1.442695, %v800_v6  ;;  %v6940_v5 = vld [vmem:[%s10628_s0 + $0x36] sm:$0x3] }
 0x2c8   :  { %v7918_v12 = vpop.f32.mrf.mxu0  ;;  %v7926_v13 = vpop.f32.mrf.mxu1 }
 0x2c9   :  { %8922 = vpow2.f32 %v796_v10 }
 0x2ca   :  { %8924 = vpow2.f32 %v801_v11  ;;  %v729_v15 = vpop.f32.mrf.mxu0  ;;  %v788_v16 = vpop.f32.mrf.mxu1 }
 0x2cb   :  { %v794_v17 = vadd.f32 %v6912_v14, %v788_v16  ;;  %v735_v27 = vadd.f32 %v6904_v25, %v729_v15 }
 0x2cc   :  { %v7933_v18 = vpop.f32.mrf.mxu0  ;;  %v7941_v19 = vpop.f32.mrf.mxu1 }
 0x2cd   :  { %v806_v22 = vsub.f32 0.0, %v794_v17  ;;  %v6932_v17 = vld [vmem:[%s10628_s0 + $0x26] sm:$0x3] }
 0x2ce   :  { %v732_v20 = vpop.f32.mrf.mxu0  ;;  %v791_v21 = vpop.f32.mrf.mxu1 }
 0x2cf   :  { %v807_v26 = vmul.f32 1.442695, %v806_v22 }
 0x2d0   :  { %v7934_v23 = vpop.f32.mrf.mxu0  ;;  %v7942_v24 = vpop.f32.mrf.mxu1 }
 0x2d1   :  { %8926 = vpow2.f32 %v807_v26 }
 0x2d2   :  { %8928 = vtanh.f32 %v735_v27 }
 0x2d6   :  { %v8923_v28 = vpop.eup %8922 }
 0x2d7   :  { %v8925_v29 = vpop.eup %8924  ;;  %v798_v30 = vadd.f32 1.0, %v8923_v28 }
 0x2d8   :  { %v803_v31 = vadd.f32 1.0, %v8925_v29 }
 0x2d9   :  { %8930 = vrcp.f32 %v798_v30 }
 0x2da   :  { %8932 = vrcp.f32 %v803_v31 }
 0x2de   :  { %v8927_v32 = vpop.eup %8926 }
 0x2df   :  { %v8929_v33 = vpop.eup %8928  ;;  %v809_v37 = vadd.f32 1.0, %v8927_v32 }
 0x2e1   :  { %8934 = vrcp.f32 %v809_v37 }
 0x2e6   :  { %v8931_v34 = vpop.eup %8930 }
 0x2e7   :  { %v8933_v35 = vpop.eup %8932  ;;  %v812_v36 = vmul.f32 %v8931_v34, %v8929_v33 }
 0x2e8   :  { %v811_v38 = vmul.f32 %v8933_v35, %v9328_v47  ;;  %v8713_v47 = vld [vmem:[%s10627_s1 + $0x30] sm:$0xff]   ;;  %v8718_v35 = vld [vmem:[%s10627_s1 + $0x28] sm:$0xff]  }
 0x2ea   :  { %v9389_v39 = vadd.f32 %v812_v36, %v811_v38  ;;  %v8719_v36 = vld [vmem:[%s10627_s1 + $0x38] sm:$0xff]   ;;  %v8720_v38 = vld [vmem:[%s10627_s1 + $0x20] sm:$0xff]  }
 0x2ec   :  { %8936 = vtanh.f32 %v9389_v39 }
 0x2ee   :  { %v8935_v40 = vpop.eup %8934 }
 0x2f9   :  { %v8937_v41 = vpop.eup %8936 }
 0x2fa   :  { %v815_v42 = vmul.f32 %v8937_v41, %v8935_v40  ;;  %v8722_v40 = vld [vmem:[%s10627_s1 + $0x8] sm:$0xff]   ;;  %v8723_v41 = vld [vmem:[%s10627_s1 + $0x18] sm:$0xff]  }
 0x2fc   :  { %817 = vst.msk [vmem:[#allocation2 + $0x4] sm:$0x3] %vm290_vm1, %v815_v42  ;;  %v818_v45 = vpack.c.bf16 %v815_v42, %v815_v42  ;;  %v8724_v42 = vld [vmem:[%s10627_s1] sm:$0xff]  }
 0x2fe   :  { %7948 = vmatmul.mubr.msk.bf16.vlgmr.msra.gmra.mxu0 %vm44_vm2, %v818_v45  ;;  %7956 = vmatmul.mubr.msk.bf16.vlgmr.msra.gmra.mxu1 %vm44_vm2, %v818_v45 }
 0x2ff   :  { %7960 = vmatpush3.bf16.msra.mxu0 %v8710_v43  ;;  %7968 = vmatpush3.bf16.msra.mxu1 %v8711_v44  ;;  %v8725_v43 = vld [vmem:[%s10627_s1 + $0x10] sm:$0xff]   ;;  %v6948_v44 = vld [vmem:[%s10628_s0 + $0x8] sm:$0x3] }
 0x300   :  { %7961 = vmatprep.subr.bf16.mxu0 %v9146_v0  ;;  %7969 = vmatprep.subr.bf16.mxu1 %v9146_v0 }
 0x301   :  { %7963 = vmatprep.mubr.msk.bf16.mxu0 %vm9147_vm0, %v9146_v0  ;;  %7971 = vmatprep.mubr.msk.bf16.mxu1 %vm9147_vm0, %v9146_v0 }
 0x303   :  { %7962 = vmatpush3.bf16.msra.mxu0 %v8712_v46  ;;  %7970 = vmatpush3.bf16.msra.mxu1 %v8713_v47 }
 0x304   :  { %7975 = vmatprep.subr.bf16.mxu0 %v9146_v0  ;;  %7983 = vmatprep.subr.bf16.mxu1 %v9146_v0 }
 0x306   :  { %7964 = vmatmul.mubr.msk.bf16.vlgmr.msra.gmra.mxu0 %vm44_vm2, %v818_v45  ;;  %7972 = vmatmul.mubr.msk.bf16.vlgmr.msra.gmra.mxu1 %vm44_vm2, %v818_v45  ;;  %v6952_v45 = vld [vmem:[%s10628_s0 + $0x18] sm:$0x3] }
 0x307   :  { %7979 = vmatprep.mubr.msk.bf16.mxu0 %vm9147_vm0, %v9146_v0  ;;  %7987 = vmatprep.mubr.msk.bf16.mxu1 %vm9147_vm0, %v9146_v0 }
 0x308   :  { %7976 = vmatpush3.bf16.msra.mxu0 %v8714_v48  ;;  %7984 = vmatpush3.bf16.msra.mxu1 %v8715_v49 }
 0x309   :  { %7977 = vmatprep.subr.bf16.mxu0 %v9146_v0  ;;  %7985 = vmatprep.subr.bf16.mxu1 %v9146_v0 }
 0x30c   :  { %7978 = vmatpush3.bf16.msra.mxu0 %v8716_v50  ;;  %7986 = vmatpush3.bf16.msra.mxu1 %v8717_v51 }
 0x30d   :  { %7991 = vmatprep.subr.bf16.mxu0 %v9146_v0  ;;  %7999 = vmatprep.subr.bf16.mxu1 %v9146_v0 }
 0x3be   :  { %v874_v54 = vpop.f32.mrf.mxu0  ;;  %v933_v55 = vpop.f32.mrf.mxu1 }
 0x3bf   :  { %v880_v56 = vadd.f32 %v6920_v52, %v874_v54  ;;  %v939_v57 = vadd.f32 %v6924_v53, %v933_v55 }
 0x3c0   :  { %v7949_v58 = vpop.f32.mrf.mxu0  ;;  %v7957_v59 = vpop.f32.mrf.mxu1 }
 0x3c1   :  { %v1058_v60 = vsub.f32 0.0, %v880_v56  ;;  %v1063_v61 = vsub.f32 0.0, %v939_v57 }
 0x3c2   :  { %v877_v62 = vpop.f32.mrf.mxu0  ;;  %v936_v63 = vpop.f32.mrf.mxu1 }
 0x3c3   :  { %v1059_v1 = vmul.f32 1.442695, %v1058_v60  ;;  %v1064_v2 = vmul.f32 1.442695, %v1063_v61  ;;  %v6968_v60 = vld [vmem:[%s10628_s0 + $0x38] sm:$0x3] }
 0x3c4   :  { %v7950_v3 = vpop.f32.mrf.mxu0  ;;  %v7958_v4 = vpop.f32.mrf.mxu1 }
 0x3c5   :  { %8938 = vpow2.f32 %v1059_v1 }
 0x3c6   :  { %8940 = vpow2.f32 %v1064_v2  ;;  %v992_v6 = vpop.f32.mrf.mxu0  ;;  %v1051_v7 = vpop.f32.mrf.mxu1 }
 0x3c7   :  { %v1057_v9 = vadd.f32 %v6940_v5, %v1051_v7  ;;  %v998_v19 = vadd.f32 %v6932_v17, %v992_v6 }
 0x3c8   :  { %v7965_v10 = vpop.f32.mrf.mxu0  ;;  %v7973_v11 = vpop.f32.mrf.mxu1 }
 0x3c9   :  { %v1069_v14 = vsub.f32 0.0, %v1057_v9  ;;  %v6960_v9 = vld [vmem:[%s10628_s0 + $0x28] sm:$0x3] }
 0x3ca   :  { %v995_v12 = vpop.f32.mrf.mxu0  ;;  %v1054_v13 = vpop.f32.mrf.mxu1 }
 0x3cb   :  { %v1070_v18 = vmul.f32 1.442695, %v1069_v14 }
 0x3cc   :  { %v7966_v15 = vpop.f32.mrf.mxu0  ;;  %v7974_v16 = vpop.f32.mrf.mxu1 }
 0x3cd   :  { %8942 = vpow2.f32 %v1070_v18 }
 0x3ce   :  { %8944 = vtanh.f32 %v998_v19 }
 0x3d2   :  { %v8939_v20 = vpop.eup %8938 }
 0x3d3   :  { %v8941_v21 = vpop.eup %8940  ;;  %v1061_v22 = vadd.f32 1.0, %v8939_v20 }
 0x3d4   :  { %v1066_v23 = vadd.f32 1.0, %v8941_v21 }
 0x3d5   :  { %8946 = vrcp.f32 %v1061_v22 }
 0x3d6   :  { %8948 = vrcp.f32 %v1066_v23 }
 0x3da   :  { %v8943_v24 = vpop.eup %8942 }
 0x3db   :  { %v8945_v25 = vpop.eup %8944  ;;  %v1072_v29 = vadd.f32 1.0, %v8943_v24 }
 0x3dd   :  { %8950 = vrcp.f32 %v1072_v29 }
 0x3e2   :  { %v8947_v26 = vpop.eup %8946 }
 0x3e3   :  { %v8949_v27 = vpop.eup %8948  ;;  %v1075_v28 = vmul.f32 %v8947_v26, %v8945_v25 }
 0x3e4   :  { %v1074_v30 = vmul.f32 %v8949_v27, %v9389_v39  ;;  %v8721_v39 = vld [vmem:[%s10627_s1 + $0x30] sm:$0xff]   ;;  %v8726_v27 = vld [vmem:[%s10627_s1 + $0x28] sm:$0xff]  }
 0x3e6   :  { %v9450_v31 = vadd.f32 %v1075_v28, %v1074_v30  ;;  %v8727_v28 = vld [vmem:[%s10627_s1 + $0x38] sm:$0xff]   ;;  %v8728_v30 = vld [vmem:[%s10627_s1 + $0x20] sm:$0xff]  }
 0x3e8   :  { %8952 = vtanh.f32 %v9450_v31 }
 0x3ea   :  { %v8951_v32 = vpop.eup %8950 }
 0x3f5   :  { %v8953_v33 = vpop.eup %8952 }
 0x3f6   :  { %v1078_v34 = vmul.f32 %v8953_v33, %v8951_v32  ;;  %v8730_v32 = vld [vmem:[%s10627_s1 + $0x8] sm:$0xff]   ;;  %v8731_v33 = vld [vmem:[%s10627_s1 + $0x18] sm:$0xff]  }
 0x3f8   :  { %1080 = vst.msk [vmem:[#allocation2 + $0x6] sm:$0x3] %vm290_vm1, %v1078_v34  ;;  %v1081_v37 = vpack.c.bf16 %v1078_v34, %v1078_v34  ;;  %v8732_v34 = vld [vmem:[%s10627_s1] sm:$0xff]  }
 0x3fa   :  { %7980 = vmatmul.mubr.msk.bf16.vlgmr.msra.gmra.mxu0 %vm44_vm2, %v1081_v37  ;;  %7988 = vmatmul.mubr.msk.bf16.vlgmr.msra.gmra.mxu1 %vm44_vm2, %v1081_v37 }
 0x3fb   :  { %7992 = vmatpush3.bf16.msra.mxu0 %v8718_v35  ;;  %8000 = vmatpush3.bf16.msra.mxu1 %v8719_v36  ;;  %v8733_v35 = vld [vmem:[%s10627_s1 + $0x10] sm:$0xff]   ;;  %v6976_v36 = vld [vmem:[%s10628_s0 + $0xa] sm:$0x3] }
 0x3fc   :  { %7993 = vmatprep.subr.bf16.mxu0 %v9146_v0  ;;  %8001 = vmatprep.subr.bf16.mxu1 %v9146_v0 }
 0x3fd   :  { %7995 = vmatprep.mubr.msk.bf16.mxu0 %vm9147_vm0, %v9146_v0  ;;  %8003 = vmatprep.mubr.msk.bf16.mxu1 %vm9147_vm0, %v9146_v0 }
 0x3ff   :  { %7994 = vmatpush3.bf16.msra.mxu0 %v8720_v38  ;;  %8002 = vmatpush3.bf16.msra.mxu1 %v8721_v39 }
 0x400   :  { %8007 = vmatprep.subr.bf16.mxu0 %v9146_v0  ;;  %8015 = vmatprep.subr.bf16.mxu1 %v9146_v0 }
 0x402   :  { %7996 = vmatmul.mubr.msk.bf16.vlgmr.msra.gmra.mxu0 %vm44_vm2, %v1081_v37  ;;  %8004 = vmatmul.mubr.msk.bf16.vlgmr.msra.gmra.mxu1 %vm44_vm2, %v1081_v37  ;;  %v6980_v37 = vld [vmem:[%s10628_s0 + $0x1a] sm:$0x3] }
 0x403   :  { %8011 = vmatprep.mubr.msk.bf16.mxu0 %vm9147_vm0, %v9146_v0  ;;  %8019 = vmatprep.mubr.msk.bf16.mxu1 %vm9147_vm0, %v9146_v0 }
 0x404   :  { %8008 = vmatpush3.bf16.msra.mxu0 %v8722_v40  ;;  %8016 = vmatpush3.bf16.msra.mxu1 %v8723_v41 }
 0x405   :  { %8009 = vmatprep.subr.bf16.mxu0 %v9146_v0  ;;  %8017 = vmatprep.subr.bf16.mxu1 %v9146_v0 }
 0x408   :  { %8010 = vmatpush3.bf16.msra.mxu0 %v8724_v42  ;;  %8018 = vmatpush3.bf16.msra.mxu1 %v8725_v43 }
 0x409   :  { %8023 = vmatprep.subr.bf16.mxu0 %v9146_v0  ;;  %8031 = vmatprep.subr.bf16.mxu1 %v9146_v0 }
 0x4ba   :  { %v1137_v46 = vpop.f32.mrf.mxu0  ;;  %v1196_v47 = vpop.f32.mrf.mxu1 }
 0x4bb   :  { %v1143_v48 = vadd.f32 %v6948_v44, %v1137_v46  ;;  %v1202_v49 = vadd.f32 %v6952_v45, %v1196_v47 }
 0x4bc   :  { %v7981_v50 = vpop.f32.mrf.mxu0  ;;  %v7989_v51 = vpop.f32.mrf.mxu1 }
 0x4bd   :  { %v1321_v52 = vsub.f32 0.0, %v1143_v48  ;;  %v1326_v53 = vsub.f32 0.0, %v1202_v49 }
 0x4be   :  { %v1140_v54 = vpop.f32.mrf.mxu0  ;;  %v1199_v55 = vpop.f32.mrf.mxu1 }
 0x4bf   :  { %v1322_v56 = vmul.f32 1.442695, %v1321_v52  ;;  %v1327_v57 = vmul.f32 1.442695, %v1326_v53  ;;  %v6996_v52 = vld [vmem:[%s10628_s0 + $0x3a] sm:$0x3] }
 0x4c0   :  { %v7982_v58 = vpop.f32.mrf.mxu0  ;;  %v7990_v59 = vpop.f32.mrf.mxu1 }
 0x4c1   :  { %8954 = vpow2.f32 %v1322_v56 }
 0x4c2   :  { %8956 = vpow2.f32 %v1327_v57  ;;  %v1255_v61 = vpop.f32.mrf.mxu0  ;;  %v1314_v62 = vpop.f32.mrf.mxu1 }
 0x4c3   :  { %v1320_v63 = vadd.f32 %v6968_v60, %v1314_v62  ;;  %v1261_v11 = vadd.f32 %v6960_v9, %v1255_v61 }
 0x4c4   :  { %v7997_v1 = vpop.f32.mrf.mxu0  ;;  %v8005_v2 = vpop.f32.mrf.mxu1 }
 0x4c5   :  { %v1332_v5 = vsub.f32 0.0, %v1320_v63  ;;  %v6988_v63 = vld [vmem:[%s10628_s0 + $0x2a] sm:$0x3] }
 0x4c6   :  { %v1258_v3 = vpop.f32.mrf.mxu0  ;;  %v1317_v4 = vpop.f32.mrf.mxu1 }
 0x4c7   :  { %v1333_v10 = vmul.f32 1.442695, %v1332_v5 }
 0x4c8   :  { %v7998_v6 = vpop.f32.mrf.mxu0  ;;  %v8006_v7 = vpop.f32.mrf.mxu1 }
 0x4c9   :  { %8958 = vpow2.f32 %v1333_v10 }
 0x4ca   :  { %8960 = vtanh.f32 %v1261_v11 }
 0x4ce   :  { %v8955_v12 = vpop.eup %8954 }
 0x4cf   :  { %v8957_v13 = vpop.eup %8956  ;;  %v1324_v14 = vadd.f32 1.0, %v8955_v12 }
 0x4d0   :  { %v1329_v15 = vadd.f32 1.0, %v8957_v13 }
 0x4d1   :  { %8962 = vrcp.f32 %v1324_v14 }
 0x4d2   :  { %8964 = vrcp.f32 %v1329_v15 }
 0x4d6   :  { %v8959_v16 = vpop.eup %8958 }
 0x4d7   :  { %v8961_v17 = vpop.eup %8960  ;;  %v1335_v21 = vadd.f32 1.0, %v8959_v16 }
 0x4d9   :  { %8966 = vrcp.f32 %v1335_v21 }
 0x4de   :  { %v8963_v18 = vpop.eup %8962 }
 0x4df   :  { %v8965_v19 = vpop.eup %8964  ;;  %v1338_v20 = vmul.f32 %v8963_v18, %v8961_v17 }
 0x4e0   :  { %v1337_v22 = vmul.f32 %v8965_v19, %v9450_v31  ;;  %v8729_v31 = vld [vmem:[%s10627_s1 + $0x30] sm:$0xff]   ;;  %v8734_v19 = vld [vmem:[%s10627_s1 + $0x28] sm:$0xff]  }
 0x4e2   :  { %v9511_v23 = vadd.f32 %v1338_v20, %v1337_v22  ;;  %v8735_v20 = vld [vmem:[%s10627_s1 + $0x38] sm:$0xff]   ;;  %v8736_v22 = vld [vmem:[%s10627_s1 + $0x20] sm:$0xff]  }
 0x4e4   :  { %8968 = vtanh.f32 %v9511_v23 }
 0x4e6   :  { %v8967_v24 = vpop.eup %8966 }
 0x4f1   :  { %v8969_v25 = vpop.eup %8968 }
 0x4f2   :  { %v1341_v26 = vmul.f32 %v8969_v25, %v8967_v24  ;;  %v8738_v24 = vld [vmem:[%s10627_s1 + $0x8] sm:$0xff]   ;;  %v8739_v25 = vld [vmem:[%s10627_s1 + $0x18] sm:$0xff]  }
 0x4f4   :  { %1343 = vst.msk [vmem:[#allocation2 + $0x8] sm:$0x3] %vm290_vm1, %v1341_v26  ;;  %v1344_v29 = vpack.c.bf16 %v1341_v26, %v1341_v26  ;;  %v8740_v26 = vld [vmem:[%s10627_s1] sm:$0xff]  }
 0x4f6   :  { %8012 = vmatmul.mubr.msk.bf16.vlgmr.msra.gmra.mxu0 %vm44_vm2, %v1344_v29  ;;  %8020 = vmatmul.mubr.msk.bf16.vlgmr.msra.gmra.mxu1 %vm44_vm2, %v1344_v29 }
 0x4f7   :  { %8024 = vmatpush3.bf16.msra.mxu0 %v8726_v27  ;;  %8032 = vmatpush3.bf16.msra.mxu1 %v8727_v28  ;;  %v8741_v27 = vld [vmem:[%s10627_s1 + $0x10] sm:$0xff]   ;;  %v7004_v28 = vld [vmem:[%s10628_s0 + $0xc] sm:$0x3] }
 0x4f8   :  { %8025 = vmatprep.subr.bf16.mxu0 %v9146_v0  ;;  %8033 = vmatprep.subr.bf16.mxu1 %v9146_v0 }
 0x4f9   :  { %8027 = vmatprep.mubr.msk.bf16.mxu0 %vm9147_vm0, %v9146_v0  ;;  %8035 = vmatprep.mubr.msk.bf16.mxu1 %vm9147_vm0, %v9146_v0 }
 0x4fb   :  { %8026 = vmatpush3.bf16.msra.mxu0 %v8728_v30  ;;  %8034 = vmatpush3.bf16.msra.mxu1 %v8729_v31 }
 0x4fc   :  { %8039 = vmatprep.subr.bf16.mxu0 %v9146_v0  ;;  %8047 = vmatprep.subr.bf16.mxu1 %v9146_v0 }
 0x4fe   :  { %8028 = vmatmul.mubr.msk.bf16.vlgmr.msra.gmra.mxu0 %vm44_vm2, %v1344_v29  ;;  %8036 = vmatmul.mubr.msk.bf16.vlgmr.msra.gmra.mxu1 %vm44_vm2, %v1344_v29  ;;  %v7008_v29 = vld [vmem:[%s10628_s0 + $0x1c] sm:$0x3] }
 0x4ff   :  { %8043 = vmatprep.mubr.msk.bf16.mxu0 %vm9147_vm0, %v9146_v0  ;;  %8051 = vmatprep.mubr.msk.bf16.mxu1 %vm9147_vm0, %v9146_v0 }
 0x500   :  { %8040 = vmatpush3.bf16.msra.mxu0 %v8730_v32  ;;  %8048 = vmatpush3.bf16.msra.mxu1 %v8731_v33 }
 0x501   :  { %8041 = vmatprep.subr.bf16.mxu0 %v9146_v0  ;;  %8049 = vmatprep.subr.bf16.mxu1 %v9146_v0 }
 0x504   :  { %8042 = vmatpush3.bf16.msra.mxu0 %v8732_v34  ;;  %8050 = vmatpush3.bf16.msra.mxu1 %v8733_v35 }
 0x505   :  { %8055 = vmatprep.subr.bf16.mxu0 %v9146_v0  ;;  %8063 = vmatprep.subr.bf16.mxu1 %v9146_v0 }
 0x5b6   :  { %v1400_v38 = vpop.f32.mrf.mxu0  ;;  %v1459_v39 = vpop.f32.mrf.mxu1 }
 0x5b7   :  { %v1406_v40 = vadd.f32 %v6976_v36, %v1400_v38  ;;  %v1465_v41 = vadd.f32 %v6980_v37, %v1459_v39 }
 0x5b8   :  { %v8013_v42 = vpop.f32.mrf.mxu0  ;;  %v8021_v43 = vpop.f32.mrf.mxu1 }
 0x5b9   :  { %v1584_v44 = vsub.f32 0.0, %v1406_v40  ;;  %v1589_v45 = vsub.f32 0.0, %v1465_v41 }
 0x5ba   :  { %v1403_v46 = vpop.f32.mrf.mxu0  ;;  %v1462_v47 = vpop.f32.mrf.mxu1 }
 0x5bb   :  { %v1585_v48 = vmul.f32 1.442695, %v1584_v44  ;;  %v1590_v49 = vmul.f32 1.442695, %v1589_v45  ;;  %v7024_v44 = vld [vmem:[%s10628_s0 + $0x3c] sm:$0x3] }
 0x5bc   :  { %v8014_v50 = vpop.f32.mrf.mxu0  ;;  %v8022_v51 = vpop.f32.mrf.mxu1 }
 0x5bd   :  { %8970 = vpow2.f32 %v1585_v48 }
 0x5be   :  { %8972 = vpow2.f32 %v1590_v49  ;;  %v1518_v53 = vpop.f32.mrf.mxu0  ;;  %v1577_v54 = vpop.f32.mrf.mxu1 }
 0x5bf   :  { %v1583_v55 = vadd.f32 %v6996_v52, %v1577_v54  ;;  %v1524_v2 = vadd.f32 %v6988_v63, %v1518_v53 }
 0x5c0   :  { %v8029_v56 = vpop.f32.mrf.mxu0  ;;  %v8037_v57 = vpop.f32.mrf.mxu1 }
 0x5c1   :  { %v1595_v60 = vsub.f32 0.0, %v1583_v55  ;;  %v7016_v55 = vld [vmem:[%s10628_s0 + $0x2c] sm:$0x3] }
 0x5c2   :  { %v1521_v58 = vpop.f32.mrf.mxu0  ;;  %v1580_v59 = vpop.f32.mrf.mxu1 }
 0x5c3   :  { %v1596_v1 = vmul.f32 1.442695, %v1595_v60 }
 0x5c4   :  { %v8030_v61 = vpop.f32.mrf.mxu0  ;;  %v8038_v62 = vpop.f32.mrf.mxu1 }
 0x5c5   :  { %8974 = vpow2.f32 %v1596_v1 }
 0x5c6   :  { %8976 = vtanh.f32 %v1524_v2 }
 0x5ca   :  { %v8971_v3 = vpop.eup %8970 }
 0x5cb   :  { %v8973_v4 = vpop.eup %8972  ;;  %v1587_v5 = vadd.f32 1.0, %v8971_v3 }
 0x5cc   :  { %v1592_v6 = vadd.f32 1.0, %v8973_v4 }
 0x5cd   :  { %8978 = vrcp.f32 %v1587_v5 }
 0x5ce   :  { %8980 = vrcp.f32 %v1592_v6 }
 0x5d2   :  { %v8975_v7 = vpop.eup %8974 }
 0x5d3   :  { %v8977_v9 = vpop.eup %8976  ;;  %v1598_v13 = vadd.f32 1.0, %v8975_v7 }
 0x5d5   :  { %8982 = vrcp.f32 %v1598_v13 }
 0x5da   :  { %v8979_v10 = vpop.eup %8978 }
 0x5db   :  { %v8981_v11 = vpop.eup %8980  ;;  %v1601_v12 = vmul.f32 %v8979_v10, %v8977_v9 }
 0x5dc   :  { %v1600_v14 = vmul.f32 %v8981_v11, %v9511_v23  ;;  %v8737_v23 = vld [vmem:[%s10627_s1 + $0x30] sm:$0xff]   ;;  %v8742_v11 = vld [vmem:[%s10627_s1 + $0x28] sm:$0xff]  }
 0x5de   :  { %v9572_v15 = vadd.f32 %v1601_v12, %v1600_v14  ;;  %v8743_v12 = vld [vmem:[%s10627_s1 + $0x38] sm:$0xff]   ;;  %v8744_v14 = vld [vmem:[%s10627_s1 + $0x20] sm:$0xff]  }
 0x5e0   :  { %8984 = vtanh.f32 %v9572_v15 }
 0x5e2   :  { %v8983_v16 = vpop.eup %8982 }
 0x5ed   :  { %v8985_v17 = vpop.eup %8984 }
 0x5ee   :  { %v1604_v18 = vmul.f32 %v8985_v17, %v8983_v16  ;;  %v8746_v16 = vld [vmem:[%s10629_s2 + $0x8] sm:$0xff]   ;;  %v8747_v17 = vld [vmem:[%s10629_s2 + $0x18] sm:$0xff]  }
 0x5f0   :  { %1606 = vst.msk [vmem:[#allocation2 + $0xa] sm:$0x3] %vm290_vm1, %v1604_v18  ;;  %v1607_v21 = vpack.c.bf16 %v1604_v18, %v1604_v18  ;;  %v8748_v18 = vld [vmem:[%s10629_s2] sm:$0xff]  }
 0x5f2   :  { %8044 = vmatmul.mubr.msk.bf16.vlgmr.msra.gmra.mxu0 %vm44_vm2, %v1607_v21  ;;  %8052 = vmatmul.mubr.msk.bf16.vlgmr.msra.gmra.mxu1 %vm44_vm2, %v1607_v21 }
 0x5f3   :  { %8056 = vmatpush3.bf16.msra.mxu0 %v8734_v19  ;;  %8064 = vmatpush3.bf16.msra.mxu1 %v8735_v20  ;;  %v8749_v19 = vld [vmem:[%s10629_s2 + $0x10] sm:$0xff]   ;;  %v2133_v20 = vld [vmem:[#allocation2] sm:$0x3] }
 0x5f4   :  { %8057 = vmatprep.subr.bf16.mxu0 %v9146_v0  ;;  %8065 = vmatprep.subr.bf16.mxu1 %v9146_v0 }
 0x5f5   :  { %8059 = vmatprep.mubr.msk.bf16.mxu0 %vm9147_vm0, %v9146_v0  ;;  %8067 = vmatprep.mubr.msk.bf16.mxu1 %vm9147_vm0, %v9146_v0 }
 0x5f7   :  { %8058 = vmatpush3.bf16.msra.mxu0 %v8736_v22  ;;  %8066 = vmatpush3.bf16.msra.mxu1 %v8737_v23  ;;  %v8751_v22 = vld [vmem:[%s10629_s2 + $0x38] sm:$0xff]   ;;  %v2134_v23 = vpack.c.bf16 %v2133_v20, %v2133_v20  ;;  %v8798_v20 = vld [vmem:[%s10629_s2 + $0x28] sm:$0xff]  }
 0x5f8   :  { %8071 = vmatprep.subr.bf16.mxu0 %v9146_v0  ;;  %8079 = vmatprep.subr.bf16.mxu1 %v9146_v0 }
 0x5fa   :  { %8060 = vmatmul.mubr.msk.bf16.vlgmr.msra.gmra.mxu0 %vm44_vm2, %v1607_v21  ;;  %8068 = vmatmul.mubr.msk.bf16.vlgmr.msra.gmra.mxu1 %vm44_vm2, %v1607_v21  ;;  %v8750_v21 = vld [vmem:[%s10629_s2 + $0x28] sm:$0xff]  }
 0x5fb   :  { %8075 = vmatprep.mubr.msk.bf16.mxu0 %vm9147_vm0, %v9146_v0  ;;  %8083 = vmatprep.mubr.msk.bf16.mxu1 %vm9147_vm0, %v9146_v0 }
 0x5fc   :  { %8072 = vmatpush3.bf16.msra.mxu0 %v8738_v24  ;;  %8080 = vmatpush3.bf16.msra.mxu1 %v8739_v25  ;;  %v8752_v24 = vld [vmem:[%s10629_s2 + $0x20] sm:$0xff]   ;;  %v8753_v25 = vld [vmem:[%s10629_s2 + $0x30] sm:$0xff]  }
 0x5fd   :  { %8073 = vmatprep.subr.bf16.mxu0 %v9146_v0  ;;  %8081 = vmatprep.subr.bf16.mxu1 %v9146_v0 }
 0x600   :  { %8074 = vmatpush3.bf16.msra.mxu0 %v8740_v26  ;;  %8082 = vmatpush3.bf16.msra.mxu1 %v8741_v27  ;;  %v8754_v26 = vld [vmem:[%s10629_s2 + $0x8] sm:$0xff]   ;;  %v8755_v27 = vld [vmem:[%s10629_s2 + $0x18] sm:$0xff]  }
 0x601   :  { %8087 = vmatprep.subr.bf16.mxu0 %v9146_v0  ;;  %8095 = vmatprep.subr.bf16.mxu1 %v9146_v0 }
 0x6b2   :  { %v1663_v30 = vpop.f32.mrf.mxu0  ;;  %v1722_v31 = vpop.f32.mrf.mxu1 }
 0x6b3   :  { %v1669_v32 = vadd.f32 %v7004_v28, %v1663_v30  ;;  %v1728_v33 = vadd.f32 %v7008_v29, %v1722_v31  ;;  %v8756_v28 = vld [vmem:[%s10629_s2] sm:$0xff]   ;;  %v8757_v29 = vld [vmem:[%s10629_s2 + $0x10] sm:$0xff]   ;;  %v8758_v31 = vld [vmem:[%s10629_s2 + $0x28] sm:$0xff]  }
 0x6b4   :  { %v8045_v34 = vpop.f32.mrf.mxu0  ;;  %v8053_v35 = vpop.f32.mrf.mxu1  ;;  %v2403_v30 = vld [vmem:[#allocation2 + $0x2] sm:$0x3] }
 0x6b5   :  { %v1847_v36 = vsub.f32 0.0, %v1669_v32  ;;  %v1852_v37 = vsub.f32 0.0, %v1728_v33  ;;  %v8759_v32 = vld [vmem:[%s10629_s2 + $0x38] sm:$0xff]   ;;  %v2404_v33 = vpack.c.bf16 %v2403_v30, %v2403_v30  ;;  %v8760_v34 = vld [vmem:[%s10629_s2 + $0x20] sm:$0xff]   ;;  %v8761_v35 = vld [vmem:[%s10629_s2 + $0x30] sm:$0xff]  }
 0x6b6   :  { %v1666_v38 = vpop.f32.mrf.mxu0  ;;  %v1725_v39 = vpop.f32.mrf.mxu1  ;;  %v7036_v30 = vld [vmem:[%s10628_s0 + $0x1e] sm:$0x3] }
 0x6b7   :  { %v1848_v40 = vmul.f32 1.442695, %v1847_v36  ;;  %v1853_v41 = vmul.f32 1.442695, %v1852_v37  ;;  %v8762_v36 = vld [vmem:[%s10629_s2 + $0x8] sm:$0xff]   ;;  %v8763_v37 = vld [vmem:[%s10629_s2 + $0x18] sm:$0xff]  }
 0x6b8   :  { %v8046_v42 = vpop.f32.mrf.mxu0  ;;  %v8054_v43 = vpop.f32.mrf.mxu1  ;;  %v8764_v38 = vld [vmem:[%s10629_s2] sm:$0xff]   ;;  %v8765_v39 = vld [vmem:[%s10629_s2 + $0x10] sm:$0xff]  }
 0x6b9   :  { %8986 = vpow2.f32 %v1848_v40  ;;  %v2668_v40 = vld [vmem:[#allocation2 + $0x4] sm:$0x3]  ;;  %v8767_v42 = vld [vmem:[%s10629_s2 + $0x38] sm:$0xff]  }
 0x6ba   :  { %8988 = vpow2.f32 %v1853_v41  ;;  %v1781_v45 = vpop.f32.mrf.mxu0  ;;  %v1840_v46 = vpop.f32.mrf.mxu1  ;;  %v8766_v41 = vld [vmem:[%s10629_s2 + $0x28] sm:$0xff]   ;;  %v2669_v43 = vpack.c.bf16 %v2668_v40, %v2668_v40 }
 0x6bb   :  { %v1846_v47 = vadd.f32 %v7024_v44, %v1840_v46  ;;  %v1787_v57 = vadd.f32 %v7016_v55, %v1781_v45  ;;  %v8768_v44 = vld [vmem:[%s10629_s2 + $0x20] sm:$0xff]   ;;  %v8769_v45 = vld [vmem:[%s10629_s2 + $0x30] sm:$0xff]   ;;  %v8770_v46 = vld [vmem:[%s10629_s2 + $0x8] sm:$0xff]  }
 0x6bc   :  { %v8061_v48 = vpop.f32.mrf.mxu0  ;;  %v8069_v49 = vpop.f32.mrf.mxu1  ;;  %v8777_v55 = vld [vmem:[%s10629_s2 + $0x30] sm:$0xff]  }
 0x6bd   :  { %v1858_v52 = vsub.f32 0.0, %v1846_v47  ;;  %v8771_v47 = vld [vmem:[%s10629_s2 + $0x18] sm:$0xff]   ;;  %v8772_v48 = vld [vmem:[%s10629_s2] sm:$0xff]   ;;  %v8773_v49 = vld [vmem:[%s10629_s2 + $0x10] sm:$0xff]  }
 0x6be   :  { %v1784_v50 = vpop.f32.mrf.mxu0  ;;  %v1843_v51 = vpop.f32.mrf.mxu1 }
 0x6bf   :  { %v1859_v56 = vmul.f32 1.442695, %v1858_v52  ;;  %v2933_v50 = vld [vmem:[#allocation2 + $0x6] sm:$0x3]  ;;  %v8774_v51 = vld [vmem:[%s10629_s2 + $0x28] sm:$0xff]   ;;  %v8775_v52 = vld [vmem:[%s10629_s2 + $0x38] sm:$0xff]  }
 0x6c0   :  { %v8062_v53 = vpop.f32.mrf.mxu0  ;;  %v8070_v54 = vpop.f32.mrf.mxu1 }
 0x6c1   :  { %8990 = vpow2.f32 %v1859_v56  ;;  %v2934_v53 = vpack.c.bf16 %v2933_v50, %v2933_v50  ;;  %v8776_v54 = vld [vmem:[%s10629_s2 + $0x20] sm:$0xff]   ;;  %v8778_v56 = vld [vmem:[%s10629_s2 + $0x8] sm:$0xff]  }
 0x6c2   :  { %8992 = vtanh.f32 %v1787_v57  ;;  %v8779_v57 = vld [vmem:[%s10629_s2 + $0x18] sm:$0xff]  }
 0x6c6   :  { %v8987_v58 = vpop.eup %8986 }
 0x6c7   :  { %v8989_v59 = vpop.eup %8988  ;;  %v1850_v60 = vadd.f32 1.0, %v8987_v58  ;;  %v8780_v58 = vld [vmem:[%s10629_s2] sm:$0xff]  }
 0x6c8   :  { %v1855_v61 = vadd.f32 1.0, %v8989_v59  ;;  %v8781_v59 = vld [vmem:[%s10629_s2 + $0x10] sm:$0xff]  }
 0x6c9   :  { %8994 = vrcp.f32 %v1850_v60  ;;  %v3198_v60 = vld [vmem:[#allocation2 + $0x8] sm:$0x3] }
 0x6ca   :  { %8996 = vrcp.f32 %v1855_v61  ;;  %v8782_v61 = vld [vmem:[%s10629_s2 + $0x28] sm:$0xff]  }
 0x6ce   :  { %v8991_v62 = vpop.eup %8990 }
 0x6cf   :  { %v8993_v63 = vpop.eup %8992  ;;  %v1861_v4 = vadd.f32 1.0, %v8991_v62  ;;  %v8783_v62 = vld [vmem:[%s10629_s2 + $0x38] sm:$0xff]  }
 0x6d1   :  { %8998 = vrcp.f32 %v1861_v4  ;;  %v8787_v4 = vld [vmem:[%s10629_s2 + $0x18] sm:$0xff]  }
 0x6d6   :  { %v8995_v1 = vpop.eup %8994 }
 0x6d7   :  { %v8997_v2 = vpop.eup %8996  ;;  %v1864_v3 = vmul.f32 %v8995_v1, %v8993_v63  ;;  %v3199_v63 = vpack.c.bf16 %v3198_v60, %v3198_v60  ;;  %v8784_v1 = vld [vmem:[%s10629_s2 + $0x20] sm:$0xff]  }
 0x6d8   :  { %v1863_v5 = vmul.f32 %v8997_v2, %v9572_v15  ;;  %v8745_v15 = vld [vmem:[%s10627_s1 + $0x30] sm:$0xff]  }
 0x6d9   :  { %v8785_v2 = vld [vmem:[%s10629_s2 + $0x30] sm:$0xff]  }
 0x6da   :  { %v9633_v6 = vadd.f32 %v1864_v3, %v1863_v5  ;;  %v8786_v3 = vld [vmem:[%s10629_s2 + $0x8] sm:$0xff]   ;;  %v8788_v5 = vld [vmem:[%s10629_s2] sm:$0xff]  }
 0x6dc   :  { %9000 = vtanh.f32 %v9633_v6 }
 0x6de   :  { %v8999_v7 = vpop.eup %8998 }
 0x6e9   :  { %v9001_v9 = vpop.eup %9000 }
 0x6ea   :  { %v1867_v10 = vmul.f32 %v9001_v9, %v8999_v7  ;;  %v8789_v7 = vld [vmem:[%s10629_s2 + $0x10] sm:$0xff]   ;;  %v3463_v9 = vld [vmem:[#allocation2 + $0xa] sm:$0x3] }
 0x6ec   :  { %1869 = vst.msk [vmem:[#allocation2 + $0xc] sm:$0x3] %vm290_vm1, %v1867_v10  ;;  %v1870_v13 = vpack.c.bf16 %v1867_v10, %v1867_v10  ;;  %v8790_v10 = vld [vmem:[%s10629_s2 + $0x28] sm:$0xff]  }
 0x6ee   :  { %8076 = vmatmul.mubr.msk.bf16.vlgmr.msra.gmra.mxu0 %vm44_vm2, %v1870_v13  ;;  %8084 = vmatmul.mubr.msk.bf16.vlgmr.msra.gmra.mxu1 %vm44_vm2, %v1870_v13 }
 0x6ef   :  { %8088 = vmatpush3.bf16.msra.mxu0 %v8742_v11  ;;  %8096 = vmatpush3.bf16.msra.mxu1 %v8743_v12  ;;  %v8791_v11 = vld [vmem:[%s10629_s2 + $0x38] sm:$0xff]   ;;  %v3464_v12 = vpack.c.bf16 %v3463_v9, %v3463_v9 }
 0x6f0   :  { %8089 = vmatprep.subr.bf16.mxu0 %v9146_v0  ;;  %8097 = vmatprep.subr.bf16.mxu1 %v9146_v0 }
 0x6f1   :  { %8091 = vmatprep.mubr.msk.bf16.mxu0 %vm9147_vm0, %v9146_v0  ;;  %8099 = vmatprep.mubr.msk.bf16.mxu1 %vm9147_vm0, %v9146_v0 }
 0x6f3   :  { %8090 = vmatpush3.bf16.msra.mxu0 %v8744_v14  ;;  %8098 = vmatpush3.bf16.msra.mxu1 %v8745_v15  ;;  %v8793_v14 = vld [vmem:[%s10629_s2 + $0x30] sm:$0xff]   ;;  %v8794_v15 = vld [vmem:[%s10629_s2 + $0x8] sm:$0xff]  }
 0x6f4   :  { %8103 = vmatprep.subr.bf16.mxu0 %v9146_v0  ;;  %8111 = vmatprep.subr.bf16.mxu1 %v9146_v0 }
 0x6f6   :  { %8092 = vmatmul.mubr.msk.bf16.vlgmr.msra.gmra.mxu0 %vm44_vm2, %v1870_v13  ;;  %8100 = vmatmul.mubr.msk.bf16.vlgmr.msra.gmra.mxu1 %vm44_vm2, %v1870_v13  ;;  %v8792_v13 = vld [vmem:[%s10629_s2 + $0x20] sm:$0xff]  }
 0x6f7   :  { %8104 = vmatpush3.bf16.msra.mxu0 %v8746_v16  ;;  %8112 = vmatpush3.bf16.msra.mxu1 %v8747_v17  ;;  %v8795_v16 = vld [vmem:[%s10629_s2 + $0x18] sm:$0xff]   ;;  %v8796_v17 = vld [vmem:[%s10629_s2] sm:$0xff]  }
 0x6f8   :  { %8105 = vmatprep.subr.bf16.mxu0 %v9146_v0  ;;  %8113 = vmatprep.subr.bf16.mxu1 %v9146_v0 }
 0x6f9   :  { %8107 = vmatprep.mubr.msk.bf16.mxu0 %vm9147_vm0, %v9146_v0  ;;  %8115 = vmatprep.mubr.msk.bf16.mxu1 %vm9147_vm0, %v9146_v0 }
 0x6fb   :  { %8106 = vmatpush3.bf16.msra.mxu0 %v8748_v18  ;;  %8114 = vmatpush3.bf16.msra.mxu1 %v8749_v19  ;;  %v8797_v18 = vld [vmem:[%s10629_s2 + $0x10] sm:$0xff]   ;;  %v3728_v19 = vld [vmem:[#allocation2 + $0xc] sm:$0x3] }
 0x6fc   :  { %8119 = vmatprep.subr.bf16.mxu0 %v9146_v0  ;;  %8127 = vmatprep.subr.bf16.mxu1 %v9146_v0 }
 0x6fe   :  { %8108 = vmatmul.mubr.msk.bf16.vlgmr.msra.gmra.mxu0 %vm44_vm2, %v2134_v23  ;;  %8116 = vmatmul.mubr.msk.bf16.vlgmr.msra.gmra.mxu1 %vm44_vm2, %v2134_v23 }
 0x6ff   :  { %8120 = vmatpush3.bf16.msra.mxu0 %v8750_v21  ;;  %8128 = vmatpush3.bf16.msra.mxu1 %v8751_v22  ;;  %v8799_v21 = vld [vmem:[%s10629_s2 + $0x38] sm:$0xff]   ;;  %v3729_v22 = vpack.c.bf16 %v3728_v19, %v3728_v19 }
 0x700   :  { %8121 = vmatprep.subr.bf16.mxu0 %v9146_v0  ;;  %8129 = vmatprep.subr.bf16.mxu1 %v9146_v0 }
 0x701   :  { %8123 = vmatprep.mubr.msk.bf16.mxu0 %vm9147_vm0, %v9146_v0  ;;  %8131 = vmatprep.mubr.msk.bf16.mxu1 %vm9147_vm0, %v9146_v0 }
 0x703   :  { %8122 = vmatpush3.bf16.msra.mxu0 %v8752_v24  ;;  %8130 = vmatpush3.bf16.msra.mxu1 %v8753_v25  ;;  %v8801_v24 = vld [vmem:[%s10629_s2 + $0x30] sm:$0xff]   ;;  %v8802_v25 = vld [vmem:[%s10629_s2 + $0x8] sm:$0xff]  }
 0x704   :  { %8135 = vmatprep.subr.bf16.mxu0 %v9146_v0  ;;  %8143 = vmatprep.subr.bf16.mxu1 %v9146_v0 }
 0x706   :  { %8124 = vmatmul.mubr.msk.bf16.vlgmr.msra.gmra.mxu0 %vm44_vm2, %v2134_v23  ;;  %8132 = vmatmul.mubr.msk.bf16.vlgmr.msra.gmra.mxu1 %vm44_vm2, %v2134_v23  ;;  %v8800_v23 = vld [vmem:[%s10629_s2 + $0x20] sm:$0xff]  }
 0x707   :  { %8136 = vmatpush3.bf16.msra.mxu0 %v8754_v26  ;;  %8144 = vmatpush3.bf16.msra.mxu1 %v8755_v27  ;;  %v8803_v26 = vld [vmem:[%s10629_s2 + $0x18] sm:$0xff]   ;;  %v8804_v27 = vld [vmem:[%s10629_s2] sm:$0xff]  }
 0x708   :  { %8137 = vmatprep.subr.bf16.mxu0 %v9146_v0  ;;  %8145 = vmatprep.subr.bf16.mxu1 %v9146_v0 }
 0x709   :  { %8139 = vmatprep.mubr.msk.bf16.mxu0 %vm9147_vm0, %v9146_v0  ;;  %8147 = vmatprep.mubr.msk.bf16.mxu1 %vm9147_vm0, %v9146_v0 }
 0x70b   :  { %8138 = vmatpush3.bf16.msra.mxu0 %v8756_v28  ;;  %8146 = vmatpush3.bf16.msra.mxu1 %v8757_v29  ;;  %v8805_v28 = vld [vmem:[%s10629_s2 + $0x10] sm:$0xff]   ;;  %v7032_v29 = vld [vmem:[%s10628_s0 + $0xe] sm:$0x3] }
 0x70c   :  { %8151 = vmatprep.subr.bf16.mxu0 %v9146_v0  ;;  %8159 = vmatprep.subr.bf16.mxu1 %v9146_v0 }
 0x70e   :  { %8140 = vmatmul.mubr.msk.bf16.vlgmr.msra.gmra.mxu0 %vm44_vm2, %v2404_v33  ;;  %8148 = vmatmul.mubr.msk.bf16.vlgmr.msra.gmra.mxu1 %vm44_vm2, %v2404_v33 }
 0x70f   :  { %8152 = vmatpush3.bf16.msra.mxu0 %v8758_v31  ;;  %8160 = vmatpush3.bf16.msra.mxu1 %v8759_v32 }
 0x710   :  { %8153 = vmatprep.subr.bf16.mxu0 %v9146_v0  ;;  %8161 = vmatprep.subr.bf16.mxu1 %v9146_v0 }
 0x711   :  { %8155 = vmatprep.mubr.msk.bf16.mxu0 %vm9147_vm0, %v9146_v0  ;;  %8163 = vmatprep.mubr.msk.bf16.mxu1 %vm9147_vm0, %v9146_v0 }
 0x713   :  { %8154 = vmatpush3.bf16.msra.mxu0 %v8760_v34  ;;  %8162 = vmatpush3.bf16.msra.mxu1 %v8761_v35 }
 0x714   :  { %8167 = vmatprep.subr.bf16.mxu0 %v9146_v0  ;;  %8175 = vmatprep.subr.bf16.mxu1 %v9146_v0 }
 0x716   :  { %8156 = vmatmul.mubr.msk.bf16.vlgmr.msra.gmra.mxu0 %vm44_vm2, %v2404_v33  ;;  %8164 = vmatmul.mubr.msk.bf16.vlgmr.msra.gmra.mxu1 %vm44_vm2, %v2404_v33 }
 0x717   :  { %8168 = vmatpush3.bf16.msra.mxu0 %v8762_v36  ;;  %8176 = vmatpush3.bf16.msra.mxu1 %v8763_v37 }
 0x718   :  { %8169 = vmatprep.subr.bf16.mxu0 %v9146_v0  ;;  %8177 = vmatprep.subr.bf16.mxu1 %v9146_v0 }
 0x719   :  { %8171 = vmatprep.mubr.msk.bf16.mxu0 %vm9147_vm0, %v9146_v0  ;;  %8179 = vmatprep.mubr.msk.bf16.mxu1 %vm9147_vm0, %v9146_v0 }
 0x71b   :  { %8170 = vmatpush3.bf16.msra.mxu0 %v8764_v38  ;;  %8178 = vmatpush3.bf16.msra.mxu1 %v8765_v39 }
 0x71c   :  { %8183 = vmatprep.subr.bf16.mxu0 %v9146_v0  ;;  %8191 = vmatprep.subr.bf16.mxu1 %v9146_v0 }
 0x71e   :  { %8172 = vmatmul.mubr.msk.bf16.vlgmr.msra.gmra.mxu0 %vm44_vm2, %v2669_v43  ;;  %8180 = vmatmul.mubr.msk.bf16.vlgmr.msra.gmra.mxu1 %vm44_vm2, %v2669_v43 }
 0x71f   :  { %8184 = vmatpush3.bf16.msra.mxu0 %v8766_v41  ;;  %8192 = vmatpush3.bf16.msra.mxu1 %v8767_v42 }
 0x720   :  { %8185 = vmatprep.subr.bf16.mxu0 %v9146_v0  ;;  %8193 = vmatprep.subr.bf16.mxu1 %v9146_v0 }
 0x721   :  { %8187 = vmatprep.mubr.msk.bf16.mxu0 %vm9147_vm0, %v9146_v0  ;;  %8195 = vmatprep.mubr.msk.bf16.mxu1 %vm9147_vm0, %v9146_v0 }
 0x723   :  { %8186 = vmatpush3.bf16.msra.mxu0 %v8768_v44  ;;  %8194 = vmatpush3.bf16.msra.mxu1 %v8769_v45  ;;  %v7052_v45 = vld [vmem:[%s10628_s0 + $0x3e] sm:$0x3] }
 0x724   :  { %8199 = vmatprep.subr.bf16.mxu0 %v9146_v0  ;;  %8207 = vmatprep.subr.bf16.mxu1 %v9146_v0 }
 0x726   :  { %8188 = vmatmul.mubr.msk.bf16.vlgmr.msra.gmra.mxu0 %vm44_vm2, %v2669_v43  ;;  %8196 = vmatmul.mubr.msk.bf16.vlgmr.msra.gmra.mxu1 %vm44_vm2, %v2669_v43 }
 0x727   :  { %8200 = vmatpush3.bf16.msra.mxu0 %v8770_v46  ;;  %8208 = vmatpush3.bf16.msra.mxu1 %v8771_v47 }
 0x728   :  { %8201 = vmatprep.subr.bf16.mxu0 %v9146_v0  ;;  %8209 = vmatprep.subr.bf16.mxu1 %v9146_v0 }
 0x729   :  { %8203 = vmatprep.mubr.msk.bf16.mxu0 %vm9147_vm0, %v9146_v0  ;;  %8211 = vmatprep.mubr.msk.bf16.mxu1 %vm9147_vm0, %v9146_v0 }
 0x72b   :  { %8202 = vmatpush3.bf16.msra.mxu0 %v8772_v48  ;;  %8210 = vmatpush3.bf16.msra.mxu1 %v8773_v49 }
 0x72c   :  { %8215 = vmatprep.subr.bf16.mxu0 %v9146_v0  ;;  %8223 = vmatprep.subr.bf16.mxu1 %v9146_v0 }
 0x72e   :  { %8204 = vmatmul.mubr.msk.bf16.vlgmr.msra.gmra.mxu0 %vm44_vm2, %v2934_v53  ;;  %8212 = vmatmul.mubr.msk.bf16.vlgmr.msra.gmra.mxu1 %vm44_vm2, %v2934_v53 }
 0x72f   :  { %8216 = vmatpush3.bf16.msra.mxu0 %v8774_v51  ;;  %8224 = vmatpush3.bf16.msra.mxu1 %v8775_v52 }
 0x730   :  { %8217 = vmatprep.subr.bf16.mxu0 %v9146_v0  ;;  %8225 = vmatprep.subr.bf16.mxu1 %v9146_v0 }
 0x731   :  { %8219 = vmatprep.mubr.msk.bf16.mxu0 %vm9147_vm0, %v9146_v0  ;;  %8227 = vmatprep.mubr.msk.bf16.mxu1 %vm9147_vm0, %v9146_v0 }
 0x733   :  { %8218 = vmatpush3.bf16.msra.mxu0 %v8776_v54  ;;  %8226 = vmatpush3.bf16.msra.mxu1 %v8777_v55 }
 0x734   :  { %8231 = vmatprep.subr.bf16.mxu0 %v9146_v0  ;;  %8239 = vmatprep.subr.bf16.mxu1 %v9146_v0 }
 0x736   :  { %8220 = vmatmul.mubr.msk.bf16.vlgmr.msra.gmra.mxu0 %vm44_vm2, %v2934_v53  ;;  %8228 = vmatmul.mubr.msk.bf16.vlgmr.msra.gmra.mxu1 %vm44_vm2, %v2934_v53 }
 0x737   :  { %8232 = vmatpush3.bf16.msra.mxu0 %v8778_v56  ;;  %8240 = vmatpush3.bf16.msra.mxu1 %v8779_v57  ;;  %v10001_v56 = vld [vmem:[%s10631_s4] ss:$0 sm:$0xff]  ;;  %v10006_v57 = vld [vmem:[%s10631_s4 + $0x1] ss:$0 sm:$0xff] }
 0x738   :  { %8233 = vmatprep.subr.bf16.mxu0 %v9146_v0  ;;  %8241 = vmatprep.subr.bf16.mxu1 %v9146_v0 }
 0x739   :  { %8235 = vmatprep.mubr.msk.bf16.mxu0 %vm9147_vm0, %v9146_v0  ;;  %8243 = vmatprep.mubr.msk.bf16.mxu1 %vm9147_vm0, %v9146_v0 }
 0x73b   :  { %8234 = vmatpush3.bf16.msra.mxu0 %v8780_v58  ;;  %8242 = vmatpush3.bf16.msra.mxu1 %v8781_v59  ;;  %v7044_v58 = vld [vmem:[%s10628_s0 + $0x2e] sm:$0x3] }
 0x73c   :  { %8247 = vmatprep.subr.bf16.mxu0 %v9146_v0  ;;  %8255 = vmatprep.subr.bf16.mxu1 %v9146_v0 }
 0x73e   :  { %8236 = vmatmul.mubr.msk.bf16.vlgmr.msra.gmra.mxu0 %vm44_vm2, %v3199_v63  ;;  %8244 = vmatmul.mubr.msk.bf16.vlgmr.msra.gmra.mxu1 %vm44_vm2, %v3199_v63 }
 0x73f   :  { %8248 = vmatpush3.bf16.msra.mxu0 %v8782_v61  ;;  %8256 = vmatpush3.bf16.msra.mxu1 %v8783_v62 }
 0x740   :  { %8249 = vmatprep.subr.bf16.mxu0 %v9146_v0  ;;  %8257 = vmatprep.subr.bf16.mxu1 %v9146_v0 }
 0x741   :  { %8251 = vmatprep.mubr.msk.bf16.mxu0 %vm9147_vm0, %v9146_v0  ;;  %8259 = vmatprep.mubr.msk.bf16.mxu1 %vm9147_vm0, %v9146_v0 }
 0x743   :  { %8250 = vmatpush3.bf16.msra.mxu0 %v8784_v1  ;;  %8258 = vmatpush3.bf16.msra.mxu1 %v8785_v2 }
 0x744   :  { %8263 = vmatprep.subr.bf16.mxu0 %v9146_v0  ;;  %8271 = vmatprep.subr.bf16.mxu1 %v9146_v0 }
 0x746   :  { %8252 = vmatmul.mubr.msk.bf16.vlgmr.msra.gmra.mxu0 %vm44_vm2, %v3199_v63  ;;  %8260 = vmatmul.mubr.msk.bf16.vlgmr.msra.gmra.mxu1 %vm44_vm2, %v3199_v63 }
 0x747   :  { %8264 = vmatpush3.bf16.msra.mxu0 %v8786_v3  ;;  %8272 = vmatpush3.bf16.msra.mxu1 %v8787_v4 }
 0x748   :  { %8265 = vmatprep.subr.bf16.mxu0 %v9146_v0  ;;  %8273 = vmatprep.subr.bf16.mxu1 %v9146_v0 }
 0x749   :  { %8267 = vmatprep.mubr.msk.bf16.mxu0 %vm9147_vm0, %v9146_v0  ;;  %8275 = vmatprep.mubr.msk.bf16.mxu1 %vm9147_vm0, %v9146_v0 }
 0x74b   :  { %8266 = vmatpush3.bf16.msra.mxu0 %v8788_v5  ;;  %8274 = vmatpush3.bf16.msra.mxu1 %v8789_v7 }
 0x74c   :  { %8279 = vmatprep.subr.bf16.mxu0 %v9146_v0  ;;  %8287 = vmatprep.subr.bf16.mxu1 %v9146_v0 }
 0x74e   :  { %8268 = vmatmul.mubr.msk.bf16.vlgmr.msra.gmra.mxu0 %vm44_vm2, %v3464_v12  ;;  %8276 = vmatmul.mubr.msk.bf16.vlgmr.msra.gmra.mxu1 %vm44_vm2, %v3464_v12 }
 0x74f   :  { %8280 = vmatpush3.bf16.msra.mxu0 %v8790_v10  ;;  %8288 = vmatpush3.bf16.msra.mxu1 %v8791_v11 }
 0x750   :  { %8281 = vmatprep.subr.bf16.mxu0 %v9146_v0  ;;  %8289 = vmatprep.subr.bf16.mxu1 %v9146_v0 }
 0x751   :  { %8283 = vmatprep.mubr.msk.bf16.mxu0 %vm9147_vm0, %v9146_v0  ;;  %8291 = vmatprep.mubr.msk.bf16.mxu1 %vm9147_vm0, %v9146_v0 }
 0x753   :  { %8282 = vmatpush3.bf16.msra.mxu0 %v8792_v13  ;;  %8290 = vmatpush3.bf16.msra.mxu1 %v8793_v14  ;;  %v10018_v14 = vld [vmem:[%s10631_s4 + $0x2] ss:$0 sm:$0xff] }
 0x754   :  { %8295 = vmatprep.subr.bf16.mxu0 %v9146_v0  ;;  %8303 = vmatprep.subr.bf16.mxu1 %v9146_v0 }
 0x756   :  { %8284 = vmatmul.mubr.msk.bf16.vlgmr.msra.gmra.mxu0 %vm44_vm2, %v3464_v12  ;;  %8292 = vmatmul.mubr.msk.bf16.vlgmr.msra.gmra.mxu1 %vm44_vm2, %v3464_v12 }
 0x757   :  { %8296 = vmatpush3.bf16.msra.mxu0 %v8794_v15  ;;  %8304 = vmatpush3.bf16.msra.mxu1 %v8795_v16  ;;  %v10023_v15 = vld [vmem:[%s10631_s4 + $0x3] ss:$0 sm:$0xff] }
 0x758   :  { %8297 = vmatprep.subr.bf16.mxu0 %v9146_v0  ;;  %8305 = vmatprep.subr.bf16.mxu1 %v9146_v0 }
 0x759   :  { %8299 = vmatprep.mubr.msk.bf16.mxu0 %vm9147_vm0, %v9146_v0  ;;  %8307 = vmatprep.mubr.msk.bf16.mxu1 %vm9147_vm0, %v9146_v0 }
 0x75b   :  { %8298 = vmatpush3.bf16.msra.mxu0 %v8796_v17  ;;  %8306 = vmatpush3.bf16.msra.mxu1 %v8797_v18 }
 0x75c   :  { %8311 = vmatprep.subr.bf16.mxu0 %v9146_v0  ;;  %8319 = vmatprep.subr.bf16.mxu1 %v9146_v0 }
 0x75e   :  { %8300 = vmatmul.mubr.msk.bf16.vlgmr.msra.gmra.mxu0 %vm44_vm2, %v3729_v22  ;;  %8308 = vmatmul.mubr.msk.bf16.vlgmr.msra.gmra.mxu1 %vm44_vm2, %v3729_v22 }
 0x75f   :  { %8312 = vmatpush3.bf16.msra.mxu0 %v8798_v20  ;;  %8320 = vmatpush3.bf16.msra.mxu1 %v8799_v21 }
 0x760   :  { %8313 = vmatprep.subr.bf16.mxu0 %v9146_v0  ;;  %8321 = vmatprep.subr.bf16.mxu1 %v9146_v0 }
 0x761   :  { %8315 = vmatprep.mubr.msk.bf16.mxu0 %vm9147_vm0, %v9146_v0  ;;  %8323 = vmatprep.mubr.msk.bf16.mxu1 %vm9147_vm0, %v9146_v0 }
 0x763   :  { %8314 = vmatpush3.bf16.msra.mxu0 %v8800_v23  ;;  %8322 = vmatpush3.bf16.msra.mxu1 %v8801_v24 }
 0x764   :  { %8327 = vmatprep.subr.bf16.mxu0 %v9146_v0  ;;  %8335 = vmatprep.subr.bf16.mxu1 %v9146_v0 }
 0x766   :  { %8316 = vmatmul.mubr.msk.bf16.vlgmr.msra.gmra.mxu0 %vm44_vm2, %v3729_v22  ;;  %8324 = vmatmul.mubr.msk.bf16.vlgmr.msra.gmra.mxu1 %vm44_vm2, %v3729_v22 }
 0x767   :  { %8331 = vmatprep.mubr.msk.bf16.mxu0 %vm9147_vm0, %v9146_v0  ;;  %8339 = vmatprep.mubr.msk.bf16.mxu1 %vm9147_vm0, %v9146_v0 }
 0x768   :  { %8328 = vmatpush3.bf16.msra.mxu0 %v8802_v25  ;;  %8336 = vmatpush3.bf16.msra.mxu1 %v8803_v26 }
 0x769   :  { %8329 = vmatprep.subr.bf16.mxu0 %v9146_v0  ;;  %8337 = vmatprep.subr.bf16.mxu1 %v9146_v0 }
 0x76c   :  { %8330 = vmatpush3.bf16.msra.mxu0 %v8804_v27  ;;  %8338 = vmatpush3.bf16.msra.mxu1 %v8805_v28 }
 0x76d   :  { %8343 = vmatprep.subr.bf16.mxu0 %v9146_v0  ;;  %8351 = vmatprep.subr.bf16.mxu1 %v9146_v0 }
 0x7ae   :  { %v1926_v31 = vpop.f32.mrf.mxu0  ;;  %v1985_v32 = vpop.f32.mrf.mxu1 }
 0x7af   :  { %v1932_v33 = vadd.f32 %v7032_v29, %v1926_v31  ;;  %v1991_v34 = vadd.f32 %v7036_v30, %v1985_v32 }
 0x7b0   :  { %v8077_v35 = vpop.f32.mrf.mxu0  ;;  %v8085_v36 = vpop.f32.mrf.mxu1 }
 0x7b1   :  { %v2110_v37 = vsub.f32 0.0, %v1932_v33  ;;  %v2115_v38 = vsub.f32 0.0, %v1991_v34 }
 0x7b2   :  { %v1929_v39 = vpop.f32.mrf.mxu0  ;;  %v1988_v40 = vpop.f32.mrf.mxu1 }
 0x7b3   :  { %v2111_v41 = vmul.f32 1.442695, %v2110_v37  ;;  %v2116_v42 = vmul.f32 1.442695, %v2115_v38 }
 0x7b4   :  { %v8078_v43 = vpop.f32.mrf.mxu0  ;;  %v8086_v44 = vpop.f32.mrf.mxu1 }
 0x7b5   :  { %9002 = vpow2.f32 %v2111_v41 }
 0x7b6   :  { %9004 = vpow2.f32 %v2116_v42  ;;  %v2044_v46 = vpop.f32.mrf.mxu0  ;;  %v2103_v47 = vpop.f32.mrf.mxu1 }
 0x7b7   :  { %v2109_v48 = vadd.f32 %v7052_v45, %v2103_v47  ;;  %v2050_v1 = vadd.f32 %v7044_v58, %v2044_v46 }
 0x7b8   :  { %v8093_v49 = vpop.f32.mrf.mxu0  ;;  %v8101_v50 = vpop.f32.mrf.mxu1 }
 0x7b9   :  { %v2121_v53 = vsub.f32 0.0, %v2109_v48 }
 0x7ba   :  { %v2047_v51 = vpop.f32.mrf.mxu0  ;;  %v2106_v52 = vpop.f32.mrf.mxu1 }
 0x7bb   :  { %v2122_v61 = vmul.f32 1.442695, %v2121_v53 }
 0x7bc   :  { %v8094_v54 = vpop.f32.mrf.mxu0  ;;  %v8102_v55 = vpop.f32.mrf.mxu1 }
 0x7bd   :  { %9006 = vpow2.f32 %v2122_v61 }
 0x7be   :  { %v2195_v59 = vpop.f32.mrf.mxu0  ;;  %v2261_v60 = vpop.f32.mrf.mxu1  ;;  %9008 = vtanh.f32 %v2050_v1 }
 0x7bf   :  { %v2196_v62 = vadd.f32 %v10001_v56, %v2195_v59  ;;  %v2262_v63 = vadd.f32 %v10006_v57, %v2261_v60 }
 0x7c0   :  { %v8109_v2 = vpop.f32.mrf.mxu0  ;;  %v8117_v3 = vpop.f32.mrf.mxu1 }
 0x7c1   :  { %2201 = vst.msk [vmem:[#allocation3] sm:$0x3] %vm290_vm1, %v2196_v62  ;;  %2268 = vst.msk [vmem:[#allocation3 + $0x10] sm:$0x3] %vm290_vm1, %v2262_v63 }
 0x7c2   :  { %v9003_v4 = vpop.eup %9002  ;;  %v2198_v5 = vpop.f32.mrf.mxu0 }
 0x7c3   :  { %v2264_v7 = vpop.f32.mrf.mxu1  ;;  %v9005_v9 = vpop.eup %9004  ;;  %v2113_v10 = vadd.f32 1.0, %v9003_v4 }
 0x7c4   :  { %v2118_v11 = vadd.f32 1.0, %v9005_v9  ;;  %v8110_v12 = vpop.f32.mrf.mxu0 }
 0x7c5   :  { %v8118_v13 = vpop.f32.mrf.mxu1  ;;  %9010 = vrcp.f32 %v2113_v10 }
 0x7c6   :  { %9012 = vrcp.f32 %v2118_v11  ;;  %v2328_v16 = vpop.f32.mrf.mxu0 }
 0x7c7   :  { %v2395_v17 = vpop.f32.mrf.mxu1  ;;  %v2329_v18 = vadd.f32 %v10018_v14, %v2328_v16 }
 0x7c8   :  { %v2396_v19 = vadd.f32 %v10023_v15, %v2395_v17  ;;  %v8125_v20 = vpop.f32.mrf.mxu0 }
 0x7c9   :  { %v8133_v21 = vpop.f32.mrf.mxu1  ;;  %2335 = vst.msk [vmem:[#allocation3 + $0x20] sm:$0x3] %vm290_vm1, %v2329_v18 }
 0x7ca   :  { %2402 = vst.msk [vmem:[#allocation3 + $0x30] sm:$0x3] %vm290_vm1, %v2396_v19  ;;  %v2331_v22 = vpop.f32.mrf.mxu0  ;;  %v9007_v30 = vpop.eup %9006 }
 0x7cb   :  { %v2398_v23 = vpop.f32.mrf.mxu1  ;;  %v9009_v33 = vpop.eup %9008  ;;  %v2124_v39 = vadd.f32 1.0, %v9007_v30 }
 0x7cc   :  { %v8126_v24 = vpop.f32.mrf.mxu0 }
 0x7cd   :  { %v8134_v25 = vpop.f32.mrf.mxu1  ;;  %9014 = vrcp.f32 %v2124_v39  ;;  %v8806_v24 = vld [vmem:[%s10629_s2 + $0x28] sm:$0xff]  }
 0x7ce   :  { %v2465_v26 = vpop.f32.mrf.mxu0  ;;  %v8807_v25 = vld [vmem:[%s10629_s2 + $0x38] sm:$0xff]   ;;  %v8810_v39 = vld [vmem:[%s10630_s3 + $0x8] sm:$0xff]  }
 0x7cf   :  { %v2530_v27 = vpop.f32.mrf.mxu1  ;;  %v2466_v28 = vadd.f32 %v10001_v56, %v2465_v26 }
 0x7d0   :  { %v2531_v29 = vadd.f32 %v10006_v57, %v2530_v27  ;;  %v8141_v31 = vpop.f32.mrf.mxu0 }
 0x7d1   :  { %v8149_v32 = vpop.f32.mrf.mxu1  ;;  %2472 = vst.msk [vmem:[#allocation3 + $0x2] sm:$0x3] %vm290_vm1, %v2466_v28  ;;  %v8808_v31 = vld [vmem:[%s10629_s2 + $0x20] sm:$0xff]  }
 0x7d2   :  { %2537 = vst.msk [vmem:[#allocation3 + $0x12] sm:$0x3] %vm290_vm1, %v2531_v29  ;;  %v9011_v34 = vpop.eup %9010  ;;  %v2468_v35 = vpop.f32.mrf.mxu0  ;;  %v8809_v32 = vld [vmem:[%s10629_s2 + $0x30] sm:$0xff]  }
 0x7d3   :  { %v2533_v36 = vpop.f32.mrf.mxu1  ;;  %v9013_v37 = vpop.eup %9012  ;;  %v2127_v38 = vmul.f32 %v9011_v34, %v9009_v33 }
 0x7d4   :  { %v2126_v40 = vmul.f32 %v9013_v37, %v9633_v6  ;;  %v8142_v41 = vpop.f32.mrf.mxu0 }
 0x7d5   :  { %v8150_v42 = vpop.f32.mrf.mxu1 }
 0x7d6   :  { %v2128_v43 = vadd.f32 %v2127_v38, %v2126_v40  ;;  %v2595_v44 = vpop.f32.mrf.mxu0  ;;  %v8811_v40 = vld [vmem:[%s10630_s3 + $0x18] sm:$0xff]  }
 0x7d7   :  { %v2660_v45 = vpop.f32.mrf.mxu1  ;;  %v2596_v46 = vadd.f32 %v10018_v14, %v2595_v44 }
 0x7d8   :  { %v2661_v47 = vadd.f32 %v10023_v15, %v2660_v45  ;;  %9016 = vtanh.f32 %v2128_v43  ;;  %v8157_v48 = vpop.f32.mrf.mxu0  ;;  %v8812_v45 = vld [vmem:[%s10630_s3] sm:$0xff]  }
 0x7d9   :  { %v8165_v49 = vpop.f32.mrf.mxu1  ;;  %2602 = vst.msk [vmem:[#allocation3 + $0x22] sm:$0x3] %vm290_vm1, %v2596_v46  ;;  %v8813_v46 = vld [vmem:[%s10630_s3 + $0x10] sm:$0xff]  }
 0x7da   :  { %2667 = vst.msk [vmem:[#allocation3 + $0x32] sm:$0x3] %vm290_vm1, %v2661_v47  ;;  %v2598_v50 = vpop.f32.mrf.mxu0  ;;  %v9015_v63 = vpop.eup %9014 }
 0x7db   :  { %v2663_v51 = vpop.f32.mrf.mxu1 }
 0x7dc   :  { %v8158_v6 = vpop.f32.mrf.mxu0 }
 0x7dd   :  { %v8166_v52 = vpop.f32.mrf.mxu1 }
 0x7de   :  { %v2730_v53 = vpop.f32.mrf.mxu0  ;;  %v8814_v52 = vld [vmem:[%s10630_s3 + $0x28] sm:$0xff]  }
 0x7df   :  { %v2795_v54 = vpop.f32.mrf.mxu1  ;;  %v2731_v55 = vadd.f32 %v10001_v56, %v2730_v53  ;;  %v8815_v53 = vld [vmem:[%s10630_s3 + $0x38] sm:$0xff]  }
 0x7e0   :  { %v2796_v58 = vadd.f32 %v10006_v57, %v2795_v54  ;;  %v8173_v59 = vpop.f32.mrf.mxu0 }
 0x7e1   :  { %v8181_v60 = vpop.f32.mrf.mxu1  ;;  %2737 = vst.msk [vmem:[#allocation3 + $0x4] sm:$0x3] %vm290_vm1, %v2731_v55 }
 0x7e2   :  { %2802 = vst.msk [vmem:[#allocation3 + $0x14] sm:$0x3] %vm290_vm1, %v2796_v58  ;;  %v2733_v61 = vpop.f32.mrf.mxu0  ;;  %v8816_v60 = vld [vmem:[%s10630_s3 + $0x20] sm:$0xff]  }
 0x7e3   :  { %v2798_v62 = vpop.f32.mrf.mxu1  ;;  %v8817_v61 = vld [vmem:[%s10630_s3 + $0x30] sm:$0xff]  }
 0x7e4   :  { %v8174_v1 = vpop.f32.mrf.mxu0 }
 0x7e5   :  { %v8182_v2 = vpop.f32.mrf.mxu1  ;;  %v9017_v3 = vpop.eup %9016 }
 0x7e6   :  { %v2130_v4 = vmul.f32 %v9017_v3, %v9015_v63  ;;  %v2860_v5 = vpop.f32.mrf.mxu0 }
 0x7e7   :  { %v2925_v7 = vpop.f32.mrf.mxu1  ;;  %v2861_v9 = vadd.f32 %v10018_v14, %v2860_v5 }
 0x7e8   :  { %v2926_v10 = vadd.f32 %v10023_v15, %v2925_v7  ;;  %2132 = vst.msk [vmem:[#allocation2 + $0xe] sm:$0x3] %vm290_vm1, %v2130_v4  ;;  %v8189_v11 = vpop.f32.mrf.mxu0 }
 0x7e9   :  { %v8197_v12 = vpop.f32.mrf.mxu1  ;;  %2867 = vst.msk [vmem:[#allocation3 + $0x24] sm:$0x3] %vm290_vm1, %v2861_v9 }
 0x7ea   :  { %2932 = vst.msk [vmem:[#allocation3 + $0x34] sm:$0x3] %vm290_vm1, %v2926_v10  ;;  %v2863_v13 = vpop.f32.mrf.mxu0 }
 0x7eb   :  { %v2928_v16 = vpop.f32.mrf.mxu1 }
 0x7ec   :  { %v8190_v17 = vpop.f32.mrf.mxu0 }
 0x7ed   :  { %v8198_v18 = vpop.f32.mrf.mxu1 }
 0x7ee   :  { %v2995_v19 = vpop.f32.mrf.mxu0 }
 0x7ef   :  { %v3060_v20 = vpop.f32.mrf.mxu1  ;;  %v2996_v21 = vadd.f32 %v10001_v56, %v2995_v19  ;;  %v3993_v23 = vld [vmem:[#allocation2 + $0xe] sm:$0x3] }
 0x7f0   :  { %v3061_v22 = vadd.f32 %v10006_v57, %v3060_v20  ;;  %v8205_v26 = vpop.f32.mrf.mxu0  ;;  %v3994_v28 = vpack.c.bf16 %v3993_v23, %v3993_v23 }
 0x7f1   :  { %v8213_v27 = vpop.f32.mrf.mxu1  ;;  %3002 = vst.msk [vmem:[#allocation3 + $0x6] sm:$0x3] %vm290_vm1, %v2996_v21 }
 0x7f2   :  { %3067 = vst.msk [vmem:[#allocation3 + $0x16] sm:$0x3] %vm290_vm1, %v3061_v22  ;;  %8332 = vmatmul.mubr.msk.bf16.vlgmr.msra.gmra.mxu0 %vm44_vm2, %v3994_v28  ;;  %8340 = vmatmul.mubr.msk.bf16.vlgmr.msra.gmra.mxu1 %vm44_vm2, %v3994_v28  ;;  %v2998_v29 = vpop.f32.mrf.mxu0 }
 0x7f3   :  { %v3063_v30 = vpop.f32.mrf.mxu1  ;;  %8344 = vmatpush3.bf16.msra.mxu0 %v8806_v24  ;;  %8352 = vmatpush3.bf16.msra.mxu1 %v8807_v25 }
 0x7f4   :  { %v8206_v33 = vpop.f32.mrf.mxu0  ;;  %8345 = vmatprep.subr.bf16.mxu0 %v9146_v0  ;;  %8353 = vmatprep.subr.bf16.mxu1 %v9146_v0 }
 0x7f5   :  { %v8214_v34 = vpop.f32.mrf.mxu1  ;;  %8347 = vmatprep.mubr.msk.bf16.mxu0 %vm9147_vm0, %v9146_v0  ;;  %8355 = vmatprep.mubr.msk.bf16.mxu1 %vm9147_vm0, %v9146_v0 }
 0x7f6   :  { %v3125_v35 = vpop.f32.mrf.mxu0 }
 0x7f7   :  { %v3190_v36 = vpop.f32.mrf.mxu1  ;;  %8346 = vmatpush3.bf16.msra.mxu0 %v8808_v31  ;;  %8354 = vmatpush3.bf16.msra.mxu1 %v8809_v32  ;;  %v3126_v37 = vadd.f32 %v10018_v14, %v3125_v35 }
 0x7f8   :  { %v3191_v38 = vadd.f32 %v10023_v15, %v3190_v36  ;;  %v8221_v41 = vpop.f32.mrf.mxu0  ;;  %8359 = vmatprep.subr.bf16.mxu0 %v9146_v0  ;;  %8367 = vmatprep.subr.bf16.mxu1 %v9146_v0 }
 0x7f9   :  { %v8229_v42 = vpop.f32.mrf.mxu1  ;;  %3132 = vst.msk [vmem:[#allocation3 + $0x26] sm:$0x3] %vm290_vm1, %v3126_v37 }
 0x7fa   :  { %3197 = vst.msk [vmem:[#allocation3 + $0x36] sm:$0x3] %vm290_vm1, %v3191_v38  ;;  %8348 = vmatmul.mubr.msk.bf16.vlgmr.msra.gmra.mxu0 %vm44_vm2, %v3994_v28  ;;  %8356 = vmatmul.mubr.msk.bf16.vlgmr.msra.gmra.mxu1 %vm44_vm2, %v3994_v28  ;;  %v3128_v43 = vpop.f32.mrf.mxu0 }
 0x7fb   :  { %v3193_v44 = vpop.f32.mrf.mxu1  ;;  %8360 = vmatpush3.bf16.msra.mxu0 %v8810_v39  ;;  %8368 = vmatpush3.bf16.msra.mxu1 %v8811_v40 }
 0x7fc   :  { %v8222_v47 = vpop.f32.mrf.mxu0  ;;  %8361 = vmatprep.subr.bf16.mxu0 %v9146_v0  ;;  %8369 = vmatprep.subr.bf16.mxu1 %v9146_v0 }
 0x7fd   :  { %v8230_v48 = vpop.f32.mrf.mxu1  ;;  %8363 = vmatprep.mubr.msk.bf16.mxu0 %vm9147_vm0, %v9146_v0  ;;  %8371 = vmatprep.mubr.msk.bf16.mxu1 %vm9147_vm0, %v9146_v0 }
 0x7fe   :  { %v3260_v49 = vpop.f32.mrf.mxu0 }
 0x7ff   :  { %v3325_v50 = vpop.f32.mrf.mxu1  ;;  %8362 = vmatpush3.bf16.msra.mxu0 %v8812_v45  ;;  %8370 = vmatpush3.bf16.msra.mxu1 %v8813_v46  ;;  %v3261_v51 = vadd.f32 %v10001_v56, %v3260_v49 }
 0x800   :  { %v3326_v6 = vadd.f32 %v10006_v57, %v3325_v50  ;;  %v8237_v54 = vpop.f32.mrf.mxu0  ;;  %8375 = vmatprep.subr.bf16.mxu0 %v9146_v0  ;;  %8383 = vmatprep.subr.bf16.mxu1 %v9146_v0 }
 0x801   :  { %v8245_v55 = vpop.f32.mrf.mxu1  ;;  %3267 = vst.msk [vmem:[#allocation3 + $0x8] sm:$0x3] %vm290_vm1, %v3261_v51  ;;  %v8821_v54 = vld [vmem:[%s10630_s3] sm:$0xff]  }
 0x802   :  { %3332 = vst.msk [vmem:[#allocation3 + $0x18] sm:$0x3] %vm290_vm1, %v3326_v6  ;;  %8364 = vmatmul.mubr.bf16.vlgmr.msra.gmra.mxu0 %v9148_v8  ;;  %8372 = vmatmul.mubr.bf16.vlgmr.msra.gmra.mxu1 %v9148_v8  ;;  %v3263_v58 = vpop.f32.mrf.mxu0  ;;  %v8818_v55 = vld [vmem:[%s10632_s5 + $0x8] sm:$0xff]  }
 0x803   :  { %v3328_v59 = vpop.f32.mrf.mxu1  ;;  %8376 = vmatpush3.bf16.msra.mxu0 %v8814_v52  ;;  %8384 = vmatpush3.bf16.msra.mxu1 %v8815_v53  ;;  %v8819_v53 = vld [vmem:[%s10630_s3 + $0x8] sm:$0xff]   ;;  %v8820_v58 = vld [vmem:[%s10632_s5] sm:$0xff]  }
 0x804   :  { %v8238_v62 = vpop.f32.mrf.mxu0  ;;  %8377 = vmatprep.subr.bf16.mxu0 %v9146_v0  ;;  %8385 = vmatprep.subr.bf16.mxu1 %v9146_v0 }
 0x805   :  { %v8246_v63 = vpop.f32.mrf.mxu1  ;;  %8379 = vmatprep.mubr.msk.bf16.mxu0 %vm9147_vm0, %v9146_v0  ;;  %8387 = vmatprep.mubr.msk.bf16.mxu1 %vm9147_vm0, %v9146_v0 }
 0x806   :  { %v3390_v1 = vpop.f32.mrf.mxu0 }
 0x807   :  { %v3455_v2 = vpop.f32.mrf.mxu1  ;;  %v3391_v3 = vadd.f32 %v10018_v14, %v3390_v1  ;;  %8378 = vmatpush3.bf16.msra.mxu0 %v8816_v60  ;;  %8386 = vmatpush3.bf16.msra.mxu1 %v8817_v61 }
 0x808   :  { %v3456_v4 = vadd.f32 %v10023_v15, %v3455_v2  ;;  %v8253_v5 = vpop.f32.mrf.mxu0  ;;  %8391 = vmatprep.subr.bf16.mxu0 %v9146_v0  ;;  %8399 = vmatprep.subr.bf16.mxu1 %v9146_v0 }
 0x809   :  { %v8261_v7 = vpop.f32.mrf.mxu1  ;;  %3397 = vst.msk [vmem:[#allocation3 + $0x28] sm:$0x3] %vm290_vm1, %v3391_v3 }
 0x80a   :  { %3462 = vst.msk [vmem:[#allocation3 + $0x38] sm:$0x3] %vm290_vm1, %v3456_v4  ;;  %8380 = vmatmul.mubr.bf16.vlgmr.msra.gmra.mxu0 %v9148_v8  ;;  %8388 = vmatmul.mubr.bf16.vlgmr.msra.gmra.mxu1 %v9148_v8  ;;  %v3393_v9 = vpop.f32.mrf.mxu0 }
 0x80b   :  { %v3458_v10 = vpop.f32.mrf.mxu1  ;;  %8395 = vmatprep.mubr.msk.bf16.mxu0 %vm9147_vm0, %v9146_v0  ;;  %8403 = vmatprep.mubr.msk.bf16.mxu1 %vm9147_vm0, %v9146_v0 }
 0x80c   :  { %v8254_v11 = vpop.f32.mrf.mxu0  ;;  %8400 = vmatpush3.bf16.msra.mxu1 %v8819_v53  ;;  %8392 = vmatpush3.bf16.msra.mxu0 %v8818_v55 }
 0x80d   :  { %v8262_v12 = vpop.f32.mrf.mxu1  ;;  %8401 = vmatprep.subr.bf16.mxu1 %v9146_v0  ;;  %8393 = vmatprep.subr.bf16.mxu0 %v9146_v0 }
 0x80e   :  { %v3525_v13 = vpop.f32.mrf.mxu0 }
 0x80f   :  { %v3590_v16 = vpop.f32.mrf.mxu1  ;;  %v3526_v17 = vadd.f32 %v10001_v56, %v3525_v13 }
 0x810   :  { %v3591_v18 = vadd.f32 %v10006_v57, %v3590_v16  ;;  %v8269_v19 = vpop.f32.mrf.mxu0  ;;  %8402 = vmatpush3.bf16.msra.mxu1 %v8821_v54  ;;  %8394 = vmatpush3.bf16.msra.mxu0 %v8820_v58 }
 0x811   :  { %v8277_v20 = vpop.f32.mrf.mxu1  ;;  %3532 = vst.msk [vmem:[#allocation3 + $0xa] sm:$0x3] %vm290_vm1, %v3526_v17  ;;  %8415 = vmatprep.subr.bf16.mxu1 %v9146_v0  ;;  %8407 = vmatprep.subr.bf16.mxu0 %v9146_v0 }
 0x812   :  { %3597 = vst.msk [vmem:[#allocation3 + $0x1a] sm:$0x3] %vm290_vm1, %v3591_v18  ;;  %v3528_v8 = vpop.f32.mrf.mxu0  ;;  %v4258_v18 = vld [vmem:[#allocation3] sm:$0x3]  ;;  %v4316_v20 = vld [vmem:[#allocation3 + $0x10] sm:$0x3] }
 0x813   :  { %v3593_v21 = vpop.f32.mrf.mxu1 }
 0x814   :  { %v8270_v22 = vpop.f32.mrf.mxu0 }
 0x815   :  { %v8278_v23 = vpop.f32.mrf.mxu1 }
 0x816   :  { %v3655_v24 = vpop.f32.mrf.mxu0 }
 0x817   :  { %v3720_v25 = vpop.f32.mrf.mxu1  ;;  %v3656_v26 = vadd.f32 %v10018_v14, %v3655_v24 }
 0x818   :  { %v3721_v27 = vadd.f32 %v10023_v15, %v3720_v25  ;;  %v8285_v28 = vpop.f32.mrf.mxu0 }
 0x819   :  { %v8293_v29 = vpop.f32.mrf.mxu1  ;;  %3662 = vst.msk [vmem:[#allocation3 + $0x2a] sm:$0x3] %vm290_vm1, %v3656_v26 }
 0x81a   :  { %3727 = vst.msk [vmem:[#allocation3 + $0x3a] sm:$0x3] %vm290_vm1, %v3721_v27  ;;  %v3658_v30 = vpop.f32.mrf.mxu0 }
 0x81b   :  { %v3723_v31 = vpop.f32.mrf.mxu1 }
 0x81c   :  { %v8286_v32 = vpop.f32.mrf.mxu0 }
 0x81d   :  { %v8294_v33 = vpop.f32.mrf.mxu1  ;;  %v4434_v32 = vld [vmem:[#allocation3 + $0x30] sm:$0x3] }
 0x81e   :  { %v3790_v34 = vpop.f32.mrf.mxu0 }
 0x81f   :  { %v3855_v35 = vpop.f32.mrf.mxu1  ;;  %v3791_v36 = vadd.f32 %v10001_v56, %v3790_v34 }
 0x820   :  { %v3856_v37 = vadd.f32 %v10006_v57, %v3855_v35  ;;  %v8301_v38 = vpop.f32.mrf.mxu0 }
 0x821   :  { %v8309_v39 = vpop.f32.mrf.mxu1  ;;  %3797 = vst.msk [vmem:[#allocation3 + $0xc] sm:$0x3] %vm290_vm1, %v3791_v36 }
 0x822   :  { %3862 = vst.msk [vmem:[#allocation3 + $0x1c] sm:$0x3] %vm290_vm1, %v3856_v37  ;;  %v3793_v40 = vpop.f32.mrf.mxu0 }
 0x823   :  { %v3858_v41 = vpop.f32.mrf.mxu1 }
 0x824   :  { %v8302_v42 = vpop.f32.mrf.mxu0 }
 0x825   :  { %v8310_v43 = vpop.f32.mrf.mxu1  ;;  %v4375_v42 = vld [vmem:[#allocation3 + $0x20] sm:$0x3] }
 0x826   :  { %v3920_v44 = vpop.f32.mrf.mxu0 }
 0x827   :  { %v3985_v45 = vpop.f32.mrf.mxu1  ;;  %v3921_v46 = vadd.f32 %v10018_v14, %v3920_v44 }
 0x828   :  { %v3986_v47 = vadd.f32 %v10023_v15, %v3985_v45  ;;  %v8317_v48 = vpop.f32.mrf.mxu0 }
 0x829   :  { %v8325_v49 = vpop.f32.mrf.mxu1  ;;  %3927 = vst.msk [vmem:[#allocation3 + $0x2c] sm:$0x3] %vm290_vm1, %v3921_v46 }
 0x82a   :  { %3992 = vst.msk [vmem:[#allocation3 + $0x3c] sm:$0x3] %vm290_vm1, %v3986_v47  ;;  %v3923_v50 = vpop.f32.mrf.mxu0 }
 0x82b   :  { %v3988_v51 = vpop.f32.mrf.mxu1 }
 0x82c   :  { %v8318_v6 = vpop.f32.mrf.mxu0 }
 0x82d   :  { %v8326_v52 = vpop.f32.mrf.mxu1 }
 0x8b2   :  { %v4055_v59 = vpop.f32.mrf.mxu0  ;;  %v4120_v60 = vpop.f32.mrf.mxu1 }
 0x8b3   :  { %v4056_v61 = vadd.f32 %v10001_v56, %v4055_v59  ;;  %v4121_v62 = vadd.f32 %v10006_v57, %v4120_v60 }
 0x8b4   :  { %v8333_v63 = vpop.f32.mrf.mxu0  ;;  %v8341_v1 = vpop.f32.mrf.mxu1 }
 0x8b5   :  { %4062 = vst.msk [vmem:[#allocation3 + $0xe] sm:$0x3] %vm290_vm1, %v4056_v61  ;;  %4127 = vst.msk [vmem:[#allocation3 + $0x1e] sm:$0x3] %vm290_vm1, %v4121_v62  ;;  %v8822_v61 = vld [vmem:[%s10630_s3 + $0x18] sm:$0xff]   ;;  %v8823_v62 = vld [vmem:[%s10630_s3 + $0x28] sm:$0xff]  }
 0x8b6   :  { %v4058_v2 = vpop.f32.mrf.mxu0  ;;  %v4123_v3 = vpop.f32.mrf.mxu1  ;;  %v8824_v1 = vld [vmem:[%s10630_s3 + $0x10] sm:$0xff]  }
 0x8b7   :  { %v8825_v2 = vld [vmem:[%s10630_s3 + $0x20] sm:$0xff]   ;;  %v8826_v3 = vld [vmem:[%s10630_s3 + $0x38] sm:$0xff]  }
 0x8b8   :  { %v8334_v4 = vpop.f32.mrf.mxu0  ;;  %v8342_v5 = vpop.f32.mrf.mxu1 }
 0x8b9   :  { %v8827_v4 = vld [vmem:[%s10630_s3 + $0x30] sm:$0xff]   ;;  %v8828_v5 = vld [vmem:[%s10632_s5 + $0x8] sm:$0xff]  }
 0x8ba   :  { %v4185_v7 = vpop.f32.mrf.mxu0  ;;  %v4250_v9 = vpop.f32.mrf.mxu1 }
 0x8bb   :  { %v4186_v10 = vadd.f32 %v10018_v14, %v4185_v7  ;;  %v4251_v11 = vadd.f32 %v10023_v15, %v4250_v9  ;;  %v8829_v7 = vld [vmem:[%s10630_s3 + $0x8] sm:$0xff]   ;;  %v8830_v9 = vld [vmem:[%s10632_s5] sm:$0xff]  }
 0x8bc   :  { %v8349_v12 = vpop.f32.mrf.mxu0  ;;  %v8357_v56 = vpop.f32.mrf.mxu1 }
 0x8bd   :  { %4192 = vst.msk [vmem:[#allocation3 + $0x2e] sm:$0x3] %vm290_vm1, %v4186_v10  ;;  %4257 = vst.msk [vmem:[#allocation3 + $0x3e] sm:$0x3] %vm290_vm1, %v4251_v11  ;;  %v8831_v10 = vld [vmem:[%s10630_s3] sm:$0xff]  }
 0x8be   :  { %v4188_v57 = vpop.f32.mrf.mxu0  ;;  %v4253_v13 = vpop.f32.mrf.mxu1  ;;  %v10236_v11 = vld [vmem:[%s10633_s6] ss:$0 sm:$0xff]  ;;  %v4583_v56 = vld [vmem:[#allocation3 + $0x2] sm:$0x3] }
 0x8c0   :  { %v8350_v16 = vpop.f32.mrf.mxu0  ;;  %v8358_v17 = vpop.f32.mrf.mxu1 }
 0x8c2   :  { %v4309_v19 = vpop.f32.mrf.mxu0  ;;  %v4368_v8 = vpop.f32.mrf.mxu1 }
 0x8c3   :  { %v4315_v21 = vadd.f32 %v4309_v19, %v4258_v18  ;;  %v4374_v22 = vadd.f32 %v4368_v8, %v4316_v20 }
 0x8c4   :  { %v8365_v23 = vpop.f32.mrf.mxu0  ;;  %v8373_v14 = vpop.f32.mrf.mxu1 }
 0x8c5   :  { %v4493_v24 = vsub.f32 0.0, %v4315_v21  ;;  %v4498_v15 = vsub.f32 0.0, %v4374_v22  ;;  %v4641_v14 = vld [vmem:[#allocation3 + $0x12] sm:$0x3] }
 0x8c6   :  { %v4312_v25 = vpop.f32.mrf.mxu0  ;;  %v4371_v26 = vpop.f32.mrf.mxu1 }
 0x8c7   :  { %v4494_v27 = vmul.f32 1.442695, %v4493_v24  ;;  %v4499_v28 = vmul.f32 1.442695, %v4498_v15 }
 0x8c8   :  { %v8366_v29 = vpop.f32.mrf.mxu0  ;;  %v8374_v30 = vpop.f32.mrf.mxu1 }
 0x8c9   :  { %9018 = vpow2.f32 %v4494_v27 }
 0x8ca   :  { %9020 = vpow2.f32 %v4499_v28  ;;  %v4427_v31 = vpop.f32.mrf.mxu0  ;;  %v4486_v33 = vpop.f32.mrf.mxu1 }
 0x8cb   :  { %v4492_v34 = vadd.f32 %v4486_v33, %v4434_v32  ;;  %v4433_v44 = vadd.f32 %v4427_v31, %v4375_v42 }
 0x8cc   :  { %v8389_v35 = vpop.f32.mrf.mxu1  ;;  %v8381_v36 = vpop.f32.mrf.mxu0 }
 0x8cd   :  { %v4504_v39 = vsub.f32 0.0, %v4492_v34  ;;  %v4757_v34 = vld [vmem:[#allocation3 + $0x32] sm:$0x3] }
 0x8ce   :  { %v4489_v37 = vpop.f32.mrf.mxu1  ;;  %v4430_v38 = vpop.f32.mrf.mxu0 }
 0x8cf   :  { %v4505_v43 = vmul.f32 1.442695, %v4504_v39 }
 0x8d0   :  { %v8390_v40 = vpop.f32.mrf.mxu1  ;;  %v8382_v41 = vpop.f32.mrf.mxu0 }
 0x8d1   :  { %9022 = vpow2.f32 %v4505_v43 }
 0x8d2   :  { %9024 = vtanh.f32 %v4433_v44  ;;  %v4699_v44 = vld [vmem:[#allocation3 + $0x22] sm:$0x3] }
 0x8d6   :  { %v9019_v45 = vpop.eup %9018 }
 0x8d7   :  { %v9021_v46 = vpop.eup %9020  ;;  %v4496_v47 = vadd.f32 1.0, %v9019_v45 }
 0x8d8   :  { %v4501_v48 = vadd.f32 1.0, %v9021_v46 }
 0x8d9   :  { %9026 = vrcp.f32 %v4496_v47 }
 0x8da   :  { %9028 = vrcp.f32 %v4501_v48 }
 0x8de   :  { %v9023_v49 = vpop.eup %9022 }
 0x8df   :  { %v9025_v50 = vpop.eup %9024  ;;  %v4507_v53 = vadd.f32 1.0, %v9023_v49 }
 0x8e1   :  { %9030 = vrcp.f32 %v4507_v53 }
 0x8e6   :  { %v9027_v51 = vpop.eup %9026 }
 0x8e7   :  { %v9029_v6 = vpop.eup %9028  ;;  %v4510_v52 = vmul.f32 %v9027_v51, %v9025_v50 }
 0x8e8   :  { %v4509_v54 = vmul.f32 0.0, %v9029_v6 }
 0x8ea   :  { %v10175_v55 = vadd.f32 %v4510_v52, %v4509_v54 }
 0x8ec   :  { %9032 = vtanh.f32 %v10175_v55 }
 0x8ee   :  { %v9031_v58 = vpop.eup %9030 }
 0x8f9   :  { %v9033_v59 = vpop.eup %9032 }
 0x8fa   :  { %v4513_v60 = vmul.f32 %v9033_v59, %v9031_v58 }
 0x8fc   :  { %v4514_v63 = vpack.c.bf16 %v4513_v60, %v4513_v60 }
 0x8fe   :  { %8396 = vmatmul.mubr.msk.bf16.vlgmr.msra.gmra.mxu0 %vm44_vm2, %v4514_v63  ;;  %8404 = vmatmul.mubr.msk.bf16.vlgmr.msra.gmra.mxu1 %vm44_vm2, %v4514_v63 }
 0x8ff   :  { %8408 = vmatpush3.bf16.msra.mxu0 %v8822_v61  ;;  %8416 = vmatpush3.bf16.msra.mxu1 %v8823_v62  ;;  %v8832_v61 = vld [vmem:[%s10630_s3 + $0x18] sm:$0xff]   ;;  %v8833_v62 = vld [vmem:[%s10630_s3 + $0x28] sm:$0xff]  }
 0x900   :  { %8409 = vmatprep.subr.bf16.mxu0 %v9146_v0  ;;  %8417 = vmatprep.subr.bf16.mxu1 %v9146_v0 }
 0x901   :  { %8411 = vmatprep.mubr.msk.bf16.mxu0 %vm9147_vm0, %v9146_v0  ;;  %8419 = vmatprep.mubr.msk.bf16.mxu1 %vm9147_vm0, %v9146_v0 }
 0x903   :  { %8410 = vmatpush3.bf16.msra.mxu0 %v8824_v1  ;;  %8418 = vmatpush3.bf16.msra.mxu1 %v8825_v2  ;;  %v8835_v1 = vld [vmem:[%s10630_s3 + $0x20] sm:$0xff]   ;;  %v8836_v2 = vld [vmem:[%s10630_s3 + $0x38] sm:$0xff]  }
 0x904   :  { %8423 = vmatprep.subr.bf16.mxu0 %v9146_v0  ;;  %8431 = vmatprep.subr.bf16.mxu1 %v9146_v0 }
 0x906   :  { %8412 = vmatmul.mubr.msk.bf16.vlgmr.msra.gmra.mxu0 %vm44_vm2, %v4514_v63  ;;  %8420 = vmatmul.mubr.msk.bf16.vlgmr.msra.gmra.mxu1 %vm44_vm2, %v4514_v63 }
 0x907   :  { %8424 = vmatpush3.bf16.msra.mxu0 %v8826_v3  ;;  %8427 = vmatprep.mubr.msk.bf16.mxu0 %vm9147_vm0, %v9146_v0  ;;  %v8837_v3 = vld [vmem:[%s10630_s3 + $0x30] sm:$0xff]  }
 0x908   :  { %8425 = vmatprep.subr.bf16.mxu0 %v9146_v0  ;;  %8435 = vmatprep.mubr.msk.bf16.mxu1 %vm9147_vm0, %v9146_v0 }
 0x909   :  { %8432 = vmatpush3.bf16.msra.mxu1 %v8828_v5  ;;  %v8839_v5 = vld [vmem:[%s10630_s3 + $0x8] sm:$0xff]  }
 0x90a   :  { %8433 = vmatprep.subr.bf16.mxu1 %v9146_v0 }
 0x90b   :  { %8426 = vmatpush3.bf16.msra.mxu0 %v8827_v4  ;;  %v8838_v4 = vld [vmem:[%s10632_s5 + $0x8] sm:$0xff]  }
 0x90c   :  { %8439 = vmatprep.subr.bf16.mxu0 %v9146_v0 }
 0x90d   :  { %8434 = vmatpush3.bf16.msra.mxu1 %v8830_v9  ;;  %v8841_v9 = vld [vmem:[%s10630_s3] sm:$0xff]  }
 0x90e   :  { %8428 = vmatmul.mubr.msk.bf16.vlgmr.msra.gmra.mxu0 %vm44_vm2, %v4514_v63  ;;  %8447 = vmatprep.subr.bf16.mxu1 %v9146_v0 }
 0x90f   :  { %8443 = vmatprep.mubr.msk.bf16.mxu0 %vm9147_vm0, %v9146_v0  ;;  %8440 = vmatpush3.bf16.msra.mxu0 %v8829_v7  ;;  %v8840_v7 = vld [vmem:[%s10632_s5] sm:$0xff]  }
 0x910   :  { %8441 = vmatprep.subr.bf16.mxu0 %v9146_v0 }
 0x913   :  { %8442 = vmatpush3.bf16.msra.mxu0 %v8831_v10 }
 0x914   :  { %8455 = vmatprep.subr.bf16.mxu0 %v9146_v0 }
 0x9be   :  { %v4575_v12 = vpop.f32.mrf.mxu0  ;;  %v4634_v57 = vpop.f32.mrf.mxu1 }
 0x9bf   :  { %v4576_v13 = vadd.f32 %v10236_v11, %v4575_v12  ;;  %v4640_v16 = vadd.f32 %v4634_v57, %v4583_v56  ;;  %v4905_v12 = vld [vmem:[#allocation3 + $0x4] sm:$0x3] }
 0x9c0   :  { %v8397_v17 = vpop.f32.mrf.mxu0  ;;  %v8405_v18 = vpop.f32.mrf.mxu1 }
 0x9c1   :  { %4582 = vst.msk [vmem:[%s10634_s7] sm:$0x3] %vm4581_vm3, %v4576_v13  ;;  %v4815_v19 = vsub.f32 0.0, %v4640_v16 }
 0x9c2   :  { %v4578_v20 = vpop.f32.mrf.mxu0  ;;  %v4637_v8 = vpop.f32.mrf.mxu1 }
 0x9c3   :  { %v4816_v21 = vmul.f32 1.442695, %v4815_v19 }
 0x9c4   :  { %v8398_v22 = vpop.f32.mrf.mxu0  ;;  %v8406_v23 = vpop.f32.mrf.mxu1 }
 0x9c5   :  { %9034 = vpow2.f32 %v4816_v21  ;;  %v4963_v23 = vld [vmem:[#allocation3 + $0x14] sm:$0x3] }
 0x9c6   :  { %v4692_v24 = vpop.f32.mrf.mxu0  ;;  %v4750_v15 = vpop.f32.mrf.mxu1 }
 0x9c7   :  { %v4698_v25 = vadd.f32 %v4692_v24, %v4641_v14  ;;  %v4756_v45 = vadd.f32 %v4750_v15, %v4699_v44 }
 0x9c8   :  { %v8413_v26 = vpop.f32.mrf.mxu0  ;;  %v8421_v27 = vpop.f32.mrf.mxu1 }
 0x9c9   :  { %v4820_v28 = vsub.f32 0.0, %v4698_v25 }
 0x9ca   :  { %v4695_v29 = vpop.f32.mrf.mxu0  ;;  %v4753_v30 = vpop.f32.mrf.mxu1 }
 0x9cb   :  { %v4821_v31 = vmul.f32 1.442695, %v4820_v28 }
 0x9cc   :  { %v8414_v32 = vpop.f32.mrf.mxu0  ;;  %v8422_v33 = vpop.f32.mrf.mxu1 }
 0x9cd   :  { %9036 = vpow2.f32 %v4821_v31  ;;  %v5079_v33 = vld [vmem:[#allocation3 + $0x34] sm:$0x3] }
 0x9ce   :  { %v4808_v35 = vpop.f32.mrf.mxu0 }
 0x9cf   :  { %v4814_v36 = vadd.f32 %v4808_v35, %v4757_v34 }
 0x9d0   :  { %v8429_v37 = vpop.f32.mrf.mxu0 }
 0x9d1   :  { %v4826_v38 = vsub.f32 0.0, %v4814_v36 }
 0x9d2   :  { %v4811_v39 = vpop.f32.mrf.mxu0  ;;  %v9035_v40 = vpop.eup %9034 }
 0x9d3   :  { %v4827_v42 = vmul.f32 1.442695, %v4826_v38  ;;  %v4818_v43 = vadd.f32 1.0, %v9035_v40 }
 0x9d4   :  { %v8430_v41 = vpop.f32.mrf.mxu0 }
 0x9d5   :  { %9038 = vpow2.f32 %v4827_v42 }
 0x9d6   :  { %9040 = vrcp.f32 %v4818_v43  ;;  %v5021_v43 = vld [vmem:[#allocation3 + $0x24] sm:$0x3] }
 0x9d7   :  { %9042 = vtanh.f32 %v4756_v45 }
 0x9da   :  { %v9037_v46 = vpop.eup %9036 }
 0x9db   :  { %v4823_v47 = vadd.f32 1.0, %v9037_v46 }
 0x9dd   :  { %9044 = vrcp.f32 %v4823_v47 }
 0x9e2   :  { %v9039_v48 = vpop.eup %9038 }
 0x9e3   :  { %v9041_v49 = vpop.eup %9040  ;;  %v4829_v6 = vadd.f32 1.0, %v9039_v48 }
 0x9e4   :  { %v9043_v50 = vpop.eup %9042 }
 0x9e5   :  { %v4832_v53 = vmul.f32 %v9043_v50, %v9041_v49  ;;  %9046 = vrcp.f32 %v4829_v6 }
 0x9ea   :  { %v9045_v51 = vpop.eup %9044 }
 0x9eb   :  { %v4831_v52 = vmul.f32 %v9045_v51, %v10175_v55  ;;  %v8834_v55 = vld [vmem:[%s10630_s3 + $0x10] sm:$0xff]  }
 0x9ed   :  { %v10244_v54 = vadd.f32 %v4832_v53, %v4831_v52 }
 0x9ef   :  { %9048 = vtanh.f32 %v10244_v54 }
 0x9f2   :  { %v9047_v58 = vpop.eup %9046 }
 0x9fc   :  { %v9049_v59 = vpop.eup %9048 }
 0x9fd   :  { %v4835_v60 = vmul.f32 %v9049_v59, %v9047_v58 }
 0x9ff   :  { %v4836_v63 = vpack.c.bf16 %v4835_v60, %v4835_v60 }
 0xa01   :  { %8436 = vmatmul.mubr.msk.bf16.vlgmr.msra.gmra.mxu1 %vm44_vm2, %v4836_v63  ;;  %8444 = vmatmul.mubr.msk.bf16.vlgmr.msra.gmra.mxu0 %vm44_vm2, %v4836_v63 }
 0xa02   :  { %8448 = vmatpush3.bf16.msra.mxu1 %v8832_v61  ;;  %8456 = vmatpush3.bf16.msra.mxu0 %v8833_v62  ;;  %v8842_v61 = vld [vmem:[%s10630_s3 + $0x18] sm:$0xff]   ;;  %v8843_v62 = vld [vmem:[%s10630_s3 + $0x28] sm:$0xff]  }
 0xa03   :  { %8449 = vmatprep.subr.bf16.mxu1 %v9146_v0  ;;  %8457 = vmatprep.subr.bf16.mxu0 %v9146_v0 }
 0xa04   :  { %8451 = vmatprep.mubr.msk.bf16.mxu1 %vm9147_vm0, %v9146_v0  ;;  %8459 = vmatprep.mubr.msk.bf16.mxu0 %vm9147_vm0, %v9146_v0 }
 0xa06   :  { %8450 = vmatpush3.bf16.msra.mxu1 %v8834_v55  ;;  %8458 = vmatpush3.bf16.msra.mxu0 %v8835_v1  ;;  %v8845_v55 = vld [vmem:[%s10630_s3 + $0x20] sm:$0xff]   ;;  %v8846_v1 = vld [vmem:[%s10630_s3 + $0x38] sm:$0xff]  }
 0xa07   :  { %8463 = vmatprep.subr.bf16.mxu1 %v9146_v0  ;;  %8471 = vmatprep.subr.bf16.mxu0 %v9146_v0 }
 0xa09   :  { %8452 = vmatmul.mubr.msk.bf16.vlgmr.msra.gmra.mxu1 %vm44_vm2, %v4836_v63  ;;  %8460 = vmatmul.mubr.msk.bf16.vlgmr.msra.gmra.mxu0 %vm44_vm2, %v4836_v63 }
 0xa0a   :  { %8464 = vmatpush3.bf16.msra.mxu1 %v8836_v2  ;;  %8467 = vmatprep.mubr.msk.bf16.mxu1 %vm9147_vm0, %v9146_v0  ;;  %v8847_v2 = vld [vmem:[%s10630_s3 + $0x30] sm:$0xff]  }
 0xa0b   :  { %8465 = vmatprep.subr.bf16.mxu1 %v9146_v0  ;;  %8475 = vmatprep.mubr.msk.bf16.mxu0 %vm9147_vm0, %v9146_v0 }
 0xa0c   :  { %8472 = vmatpush3.bf16.msra.mxu0 %v8838_v4  ;;  %v8849_v4 = vld [vmem:[%s10630_s3 + $0x8] sm:$0xff]  }
 0xa0d   :  { %8473 = vmatprep.subr.bf16.mxu0 %v9146_v0 }
 0xa0e   :  { %8466 = vmatpush3.bf16.msra.mxu1 %v8837_v3  ;;  %v8848_v3 = vld [vmem:[%s10632_s5 + $0x8] sm:$0xff]  }
 0xa0f   :  { %8479 = vmatprep.subr.bf16.mxu1 %v9146_v0 }
 0xa10   :  { %8474 = vmatpush3.bf16.msra.mxu0 %v8840_v7  ;;  %v8851_v7 = vld [vmem:[%s10630_s3] sm:$0xff]  }
 0xa11   :  { %8468 = vmatmul.mubr.msk.bf16.vlgmr.msra.gmra.mxu1 %vm44_vm2, %v4836_v63  ;;  %8487 = vmatprep.subr.bf16.mxu0 %v9146_v0 }
 0xa12   :  { %8483 = vmatprep.mubr.msk.bf16.mxu1 %vm9147_vm0, %v9146_v0  ;;  %8480 = vmatpush3.bf16.msra.mxu1 %v8839_v5  ;;  %v8850_v5 = vld [vmem:[%s10632_s5] sm:$0xff]  }
 0xa13   :  { %8481 = vmatprep.subr.bf16.mxu1 %v9146_v0 }
 0xa16   :  { %8482 = vmatpush3.bf16.msra.mxu1 %v8841_v9 }
 0xa17   :  { %8495 = vmatprep.subr.bf16.mxu1 %v9146_v0 }
 0xac1   :  { %v4897_v10 = vpop.f32.mrf.mxu1  ;;  %v4956_v56 = vpop.f32.mrf.mxu0 }
 0xac2   :  { %v4898_v57 = vadd.f32 %v10236_v11, %v4897_v10  ;;  %v4962_v13 = vadd.f32 %v4956_v56, %v4905_v12  ;;  %v5227_v10 = vld [vmem:[#allocation3 + $0x6] sm:$0x3] }
 0xac3   :  { %v8437_v16 = vpop.f32.mrf.mxu1  ;;  %v8445_v17 = vpop.f32.mrf.mxu0 }
 0xac4   :  { %7360 = vst.msk [vmem:[%s10634_s7 + $0x2] sm:$0x3] %vm4581_vm3, %v4898_v57  ;;  %v5137_v18 = vsub.f32 0.0, %v4962_v13 }
 0xac5   :  { %v4900_v19 = vpop.f32.mrf.mxu1  ;;  %v4959_v20 = vpop.f32.mrf.mxu0 }
 0xac6   :  { %v5138_v8 = vmul.f32 1.442695, %v5137_v18 }
 0xac7   :  { %v8438_v21 = vpop.f32.mrf.mxu1  ;;  %v8446_v22 = vpop.f32.mrf.mxu0 }
 0xac8   :  { %9050 = vpow2.f32 %v5138_v8  ;;  %v5285_v22 = vld [vmem:[#allocation3 + $0x16] sm:$0x3] }
 0xac9   :  { %v5014_v14 = vpop.f32.mrf.mxu1  ;;  %v5072_v24 = vpop.f32.mrf.mxu0 }
 0xaca   :  { %v5020_v15 = vadd.f32 %v5014_v14, %v4963_v23  ;;  %v5078_v44 = vadd.f32 %v5072_v24, %v5021_v43 }
 0xacb   :  { %v8453_v25 = vpop.f32.mrf.mxu1  ;;  %v8461_v26 = vpop.f32.mrf.mxu0 }
 0xacc   :  { %v5142_v27 = vsub.f32 0.0, %v5020_v15 }
 0xacd   :  { %v5017_v28 = vpop.f32.mrf.mxu1  ;;  %v5075_v29 = vpop.f32.mrf.mxu0 }
 0xace   :  { %v5143_v30 = vmul.f32 1.442695, %v5142_v27 }
 0xacf   :  { %v8454_v31 = vpop.f32.mrf.mxu1  ;;  %v8462_v32 = vpop.f32.mrf.mxu0 }
 0xad0   :  { %9052 = vpow2.f32 %v5143_v30  ;;  %v5401_v32 = vld [vmem:[#allocation3 + $0x36] sm:$0x3] }
 0xad1   :  { %v5130_v34 = vpop.f32.mrf.mxu1 }
 0xad2   :  { %v5136_v35 = vadd.f32 %v5130_v34, %v5079_v33 }
 0xad3   :  { %v8469_v36 = vpop.f32.mrf.mxu1 }
 0xad4   :  { %v5148_v37 = vsub.f32 0.0, %v5136_v35 }
 0xad5   :  { %v5133_v38 = vpop.f32.mrf.mxu1  ;;  %v9051_v39 = vpop.eup %9050 }
 0xad6   :  { %v5149_v41 = vmul.f32 1.442695, %v5148_v37  ;;  %v5140_v42 = vadd.f32 1.0, %v9051_v39 }
 0xad7   :  { %v8470_v40 = vpop.f32.mrf.mxu1 }
 0xad8   :  { %9054 = vpow2.f32 %v5149_v41 }
 0xad9   :  { %9056 = vrcp.f32 %v5140_v42  ;;  %v5343_v42 = vld [vmem:[#allocation3 + $0x26] sm:$0x3] }
 0xada   :  { %9058 = vtanh.f32 %v5078_v44 }
 0xadd   :  { %v9053_v45 = vpop.eup %9052 }
 0xade   :  { %v5145_v46 = vadd.f32 1.0, %v9053_v45 }
 0xae0   :  { %9060 = vrcp.f32 %v5145_v46 }
 0xae5   :  { %v9055_v47 = vpop.eup %9054 }
 0xae6   :  { %v9057_v48 = vpop.eup %9056  ;;  %v5151_v51 = vadd.f32 1.0, %v9055_v47 }
 0xae7   :  { %v9059_v49 = vpop.eup %9058 }
 0xae8   :  { %v5154_v52 = vmul.f32 %v9059_v49, %v9057_v48  ;;  %9062 = vrcp.f32 %v5151_v51 }
 0xaed   :  { %v9061_v50 = vpop.eup %9060 }
 0xaee   :  { %v5153_v6 = vmul.f32 %v9061_v50, %v10244_v54  ;;  %v8844_v54 = vld [vmem:[%s10630_s3 + $0x10] sm:$0xff]  }
 0xaf0   :  { %v10308_v53 = vadd.f32 %v5154_v52, %v5153_v6 }
 0xaf2   :  { %9064 = vtanh.f32 %v10308_v53 }
 0xaf5   :  { %v9063_v58 = vpop.eup %9062 }
 0xaff   :  { %v9065_v59 = vpop.eup %9064 }
 0xb00   :  { %v5157_v60 = vmul.f32 %v9065_v59, %v9063_v58 }
 0xb02   :  { %v5158_v63 = vpack.c.bf16 %v5157_v60, %v5157_v60 }
 0xb04   :  { %8476 = vmatmul.mubr.msk.bf16.vlgmr.msra.gmra.mxu0 %vm44_vm2, %v5158_v63  ;;  %8484 = vmatmul.mubr.msk.bf16.vlgmr.msra.gmra.mxu1 %vm44_vm2, %v5158_v63 }
 0xb05   :  { %8488 = vmatpush3.bf16.msra.mxu0 %v8842_v61  ;;  %8496 = vmatpush3.bf16.msra.mxu1 %v8843_v62  ;;  %v8852_v61 = vld [vmem:[%s10630_s3 + $0x18] sm:$0xff]   ;;  %v8853_v62 = vld [vmem:[%s10630_s3 + $0x28] sm:$0xff]  }
 0xb06   :  { %8489 = vmatprep.subr.bf16.mxu0 %v9146_v0  ;;  %8497 = vmatprep.subr.bf16.mxu1 %v9146_v0 }
 0xb07   :  { %8491 = vmatprep.mubr.msk.bf16.mxu0 %vm9147_vm0, %v9146_v0  ;;  %8499 = vmatprep.mubr.msk.bf16.mxu1 %vm9147_vm0, %v9146_v0 }
 0xb09   :  { %8490 = vmatpush3.bf16.msra.mxu0 %v8844_v54  ;;  %8498 = vmatpush3.bf16.msra.mxu1 %v8845_v55  ;;  %v8855_v54 = vld [vmem:[%s10630_s3 + $0x20] sm:$0xff]   ;;  %v8856_v55 = vld [vmem:[%s10630_s3 + $0x38] sm:$0xff]  }
 0xb0a   :  { %8503 = vmatprep.subr.bf16.mxu0 %v9146_v0  ;;  %8511 = vmatprep.subr.bf16.mxu1 %v9146_v0 }
 0xb0c   :  { %8492 = vmatmul.mubr.msk.bf16.vlgmr.msra.gmra.mxu0 %vm44_vm2, %v5158_v63  ;;  %8500 = vmatmul.mubr.msk.bf16.vlgmr.msra.gmra.mxu1 %vm44_vm2, %v5158_v63 }
 0xb0d   :  { %8504 = vmatpush3.bf16.msra.mxu0 %v8846_v1  ;;  %8507 = vmatprep.mubr.msk.bf16.mxu0 %vm9147_vm0, %v9146_v0  ;;  %v8857_v1 = vld [vmem:[%s10630_s3 + $0x30] sm:$0xff]  }
 0xb0e   :  { %8505 = vmatprep.subr.bf16.mxu0 %v9146_v0  ;;  %8515 = vmatprep.mubr.msk.bf16.mxu1 %vm9147_vm0, %v9146_v0 }
 0xb0f   :  { %8512 = vmatpush3.bf16.msra.mxu1 %v8848_v3  ;;  %v8859_v3 = vld [vmem:[%s10630_s3 + $0x8] sm:$0xff]  }
 0xb10   :  { %8513 = vmatprep.subr.bf16.mxu1 %v9146_v0 }
 0xb11   :  { %8506 = vmatpush3.bf16.msra.mxu0 %v8847_v2  ;;  %v8858_v2 = vld [vmem:[%s10632_s5 + $0x8] sm:$0xff]  }
 0xb12   :  { %8519 = vmatprep.subr.bf16.mxu0 %v9146_v0 }
 0xb13   :  { %8514 = vmatpush3.bf16.msra.mxu1 %v8850_v5  ;;  %v8861_v5 = vld [vmem:[%s10630_s3] sm:$0xff]  }
 0xb14   :  { %8508 = vmatmul.mubr.msk.bf16.vlgmr.msra.gmra.mxu0 %vm44_vm2, %v5158_v63  ;;  %8527 = vmatprep.subr.bf16.mxu1 %v9146_v0 }
 0xb15   :  { %8523 = vmatprep.mubr.msk.bf16.mxu0 %vm9147_vm0, %v9146_v0  ;;  %8520 = vmatpush3.bf16.msra.mxu0 %v8849_v4  ;;  %v8860_v4 = vld [vmem:[%s10632_s5] sm:$0xff]  }
 0xb16   :  { %8521 = vmatprep.subr.bf16.mxu0 %v9146_v0 }
 0xb19   :  { %8522 = vmatpush3.bf16.msra.mxu0 %v8851_v7 }
 0xb1a   :  { %8535 = vmatprep.subr.bf16.mxu0 %v9146_v0 }
 0xbc4   :  { %v5219_v9 = vpop.f32.mrf.mxu0  ;;  %v5278_v12 = vpop.f32.mrf.mxu1 }
 0xbc5   :  { %v5220_v56 = vadd.f32 %v10236_v11, %v5219_v9  ;;  %v5284_v57 = vadd.f32 %v5278_v12, %v5227_v10  ;;  %v5549_v9 = vld [vmem:[#allocation3 + $0x8] sm:$0x3] }
 0xbc6   :  { %v8477_v13 = vpop.f32.mrf.mxu0  ;;  %v8485_v16 = vpop.f32.mrf.mxu1 }
 0xbc7   :  { %7389 = vst.msk [vmem:[%s10634_s7 + $0x4] sm:$0x3] %vm4581_vm3, %v5220_v56  ;;  %v5459_v17 = vsub.f32 0.0, %v5284_v57 }
 0xbc8   :  { %v5222_v18 = vpop.f32.mrf.mxu0  ;;  %v5281_v19 = vpop.f32.mrf.mxu1 }
 0xbc9   :  { %v5460_v20 = vmul.f32 1.442695, %v5459_v17 }
 0xbca   :  { %v8478_v8 = vpop.f32.mrf.mxu0  ;;  %v8486_v21 = vpop.f32.mrf.mxu1 }
 0xbcb   :  { %9066 = vpow2.f32 %v5460_v20  ;;  %v5607_v21 = vld [vmem:[#allocation3 + $0x18] sm:$0x3] }
 0xbcc   :  { %v5336_v23 = vpop.f32.mrf.mxu0  ;;  %v5394_v14 = vpop.f32.mrf.mxu1 }
 0xbcd   :  { %v5342_v24 = vadd.f32 %v5336_v23, %v5285_v22  ;;  %v5400_v43 = vadd.f32 %v5394_v14, %v5343_v42 }
 0xbce   :  { %v8493_v15 = vpop.f32.mrf.mxu0  ;;  %v8501_v25 = vpop.f32.mrf.mxu1 }
 0xbcf   :  { %v5464_v26 = vsub.f32 0.0, %v5342_v24 }
 0xbd0   :  { %v5339_v27 = vpop.f32.mrf.mxu0  ;;  %v5397_v28 = vpop.f32.mrf.mxu1 }
 0xbd1   :  { %v5465_v29 = vmul.f32 1.442695, %v5464_v26 }
 0xbd2   :  { %v8494_v30 = vpop.f32.mrf.mxu0  ;;  %v8502_v31 = vpop.f32.mrf.mxu1 }
 0xbd3   :  { %9068 = vpow2.f32 %v5465_v29  ;;  %v5723_v31 = vld [vmem:[#allocation3 + $0x38] sm:$0x3] }
 0xbd4   :  { %v5452_v33 = vpop.f32.mrf.mxu0 }
 0xbd5   :  { %v5458_v34 = vadd.f32 %v5452_v33, %v5401_v32 }
 0xbd6   :  { %v8509_v35 = vpop.f32.mrf.mxu0 }
 0xbd7   :  { %v5470_v36 = vsub.f32 0.0, %v5458_v34 }
 0xbd8   :  { %v5455_v37 = vpop.f32.mrf.mxu0  ;;  %v9067_v38 = vpop.eup %9066 }
 0xbd9   :  { %v5471_v40 = vmul.f32 1.442695, %v5470_v36  ;;  %v5462_v41 = vadd.f32 1.0, %v9067_v38 }
 0xbda   :  { %v8510_v39 = vpop.f32.mrf.mxu0 }
 0xbdb   :  { %9070 = vpow2.f32 %v5471_v40 }
 0xbdc   :  { %9072 = vrcp.f32 %v5462_v41  ;;  %v5665_v41 = vld [vmem:[#allocation3 + $0x28] sm:$0x3] }
 0xbdd   :  { %9074 = vtanh.f32 %v5400_v43 }
 0xbe0   :  { %v9069_v44 = vpop.eup %9068 }
 0xbe1   :  { %v5467_v45 = vadd.f32 1.0, %v9069_v44 }
 0xbe3   :  { %9076 = vrcp.f32 %v5467_v45 }
 0xbe8   :  { %v9071_v46 = vpop.eup %9070 }
 0xbe9   :  { %v9073_v47 = vpop.eup %9072  ;;  %v5473_v50 = vadd.f32 1.0, %v9071_v46 }
 0xbea   :  { %v9075_v48 = vpop.eup %9074 }
 0xbeb   :  { %v5476_v6 = vmul.f32 %v9075_v48, %v9073_v47  ;;  %9078 = vrcp.f32 %v5473_v50 }
 0xbf0   :  { %v9077_v49 = vpop.eup %9076 }
 0xbf1   :  { %v5475_v51 = vmul.f32 %v9077_v49, %v10308_v53  ;;  %v8854_v53 = vld [vmem:[%s10630_s3 + $0x10] sm:$0xff]  }
 0xbf3   :  { %v10372_v52 = vadd.f32 %v5476_v6, %v5475_v51 }
 0xbf5   :  { %9080 = vtanh.f32 %v10372_v52 }
 0xbf8   :  { %v9079_v58 = vpop.eup %9078 }
 0xc02   :  { %v9081_v59 = vpop.eup %9080 }
 0xc03   :  { %v5479_v60 = vmul.f32 %v9081_v59, %v9079_v58 }
 0xc05   :  { %v5480_v63 = vpack.c.bf16 %v5479_v60, %v5479_v60 }
 0xc07   :  { %8516 = vmatmul.mubr.msk.bf16.vlgmr.msra.gmra.mxu1 %vm44_vm2, %v5480_v63  ;;  %8524 = vmatmul.mubr.msk.bf16.vlgmr.msra.gmra.mxu0 %vm44_vm2, %v5480_v63 }
 0xc08   :  { %8528 = vmatpush3.bf16.msra.mxu1 %v8852_v61  ;;  %8536 = vmatpush3.bf16.msra.mxu0 %v8853_v62  ;;  %v8862_v61 = vld [vmem:[%s10630_s3 + $0x18] sm:$0xff]   ;;  %v8863_v62 = vld [vmem:[%s10630_s3 + $0x28] sm:$0xff]  }
 0xc09   :  { %8529 = vmatprep.subr.bf16.mxu1 %v9146_v0  ;;  %8537 = vmatprep.subr.bf16.mxu0 %v9146_v0 }
 0xc0a   :  { %8531 = vmatprep.mubr.msk.bf16.mxu1 %vm9147_vm0, %v9146_v0  ;;  %8539 = vmatprep.mubr.msk.bf16.mxu0 %vm9147_vm0, %v9146_v0 }
 0xc0c   :  { %8530 = vmatpush3.bf16.msra.mxu1 %v8854_v53  ;;  %8538 = vmatpush3.bf16.msra.mxu0 %v8855_v54  ;;  %v8865_v53 = vld [vmem:[%s10630_s3 + $0x20] sm:$0xff]   ;;  %v8866_v54 = vld [vmem:[%s10630_s3 + $0x38] sm:$0xff]  }
 0xc0d   :  { %8543 = vmatprep.subr.bf16.mxu1 %v9146_v0  ;;  %8551 = vmatprep.subr.bf16.mxu0 %v9146_v0 }
 0xc0f   :  { %8532 = vmatmul.mubr.msk.bf16.vlgmr.msra.gmra.mxu1 %vm44_vm2, %v5480_v63  ;;  %8540 = vmatmul.mubr.msk.bf16.vlgmr.msra.gmra.mxu0 %vm44_vm2, %v5480_v63 }
 0xc10   :  { %8544 = vmatpush3.bf16.msra.mxu1 %v8856_v55  ;;  %8547 = vmatprep.mubr.msk.bf16.mxu1 %vm9147_vm0, %v9146_v0  ;;  %v8867_v55 = vld [vmem:[%s10630_s3 + $0x30] sm:$0xff]  }
 0xc11   :  { %8545 = vmatprep.subr.bf16.mxu1 %v9146_v0  ;;  %8555 = vmatprep.mubr.msk.bf16.mxu0 %vm9147_vm0, %v9146_v0 }
 0xc12   :  { %8552 = vmatpush3.bf16.msra.mxu0 %v8858_v2  ;;  %v8869_v2 = vld [vmem:[%s10630_s3 + $0x8] sm:$0xff]  }
 0xc13   :  { %8553 = vmatprep.subr.bf16.mxu0 %v9146_v0 }
 0xc14   :  { %8546 = vmatpush3.bf16.msra.mxu1 %v8857_v1  ;;  %v8868_v1 = vld [vmem:[%s10632_s5 + $0x8] sm:$0xff]  }
 0xc15   :  { %8559 = vmatprep.subr.bf16.mxu1 %v9146_v0 }
 0xc16   :  { %8554 = vmatpush3.bf16.msra.mxu0 %v8860_v4  ;;  %v8871_v4 = vld [vmem:[%s10630_s3] sm:$0xff]  }
 0xc17   :  { %8548 = vmatmul.mubr.msk.bf16.vlgmr.msra.gmra.mxu1 %vm44_vm2, %v5480_v63  ;;  %8567 = vmatprep.subr.bf16.mxu0 %v9146_v0 }
 0xc18   :  { %8563 = vmatprep.mubr.msk.bf16.mxu1 %vm9147_vm0, %v9146_v0  ;;  %8560 = vmatpush3.bf16.msra.mxu1 %v8859_v3  ;;  %v8870_v3 = vld [vmem:[%s10632_s5] sm:$0xff]  }
 0xc19   :  { %8561 = vmatprep.subr.bf16.mxu1 %v9146_v0 }
 0xc1c   :  { %8562 = vmatpush3.bf16.msra.mxu1 %v8861_v5 }
 0xc1d   :  { %8575 = vmatprep.subr.bf16.mxu1 %v9146_v0 }
 0xcc7   :  { %v5541_v7 = vpop.f32.mrf.mxu1  ;;  %v5600_v10 = vpop.f32.mrf.mxu0 }
 0xcc8   :  { %v5542_v12 = vadd.f32 %v10236_v11, %v5541_v7  ;;  %v5606_v56 = vadd.f32 %v5600_v10, %v5549_v9  ;;  %v5871_v7 = vld [vmem:[#allocation3 + $0xa] sm:$0x3] }
 0xcc9   :  { %v8517_v57 = vpop.f32.mrf.mxu1  ;;  %v8525_v13 = vpop.f32.mrf.mxu0 }
 0xcca   :  { %7418 = vst.msk [vmem:[%s10634_s7 + $0x6] sm:$0x3] %vm4581_vm3, %v5542_v12  ;;  %v5781_v16 = vsub.f32 0.0, %v5606_v56 }
 0xccb   :  { %v5544_v17 = vpop.f32.mrf.mxu1  ;;  %v5603_v18 = vpop.f32.mrf.mxu0 }
 0xccc   :  { %v5782_v19 = vmul.f32 1.442695, %v5781_v16 }
 0xccd   :  { %v8518_v20 = vpop.f32.mrf.mxu1  ;;  %v8526_v8 = vpop.f32.mrf.mxu0 }
 0xcce   :  { %9082 = vpow2.f32 %v5782_v19  ;;  %v5929_v8 = vld [vmem:[#allocation3 + $0x1a] sm:$0x3] }
 0xccf   :  { %v5658_v22 = vpop.f32.mrf.mxu1  ;;  %v5716_v23 = vpop.f32.mrf.mxu0 }
 0xcd0   :  { %v5664_v14 = vadd.f32 %v5658_v22, %v5607_v21  ;;  %v5722_v42 = vadd.f32 %v5716_v23, %v5665_v41 }
 0xcd1   :  { %v8533_v24 = vpop.f32.mrf.mxu1  ;;  %v8541_v15 = vpop.f32.mrf.mxu0 }
 0xcd2   :  { %v5786_v25 = vsub.f32 0.0, %v5664_v14 }
 0xcd3   :  { %v5661_v26 = vpop.f32.mrf.mxu1  ;;  %v5719_v27 = vpop.f32.mrf.mxu0 }
 0xcd4   :  { %v5787_v28 = vmul.f32 1.442695, %v5786_v25 }
 0xcd5   :  { %v8534_v29 = vpop.f32.mrf.mxu1  ;;  %v8542_v30 = vpop.f32.mrf.mxu0 }
 0xcd6   :  { %9084 = vpow2.f32 %v5787_v28  ;;  %v6045_v29 = vld [vmem:[#allocation3 + $0x3a] sm:$0x3] }
 0xcd7   :  { %v5774_v32 = vpop.f32.mrf.mxu1 }
 0xcd8   :  { %v5780_v33 = vadd.f32 %v5774_v32, %v5723_v31 }
 0xcd9   :  { %v8549_v34 = vpop.f32.mrf.mxu1 }
 0xcda   :  { %v5792_v35 = vsub.f32 0.0, %v5780_v33 }
 0xcdb   :  { %v5777_v36 = vpop.f32.mrf.mxu1  ;;  %v9083_v37 = vpop.eup %9082 }
 0xcdc   :  { %v5793_v39 = vmul.f32 1.442695, %v5792_v35  ;;  %v5784_v40 = vadd.f32 1.0, %v9083_v37 }
 0xcdd   :  { %v8550_v38 = vpop.f32.mrf.mxu1 }
 0xcde   :  { %9086 = vpow2.f32 %v5793_v39  ;;  %v5987_v39 = vld [vmem:[#allocation3 + $0x2a] sm:$0x3] }
 0xcdf   :  { %9088 = vrcp.f32 %v5784_v40 }
 0xce0   :  { %9090 = vtanh.f32 %v5722_v42 }
 0xce3   :  { %v9085_v43 = vpop.eup %9084 }
 0xce4   :  { %v5789_v44 = vadd.f32 1.0, %v9085_v43 }
 0xce6   :  { %9092 = vrcp.f32 %v5789_v44 }
 0xceb   :  { %v9087_v45 = vpop.eup %9086 }
 0xcec   :  { %v9089_v46 = vpop.eup %9088  ;;  %v5795_v49 = vadd.f32 1.0, %v9087_v45 }
 0xced   :  { %v9091_v47 = vpop.eup %9090 }
 0xcee   :  { %v5798_v51 = vmul.f32 %v9091_v47, %v9089_v46  ;;  %9094 = vrcp.f32 %v5795_v49 }
 0xcf3   :  { %v9093_v48 = vpop.eup %9092 }
 0xcf4   :  { %v5797_v50 = vmul.f32 %v9093_v48, %v10372_v52  ;;  %v8864_v52 = vld [vmem:[%s10630_s3 + $0x10] sm:$0xff]  }
 0xcf6   :  { %v10436_v6 = vadd.f32 %v5798_v51, %v5797_v50 }
 0xcf8   :  { %9096 = vtanh.f32 %v10436_v6 }
 0xcfb   :  { %v9095_v58 = vpop.eup %9094 }
 0xd05   :  { %v9097_v59 = vpop.eup %9096 }
 0xd06   :  { %v5801_v60 = vmul.f32 %v9097_v59, %v9095_v58 }
 0xd08   :  { %v5802_v63 = vpack.c.bf16 %v5801_v60, %v5801_v60  ;;  %v8872_v60 = vld [vmem:[%s10630_s3 + $0x18] sm:$0xff]  }
 0xd0a   :  { %8556 = vmatmul.mubr.msk.bf16.vlgmr.msra.gmra.mxu0 %vm44_vm2, %v5802_v63  ;;  %8564 = vmatmul.mubr.msk.bf16.vlgmr.msra.gmra.mxu1 %vm44_vm2, %v5802_v63 }
 0xd0b   :  { %8568 = vmatpush3.bf16.msra.mxu0 %v8862_v61  ;;  %8576 = vmatpush3.bf16.msra.mxu1 %v8863_v62  ;;  %v8873_v61 = vld [vmem:[%s10630_s3 + $0x28] sm:$0xff]  }
 0xd0c   :  { %8569 = vmatprep.subr.bf16.mxu0 %v9146_v0  ;;  %8577 = vmatprep.subr.bf16.mxu1 %v9146_v0 }
 0xd0d   :  { %8571 = vmatprep.mubr.msk.bf16.mxu0 %vm9147_vm0, %v9146_v0  ;;  %8579 = vmatprep.mubr.msk.bf16.mxu1 %vm9147_vm0, %v9146_v0 }
 0xd0f   :  { %8570 = vmatpush3.bf16.msra.mxu0 %v8864_v52  ;;  %8578 = vmatpush3.bf16.msra.mxu1 %v8865_v53  ;;  %v8876_v52 = vld [vmem:[%s10630_s3 + $0x38] sm:$0xff]   ;;  %v8877_v53 = vld [vmem:[%s10630_s3 + $0x30] sm:$0xff]  }
 0xd10   :  { %8583 = vmatprep.subr.bf16.mxu0 %v9146_v0  ;;  %8591 = vmatprep.subr.bf16.mxu1 %v9146_v0 }
 0xd12   :  { %8572 = vmatmul.mubr.msk.bf16.vlgmr.msra.gmra.mxu0 %vm44_vm2, %v5802_v63  ;;  %8580 = vmatmul.mubr.msk.bf16.vlgmr.msra.gmra.mxu1 %vm44_vm2, %v5802_v63 }
 0xd13   :  { %8584 = vmatpush3.bf16.msra.mxu0 %v8866_v54  ;;  %8587 = vmatprep.mubr.msk.bf16.mxu0 %vm9147_vm0, %v9146_v0  ;;  %v8878_v54 = vld [vmem:[%s10632_s5 + $0x8] sm:$0xff]  }
 0xd14   :  { %8585 = vmatprep.subr.bf16.mxu0 %v9146_v0  ;;  %8595 = vmatprep.mubr.msk.bf16.mxu1 %vm9147_vm0, %v9146_v0 }
 0xd15   :  { %8592 = vmatpush3.bf16.msra.mxu1 %v8868_v1  ;;  %v8880_v1 = vld [vmem:[%s10632_s5] sm:$0xff]  }
 0xd16   :  { %8593 = vmatprep.subr.bf16.mxu1 %v9146_v0 }
 0xd17   :  { %8586 = vmatpush3.bf16.msra.mxu0 %v8867_v55  ;;  %v8879_v55 = vld [vmem:[%s10630_s3 + $0x8] sm:$0xff]  }
 0xd18   :  { %8599 = vmatprep.subr.bf16.mxu0 %v9146_v0 }
 0xd19   :  { %8594 = vmatpush3.bf16.msra.mxu1 %v8870_v3  ;;  %v10561_v3 = vld [vmem:[%s10633_s6] ss:$0 sm:$0xff] }
 0xd1a   :  { %8588 = vmatmul.mubr.msk.bf16.vlgmr.msra.gmra.mxu0 %vm44_vm2, %v5802_v63  ;;  %8607 = vmatprep.subr.bf16.mxu1 %v9146_v0  ;;  %v8875_v63 = vld [vmem:[%s10630_s3 + $0x20] sm:$0xff]  }
 0xd1b   :  { %8603 = vmatprep.mubr.msk.bf16.mxu0 %vm9147_vm0, %v9146_v0  ;;  %8600 = vmatpush3.bf16.msra.mxu0 %v8869_v2  ;;  %v8881_v2 = vld [vmem:[%s10630_s3] sm:$0xff]  }
 0xd1c   :  { %8601 = vmatprep.subr.bf16.mxu0 %v9146_v0 }
 0xd1f   :  { %8602 = vmatpush3.bf16.msra.mxu0 %v8871_v4 }
 0xd20   :  { %8615 = vmatprep.subr.bf16.mxu0 %v9146_v0 }
 0xdca   :  { %v5863_v5 = vpop.f32.mrf.mxu0  ;;  %v5922_v9 = vpop.f32.mrf.mxu1 }
 0xdcb   :  { %v5864_v10 = vadd.f32 %v10236_v11, %v5863_v5  ;;  %v5928_v12 = vadd.f32 %v5922_v9, %v5871_v7  ;;  %v6193_v5 = vld [vmem:[#allocation3 + $0xc] sm:$0x3] }
 0xdcc   :  { %v8557_v56 = vpop.f32.mrf.mxu0  ;;  %v8565_v57 = vpop.f32.mrf.mxu1 }
 0xdcd   :  { %7447 = vst.msk [vmem:[%s10634_s7 + $0x8] sm:$0x3] %vm4581_vm3, %v5864_v10  ;;  %v6103_v13 = vsub.f32 0.0, %v5928_v12 }
 0xdce   :  { %v5866_v16 = vpop.f32.mrf.mxu0  ;;  %v5925_v17 = vpop.f32.mrf.mxu1 }
 0xdcf   :  { %v6104_v18 = vmul.f32 1.442695, %v6103_v13 }
 0xdd0   :  { %v8558_v19 = vpop.f32.mrf.mxu0  ;;  %v8566_v20 = vpop.f32.mrf.mxu1 }
 0xdd1   :  { %9098 = vpow2.f32 %v6104_v18  ;;  %v6251_v20 = vld [vmem:[#allocation3 + $0x1c] sm:$0x3] }
 0xdd2   :  { %v5980_v21 = vpop.f32.mrf.mxu0  ;;  %v6038_v22 = vpop.f32.mrf.mxu1 }
 0xdd3   :  { %v5986_v23 = vadd.f32 %v5980_v21, %v5929_v8  ;;  %v6044_v40 = vadd.f32 %v6038_v22, %v5987_v39 }
 0xdd4   :  { %v8573_v11 = vpop.f32.mrf.mxu0  ;;  %v8581_v14 = vpop.f32.mrf.mxu1 }
 0xdd5   :  { %v6108_v24 = vsub.f32 0.0, %v5986_v23 }
 0xdd6   :  { %v5983_v15 = vpop.f32.mrf.mxu0  ;;  %v6041_v25 = vpop.f32.mrf.mxu1 }
 0xdd7   :  { %v6109_v26 = vmul.f32 1.442695, %v6108_v24 }
 0xdd8   :  { %v8574_v27 = vpop.f32.mrf.mxu0  ;;  %v8582_v28 = vpop.f32.mrf.mxu1 }
 0xdd9   :  { %9100 = vpow2.f32 %v6109_v26  ;;  %v6367_v28 = vld [vmem:[#allocation3 + $0x3c] sm:$0x3] }
 0xdda   :  { %v6096_v30 = vpop.f32.mrf.mxu0 }
 0xddb   :  { %v6102_v31 = vadd.f32 %v6096_v30, %v6045_v29 }
 0xddc   :  { %v8589_v32 = vpop.f32.mrf.mxu0 }
 0xddd   :  { %v6114_v33 = vsub.f32 0.0, %v6102_v31 }
 0xdde   :  { %v6099_v34 = vpop.f32.mrf.mxu0  ;;  %v9099_v35 = vpop.eup %9098 }
 0xddf   :  { %v6115_v37 = vmul.f32 1.442695, %v6114_v33  ;;  %v6106_v38 = vadd.f32 1.0, %v9099_v35 }
 0xde0   :  { %v8590_v36 = vpop.f32.mrf.mxu0 }
 0xde1   :  { %9102 = vpow2.f32 %v6115_v37 }
 0xde2   :  { %9104 = vrcp.f32 %v6106_v38  ;;  %v6309_v38 = vld [vmem:[#allocation3 + $0x2c] sm:$0x3] }
 0xde3   :  { %9106 = vtanh.f32 %v6044_v40 }
 0xde6   :  { %v9101_v41 = vpop.eup %9100 }
 0xde7   :  { %v6111_v42 = vadd.f32 1.0, %v9101_v41 }
 0xde9   :  { %9108 = vrcp.f32 %v6111_v42 }
 0xdee   :  { %v9103_v43 = vpop.eup %9102 }
 0xdef   :  { %v9105_v44 = vpop.eup %9104  ;;  %v6117_v47 = vadd.f32 1.0, %v9103_v43 }
 0xdf0   :  { %v9107_v45 = vpop.eup %9106 }
 0xdf1   :  { %v6120_v49 = vmul.f32 %v9107_v45, %v9105_v44  ;;  %9110 = vrcp.f32 %v6117_v47 }
 0xdf6   :  { %v9109_v46 = vpop.eup %9108 }
 0xdf7   :  { %v6119_v48 = vmul.f32 %v9109_v46, %v10436_v6  ;;  %v8874_v6 = vld [vmem:[%s10630_s3 + $0x10] sm:$0xff]  }
 0xdf9   :  { %v10500_v50 = vadd.f32 %v6120_v49, %v6119_v48 }
 0xdfb   :  { %9112 = vtanh.f32 %v10500_v50 }
 0xdfe   :  { %v9111_v51 = vpop.eup %9110 }
 0xe08   :  { %v9113_v58 = vpop.eup %9112 }
 0xe09   :  { %v6123_v59 = vmul.f32 %v9113_v58, %v9111_v51 }
 0xe0b   :  { %v6124_v62 = vpack.c.bf16 %v6123_v59, %v6123_v59 }
 0xe0d   :  { %8596 = vmatmul.mubr.msk.bf16.vlgmr.msra.gmra.mxu1 %vm44_vm2, %v6124_v62  ;;  %8604 = vmatmul.mubr.msk.bf16.vlgmr.msra.gmra.mxu0 %vm44_vm2, %v6124_v62 }
 0xe0e   :  { %8608 = vmatpush3.bf16.msra.mxu1 %v8872_v60  ;;  %8616 = vmatpush3.bf16.msra.mxu0 %v8873_v61  ;;  %v8882_v60 = vld [vmem:[%s10630_s3 + $0x18] sm:$0xff]   ;;  %v8883_v61 = vld [vmem:[%s10630_s3 + $0x28] sm:$0xff]  }
 0xe0f   :  { %8609 = vmatprep.subr.bf16.mxu1 %v9146_v0  ;;  %8617 = vmatprep.subr.bf16.mxu0 %v9146_v0 }
 0xe10   :  { %8611 = vmatprep.mubr.msk.bf16.mxu1 %vm9147_vm0, %v9146_v0  ;;  %8619 = vmatprep.mubr.msk.bf16.mxu0 %vm9147_vm0, %v9146_v0 }
 0xe12   :  { %8610 = vmatpush3.bf16.msra.mxu1 %v8874_v6  ;;  %8618 = vmatpush3.bf16.msra.mxu0 %v8875_v63  ;;  %v8885_v6 = vld [vmem:[%s10630_s3 + $0x20] sm:$0xff]   ;;  %v8886_v63 = vld [vmem:[%s10630_s3 + $0x38] sm:$0xff]  }
 0xe13   :  { %8623 = vmatprep.subr.bf16.mxu1 %v9146_v0  ;;  %8631 = vmatprep.subr.bf16.mxu0 %v9146_v0 }
 0xe15   :  { %8612 = vmatmul.mubr.msk.bf16.vlgmr.msra.gmra.mxu1 %vm44_vm2, %v6124_v62  ;;  %8620 = vmatmul.mubr.msk.bf16.vlgmr.msra.gmra.mxu0 %vm44_vm2, %v6124_v62 }
 0xe16   :  { %8624 = vmatpush3.bf16.msra.mxu1 %v8876_v52  ;;  %8627 = vmatprep.mubr.msk.bf16.mxu1 %vm9147_vm0, %v9146_v0  ;;  %v8887_v52 = vld [vmem:[%s10630_s3 + $0x30] sm:$0xff]  }
 0xe17   :  { %8625 = vmatprep.subr.bf16.mxu1 %v9146_v0  ;;  %8635 = vmatprep.mubr.msk.bf16.mxu0 %vm9147_vm0, %v9146_v0 }
 0xe18   :  { %8632 = vmatpush3.bf16.msra.mxu0 %v8878_v54  ;;  %v8889_v54 = vld [vmem:[%s10632_s5] sm:$0xff]  }
 0xe19   :  { %8633 = vmatprep.subr.bf16.mxu0 %v9146_v0 }
 0xe1a   :  { %8626 = vmatpush3.bf16.msra.mxu1 %v8877_v53  ;;  %v8888_v53 = vld [vmem:[%s10632_s5 + $0x8] sm:$0xff]  }
 0xe1b   :  { %8639 = vmatprep.subr.bf16.mxu1 %v9146_v0 }
 0xe1c   :  { %8634 = vmatpush3.bf16.msra.mxu0 %v8880_v1  ;;  %v6515_v1 = vld [vmem:[#allocation3 + $0xe] sm:$0x3] }
 0xe1d   :  { %8628 = vmatmul.mubr.msk.bf16.vlgmr.msra.gmra.mxu1 %vm44_vm2, %v6124_v62  ;;  %8647 = vmatprep.subr.bf16.mxu0 %v9146_v0 }
 0xe1e   :  { %8643 = vmatprep.mubr.msk.bf16.mxu1 %vm9147_vm0, %v9146_v0  ;;  %8640 = vmatpush3.bf16.msra.mxu1 %v8879_v55 }
 0xe1f   :  { %8641 = vmatprep.subr.bf16.mxu1 %v9146_v0 }
 0xe22   :  { %8642 = vmatpush3.bf16.msra.mxu1 %v8881_v2 }
 0xe23   :  { %8655 = vmatprep.subr.bf16.mxu1 %v9146_v0 }
 0xecd   :  { %v6185_v4 = vpop.f32.mrf.mxu1  ;;  %v6244_v7 = vpop.f32.mrf.mxu0 }
 0xece   :  { %v6186_v9 = vadd.f32 %v10561_v3, %v6185_v4  ;;  %v6250_v10 = vadd.f32 %v6244_v7, %v6193_v5 }
 0xecf   :  { %v8597_v12 = vpop.f32.mrf.mxu1  ;;  %v8605_v56 = vpop.f32.mrf.mxu0 }
 0xed0   :  { %7476 = vst.msk [vmem:[%s10634_s7 + $0xa] sm:$0x3] %vm4581_vm3, %v6186_v9  ;;  %v6425_v57 = vsub.f32 0.0, %v6250_v10 }
 0xed1   :  { %v6188_v13 = vpop.f32.mrf.mxu1  ;;  %v6247_v16 = vpop.f32.mrf.mxu0 }
 0xed2   :  { %v6426_v17 = vmul.f32 1.442695, %v6425_v57  ;;  %v6573_v16 = vld [vmem:[#allocation3 + $0x1e] sm:$0x3] }
 0xed3   :  { %v8598_v18 = vpop.f32.mrf.mxu1  ;;  %v8606_v19 = vpop.f32.mrf.mxu0 }
 0xed4   :  { %9114 = vpow2.f32 %v6426_v17 }
 0xed5   :  { %v6302_v8 = vpop.f32.mrf.mxu1  ;;  %v6360_v21 = vpop.f32.mrf.mxu0 }
 0xed6   :  { %v6308_v22 = vadd.f32 %v6302_v8, %v6251_v20  ;;  %v6366_v39 = vadd.f32 %v6360_v21, %v6309_v38 }
 0xed7   :  { %v8613_v23 = vpop.f32.mrf.mxu1  ;;  %v8621_v11 = vpop.f32.mrf.mxu0 }
 0xed8   :  { %v6430_v14 = vsub.f32 0.0, %v6308_v22 }
 0xed9   :  { %v6305_v24 = vpop.f32.mrf.mxu1  ;;  %v6363_v15 = vpop.f32.mrf.mxu0 }
 0xeda   :  { %v6431_v25 = vmul.f32 1.442695, %v6430_v14  ;;  %v6689_v15 = vld [vmem:[#allocation3 + $0x3e] sm:$0x3] }
 0xedb   :  { %v8614_v26 = vpop.f32.mrf.mxu1  ;;  %v8622_v27 = vpop.f32.mrf.mxu0 }
 0xedc   :  { %9116 = vpow2.f32 %v6431_v25 }
 0xedd   :  { %v6418_v29 = vpop.f32.mrf.mxu1 }
 0xede   :  { %v6424_v30 = vadd.f32 %v6418_v29, %v6367_v28 }
 0xedf   :  { %v8629_v31 = vpop.f32.mrf.mxu1 }
 0xee0   :  { %v6436_v32 = vsub.f32 0.0, %v6424_v30 }
 0xee1   :  { %v6421_v33 = vpop.f32.mrf.mxu1  ;;  %v9115_v34 = vpop.eup %9114 }
 0xee2   :  { %v6437_v36 = vmul.f32 1.442695, %v6436_v32  ;;  %v6428_v37 = vadd.f32 1.0, %v9115_v34  ;;  %v6631_v34 = vld [vmem:[#allocation3 + $0x2e] sm:$0x3] }
 0xee3   :  { %v8630_v35 = vpop.f32.mrf.mxu1 }
 0xee4   :  { %9118 = vpow2.f32 %v6437_v36 }
 0xee5   :  { %9120 = vrcp.f32 %v6428_v37 }
 0xee6   :  { %9122 = vtanh.f32 %v6366_v39 }
 0xee9   :  { %v9117_v40 = vpop.eup %9116 }
 0xeea   :  { %v6433_v41 = vadd.f32 1.0, %v9117_v40 }
 0xeec   :  { %9124 = vrcp.f32 %v6433_v41 }
 0xef1   :  { %v9119_v42 = vpop.eup %9118 }
 0xef2   :  { %v9121_v43 = vpop.eup %9120  ;;  %v6439_v46 = vadd.f32 1.0, %v9119_v42 }
 0xef3   :  { %v9123_v44 = vpop.eup %9122 }
 0xef4   :  { %v6442_v48 = vmul.f32 %v9123_v44, %v9121_v43  ;;  %9126 = vrcp.f32 %v6439_v46 }
 0xef9   :  { %v9125_v45 = vpop.eup %9124 }
 0xefa   :  { %v6441_v47 = vmul.f32 %v9125_v45, %v10500_v50  ;;  %v8884_v50 = vld [vmem:[%s10630_s3 + $0x10] sm:$0xff]  }
 0xefc   :  { %v10569_v49 = vadd.f32 %v6442_v48, %v6441_v47 }
 0xefe   :  { %9128 = vtanh.f32 %v10569_v49 }
 0xf01   :  { %v9127_v51 = vpop.eup %9126 }
 0xf0b   :  { %v9129_v58 = vpop.eup %9128 }
 0xf0c   :  { %v6445_v59 = vmul.f32 %v9129_v58, %v9127_v51 }
 0xf0e   :  { %v6446_v62 = vpack.c.bf16 %v6445_v59, %v6445_v59 }
 0xf10   :  { %8636 = vmatmul.mubr.msk.bf16.vlgmr.msra.gmra.mxu0 %vm44_vm2, %v6446_v62  ;;  %8644 = vmatmul.mubr.msk.bf16.vlgmr.msra.gmra.mxu1 %vm44_vm2, %v6446_v62 }
 0xf11   :  { %8648 = vmatpush3.bf16.msra.mxu0 %v8882_v60  ;;  %8656 = vmatpush3.bf16.msra.mxu1 %v8883_v61 }
 0xf12   :  { %8649 = vmatprep.subr.bf16.mxu0 %v9146_v0  ;;  %8657 = vmatprep.subr.bf16.mxu1 %v9146_v0 }
 0xf13   :  { %8651 = vmatprep.mubr.msk.bf16.mxu0 %vm9147_vm0, %v9146_v0  ;;  %8659 = vmatprep.mubr.msk.bf16.mxu1 %vm9147_vm0, %v9146_v0 }
 0xf15   :  { %8650 = vmatpush3.bf16.msra.mxu0 %v8884_v50  ;;  %8658 = vmatpush3.bf16.msra.mxu1 %v8885_v6 }
 0xf16   :  { %8663 = vmatprep.subr.bf16.mxu0 %v9146_v0  ;;  %8671 = vmatprep.subr.bf16.mxu1 %v9146_v0 }
 0xf18   :  { %8652 = vmatmul.mubr.msk.bf16.vlgmr.msra.gmra.mxu0 %vm44_vm2, %v6446_v62  ;;  %8660 = vmatmul.mubr.msk.bf16.vlgmr.msra.gmra.mxu1 %vm44_vm2, %v6446_v62 }
 0xf19   :  { %8664 = vmatpush3.bf16.msra.mxu0 %v8886_v63  ;;  %8667 = vmatprep.mubr.msk.bf16.mxu0 %vm9147_vm0, %v9146_v0 }
 0xf1a   :  { %8665 = vmatprep.subr.bf16.mxu0 %v9146_v0  ;;  %8675 = vmatprep.mubr.msk.bf16.mxu1 %vm9147_vm0, %v9146_v0 }
 0xf1b   :  { %8672 = vmatpush3.bf16.msra.mxu1 %v8888_v53 }
 0xf1c   :  { %8673 = vmatprep.subr.bf16.mxu1 %v9146_v0 }
 0xf1d   :  { %8666 = vmatpush3.bf16.msra.mxu0 %v8887_v52 }
 0xf1f   :  { %8674 = vmatpush3.bf16.msra.mxu1 %v8889_v54 }
 0xf20   :  { %8668 = vmatmul.mubr.msk.bf16.vlgmr.msra.gmra.mxu0 %vm44_vm2, %v6446_v62 }
 0xfd0   :  { %v6507_v55 = vpop.f32.mrf.mxu0  ;;  %v6566_v2 = vpop.f32.mrf.mxu1 }
 0xfd1   :  { %v6508_v4 = vadd.f32 %v10561_v3, %v6507_v55  ;;  %v6572_v5 = vadd.f32 %v6566_v2, %v6515_v1 }
 0xfd2   :  { %v8637_v7 = vpop.f32.mrf.mxu0  ;;  %v8645_v9 = vpop.f32.mrf.mxu1 }
 0xfd3   :  { %7505 = vst.msk [vmem:[%s10634_s7 + $0xc] sm:$0x3] %vm4581_vm3, %v6508_v4  ;;  %v6747_v10 = vsub.f32 0.0, %v6572_v5 }
 0xfd4   :  { %v6510_v12 = vpop.f32.mrf.mxu0  ;;  %v6569_v56 = vpop.f32.mrf.mxu1 }
 0xfd5   :  { %v6748_v57 = vmul.f32 1.442695, %v6747_v10 }
 0xfd6   :  { %v8638_v13 = vpop.f32.mrf.mxu0  ;;  %v8646_v0 = vpop.f32.mrf.mxu1 }
 0xfd7   :  { %9130 = vpow2.f32 %v6748_v57 }
 0xfd8   :  { %v6624_v17 = vpop.f32.mrf.mxu0  ;;  %v6682_v18 = vpop.f32.mrf.mxu1 }
 0xfd9   :  { %v6630_v19 = vadd.f32 %v6624_v17, %v6573_v16  ;;  %v6688_v35 = vadd.f32 %v6682_v18, %v6631_v34 }
 0xfda   :  { %v8653_v20 = vpop.f32.mrf.mxu0  ;;  %v8661_v8 = vpop.f32.mrf.mxu1 }
 0xfdb   :  { %v6752_v21 = vsub.f32 0.0, %v6630_v19 }
 0xfdc   :  { %v6627_v22 = vpop.f32.mrf.mxu0  ;;  %v6685_v23 = vpop.f32.mrf.mxu1 }
 0xfdd   :  { %v6753_v11 = vmul.f32 1.442695, %v6752_v21 }
 0xfde   :  { %v8654_v14 = vpop.f32.mrf.mxu0  ;;  %v8662_v24 = vpop.f32.mrf.mxu1 }
 0xfdf   :  { %9132 = vpow2.f32 %v6753_v11 }
 0xfe0   :  { %v6740_v25 = vpop.f32.mrf.mxu0 }
 0xfe1   :  { %v6746_v26 = vadd.f32 %v6740_v25, %v6689_v15 }
 0xfe2   :  { %v8669_v27 = vpop.f32.mrf.mxu0 }
 0xfe3   :  { %v6758_v28 = vsub.f32 0.0, %v6746_v26 }
 0xfe4   :  { %v6743_v29 = vpop.f32.mrf.mxu0  ;;  %v9131_v30 = vpop.eup %9130 }
 0xfe5   :  { %v6759_v32 = vmul.f32 1.442695, %v6758_v28  ;;  %v6750_v33 = vadd.f32 1.0, %v9131_v30 }
 0xfe6   :  { %v8670_v31 = vpop.f32.mrf.mxu0 }
 0xfe7   :  { %9134 = vpow2.f32 %v6759_v32 }
 0xfe8   :  { %9136 = vrcp.f32 %v6750_v33 }
 0xfe9   :  { %9138 = vtanh.f32 %v6688_v35 }
 0xfec   :  { %v9133_v36 = vpop.eup %9132 }
 0xfed   :  { %v6755_v37 = vadd.f32 1.0, %v9133_v36 }
 0xfef   :  { %9140 = vrcp.f32 %v6755_v37 }
 0xff4   :  { %v9135_v38 = vpop.eup %9134 }
 0xff5   :  { %v9137_v39 = vpop.eup %9136  ;;  %v6761_v42 = vadd.f32 1.0, %v9135_v38 }
 0xff6   :  { %v9139_v40 = vpop.eup %9138 }
 0xff7   :  { %v6764_v44 = vmul.f32 %v9139_v40, %v9137_v39  ;;  %9142 = vrcp.f32 %v6761_v42 }
 0xffc   :  { %v9141_v41 = vpop.eup %9140 }
 0xffd   :  { %v6763_v43 = vmul.f32 %v9141_v41, %v10569_v49 }
 0xfff   :  { %v6765_v45 = vadd.f32 %v6764_v44, %v6763_v43 }
0x1001   :  { %9144 = vtanh.f32 %v6765_v45 }
0x1004   :  { %v9143_v46 = vpop.eup %9142 }
0x100e   :  { %v9145_v47 = vpop.eup %9144 }
0x100f   :  { %v6767_v48 = vmul.f32 %v9145_v47, %v9143_v46 }
0x1011   :  { %v6768_v51 = vpack.c.bf16 %v6767_v48, %v6767_v48 }
0x1013   :  { %8676 = vmatmul.mubr.msk.bf16.vlgmr.msra.gmra.mxu1 %vm44_vm2, %v6768_v51 }
0x10d3   :  { %v6829_v58 = vpop.f32.mrf.mxu1 }
0x10d4   :  { %v6830_v59 = vadd.f32 %v10561_v3, %v6829_v58 }
0x10d5   :  { %v8677_v60 = vpop.f32.mrf.mxu1 }
0x10d6   :  { %7534 = vst.msk [vmem:[%s10634_s7 + $0xe] sm:$0x3] %vm4581_vm3, %v6830_v59 }
0x10d7   :  { %v6832_v49 = vpop.f32.mrf.mxu1 }
0x10d9   :  { %v8678_v61 = vpop.f32.mrf.mxu1 }

</bundles_post_ra>
